<compile_context>
chip_gen: v7x
topology: tpu7x:2x2x1
jax: 0.10.0
libtpu: 0.0.40
codegen_flags: <defaults>
</compile_context>

<pallas_src>
import functools

import jax
import jax.numpy as jnp
from jax.experimental import pallas as pl
from jax.experimental.pallas import tpu as pltpu


def _round_up(n, m):
    return ((n + m - 1) // m) * m


# -----------------------------------------------------------------------------
# Fused per-sample conv-layer kernel (one grid step == one batch sample).
#   refs = (a_ref, w_ref, bias_ref, [gb_ref], [w5_ref], o_ref)
#     a_ref : (1, Mp, K)  bf16  im2col rows of one sample (padded rows are zero)
#     w_ref : (K, OC)     bf16  full weight matrix (grid-invariant block)
#     bias  : (1, OC)     f32
#     gb    : (2,)        f32 in SMEM -> [gamma, beta] of InstanceNorm3d(1)
#     w5    : (Mp, OC)    f32   cropped final-conv weights (zero on padded rows)
#     o_ref : (1, Mp, OC)       or (1, 8, 128) f32 for the fused final scalar
# -----------------------------------------------------------------------------
def _layer_kernel(*refs, apply_in, apply_leaky_out, fuse_final, apply_sigmoid,
                  m_valid, eps, leaky_slope):
    a_ref, w_ref, bias_ref = refs[0], refs[1], refs[2]
    idx = 3
    gb_ref = None
    if apply_in:
        gb_ref = refs[idx]
        idx += 1
    w5_ref = None
    if fuse_final:
        w5_ref = refs[idx]
        idx += 1
    o_ref = refs[idx]

    # Whole per-sample matmul in one shot; W stays VMEM-resident across samples.
    out = jnp.dot(a_ref[0], w_ref[...], preferred_element_type=jnp.float32)
    out = out + bias_ref[...]                                  # (Mp, OC) f32

    if apply_in:
        # InstanceNorm3d(1): per-sample stats over ALL of (C,H,W) == the valid
        # (M, OC) region, biased variance, single masked pass (sum + sum-sq).
        mp, oc = out.shape
        rows = jax.lax.broadcasted_iota(jnp.int32, (mp, oc), 0)
        masked = jnp.where(rows < m_valid, out, 0.0)
        cnt = float(m_valid * oc)
        mean = jnp.sum(masked) / cnt
        var = jnp.maximum(jnp.sum(masked * masked) / cnt - mean * mean, 0.0)
        inv = jax.lax.rsqrt(var + eps)
        out = (out - mean) * inv * gb_ref[0] + gb_ref[1]

    if apply_leaky_out:
        # The *next* layer's LeakyReLU, applied once in f32 here (commutes with
        # the next conv's zero padding since LeakyReLU(0) == 0).
        out = jnp.where(out > 0, out, leaky_slope * out)

    if fuse_final:
        # Final Conv(512 -> 1, k=4, s=2, p=1) on a 3x3 map == elementwise mul
        # with the cropped 3x3 window of w5 + full reduce; padded rows of `out`
        # contribute nothing because w5_ref is zero there.
        val = jnp.sum(out * w5_ref[...])
        res = jnp.broadcast_to(val, o_ref.shape[1:])
        if apply_sigmoid:
            res = jax.nn.sigmoid(res)
        o_ref[0] = res.astype(o_ref.dtype)
    else:
        if apply_sigmoid:
            out = jax.nn.sigmoid(out)
        o_ref[0] = out.astype(o_ref.dtype)


# -----------------------------------------------------------------------------
# im2col: (N,H,W,C) -> (N, round_up(oh*ow, 16), kh*kw*C) bf16, padded rows zero.
# Row round-up (full bf16 vreg packing) and the bf16 cast are fused into the gather.
# -----------------------------------------------------------------------------
def _im2col(x_nhwc, kh, kw, stride, pad, dtype):
    if pad > 0:
        x_nhwc = jnp.pad(x_nhwc, ((0, 0), (pad, pad), (pad, pad), (0, 0)))
    N, H, W, C = x_nhwc.shape
    oh = (H - kh) // stride + 1
    ow = (W - kw) // stride + 1
    patches = [x_nhwc[:, i:i + stride * oh:stride, j:j + stride * ow:stride, :]
               for i in range(kh) for j in range(kw)]
    p = jnp.stack(patches, axis=3)                      # (N, oh, ow, kh*kw, C)
    p = p.reshape(N, oh * ow, kh * kw * C).astype(dtype)
    m, mp = oh * ow, _round_up(oh * ow, 16)
    if mp != m:
        p = jnp.pad(p, ((0, 0), (0, mp - m), (0, 0)))
    return p, oh, ow


# -----------------------------------------------------------------------------
# One fused conv layer: Conv (+bias) [+InstanceNorm] [+LeakyReLU epilogue]
# [+fused final 1-channel conv + Sigmoid], as a single pallas_call over batch.
# -----------------------------------------------------------------------------
def conv_layer(x_nhwc, w_oihw, bias=None, gamma_beta=None, w5_fused=None, *,
               stride, pad, apply_in=False, apply_leaky_out=False,
               apply_sigmoid=False, leaky_slope=0.2, eps=1e-3,
               out_dtype=jnp.bfloat16):
    OC, IC, KH, KW = w_oihw.shape
    N = x_nhwc.shape[0]

    a, oh, ow = _im2col(x_nhwc, KH, KW, stride, pad, jnp.bfloat16)
    _, Mp, K = a.shape
    M = oh * ow

    # Weight -> (KH*KW*IC, OC), ordering matches the (i, j, c) patch layout.
    wmat = jnp.transpose(w_oihw, (2, 3, 1, 0)).reshape(K, OC).astype(jnp.bfloat16)
    bias_arr = (jnp.zeros((OC,), jnp.float32) if bias is None
                else bias.astype(jnp.float32)).reshape(1, OC)

    inputs = [a, wmat, bias_arr]
    in_specs = [
        pl.BlockSpec((1, Mp, K), lambda b: (b, 0, 0)),   # per-sample A slab
        pl.BlockSpec((K, OC), lambda b: (0, 0)),         # grid-invariant weights
        pl.BlockSpec((1, OC), lambda b: (0, 0)),
    ]
    if apply_in:
        inputs.append(gamma_beta.astype(jnp.float32))    # (2,) scalars -> SMEM
        in_specs.append(pl.BlockSpec(memory_space=pltpu.MemorySpace.SMEM))

    fuse_final = w5_fused is not None
    if fuse_final:
        assert w5_fused.shape == (M, OC)
        w5p = jnp.pad(w5_fused.astype(jnp.float32), ((0, Mp - M), (0, 0)))
        inputs.append(w5p)
        in_specs.append(pl.BlockSpec((Mp, OC), lambda b: (0, 0)))
        out_shape = jax.ShapeDtypeStruct((N, 8, 128), jnp.float32)   # lane-dense
        out_spec = pl.BlockSpec((1, 8, 128), lambda b: (b, 0, 0))
    else:
        out_shape = jax.ShapeDtypeStruct((N, Mp, OC), out_dtype)
        out_spec = pl.BlockSpec((1, Mp, OC), lambda b: (b, 0, 0))

    kern = functools.partial(
        _layer_kernel, apply_in=apply_in, apply_leaky_out=apply_leaky_out,
        fuse_final=fuse_final, apply_sigmoid=apply_sigmoid, m_valid=M, eps=eps,
        leaky_slope=leaky_slope)

    out = pl.pallas_call(
        kern,
        out_shape=out_shape,
        grid_spec=pltpu.PrefetchScalarGridSpec(
            num_scalar_prefetch=0,
            grid=(N,),
            in_specs=in_specs,
            out_specs=out_spec),
        compiler_params=pltpu.CompilerParams(
            dimension_semantics=("parallel",)),
    )(*inputs)

    if fuse_final:
        return out[:, 0, 0].reshape(N, 1)
    if Mp != M:
        out = out[:, :M, :]
    return out.reshape(N, oh, ow, OC)


# -----------------------------------------------------------------------------
# Full Discriminator forward (checkMode=0).
# -----------------------------------------------------------------------------
def discriminator_forward(x_nchw, params):
    x = jnp.transpose(x_nchw, (0, 2, 3, 1))          # NCHW -> NHWC (C on lanes)
    N = x.shape[0]

    # Conv2d(input_nc, 64, k=4, s=2, p=0, bias=True); epilogue = Block2's LeakyReLU.
    x = conv_layer(x, params["w1"], bias=params["b1"], stride=2, pad=0,
                   apply_leaky_out=True)
    # Block(64,128): Conv(no bias) -> InstanceNorm; epilogue = Block3's LeakyReLU.
    x = conv_layer(x, params["w2"], gamma_beta=params["gb2"], stride=2, pad=1,
                   apply_in=True, apply_leaky_out=True)
    # Block(128,256)
    x = conv_layer(x, params["w3"], gamma_beta=params["gb3"], stride=2, pad=1,
                   apply_in=True, apply_leaky_out=True)

    # Block(256,512) + Block(512,1,bn=False) + Sigmoid fused into ONE kernel when
    # the Block(256,512) output is 3x3 (only the centered 3x3 window of w5
    # contributes to the single 1x1 output of the final stride-2 padded conv).
    h4 = (x.shape[1] + 2 - 4) // 2 + 1
    w4 = (x.shape[2] + 2 - 4) // 2 + 1
    if h4 == 3 and w4 == 3:
        w5c = jnp.transpose(params["w5"][0, :, 1:, 1:], (1, 2, 0)).reshape(9, -1)
        out = conv_layer(x, params["w4"], gamma_beta=params["gb4"],
                         w5_fused=w5c, stride=2, pad=1, apply_in=True,
                         apply_leaky_out=True, apply_sigmoid=True)
        return out                                    # (N, 1) == Flatten output

    # Generic fallback for other spatial sizes (layer 5 as its own kernel;
    # its LeakyReLU was already applied in layer 4's epilogue).
    x = conv_layer(x, params["w4"], gamma_beta=params["gb4"], stride=2, pad=1,
                   apply_in=True, apply_leaky_out=True)
    x = conv_layer(x, params["w5"], stride=2, pad=1, apply_sigmoid=True,
                   out_dtype=jnp.float32)
    return x.reshape(N, -1)


def init_params(key, input_nc):
    ks = jax.random.split(key, 6)
    std = 0.05
    gb = jnp.array([1.0, 0.0], jnp.float32)   # InstanceNorm3d(1) default affine
    return {
        "w1": std * jax.random.normal(ks[0], (64, input_nc, 4, 4), jnp.float32),
        "b1": std * jax.random.normal(ks[1], (64,), jnp.float32),
        "w2": std * jax.random.normal(ks[2], (128, 64, 4, 4), jnp.float32),
        "w3": std * jax.random.normal(ks[3], (256, 128, 4, 4), jnp.float32),
        "w4": std * jax.random.normal(ks[4], (512, 256, 4, 4), jnp.float32),
        "w5": std * jax.random.normal(ks[5], (1, 512, 4, 4), jnp.float32),
        "gb2": gb, "gb3": gb, "gb4": gb,
    }


if __name__ == "__main__":
    key = jax.random.PRNGKey(0)
    k_in, k_par = jax.random.split(key)

    # spatial must survive 5 stride-2 convs (first one unpadded) -> 64.
    batch, input_nc, spatial = 2, 4, 64
    x = jax.random.normal(k_in, (batch, input_nc, spatial, spatial), jnp.float32)
    params = init_params(k_par, input_nc)

    fwd = jax.jit(discriminator_forward)
    out = fwd(x, params)
    out = jax.block_until_ready(out)

    assert out.shape == (batch, 1), out.shape
    assert bool(jnp.all(jnp.isfinite(out)))
    assert bool(jnp.all((out >= 0.0) & (out <= 1.0)))  # sigmoid range
    print("KERNEL_OK")
</pallas_src>

<mosaic_0001>
module attributes {stable_mosaic.version = 11 : i64} {
  func.func @_layer_kernel(%arg0: i32, %arg1: memref<1x976x64xbf16, #tpu.memory_space<vmem>>, %arg2: memref<64x64xbf16, #tpu.memory_space<vmem>>, %arg3: memref<1x64xf32, #tpu.memory_space<vmem>>, %arg4: memref<1x976x64xbf16, #tpu.memory_space<vmem>>) attributes {dimension_semantics = [#tpu.dimension_semantics<parallel>], iteration_bounds = array<i64: 2>, scalar_prefetch = 0 : i64, scratch_operands = 0 : i64, tpu.core_type = #tpu.core_type<tc>, window_params = [{transform_indices = @transform_0, window_bounds = array<i64: 1, 976, 64>}, {pipeline_mode = #tpu.pipeline_mode<synchronous>, transform_indices = @transform_1, window_bounds = array<i64: 64, 64>}, {pipeline_mode = #tpu.pipeline_mode<synchronous>, transform_indices = @transform_2, window_bounds = array<i64: 1, 64>}, {transform_indices = @transform_3, window_bounds = array<i64: 1, 976, 64>}]} {
    %c0 = arith.constant 0 : index
    %c0_0 = arith.constant 0 : index
    %c0_1 = arith.constant 0 : index
    %0 = vector.load %arg1[%c0, %c0_0, %c0_1] : memref<1x976x64xbf16, #tpu.memory_space<vmem>>, vector<1x976x64xbf16>
    %1 = vector.shape_cast %0 : vector<1x976x64xbf16> to vector<976x64xbf16>
    %c0_2 = arith.constant 0 : index
    %c0_3 = arith.constant 0 : index
    %2 = vector.load %arg2[%c0_2, %c0_3] : memref<64x64xbf16, #tpu.memory_space<vmem>>, vector<64x64xbf16>
    %cst = arith.constant dense<0.000000e+00> : vector<976x64xf32>
    %3 = tpu.matmul %1, %2, %cst {dimension_numbers = #tpu.dot_dimension_numbers<[1], [0], [0], [1], [0, 0, 1, 1], [], []>} : vector<976x64xbf16>, vector<64x64xbf16>, vector<976x64xf32> -> vector<976x64xf32>
    %c0_4 = arith.constant 0 : index
    %c0_5 = arith.constant 0 : index
    %4 = vector.load %arg3[%c0_4, %c0_5] : memref<1x64xf32, #tpu.memory_space<vmem>>, vector<1x64xf32>
    %5 = vector.broadcast %4 : vector<1x64xf32> to vector<976x64xf32>
    %6 = arith.addf %3, %5 : vector<976x64xf32>
    %cst_6 = arith.constant 0.000000e+00 : f32
    %7 = vector.broadcast %cst_6 : f32 to vector<976x64xf32>
    %8 = arith.cmpf ogt, %6, %7 : vector<976x64xf32>
    %cst_7 = arith.constant 2.000000e-01 : f32
    %9 = vector.broadcast %cst_7 : f32 to vector<976x64xf32>
    %10 = arith.mulf %9, %6 : vector<976x64xf32>
    %11 = arith.select %8, %6, %10 : vector<976x64xi1>, vector<976x64xf32>
    %12 = arith.truncf %11 : vector<976x64xf32> to vector<976x64xbf16>
    %c0_8 = arith.constant 0 : index
    %c0_9 = arith.constant 0 : index
    %c0_10 = arith.constant 0 : index
    %13 = vector.load %arg4[%c0_8, %c0_9, %c0_10] : memref<1x976x64xbf16, #tpu.memory_space<vmem>>, vector<1x976x64xbf16>
    %14 = vector.shape_cast %13 : vector<1x976x64xbf16> to vector<976x64xbf16>
    %15 = vector.shape_cast %12 : vector<976x64xbf16> to vector<1x976x64xbf16>
    tpu.vector_store %arg4[%c0_8, %c0_9, %c0_10], %15 {strides = array<i32>} : memref<1x976x64xbf16, #tpu.memory_space<vmem>>, vector<1x976x64xbf16>,
    return
  }
  func.func @transform_0(%arg0: i32) -> (i32, i32, i32) {
    %c0_i32 = arith.constant 0 : i32
    %c0_i32_0 = arith.constant 0 : i32
    %c0_i32_1 = arith.constant 0 : i32
    return %arg0, %c0_i32, %c0_i32_0 : i32, i32, i32
  }
  func.func @transform_1(%arg0: i32) -> (i32, i32) {
    %c0_i32 = arith.constant 0 : i32
    %c0_i32_0 = arith.constant 0 : i32
    %c0_i32_1 = arith.constant 0 : i32
    return %c0_i32, %c0_i32_0 : i32, i32
  }
  func.func @transform_2(%arg0: i32) -> (i32, i32) {
    %c0_i32 = arith.constant 0 : i32
    %c0_i32_0 = arith.constant 0 : i32
    %c0_i32_1 = arith.constant 0 : i32
    return %c0_i32, %c0_i32_0 : i32, i32
  }
  func.func @transform_3(%arg0: i32) -> (i32, i32, i32) {
    %c0_i32 = arith.constant 0 : i32
    %c0_i32_0 = arith.constant 0 : i32
    %c0_i32_1 = arith.constant 0 : i32
    return %arg0, %c0_i32, %c0_i32_0 : i32, i32, i32
  }
}

module attributes {stable_mosaic.version = 11 : i64} {
  func.func @_layer_kernel(%arg0: i32, %arg1: memref<1x240x1024xbf16, #tpu.memory_space<vmem>>, %arg2: memref<1024x128xbf16, #tpu.memory_space<vmem>>, %arg3: memref<1x128xf32, #tpu.memory_space<vmem>>, %arg4: memref<2xf32, #tpu.memory_space<smem>>, %arg5: memref<1x240x128xbf16, #tpu.memory_space<vmem>>) attributes {dimension_semantics = [#tpu.dimension_semantics<parallel>], iteration_bounds = array<i64: 2>, scalar_prefetch = 0 : i64, scratch_operands = 0 : i64, tpu.core_type = #tpu.core_type<tc>, window_params = [{transform_indices = @transform_0, window_bounds = array<i64: 1, 240, 1024>}, {pipeline_mode = #tpu.pipeline_mode<synchronous>, transform_indices = @transform_1, window_bounds = array<i64: 1024, 128>}, {pipeline_mode = #tpu.pipeline_mode<synchronous>, transform_indices = @transform_2, window_bounds = array<i64: 1, 128>}, {transform_indices = @transform_3, window_bounds = array<i64: 2>}, {transform_indices = @transform_4, window_bounds = array<i64: 1, 240, 128>}]} {
    %c0 = arith.constant 0 : index
    %c0_0 = arith.constant 0 : index
    %c0_1 = arith.constant 0 : index
    %0 = vector.load %arg1[%c0, %c0_0, %c0_1] : memref<1x240x1024xbf16, #tpu.memory_space<vmem>>, vector<1x240x1024xbf16>
    %1 = vector.shape_cast %0 : vector<1x240x1024xbf16> to vector<240x1024xbf16>
    %c0_2 = arith.constant 0 : index
    %c0_3 = arith.constant 0 : index
    %2 = vector.load %arg2[%c0_2, %c0_3] : memref<1024x128xbf16, #tpu.memory_space<vmem>>, vector<1024x128xbf16>
    %cst = arith.constant dense<0.000000e+00> : vector<240x128xf32>
    %3 = tpu.matmul %1, %2, %cst {dimension_numbers = #tpu.dot_dimension_numbers<[1], [0], [0], [1], [0, 0, 1, 1], [], []>} : vector<240x1024xbf16>, vector<1024x128xbf16>, vector<240x128xf32> -> vector<240x128xf32>
    %c0_4 = arith.constant 0 : index
    %c0_5 = arith.constant 0 : index
    %4 = vector.load %arg3[%c0_4, %c0_5] : memref<1x128xf32, #tpu.memory_space<vmem>>, vector<1x128xf32>
    %5 = vector.broadcast %4 : vector<1x128xf32> to vector<240x128xf32>
    %6 = arith.addf %3, %5 : vector<240x128xf32>
    %7 = tpu.iota {dimensions = array<i32: 0>} : vector<240x128xi32>
    %c225_i32 = arith.constant 225 : i32
    %8 = vector.broadcast %c225_i32 : i32 to vector<240x128xi32>
    %9 = arith.cmpi slt, %7, %8 : vector<240x128xi32>
    %cst_6 = arith.constant 0.000000e+00 : f32
    %10 = vector.broadcast %cst_6 : f32 to vector<240x128xf32>
    %11 = arith.select %9, %6, %10 : vector<240x128xi1>, vector<240x128xf32>
    %12 = vector.shape_cast %11 : vector<240x128xf32> to vector<1x240x128xf32>
    %cst_7 = arith.constant dense<0.000000e+00> : vector<1xf32>
    %13 = vector.multi_reduction <add>, %12, %cst_7 [1, 2] : vector<1x240x128xf32> to vector<1xf32>
    %14 = vector.shape_cast %13 : vector<1xf32> to vector<1x1x1xf32>
    %15 = vector.extract %14[0, 0, 0] : f32 from vector<1x1x1xf32>
    %cst_8 = arith.constant 2.880000e+04 : f32
    %16 = arith.divf %15, %cst_8 : f32
    %17 = arith.mulf %11, %11 : vector<240x128xf32>
    %18 = vector.shape_cast %17 : vector<240x128xf32> to vector<1x240x128xf32>
    %cst_9 = arith.constant dense<0.000000e+00> : vector<1xf32>
    %19 = vector.multi_reduction <add>, %18, %cst_9 [1, 2] : vector<1x240x128xf32> to vector<1xf32>
    %20 = vector.shape_cast %19 : vector<1xf32> to vector<1x1x1xf32>
    %21 = vector.extract %20[0, 0, 0] : f32 from vector<1x1x1xf32>
    %cst_10 = arith.constant 2.880000e+04 : f32
    %22 = arith.divf %21, %cst_10 : f32
    %23 = arith.mulf %16, %16 : f32
    %24 = arith.subf %22, %23 : f32
    %cst_11 = arith.constant 0.000000e+00 : f32
    %25 = arith.maximumf %24, %cst_11 : f32
    %cst_12 = arith.constant 1.000000e-03 : f32
    %26 = arith.addf %25, %cst_12 : f32
    %27 = math.rsqrt %26 : f32
    %28 = vector.broadcast %16 : f32 to vector<240x128xf32>
    %29 = arith.subf %6, %28 : vector<240x128xf32>
    %30 = vector.broadcast %27 : f32 to vector<240x128xf32>
    %31 = arith.mulf %29, %30 : vector<240x128xf32>
    %c0_13 = arith.constant 0 : index
    %32 = memref.load %arg4[%c0_13] : memref<2xf32, #tpu.memory_space<smem>>
    %33 = vector.broadcast %32 : f32 to vector<240x128xf32>
    %34 = arith.mulf %31, %33 : vector<240x128xf32>
    %c1 = arith.constant 1 : index
    %35 = memref.load %arg4[%c1] : memref<2xf32, #tpu.memory_space<smem>>
    %36 = vector.broadcast %35 : f32 to vector<240x128xf32>
    %37 = arith.addf %34, %36 : vector<240x128xf32>
    %cst_14 = arith.constant 0.000000e+00 : f32
    %38 = vector.broadcast %cst_14 : f32 to vector<240x128xf32>
    %39 = arith.cmpf ogt, %37, %38 : vector<240x128xf32>
    %cst_15 = arith.constant 2.000000e-01 : f32
    %40 = vector.broadcast %cst_15 : f32 to vector<240x128xf32>
    %41 = arith.mulf %40, %37 : vector<240x128xf32>
    %42 = arith.select %39, %37, %41 : vector<240x128xi1>, vector<240x128xf32>
    %43 = arith.truncf %42 : vector<240x128xf32> to vector<240x128xbf16>
    %c0_16 = arith.constant 0 : index
    %c0_17 = arith.constant 0 : index
    %c0_18 = arith.constant 0 : index
    %44 = vector.load %arg5[%c0_16, %c0_17, %c0_18] : memref<1x240x128xbf16, #tpu.memory_space<vmem>>, vector<1x240x128xbf16>
    %45 = vector.shape_cast %44 : vector<1x240x128xbf16> to vector<240x128xbf16>
    %46 = vector.shape_cast %43 : vector<240x128xbf16> to vector<1x240x128xbf16>
    tpu.vector_store %arg5[%c0_16, %c0_17, %c0_18], %46 {strides = array<i32>} : memref<1x240x128xbf16, #tpu.memory_space<vmem>>, vector<1x240x128xbf16>,
    return
  }
  func.func @transform_0(%arg0: i32) -> (i32, i32, i32) {
    %c0_i32 = arith.constant 0 : i32
    %c0_i32_0 = arith.constant 0 : i32
    %c0_i32_1 = arith.constant 0 : i32
    return %arg0, %c0_i32, %c0_i32_0 : i32, i32, i32
  }
  func.func @transform_1(%arg0: i32) -> (i32, i32) {
    %c0_i32 = arith.constant 0 : i32
    %c0_i32_0 = arith.constant 0 : i32
    %c0_i32_1 = arith.constant 0 : i32
    return %c0_i32, %c0_i32_0 : i32, i32
  }
  func.func @transform_2(%arg0: i32) -> (i32, i32) {
    %c0_i32 = arith.constant 0 : i32
    %c0_i32_0 = arith.constant 0 : i32
    %c0_i32_1 = arith.constant 0 : i32
    return %c0_i32, %c0_i32_0 : i32, i32
  }
  func.func @transform_3(%arg0: i32) -> i32 {
    %c0_i32 = arith.constant 0 : i32
    %c0_i32_0 = arith.constant 0 : i32
    return %c0_i32 : i32
  }
  func.func @transform_4(%arg0: i32) -> (i32, i32, i32) {
    %c0_i32 = arith.constant 0 : i32
    %c0_i32_0 = arith.constant 0 : i32
    %c0_i32_1 = arith.constant 0 : i32
    return %arg0, %c0_i32, %c0_i32_0 : i32, i32, i32
  }
}

module attributes {stable_mosaic.version = 11 : i64} {
  func.func @_layer_kernel(%arg0: i32, %arg1: memref<1x64x2048xbf16, #tpu.memory_space<vmem>>, %arg2: memref<2048x256xbf16, #tpu.memory_space<vmem>>, %arg3: memref<1x256xf32, #tpu.memory_space<vmem>>, %arg4: memref<2xf32, #tpu.memory_space<smem>>, %arg5: memref<1x64x256xbf16, #tpu.memory_space<vmem>>) attributes {dimension_semantics = [#tpu.dimension_semantics<parallel>], iteration_bounds = array<i64: 2>, scalar_prefetch = 0 : i64, scratch_operands = 0 : i64, tpu.core_type = #tpu.core_type<tc>, window_params = [{transform_indices = @transform_0, window_bounds = array<i64: 1, 64, 2048>}, {pipeline_mode = #tpu.pipeline_mode<synchronous>, transform_indices = @transform_1, window_bounds = array<i64: 2048, 256>}, {pipeline_mode = #tpu.pipeline_mode<synchronous>, transform_indices = @transform_2, window_bounds = array<i64: 1, 256>}, {transform_indices = @transform_3, window_bounds = array<i64: 2>}, {transform_indices = @transform_4, window_bounds = array<i64: 1, 64, 256>}]} {
    %c0 = arith.constant 0 : index
    %c0_0 = arith.constant 0 : index
    %c0_1 = arith.constant 0 : index
    %0 = vector.load %arg1[%c0, %c0_0, %c0_1] : memref<1x64x2048xbf16, #tpu.memory_space<vmem>>, vector<1x64x2048xbf16>
    %1 = vector.shape_cast %0 : vector<1x64x2048xbf16> to vector<64x2048xbf16>
    %c0_2 = arith.constant 0 : index
    %c0_3 = arith.constant 0 : index
    %2 = vector.load %arg2[%c0_2, %c0_3] : memref<2048x256xbf16, #tpu.memory_space<vmem>>, vector<2048x256xbf16>
    %cst = arith.constant dense<0.000000e+00> : vector<64x256xf32>
    %3 = tpu.matmul %1, %2, %cst {dimension_numbers = #tpu.dot_dimension_numbers<[1], [0], [0], [1], [0, 0, 1, 1], [], []>} : vector<64x2048xbf16>, vector<2048x256xbf16>, vector<64x256xf32> -> vector<64x256xf32>
    %c0_4 = arith.constant 0 : index
    %c0_5 = arith.constant 0 : index
    %4 = vector.load %arg3[%c0_4, %c0_5] : memref<1x256xf32, #tpu.memory_space<vmem>>, vector<1x256xf32>
    %5 = vector.broadcast %4 : vector<1x256xf32> to vector<64x256xf32>
    %6 = arith.addf %3, %5 : vector<64x256xf32>
    %7 = tpu.iota {dimensions = array<i32: 0>} : vector<64x256xi32>
    %c49_i32 = arith.constant 49 : i32
    %8 = vector.broadcast %c49_i32 : i32 to vector<64x256xi32>
    %9 = arith.cmpi slt, %7, %8 : vector<64x256xi32>
    %cst_6 = arith.constant 0.000000e+00 : f32
    %10 = vector.broadcast %cst_6 : f32 to vector<64x256xf32>
    %11 = arith.select %9, %6, %10 : vector<64x256xi1>, vector<64x256xf32>
    %12 = vector.shape_cast %11 : vector<64x256xf32> to vector<1x64x256xf32>
    %cst_7 = arith.constant dense<0.000000e+00> : vector<1xf32>
    %13 = vector.multi_reduction <add>, %12, %cst_7 [1, 2] : vector<1x64x256xf32> to vector<1xf32>
    %14 = vector.shape_cast %13 : vector<1xf32> to vector<1x1x1xf32>
    %15 = vector.extract %14[0, 0, 0] : f32 from vector<1x1x1xf32>
    %cst_8 = arith.constant 1.254400e+04 : f32
    %16 = arith.divf %15, %cst_8 : f32
    %17 = arith.mulf %11, %11 : vector<64x256xf32>
    %18 = vector.shape_cast %17 : vector<64x256xf32> to vector<1x64x256xf32>
    %cst_9 = arith.constant dense<0.000000e+00> : vector<1xf32>
    %19 = vector.multi_reduction <add>, %18, %cst_9 [1, 2] : vector<1x64x256xf32> to vector<1xf32>
    %20 = vector.shape_cast %19 : vector<1xf32> to vector<1x1x1xf32>
    %21 = vector.extract %20[0, 0, 0] : f32 from vector<1x1x1xf32>
    %cst_10 = arith.constant 1.254400e+04 : f32
    %22 = arith.divf %21, %cst_10 : f32
    %23 = arith.mulf %16, %16 : f32
    %24 = arith.subf %22, %23 : f32
    %cst_11 = arith.constant 0.000000e+00 : f32
    %25 = arith.maximumf %24, %cst_11 : f32
    %cst_12 = arith.constant 1.000000e-03 : f32
    %26 = arith.addf %25, %cst_12 : f32
    %27 = math.rsqrt %26 : f32
    %28 = vector.broadcast %16 : f32 to vector<64x256xf32>
    %29 = arith.subf %6, %28 : vector<64x256xf32>
    %30 = vector.broadcast %27 : f32 to vector<64x256xf32>
    %31 = arith.mulf %29, %30 : vector<64x256xf32>
    %c0_13 = arith.constant 0 : index
    %32 = memref.load %arg4[%c0_13] : memref<2xf32, #tpu.memory_space<smem>>
    %33 = vector.broadcast %32 : f32 to vector<64x256xf32>
    %34 = arith.mulf %31, %33 : vector<64x256xf32>
    %c1 = arith.constant 1 : index
    %35 = memref.load %arg4[%c1] : memref<2xf32, #tpu.memory_space<smem>>
    %36 = vector.broadcast %35 : f32 to vector<64x256xf32>
    %37 = arith.addf %34, %36 : vector<64x256xf32>
    %cst_14 = arith.constant 0.000000e+00 : f32
    %38 = vector.broadcast %cst_14 : f32 to vector<64x256xf32>
    %39 = arith.cmpf ogt, %37, %38 : vector<64x256xf32>
    %cst_15 = arith.constant 2.000000e-01 : f32
    %40 = vector.broadcast %cst_15 : f32 to vector<64x256xf32>
    %41 = arith.mulf %40, %37 : vector<64x256xf32>
    %42 = arith.select %39, %37, %41 : vector<64x256xi1>, vector<64x256xf32>
    %43 = arith.truncf %42 : vector<64x256xf32> to vector<64x256xbf16>
    %c0_16 = arith.constant 0 : index
    %c0_17 = arith.constant 0 : index
    %c0_18 = arith.constant 0 : index
    %44 = vector.load %arg5[%c0_16, %c0_17, %c0_18] : memref<1x64x256xbf16, #tpu.memory_space<vmem>>, vector<1x64x256xbf16>
    %45 = vector.shape_cast %44 : vector<1x64x256xbf16> to vector<64x256xbf16>
    %46 = vector.shape_cast %43 : vector<64x256xbf16> to vector<1x64x256xbf16>
    tpu.vector_store %arg5[%c0_16, %c0_17, %c0_18], %46 {strides = array<i32>} : memref<1x64x256xbf16, #tpu.memory_space<vmem>>, vector<1x64x256xbf16>,
    return
  }
  func.func @transform_0(%arg0: i32) -> (i32, i32, i32) {
    %c0_i32 = arith.constant 0 : i32
    %c0_i32_0 = arith.constant 0 : i32
    %c0_i32_1 = arith.constant 0 : i32
    return %arg0, %c0_i32, %c0_i32_0 : i32, i32, i32
  }
  func.func @transform_1(%arg0: i32) -> (i32, i32) {
    %c0_i32 = arith.constant 0 : i32
    %c0_i32_0 = arith.constant 0 : i32
    %c0_i32_1 = arith.constant 0 : i32
    return %c0_i32, %c0_i32_0 : i32, i32
  }
  func.func @transform_2(%arg0: i32) -> (i32, i32) {
    %c0_i32 = arith.constant 0 : i32
    %c0_i32_0 = arith.constant 0 : i32
    %c0_i32_1 = arith.constant 0 : i32
    return %c0_i32, %c0_i32_0 : i32, i32
  }
  func.func @transform_3(%arg0: i32) -> i32 {
    %c0_i32 = arith.constant 0 : i32
    %c0_i32_0 = arith.constant 0 : i32
    return %c0_i32 : i32
  }
  func.func @transform_4(%arg0: i32) -> (i32, i32, i32) {
    %c0_i32 = arith.constant 0 : i32
    %c0_i32_0 = arith.constant 0 : i32
    %c0_i32_1 = arith.constant 0 : i32
    return %arg0, %c0_i32, %c0_i32_0 : i32, i32, i32
  }
}

module attributes {stable_mosaic.version = 11 : i64} {
  func.func @_layer_kernel(%arg0: i32, %arg1: memref<1x16x4096xbf16, #tpu.memory_space<vmem>>, %arg2: memref<4096x512xbf16, #tpu.memory_space<vmem>>, %arg3: memref<1x512xf32, #tpu.memory_space<vmem>>, %arg4: memref<2xf32, #tpu.memory_space<smem>>, %arg5: memref<16x512xf32, #tpu.memory_space<vmem>>, %arg6: memref<1x8x128xf32, #tpu.memory_space<vmem>>) attributes {dimension_semantics = [#tpu.dimension_semantics<parallel>], iteration_bounds = array<i64: 2>, scalar_prefetch = 0 : i64, scratch_operands = 0 : i64, tpu.core_type = #tpu.core_type<tc>, window_params = [{transform_indices = @transform_0, window_bounds = array<i64: 1, 16, 4096>}, {pipeline_mode = #tpu.pipeline_mode<synchronous>, transform_indices = @transform_1, window_bounds = array<i64: 4096, 512>}, {pipeline_mode = #tpu.pipeline_mode<synchronous>, transform_indices = @transform_2, window_bounds = array<i64: 1, 512>}, {transform_indices = @transform_3, window_bounds = array<i64: 2>}, {pipeline_mode = #tpu.pipeline_mode<synchronous>, transform_indices = @transform_4, window_bounds = array<i64: 16, 512>}, {transform_indices = @transform_5, window_bounds = array<i64: 1, 8, 128>}]} {
    %c0 = arith.constant 0 : index
    %c0_0 = arith.constant 0 : index
    %c0_1 = arith.constant 0 : index
    %0 = vector.load %arg1[%c0, %c0_0, %c0_1] : memref<1x16x4096xbf16, #tpu.memory_space<vmem>>, vector<1x16x4096xbf16>
    %1 = vector.shape_cast %0 : vector<1x16x4096xbf16> to vector<16x4096xbf16>
    %c0_2 = arith.constant 0 : index
    %c0_3 = arith.constant 0 : index
    %2 = vector.load %arg2[%c0_2, %c0_3] : memref<4096x512xbf16, #tpu.memory_space<vmem>>, vector<4096x512xbf16>
    %cst = arith.constant dense<0.000000e+00> : vector<16x512xf32>
    %3 = tpu.matmul %1, %2, %cst {dimension_numbers = #tpu.dot_dimension_numbers<[1], [0], [0], [1], [0, 0, 1, 1], [], []>} : vector<16x4096xbf16>, vector<4096x512xbf16>, vector<16x512xf32> -> vector<16x512xf32>
    %c0_4 = arith.constant 0 : index
    %c0_5 = arith.constant 0 : index
    %4 = vector.load %arg3[%c0_4, %c0_5] : memref<1x512xf32, #tpu.memory_space<vmem>>, vector<1x512xf32>
    %5 = vector.broadcast %4 : vector<1x512xf32> to vector<16x512xf32>
    %6 = arith.addf %3, %5 : vector<16x512xf32>
    %7 = tpu.iota {dimensions = array<i32: 0>} : vector<16x512xi32>
    %c9_i32 = arith.constant 9 : i32
    %8 = vector.broadcast %c9_i32 : i32 to vector<16x512xi32>
    %9 = arith.cmpi slt, %7, %8 : vector<16x512xi32>
    %cst_6 = arith.constant 0.000000e+00 : f32
    %10 = vector.broadcast %cst_6 : f32 to vector<16x512xf32>
    %11 = arith.select %9, %6, %10 : vector<16x512xi1>, vector<16x512xf32>
    %12 = vector.shape_cast %11 : vector<16x512xf32> to vector<1x16x512xf32>
    %cst_7 = arith.constant dense<0.000000e+00> : vector<1xf32>
    %13 = vector.multi_reduction <add>, %12, %cst_7 [1, 2] : vector<1x16x512xf32> to vector<1xf32>
    %14 = vector.shape_cast %13 : vector<1xf32> to vector<1x1x1xf32>
    %15 = vector.extract %14[0, 0, 0] : f32 from vector<1x1x1xf32>
    %cst_8 = arith.constant 4.608000e+03 : f32
    %16 = arith.divf %15, %cst_8 : f32
    %17 = arith.mulf %11, %11 : vector<16x512xf32>
    %18 = vector.shape_cast %17 : vector<16x512xf32> to vector<1x16x512xf32>
    %cst_9 = arith.constant dense<0.000000e+00> : vector<1xf32>
    %19 = vector.multi_reduction <add>, %18, %cst_9 [1, 2] : vector<1x16x512xf32> to vector<1xf32>
    %20 = vector.shape_cast %19 : vector<1xf32> to vector<1x1x1xf32>
    %21 = vector.extract %20[0, 0, 0] : f32 from vector<1x1x1xf32>
    %cst_10 = arith.constant 4.608000e+03 : f32
    %22 = arith.divf %21, %cst_10 : f32
    %23 = arith.mulf %16, %16 : f32
    %24 = arith.subf %22, %23 : f32
    %cst_11 = arith.constant 0.000000e+00 : f32
    %25 = arith.maximumf %24, %cst_11 : f32
    %cst_12 = arith.constant 1.000000e-03 : f32
    %26 = arith.addf %25, %cst_12 : f32
    %27 = math.rsqrt %26 : f32
    %28 = vector.broadcast %16 : f32 to vector<16x512xf32>
    %29 = arith.subf %6, %28 : vector<16x512xf32>
    %30 = vector.broadcast %27 : f32 to vector<16x512xf32>
    %31 = arith.mulf %29, %30 : vector<16x512xf32>
    %c0_13 = arith.constant 0 : index
    %32 = memref.load %arg4[%c0_13] : memref<2xf32, #tpu.memory_space<smem>>
    %33 = vector.broadcast %32 : f32 to vector<16x512xf32>
    %34 = arith.mulf %31, %33 : vector<16x512xf32>
    %c1 = arith.constant 1 : index
    %35 = memref.load %arg4[%c1] : memref<2xf32, #tpu.memory_space<smem>>
    %36 = vector.broadcast %35 : f32 to vector<16x512xf32>
    %37 = arith.addf %34, %36 : vector<16x512xf32>
    %cst_14 = arith.constant 0.000000e+00 : f32
    %38 = vector.broadcast %cst_14 : f32 to vector<16x512xf32>
    %39 = arith.cmpf ogt, %37, %38 : vector<16x512xf32>
    %cst_15 = arith.constant 2.000000e-01 : f32
    %40 = vector.broadcast %cst_15 : f32 to vector<16x512xf32>
    %41 = arith.mulf %40, %37 : vector<16x512xf32>
    %42 = arith.select %39, %37, %41 : vector<16x512xi1>, vector<16x512xf32>
    %c0_16 = arith.constant 0 : index
    %c0_17 = arith.constant 0 : index
    %43 = vector.load %arg5[%c0_16, %c0_17] : memref<16x512xf32, #tpu.memory_space<vmem>>, vector<16x512xf32>
    %44 = arith.mulf %42, %43 : vector<16x512xf32>
    %45 = vector.shape_cast %44 : vector<16x512xf32> to vector<1x16x512xf32>
    %cst_18 = arith.constant dense<0.000000e+00> : vector<1xf32>
    %46 = vector.multi_reduction <add>, %45, %cst_18 [1, 2] : vector<1x16x512xf32> to vector<1xf32>
    %47 = vector.shape_cast %46 : vector<1xf32> to vector<1x1x1xf32>
    %48 = vector.extract %47[0, 0, 0] : f32 from vector<1x1x1xf32>
    %49 = vector.broadcast %48 : f32 to vector<8x128xf32>
    %50 = arith.negf %49 : vector<8x128xf32>
    %51 = math.exp %50 : vector<8x128xf32>
    %cst_19 = arith.constant 1.000000e+00 : f32
    %52 = vector.broadcast %cst_19 : f32 to vector<8x128xf32>
    %53 = arith.addf %52, %51 : vector<8x128xf32>
    %54 = arith.divf %52, %53 : vector<8x128xf32>
    %c0_20 = arith.constant 0 : index
    %c0_21 = arith.constant 0 : index
    %c0_22 = arith.constant 0 : index
    %55 = vector.load %arg6[%c0_20, %c0_21, %c0_22] : memref<1x8x128xf32, #tpu.memory_space<vmem>>, vector<1x8x128xf32>
    %56 = vector.shape_cast %55 : vector<1x8x128xf32> to vector<8x128xf32>
    %57 = vector.shape_cast %54 : vector<8x128xf32> to vector<1x8x128xf32>
    tpu.vector_store %arg6[%c0_20, %c0_21, %c0_22], %57 {strides = array<i32>} : memref<1x8x128xf32, #tpu.memory_space<vmem>>, vector<1x8x128xf32>,
    return
  }
  func.func @transform_0(%arg0: i32) -> (i32, i32, i32) {
    %c0_i32 = arith.constant 0 : i32
    %c0_i32_0 = arith.constant 0 : i32
    %c0_i32_1 = arith.constant 0 : i32
    return %arg0, %c0_i32, %c0_i32_0 : i32, i32, i32
  }
  func.func @transform_1(%arg0: i32) -> (i32, i32) {
    %c0_i32 = arith.constant 0 : i32
    %c0_i32_0 = arith.constant 0 : i32
    %c0_i32_1 = arith.constant 0 : i32
    return %c0_i32, %c0_i32_0 : i32, i32
  }
  func.func @transform_2(%arg0: i32) -> (i32, i32) {
    %c0_i32 = arith.constant 0 : i32
    %c0_i32_0 = arith.constant 0 : i32
    %c0_i32_1 = arith.constant 0 : i32
    return %c0_i32, %c0_i32_0 : i32, i32
  }
  func.func @transform_3(%arg0: i32) -> i32 {
    %c0_i32 = arith.constant 0 : i32
    %c0_i32_0 = arith.constant 0 : i32
    return %c0_i32 : i32
  }
  func.func @transform_4(%arg0: i32) -> (i32, i32) {
    %c0_i32 = arith.constant 0 : i32
    %c0_i32_0 = arith.constant 0 : i32
    %c0_i32_1 = arith.constant 0 : i32
    return %c0_i32, %c0_i32_0 : i32, i32
  }
  func.func @transform_5(%arg0: i32) -> (i32, i32, i32) {
    %c0_i32 = arith.constant 0 : i32
    %c0_i32_0 = arith.constant 0 : i32
    %c0_i32_1 = arith.constant 0 : i32
    return %arg0, %c0_i32, %c0_i32_0 : i32, i32, i32
  }
}

</mosaic_0001>

<bundles_post_ra>
// kernel: discriminator_forward.4
= control target key start
LH: loop header
LB: loop body
LE: loop exit
PB: predicated region body
PF: predicated region fallthrough
CT: control target
= control target key end

     0   :  { %s3187_s12 = smov 0   ;;  %s3855_s0 = inlined_call_operand.vmem [shape: bf16[2,976,64], index: 0, kind: input, shape index: {}]   ;;  %s3856_s1 = inlined_call_operand.vmem [shape: bf16[64,64], index: 1, kind: input, shape index: {}]   ;;  %s3857_s2 = inlined_call_operand.vmem [shape: f32[1,64], index: 2, kind: input, shape index: {}]   ;;  %s3858_s3 = inlined_call_operand.vmem [shape: bf16[2,976,64], index: 3, kind: output, shape index: {}]  }
   0x1 LB: > { %s2375_s13 = sadd.s32 4294967295, %s3163_s12   ;;  %p2379_p0 = scmp.ge.s32.totalorder %s3163_s12, 1  ;;  %s3163_s12 = sphi %s3187_s12, %s13_s12  }
   0x2   : > { %p137_p1 = scmp.lt.s32.totalorder %s3163_s12, 3 }
   0x4   : > { %p138_p2 = pnand %p2379_p0, %p137_p1 }
   0x5   : > { %v3091_v0 = vld [vmem:[%s3856_s1] sm:$0xff] (!%p138_p2)   ;;  %v3165_v1 = vmov (!%p138_p2), 0.0   ;;  %v3092_v2 = vld [vmem:[%s3856_s1 + $0x8] sm:$0xff] (!%p138_p2)   ;;  %p161_p3 = scmp.lt.s32.totalorder (!%p138_p2), %s2375_s13, 1  ;;  %vm3166_vm0 = vmmov (!%p138_p2), 0   ;;  %v3093_v3 = vld [vmem:[%s3856_s1 + $0x10] sm:$0xff] (!%p138_p2)  }
   0x6   : > { %141 = sbr.rel (%p138_p2) target bundleno = 484 (0x1e4), region = 32  ;;  %2820 = vmatprep.subr.bf16.mxu0 (!%p138_p2), %v3165_v1  ;;  %3072 = vmatprep.subr.bf16.mxu1 (!%p138_p2), %v3165_v1  ;;  %v3094_v4 = vld [vmem:[%s3856_s1 + $0x18] sm:$0xff] (!%p138_p2)   ;;  %vm638_vm1 = vcmask (!%p138_p2), 523264   ;;  %v3444_v59 = vld [vmem:[%s3857_s2] ss:$0 sm:$0xff] (!%p138_p2)  ;;  %vm2197_vm4 = vcmask (!%p138_p2), 519168  }
   0x7   : > { %2821 = vmatpush3.bf16.msra.mxu0 (!%p138_p2), %v3091_v0  ;;  %3076 = vmatpush3.bf16.msra.mxu1 (!%p138_p2), %v3091_v0 }
   0x8   : > { %2822 = vmatprep.subr.bf16.mxu0 (!%p138_p2), %v3165_v1  ;;  %3073 = vmatprep.subr.bf16.mxu1 (!%p138_p2), %v3165_v1 }
   0x9   : > { %2828 = vmatprep.mubr.msk.bf16.mxu0 (!%p138_p2), %vm3166_vm0, %v3165_v1  ;;  %2952 = vmatprep.mubr.msk.bf16.mxu1 (!%p138_p2), %vm3166_vm0, %v3165_v1 }
   0xb   : > { %2823 = vmatpush3.bf16.msra.mxu0 (!%p138_p2), %v3092_v2  ;;  %3077 = vmatpush3.bf16.msra.mxu1 (!%p138_p2), %v3092_v2 }
   0xc   : > { %2824 = vmatprep.subr.bf16.mxu0 (!%p138_p2), %v3165_v1  ;;  %3074 = vmatprep.subr.bf16.mxu1 (!%p138_p2), %v3165_v1 }
   0xd   : > { %s3860_s13 = smov (!%p161_p3, %s2375_s13), 1 }
   0xe   : > { %s3080_s20 = smul.u32 488, %s3860_s13 }
   0xf   : > { %2825 = vmatpush3.bf16.msra.mxu0 %v3093_v3  ;;  %3078 = vmatpush3.bf16.msra.mxu1 %v3093_v3 }
  0x10   : > { %s3222_s23 = scalar_lea.vmem %s3855_s0, %s3080_s20  ;;  %2826 = vmatprep.subr.bf16.mxu0 %v3165_v1  ;;  %3075 = vmatprep.subr.bf16.mxu1 %v3165_v1  ;;  %s3461_s30 = scalar_lea.vmem %s3858_s3, %s3080_s20 }
  0x11   : > { %v3095_v5 = vld [vmem:[%s3222_s23] sm:$0xff]   ;;  %v3096_v6 = vld [vmem:[%s3222_s23 + $0xf8] sm:$0xff]   ;;  %v3097_v7 = vld [vmem:[%s3222_s23 + $0x8] sm:$0xff]  }
  0x12   : > { %v3098_v8 = vld [vmem:[%s3222_s23 + $0x100] sm:$0xff]   ;;  %v3099_v9 = vld [vmem:[%s3222_s23 + $0x10] sm:$0xff]   ;;  %v3100_v10 = vld [vmem:[%s3222_s23 + $0x108] sm:$0xff]  }
  0x13   : > { %2827 = vmatpush3.bf16.msra.mxu0 %v3094_v4  ;;  %3079 = vmatpush3.bf16.msra.mxu1 %v3094_v4  ;;  %v3101_v11 = vld [vmem:[%s3222_s23 + $0x18] sm:$0xff]   ;;  %v3102_v12 = vld [vmem:[%s3222_s23 + $0x110] sm:$0xff]   ;;  %v3103_v13 = vld [vmem:[%s3222_s23 + $0x20] sm:$0xff]  }
  0x14   : > { %v3104_v14 = vld [vmem:[%s3222_s23 + $0x118] sm:$0xff]   ;;  %v3105_v15 = vld [vmem:[%s3222_s23 + $0x28] sm:$0xff]   ;;  %v3106_v16 = vld [vmem:[%s3222_s23 + $0x120] sm:$0xff]  }
  0x15   : > { %v3107_v17 = vld [vmem:[%s3222_s23 + $0x30] sm:$0xff]   ;;  %v3108_v18 = vld [vmem:[%s3222_s23 + $0x128] sm:$0xff]   ;;  %v3109_v19 = vld [vmem:[%s3222_s23 + $0x38] sm:$0xff]  }
  0x16   : > { %2829 = vmatmul.mubr.msk.bf16.vlgmr.msra.gmra.mrb[0].mxu0 %vm638_vm1, %v3095_v5  ;;  %2953 = vmatmul.mubr.msk.bf16.vlgmr.msra.gmra.mrb[0].mxu1 %vm638_vm1, %v3096_v6  ;;  %v3110_v20 = vld [vmem:[%s3222_s23 + $0x130] sm:$0xff]   ;;  %v3111_v21 = vld [vmem:[%s3222_s23 + $0x40] sm:$0xff]   ;;  %v3112_v22 = vld [vmem:[%s3222_s23 + $0x138] sm:$0xff]  }
  0x17   : > { %2832 = vmatprep.mubr.msk.bf16.mxu0 %vm3166_vm0, %v3165_v1  ;;  %2956 = vmatprep.mubr.msk.bf16.mxu1 %vm3166_vm0, %v3165_v1  ;;  %v3113_v23 = vld [vmem:[%s3222_s23 + $0x48] sm:$0xff]   ;;  %v3114_v24 = vld [vmem:[%s3222_s23 + $0x140] sm:$0xff]   ;;  %v3115_v25 = vld [vmem:[%s3222_s23 + $0x50] sm:$0xff]  }
  0x18   : > { %v3116_v26 = vld [vmem:[%s3222_s23 + $0x148] sm:$0xff]   ;;  %v3117_v27 = vld [vmem:[%s3222_s23 + $0x58] sm:$0xff]   ;;  %v3118_v28 = vld [vmem:[%s3222_s23 + $0x150] sm:$0xff]  }
  0x19   : > { %v3119_v29 = vld [vmem:[%s3222_s23 + $0x60] sm:$0xff]   ;;  %v3120_v30 = vld [vmem:[%s3222_s23 + $0x158] sm:$0xff]   ;;  %v3121_v31 = vld [vmem:[%s3222_s23 + $0x68] sm:$0xff]  }
  0x1a   : > { %v3122_v32 = vld [vmem:[%s3222_s23 + $0x160] sm:$0xff]   ;;  %v3123_v33 = vld [vmem:[%s3222_s23 + $0x70] sm:$0xff]   ;;  %v3124_v34 = vld [vmem:[%s3222_s23 + $0x168] sm:$0xff]  }
  0x1b   : > { %v3125_v35 = vld [vmem:[%s3222_s23 + $0x78] sm:$0xff]   ;;  %v3126_v36 = vld [vmem:[%s3222_s23 + $0x170] sm:$0xff]   ;;  %v3127_v37 = vld [vmem:[%s3222_s23 + $0x80] sm:$0xff]  }
  0x1c   : > { %v3128_v38 = vld [vmem:[%s3222_s23 + $0x178] sm:$0xff]   ;;  %v3129_v39 = vld [vmem:[%s3222_s23 + $0x88] sm:$0xff]   ;;  %v3130_v40 = vld [vmem:[%s3222_s23 + $0x180] sm:$0xff]  }
  0x1d   : > { %v3131_v41 = vld [vmem:[%s3222_s23 + $0x90] sm:$0xff]   ;;  %v3132_v42 = vld [vmem:[%s3222_s23 + $0x188] sm:$0xff]   ;;  %v3133_v43 = vld [vmem:[%s3222_s23 + $0x98] sm:$0xff]  }
  0x1e   : > { %2833 = vmatmul.mubr.msk.bf16.gmra.mrb[4].mxu0 %vm638_vm1, %v3097_v7  ;;  %2957 = vmatmul.mubr.msk.bf16.gmra.mrb[4].mxu1 %vm638_vm1, %v3098_v8  ;;  %v3134_v44 = vld [vmem:[%s3222_s23 + $0x190] sm:$0xff]   ;;  %v3135_v45 = vld [vmem:[%s3222_s23 + $0xa0] sm:$0xff]   ;;  %v3136_v46 = vld [vmem:[%s3222_s23 + $0x198] sm:$0xff]  }
  0x1f   : > { %2836 = vmatprep.mubr.msk.bf16.mxu0 %vm3166_vm0, %v3165_v1  ;;  %2960 = vmatprep.mubr.msk.bf16.mxu1 %vm3166_vm0, %v3165_v1  ;;  %v3137_v47 = vld [vmem:[%s3222_s23 + $0xa8] sm:$0xff]   ;;  %v3138_v48 = vld [vmem:[%s3222_s23 + $0x1a0] sm:$0xff]   ;;  %v3139_v49 = vld [vmem:[%s3222_s23 + $0xb0] sm:$0xff]  }
  0x20   : > { %v3140_v50 = vld [vmem:[%s3222_s23 + $0x1a8] sm:$0xff]   ;;  %v3141_v51 = vld [vmem:[%s3222_s23 + $0xb8] sm:$0xff]   ;;  %v3142_v52 = vld [vmem:[%s3222_s23 + $0x1b0] sm:$0xff]  }
  0x21   : > { %v3143_v53 = vld [vmem:[%s3222_s23 + $0xc0] sm:$0xff]   ;;  %v3144_v54 = vld [vmem:[%s3222_s23 + $0x1b8] sm:$0xff]   ;;  %v3145_v55 = vld [vmem:[%s3222_s23 + $0xc8] sm:$0xff]  }
  0x22   : > { %v3146_v56 = vld [vmem:[%s3222_s23 + $0x1c0] sm:$0xff]   ;;  %v3147_v57 = vld [vmem:[%s3222_s23 + $0xd0] sm:$0xff]   ;;  %v3148_v58 = vld [vmem:[%s3222_s23 + $0x1c8] sm:$0xff]  }
  0x23   : > { %v3149_v2 = vld [vmem:[%s3222_s23 + $0xd8] sm:$0xff]   ;;  %v3150_v4 = vld [vmem:[%s3222_s23 + $0x1d0] sm:$0xff]  }
  0x26   : > { %2837 = vmatmul.mubr.msk.bf16.gmra.mrb[8].mxu0 %vm638_vm1, %v3099_v9  ;;  %2961 = vmatmul.mubr.msk.bf16.gmra.mrb[8].mxu1 %vm638_vm1, %v3100_v10 }
  0x27   : > { %2840 = vmatprep.mubr.msk.bf16.mxu0 %vm3166_vm0, %v3165_v1  ;;  %2964 = vmatprep.mubr.msk.bf16.mxu1 %vm3166_vm0, %v3165_v1 }
  0x2e   : > { %2841 = vmatmul.mubr.msk.bf16.gmra.mrb[12].mxu0 %vm638_vm1, %v3101_v11  ;;  %2965 = vmatmul.mubr.msk.bf16.gmra.mrb[12].mxu1 %vm638_vm1, %v3102_v12 }
  0x2f   : > { %2844 = vmatprep.mubr.msk.bf16.mxu0 %vm3166_vm0, %v3165_v1  ;;  %2968 = vmatprep.mubr.msk.bf16.mxu1 %vm3166_vm0, %v3165_v1 }
  0x36   : > { %2845 = vmatmul.mubr.msk.bf16.gmra.mrb[16].mxu0 %vm638_vm1, %v3103_v13  ;;  %2969 = vmatmul.mubr.msk.bf16.gmra.mrb[16].mxu1 %vm638_vm1, %v3104_v14 }
  0x37   : > { %2848 = vmatprep.mubr.msk.bf16.mxu0 %vm3166_vm0, %v3165_v1  ;;  %2972 = vmatprep.mubr.msk.bf16.mxu1 %vm3166_vm0, %v3165_v1 }
  0x3e   : > { %2849 = vmatmul.mubr.msk.bf16.gmra.mrb[20].mxu0 %vm638_vm1, %v3105_v15  ;;  %2973 = vmatmul.mubr.msk.bf16.gmra.mrb[20].mxu1 %vm638_vm1, %v3106_v16 }
  0x3f   : > { %2852 = vmatprep.mubr.msk.bf16.mxu0 %vm3166_vm0, %v3165_v1  ;;  %2976 = vmatprep.mubr.msk.bf16.mxu1 %vm3166_vm0, %v3165_v1 }
  0x46   : > { %2853 = vmatmul.mubr.msk.bf16.gmra.mrb[24].mxu0 %vm638_vm1, %v3107_v17  ;;  %2977 = vmatmul.mubr.msk.bf16.gmra.mrb[24].mxu1 %vm638_vm1, %v3108_v18 }
  0x47   : > { %2856 = vmatprep.mubr.msk.bf16.mxu0 %vm3166_vm0, %v3165_v1  ;;  %2980 = vmatprep.mubr.msk.bf16.mxu1 %vm3166_vm0, %v3165_v1 }
  0x4e   : > { %2857 = vmatmul.mubr.msk.bf16.gmra.mrb[28].mxu0 %vm638_vm1, %v3109_v19  ;;  %2981 = vmatmul.mubr.msk.bf16.gmra.mrb[28].mxu1 %vm638_vm1, %v3110_v20 }
  0x4f   : > { %2860 = vmatprep.mubr.msk.bf16.mxu0 %vm3166_vm0, %v3165_v1  ;;  %2984 = vmatprep.mubr.msk.bf16.mxu1 %vm3166_vm0, %v3165_v1 }
  0x56   : > { %2861 = vmatmul.mubr.msk.bf16.gmra.mrb[32].mxu0 %vm638_vm1, %v3111_v21  ;;  %2985 = vmatmul.mubr.msk.bf16.gmra.mrb[32].mxu1 %vm638_vm1, %v3112_v22 }
  0x57   : > { %2864 = vmatprep.mubr.msk.bf16.mxu0 %vm3166_vm0, %v3165_v1  ;;  %2988 = vmatprep.mubr.msk.bf16.mxu1 %vm3166_vm0, %v3165_v1 }
  0x5e   : > { %2865 = vmatmul.mubr.msk.bf16.gmra.mrb[36].mxu0 %vm638_vm1, %v3113_v23  ;;  %2989 = vmatmul.mubr.msk.bf16.gmra.mrb[36].mxu1 %vm638_vm1, %v3114_v24 }
  0x5f   : > { %2868 = vmatprep.mubr.msk.bf16.mxu0 %vm3166_vm0, %v3165_v1  ;;  %2992 = vmatprep.mubr.msk.bf16.mxu1 %vm3166_vm0, %v3165_v1 }
  0x66   : > { %2869 = vmatmul.mubr.msk.bf16.gmra.mrb[40].mxu0 %vm638_vm1, %v3115_v25  ;;  %2993 = vmatmul.mubr.msk.bf16.gmra.mrb[40].mxu1 %vm638_vm1, %v3116_v26 }
  0x67   : > { %2872 = vmatprep.mubr.msk.bf16.mxu0 %vm3166_vm0, %v3165_v1  ;;  %2996 = vmatprep.mubr.msk.bf16.mxu1 %vm3166_vm0, %v3165_v1 }
  0x6e   : > { %2873 = vmatmul.mubr.msk.bf16.gmra.mrb[44].mxu0 %vm638_vm1, %v3117_v27  ;;  %2997 = vmatmul.mubr.msk.bf16.gmra.mrb[44].mxu1 %vm638_vm1, %v3118_v28  ;;  %v3151_v28 = vld [vmem:[%s3222_s23 + $0xe0] sm:$0xff]  }
  0x6f   : > { %2876 = vmatprep.mubr.msk.bf16.mxu0 %vm3166_vm0, %v3165_v1  ;;  %3000 = vmatprep.mubr.msk.bf16.mxu1 %vm3166_vm0, %v3165_v1 }
  0x76   : > { %2877 = vmatmul.mubr.msk.bf16.gmra.mrb[48].mxu0 %vm638_vm1, %v3119_v29  ;;  %3001 = vmatmul.mubr.msk.bf16.gmra.mrb[48].mxu1 %vm638_vm1, %v3120_v30  ;;  %v3152_v30 = vld [vmem:[%s3222_s23 + $0x1d8] sm:$0xff]  }
  0x77   : > { %2880 = vmatprep.mubr.msk.bf16.mxu0 %vm3166_vm0, %v3165_v1  ;;  %3004 = vmatprep.mubr.msk.bf16.mxu1 %vm3166_vm0, %v3165_v1 }
  0x7e   : > { %2881 = vmatmul.mubr.msk.bf16.gmra.mrb[52].mxu0 %vm638_vm1, %v3121_v31  ;;  %3005 = vmatmul.mubr.msk.bf16.gmra.mrb[52].mxu1 %vm638_vm1, %v3122_v32 }
  0x7f   : > { %2884 = vmatprep.mubr.msk.bf16.mxu0 %vm3166_vm0, %v3165_v1  ;;  %3008 = vmatprep.mubr.msk.bf16.mxu1 %vm3166_vm0, %v3165_v1 }
  0x86   : > { %2885 = vmatmul.mubr.msk.bf16.gmra.mrb[56].mxu0 %vm638_vm1, %v3123_v33  ;;  %3009 = vmatmul.mubr.msk.bf16.gmra.mrb[56].mxu1 %vm638_vm1, %v3124_v34 }
  0x87   : > { %2888 = vmatprep.mubr.msk.bf16.mxu0 %vm3166_vm0, %v3165_v1  ;;  %3012 = vmatprep.mubr.msk.bf16.mxu1 %vm3166_vm0, %v3165_v1 }
  0x8e   : > { %2889 = vmatmul.mubr.msk.bf16.gmra.mrb[60].mxu0 %vm638_vm1, %v3125_v35  ;;  %3013 = vmatmul.mubr.msk.bf16.gmra.mrb[60].mxu1 %vm638_vm1, %v3126_v36 }
  0x8f   : > { %2892 = vmatprep.mubr.msk.bf16.mxu0 %vm3166_vm0, %v3165_v1  ;;  %3016 = vmatprep.mubr.msk.bf16.mxu1 %vm3166_vm0, %v3165_v1 }
  0x96   : > { %2893 = vmatmul.mubr.msk.bf16.gmra.mrb[64].mxu0 %vm638_vm1, %v3127_v37  ;;  %3017 = vmatmul.mubr.msk.bf16.gmra.mrb[64].mxu1 %vm638_vm1, %v3128_v38 }
  0x97   : > { %2896 = vmatprep.mubr.msk.bf16.mxu0 %vm3166_vm0, %v3165_v1  ;;  %3020 = vmatprep.mubr.msk.bf16.mxu1 %vm3166_vm0, %v3165_v1 }
  0x9e   : > { %2897 = vmatmul.mubr.msk.bf16.gmra.mrb[68].mxu0 %vm638_vm1, %v3129_v39  ;;  %3021 = vmatmul.mubr.msk.bf16.gmra.mrb[68].mxu1 %vm638_vm1, %v3130_v40 }
  0x9f   : > { %2900 = vmatprep.mubr.msk.bf16.mxu0 %vm3166_vm0, %v3165_v1  ;;  %3024 = vmatprep.mubr.msk.bf16.mxu1 %vm3166_vm0, %v3165_v1 }
  0xa6   : > { %2901 = vmatmul.mubr.msk.bf16.gmra.mrb[72].mxu0 %vm638_vm1, %v3131_v41  ;;  %3025 = vmatmul.mubr.msk.bf16.gmra.mrb[72].mxu1 %vm638_vm1, %v3132_v42 }
  0xa7   : > { %2904 = vmatprep.mubr.msk.bf16.mxu0 %vm3166_vm0, %v3165_v1  ;;  %3028 = vmatprep.mubr.msk.bf16.mxu1 %vm3166_vm0, %v3165_v1 }
  0xae   : > { %2905 = vmatmul.mubr.msk.bf16.gmra.mrb[76].mxu0 %vm638_vm1, %v3133_v43  ;;  %3029 = vmatmul.mubr.msk.bf16.gmra.mrb[76].mxu1 %vm638_vm1, %v3134_v44 }
  0xaf   : > { %2908 = vmatprep.mubr.msk.bf16.mxu0 %vm3166_vm0, %v3165_v1  ;;  %3032 = vmatprep.mubr.msk.bf16.mxu1 %vm3166_vm0, %v3165_v1 }
  0xb6   : > { %2909 = vmatmul.mubr.msk.bf16.gmra.mrb[80].mxu0 %vm638_vm1, %v3135_v45  ;;  %3033 = vmatmul.mubr.msk.bf16.gmra.mrb[80].mxu1 %vm638_vm1, %v3136_v46 }
  0xb7   : > { %2912 = vmatprep.mubr.msk.bf16.mxu0 %vm3166_vm0, %v3165_v1  ;;  %3036 = vmatprep.mubr.msk.bf16.mxu1 %vm3166_vm0, %v3165_v1 }
  0xbe   : > { %2913 = vmatmul.mubr.msk.bf16.gmra.mrb[84].mxu0 %vm638_vm1, %v3137_v47  ;;  %3037 = vmatmul.mubr.msk.bf16.gmra.mrb[84].mxu1 %vm638_vm1, %v3138_v48 }
  0xbf   : > { %2916 = vmatprep.mubr.msk.bf16.mxu0 %vm3166_vm0, %v3165_v1  ;;  %3040 = vmatprep.mubr.msk.bf16.mxu1 %vm3166_vm0, %v3165_v1 }
  0xc6   : > { %2917 = vmatmul.mubr.msk.bf16.gmra.mrb[88].mxu0 %vm638_vm1, %v3139_v49  ;;  %3041 = vmatmul.mubr.msk.bf16.gmra.mrb[88].mxu1 %vm638_vm1, %v3140_v50 }
  0xc7   : > { %2920 = vmatprep.mubr.msk.bf16.mxu0 %vm3166_vm0, %v3165_v1  ;;  %3044 = vmatprep.mubr.msk.bf16.mxu1 %vm3166_vm0, %v3165_v1 }
  0xce   : > { %2921 = vmatmul.mubr.msk.bf16.gmra.mrb[92].mxu0 %vm638_vm1, %v3141_v51  ;;  %3045 = vmatmul.mubr.msk.bf16.gmra.mrb[92].mxu1 %vm638_vm1, %v3142_v52 }
  0xcf   : > { %2924 = vmatprep.mubr.msk.bf16.mxu0 %vm3166_vm0, %v3165_v1  ;;  %3048 = vmatprep.mubr.msk.bf16.mxu1 %vm3166_vm0, %v3165_v1 }
  0xd6   : > { %2925 = vmatmul.mubr.msk.bf16.gmra.mrb[96].mxu0 %vm638_vm1, %v3143_v53  ;;  %3049 = vmatmul.mubr.msk.bf16.gmra.mrb[96].mxu1 %vm638_vm1, %v3144_v54  ;;  %v3153_v54 = vld [vmem:[%s3222_s23 + $0xe8] sm:$0xff]  }
  0xd7   : > { %2928 = vmatprep.mubr.msk.bf16.mxu0 %vm3166_vm0, %v3165_v1  ;;  %3052 = vmatprep.mubr.msk.bf16.mxu1 %vm3166_vm0, %v3165_v1 }
  0xde   : > { %2929 = vmatmul.mubr.msk.bf16.gmra.mrb[100].mxu0 %vm638_vm1, %v3145_v55  ;;  %3053 = vmatmul.mubr.msk.bf16.gmra.mrb[100].mxu1 %vm638_vm1, %v3146_v56  ;;  %v3154_v56 = vld [vmem:[%s3222_s23 + $0x1e0] sm:$0xff]  }
  0xdf   : > { %2932 = vmatprep.mubr.msk.bf16.mxu0 %vm3166_vm0, %v3165_v1  ;;  %3056 = vmatprep.mubr.msk.bf16.mxu1 %vm3166_vm0, %v3165_v1 }
  0xe6   : > { %2933 = vmatmul.mubr.msk.bf16.gmra.mrb[104].mxu0 %vm638_vm1, %v3147_v57  ;;  %3057 = vmatmul.mubr.msk.bf16.gmra.mrb[104].mxu1 %vm638_vm1, %v3148_v58 }
  0xe7   : > { %2936 = vmatprep.mubr.msk.bf16.mxu0 %vm3166_vm0, %v3165_v1  ;;  %3060 = vmatprep.mubr.msk.bf16.mxu1 %vm3166_vm0, %v3165_v1 }
  0xe9   : > { %v856_v60 = vpop.f32.mrb[0].mxu0  ;;  %v1104_v61 = vpop.f32.mrb[0].mxu1 }
  0xea   : > { %v857_v62 = vadd.f32 %v3444_v59, %v856_v60  ;;  %v2830_v63 = vpop.f32.mrb[1].mxu0  ;;  %v1105_v0 = vadd.f32 %v3444_v59, %v1104_v61  ;;  %v2954_v3 = vpop.f32.mrb[1].mxu1 }
  0xeb   : > { %v859_v5 = vpop.f32.mrb[2].mxu0  ;;  %v1107_v6 = vpop.f32.mrb[2].mxu1 }
  0xec   : > { %vm1343_vm2 = vcmp.gt.f32.partialorder %v857_v62, 0.0  ;;  %v1465_v7 = vmul.f32 0.2, %v857_v62  ;;  %v860_v8 = vadd.f32 %v3444_v59, %v859_v5  ;;  %v2831_v9 = vpop.f32.mrb[3].mxu0  ;;  %vm1405_vm3 = vcmp.gt.f32.partialorder %v1105_v0, 0.0  ;;  %v2955_v10 = vpop.f32.mrb[3].mxu1 }
  0xed   : > { %v1527_v11 = vmul.f32 0.2, %v1105_v0  ;;  %v1108_v12 = vadd.f32 %v3444_v59, %v1107_v6 }
  0xee   : > { %v1587_v13 = vsel %vm1343_vm2, %v857_v62, %v1465_v7  ;;  %vm1344_vm5 = vcmp.gt.f32.partialorder %v860_v8, 0.0  ;;  %v1466_v14 = vmul.f32 0.2, %v860_v8  ;;  %2937 = vmatmul.mubr.msk.bf16.gmra.mrb[108].mxu0 %vm638_vm1, %v3149_v2  ;;  %3061 = vmatmul.mubr.msk.bf16.gmra.mrb[108].mxu1 %vm638_vm1, %v3150_v4 }
  0xef   : > { %v2633_v15 = vpack.c.bf16 %v1587_v13, %v1587_v13  ;;  %v1649_v16 = vsel %vm1405_vm3, %v1105_v0, %v1527_v11  ;;  %vm1406_vm6 = vcmp.gt.f32.partialorder %v1108_v12, 0.0  ;;  %v1528_v17 = vmul.f32 0.2, %v1108_v12  ;;  %2940 = vmatprep.mubr.msk.bf16.mxu0 %vm3166_vm0, %v3165_v1  ;;  %3064 = vmatprep.mubr.msk.bf16.mxu1 %vm3166_vm0, %v3165_v1 }
  0xf0   : > { %v1588_v18 = vsel %vm1344_vm5, %v860_v8, %v1466_v14  ;;  %v2695_v19 = vpack.c.bf16 %v1649_v16, %v1649_v16 }
  0xf1   : > { %2198 = vst.msk [vmem:[%s3461_s30] sm:$0xf] %vm2197_vm4, %v2633_v15  ;;  %v2634_v20 = vpack.c.bf16 %v1588_v18, %v1588_v18  ;;  %v1650_v21 = vsel %vm1406_vm6, %v1108_v12, %v1528_v17  ;;  %v864_v22 = vpop.f32.mrb[4].mxu0  ;;  %v1112_v23 = vpop.f32.mrb[4].mxu1  ;;  %v3155_v18 = vld [vmem:[%s3222_s23 + $0xf0] sm:$0xff]  }
  0xf2   : > { %2260 = vst.msk [vmem:[%s3461_s30 + $0xf8] sm:$0xf] %vm2197_vm4, %v2695_v19  ;;  %v2696_v24 = vpack.c.bf16 %v1650_v21, %v1650_v21  ;;  %v865_v25 = vadd.f32 %v3444_v59, %v864_v22  ;;  %v2834_v26 = vpop.f32.mrb[5].mxu0  ;;  %v1113_v27 = vadd.f32 %v3444_v59, %v1112_v23  ;;  %v2958_v29 = vpop.f32.mrb[5].mxu1 }
  0xf3   : > { %2199 = vst.msk [vmem:[%s3461_s30 + $0x4] sm:$0xf] %vm2197_vm4, %v2634_v20  ;;  %v867_v31 = vpop.f32.mrb[6].mxu0  ;;  %v1115_v32 = vpop.f32.mrb[6].mxu1 }
  0xf4   : > { %2261 = vst.msk [vmem:[%s3461_s30 + $0xfc] sm:$0xf] %vm2197_vm4, %v2696_v24  ;;  %vm1345_vm7 = vcmp.gt.f32.partialorder %v865_v25, 0.0  ;;  %v1467_v33 = vmul.f32 0.2, %v865_v25  ;;  %v868_v34 = vadd.f32 %v3444_v59, %v867_v31  ;;  %v2835_v35 = vpop.f32.mrb[7].mxu0  ;;  %v1116_v38 = vadd.f32 %v3444_v59, %v1115_v32 }
  0xf5   : > { %vm1407_vm8 = vcmp.gt.f32.partialorder %v1113_v27, 0.0  ;;  %v2959_v36 = vpop.f32.mrb[7].mxu1  ;;  %v1529_v37 = vmul.f32 0.2, %v1113_v27 }
  0xf6   : > { %v1589_v39 = vsel %vm1345_vm7, %v865_v25, %v1467_v33  ;;  %vm1346_vm9 = vcmp.gt.f32.partialorder %v868_v34, 0.0  ;;  %v1468_v40 = vmul.f32 0.2, %v868_v34  ;;  %2941 = vmatmul.mubr.msk.bf16.gmra.mrb[112].mxu0 %vm638_vm1, %v3151_v28  ;;  %3065 = vmatmul.mubr.msk.bf16.gmra.mrb[112].mxu1 %vm638_vm1, %v3152_v30  ;;  %vm1408_vm10 = vcmp.gt.f32.partialorder %v1116_v38, 0.0 }
  0xf7   : > { %v2635_v41 = vpack.c.bf16 %v1589_v39, %v1589_v39  ;;  %v1651_v42 = vsel %vm1407_vm8, %v1113_v27, %v1529_v37  ;;  %v1530_v43 = vmul.f32 0.2, %v1116_v38  ;;  %2944 = vmatprep.mubr.msk.bf16.mxu0 %vm3166_vm0, %v3165_v1  ;;  %3068 = vmatprep.mubr.msk.bf16.mxu1 %vm3166_vm0, %v3165_v1 }
  0xf8   : > { %v1590_v44 = vsel %vm1346_vm9, %v868_v34, %v1468_v40  ;;  %v2697_v45 = vpack.c.bf16 %v1651_v42, %v1651_v42 }
  0xf9   : > { %2200 = vst.msk [vmem:[%s3461_s30 + $0x8] sm:$0xf] %vm2197_vm4, %v2635_v41  ;;  %v2636_v46 = vpack.c.bf16 %v1590_v44, %v1590_v44  ;;  %v1652_v47 = vsel %vm1408_vm10, %v1116_v38, %v1530_v43  ;;  %v872_v48 = vpop.f32.mrb[8].mxu0  ;;  %v1120_v49 = vpop.f32.mrb[8].mxu1 }
  0xfa   : > { %2262 = vst.msk [vmem:[%s3461_s30 + $0x100] sm:$0xf] %vm2197_vm4, %v2697_v45  ;;  %v2698_v50 = vpack.c.bf16 %v1652_v47, %v1652_v47  ;;  %v873_v51 = vadd.f32 %v3444_v59, %v872_v48  ;;  %v2838_v52 = vpop.f32.mrb[9].mxu0  ;;  %v1121_v53 = vadd.f32 %v3444_v59, %v1120_v49  ;;  %v2962_v55 = vpop.f32.mrb[9].mxu1 }
  0xfb   : > { %2201 = vst.msk [vmem:[%s3461_s30 + $0xc] sm:$0xf] %vm2197_vm4, %v2636_v46  ;;  %v875_v57 = vpop.f32.mrb[10].mxu0  ;;  %v1123_v58 = vpop.f32.mrb[10].mxu1 }
  0xfc   : > { %2263 = vst.msk [vmem:[%s3461_s30 + $0x104] sm:$0xf] %vm2197_vm4, %v2698_v50  ;;  %vm1347_vm11 = vcmp.gt.f32.partialorder %v873_v51, 0.0  ;;  %v1469_v60 = vmul.f32 0.2, %v873_v51  ;;  %v876_v61 = vadd.f32 %v3444_v59, %v875_v57  ;;  %v2839_v62 = vpop.f32.mrb[11].mxu0  ;;  %v1124_v2 = vadd.f32 %v3444_v59, %v1123_v58 }
  0xfd   : > { %vm1409_vm12 = vcmp.gt.f32.partialorder %v1121_v53, 0.0  ;;  %v2963_v63 = vpop.f32.mrb[11].mxu1  ;;  %v1531_v0 = vmul.f32 0.2, %v1121_v53 }
  0xfe   : > { %v1591_v3 = vsel %vm1347_vm11, %v873_v51, %v1469_v60  ;;  %vm1348_vm13 = vcmp.gt.f32.partialorder %v876_v61, 0.0  ;;  %v1470_v4 = vmul.f32 0.2, %v876_v61  ;;  %2945 = vmatmul.mubr.msk.bf16.gmra.mrb[116].mxu0 %vm638_vm1, %v3153_v54  ;;  %3069 = vmatmul.mubr.msk.bf16.gmra.mrb[116].mxu1 %vm638_vm1, %v3154_v56  ;;  %vm1410_vm14 = vcmp.gt.f32.partialorder %v1124_v2, 0.0 }
  0xff   : > { %v2637_v5 = vpack.c.bf16 %v1591_v3, %v1591_v3  ;;  %v1653_v6 = vsel %vm1409_vm12, %v1121_v53, %v1531_v0  ;;  %v1532_v7 = vmul.f32 0.2, %v1124_v2  ;;  %2948 = vmatprep.mubr.msk.bf16.mxu0 %vm3166_vm0, %v3165_v1 }
 0x100   : > { %v1592_v8 = vsel %vm1348_vm13, %v876_v61, %v1470_v4  ;;  %v2699_v9 = vpack.c.bf16 %v1653_v6, %v1653_v6 }
 0x101   : > { %2202 = vst.msk [vmem:[%s3461_s30 + $0x10] sm:$0xf] %vm2197_vm4, %v2637_v5  ;;  %v2638_v10 = vpack.c.bf16 %v1592_v8, %v1592_v8  ;;  %v1654_v11 = vsel %vm1410_vm14, %v1124_v2, %v1532_v7  ;;  %v880_v12 = vpop.f32.mrb[12].mxu0  ;;  %v1128_v13 = vpop.f32.mrb[12].mxu1 }
 0x102   : > { %2264 = vst.msk [vmem:[%s3461_s30 + $0x108] sm:$0xf] %vm2197_vm4, %v2699_v9  ;;  %v2700_v14 = vpack.c.bf16 %v1654_v11, %v1654_v11  ;;  %v881_v15 = vadd.f32 %v3444_v59, %v880_v12  ;;  %v2842_v16 = vpop.f32.mrb[13].mxu0  ;;  %v1129_v17 = vadd.f32 %v3444_v59, %v1128_v13  ;;  %v2966_v19 = vpop.f32.mrb[13].mxu1 }
 0x103   : > { %2203 = vst.msk [vmem:[%s3461_s30 + $0x14] sm:$0xf] %vm2197_vm4, %v2638_v10  ;;  %v883_v1 = vpop.f32.mrb[14].mxu0  ;;  %v1131_v20 = vpop.f32.mrb[14].mxu1 }
 0x104   : > { %2265 = vst.msk [vmem:[%s3461_s30 + $0x10c] sm:$0xf] %vm2197_vm4, %v2700_v14  ;;  %vm1349_vm15 = vcmp.gt.f32.partialorder %v881_v15, 0.0  ;;  %v1471_v21 = vmul.f32 0.2, %v881_v15  ;;  %v884_v22 = vadd.f32 %v3444_v59, %v883_v1  ;;  %v2843_v23 = vpop.f32.mrb[15].mxu0  ;;  %v1132_v26 = vadd.f32 %v3444_v59, %v1131_v20 }
 0x105   : > { %vm1411_vm0 = vcmp.gt.f32.partialorder %v1129_v17, 0.0  ;;  %v2967_v24 = vpop.f32.mrb[15].mxu1  ;;  %v1533_v25 = vmul.f32 0.2, %v1129_v17 }
 0x106   : > { %v1593_v27 = vsel %vm1349_vm15, %v881_v15, %v1471_v21  ;;  %vm1350_vm2 = vcmp.gt.f32.partialorder %v884_v22, 0.0  ;;  %v1472_v28 = vmul.f32 0.2, %v884_v22  ;;  %2949 = vmatmul.mubr.msk.bf16.gmra.mrb[120].mxu0 %vm638_vm1, %v3155_v18  ;;  %vm1412_vm3 = vcmp.gt.f32.partialorder %v1132_v26, 0.0 }
 0x107   : > { %v2639_v29 = vpack.c.bf16 %v1593_v27, %v1593_v27  ;;  %v1655_v30 = vsel %vm1411_vm0, %v1129_v17, %v1533_v25  ;;  %v1534_v31 = vmul.f32 0.2, %v1132_v26 }
 0x108   : > { %v1594_v32 = vsel %vm1350_vm2, %v884_v22, %v1472_v28  ;;  %v2701_v33 = vpack.c.bf16 %v1655_v30, %v1655_v30 }
 0x109   : > { %2204 = vst.msk [vmem:[%s3461_s30 + $0x18] sm:$0xf] %vm2197_vm4, %v2639_v29  ;;  %v2640_v34 = vpack.c.bf16 %v1594_v32, %v1594_v32  ;;  %v1656_v35 = vsel %vm1412_vm3, %v1132_v26, %v1534_v31  ;;  %v888_v36 = vpop.f32.mrb[16].mxu0  ;;  %v1136_v37 = vpop.f32.mrb[16].mxu1 }
 0x10a   : > { %2266 = vst.msk [vmem:[%s3461_s30 + $0x110] sm:$0xf] %vm2197_vm4, %v2701_v33  ;;  %v2702_v38 = vpack.c.bf16 %v1656_v35, %v1656_v35  ;;  %v889_v39 = vadd.f32 %v3444_v59, %v888_v36  ;;  %v2846_v40 = vpop.f32.mrb[17].mxu0  ;;  %v1137_v41 = vadd.f32 %v3444_v59, %v1136_v37  ;;  %v2970_v42 = vpop.f32.mrb[17].mxu1 }
 0x10b   : > { %2205 = vst.msk [vmem:[%s3461_s30 + $0x1c] sm:$0xf] %vm2197_vm4, %v2640_v34  ;;  %v891_v43 = vpop.f32.mrb[18].mxu0  ;;  %v1139_v44 = vpop.f32.mrb[18].mxu1 }
 0x10c   : > { %2267 = vst.msk [vmem:[%s3461_s30 + $0x114] sm:$0xf] %vm2197_vm4, %v2702_v38  ;;  %vm1351_vm1 = vcmp.gt.f32.partialorder %v889_v39, 0.0  ;;  %v1473_v45 = vmul.f32 0.2, %v889_v39  ;;  %v892_v46 = vadd.f32 %v3444_v59, %v891_v43  ;;  %v2847_v47 = vpop.f32.mrb[19].mxu0  ;;  %v1140_v50 = vadd.f32 %v3444_v59, %v1139_v44 }
 0x10d   : > { %vm1413_vm5 = vcmp.gt.f32.partialorder %v1137_v41, 0.0  ;;  %v2971_v48 = vpop.f32.mrb[19].mxu1  ;;  %v1535_v49 = vmul.f32 0.2, %v1137_v41 }
 0x10e   : > { %v1595_v51 = vsel %vm1351_vm1, %v889_v39, %v1473_v45  ;;  %vm1352_vm6 = vcmp.gt.f32.partialorder %v892_v46, 0.0  ;;  %v1474_v52 = vmul.f32 0.2, %v892_v46  ;;  %vm1414_vm7 = vcmp.gt.f32.partialorder %v1140_v50, 0.0 }
 0x10f   : > { %v2641_v53 = vpack.c.bf16 %v1595_v51, %v1595_v51  ;;  %v1657_v54 = vsel %vm1413_vm5, %v1137_v41, %v1535_v49  ;;  %v1536_v55 = vmul.f32 0.2, %v1140_v50 }
 0x110   : > { %v1596_v56 = vsel %vm1352_vm6, %v892_v46, %v1474_v52  ;;  %v2703_v57 = vpack.c.bf16 %v1657_v54, %v1657_v54 }
 0x111   : > { %2206 = vst.msk [vmem:[%s3461_s30 + $0x20] sm:$0xf] %vm2197_vm4, %v2641_v53  ;;  %v2642_v58 = vpack.c.bf16 %v1596_v56, %v1596_v56  ;;  %v1658_v60 = vsel %vm1414_vm7, %v1140_v50, %v1536_v55  ;;  %v896_v61 = vpop.f32.mrb[20].mxu0  ;;  %v1144_v62 = vpop.f32.mrb[20].mxu1 }
 0x112   : > { %2268 = vst.msk [vmem:[%s3461_s30 + $0x118] sm:$0xf] %vm2197_vm4, %v2703_v57  ;;  %v2704_v63 = vpack.c.bf16 %v1658_v60, %v1658_v60  ;;  %v897_v0 = vadd.f32 %v3444_v59, %v896_v61  ;;  %v2850_v2 = vpop.f32.mrb[21].mxu0  ;;  %v1145_v3 = vadd.f32 %v3444_v59, %v1144_v62  ;;  %v2974_v4 = vpop.f32.mrb[21].mxu1 }
 0x113   : > { %2207 = vst.msk [vmem:[%s3461_s30 + $0x24] sm:$0xf] %vm2197_vm4, %v2642_v58  ;;  %v899_v5 = vpop.f32.mrb[22].mxu0  ;;  %v1147_v6 = vpop.f32.mrb[22].mxu1 }
 0x114   : > { %2269 = vst.msk [vmem:[%s3461_s30 + $0x11c] sm:$0xf] %vm2197_vm4, %v2704_v63  ;;  %vm1353_vm8 = vcmp.gt.f32.partialorder %v897_v0, 0.0  ;;  %v1475_v7 = vmul.f32 0.2, %v897_v0  ;;  %v900_v8 = vadd.f32 %v3444_v59, %v899_v5  ;;  %v2851_v9 = vpop.f32.mrb[23].mxu0  ;;  %v1148_v12 = vadd.f32 %v3444_v59, %v1147_v6 }
 0x115   : > { %vm1415_vm9 = vcmp.gt.f32.partialorder %v1145_v3, 0.0  ;;  %v2975_v10 = vpop.f32.mrb[23].mxu1  ;;  %v1537_v11 = vmul.f32 0.2, %v1145_v3 }
 0x116   : > { %v1597_v13 = vsel %vm1353_vm8, %v897_v0, %v1475_v7  ;;  %vm1354_vm10 = vcmp.gt.f32.partialorder %v900_v8, 0.0  ;;  %v1476_v14 = vmul.f32 0.2, %v900_v8  ;;  %vm1416_vm11 = vcmp.gt.f32.partialorder %v1148_v12, 0.0 }
 0x117   : > { %v2643_v15 = vpack.c.bf16 %v1597_v13, %v1597_v13  ;;  %v1659_v16 = vsel %vm1415_vm9, %v1145_v3, %v1537_v11  ;;  %v1538_v17 = vmul.f32 0.2, %v1148_v12 }
 0x118   : > { %v1598_v18 = vsel %vm1354_vm10, %v900_v8, %v1476_v14  ;;  %v2705_v19 = vpack.c.bf16 %v1659_v16, %v1659_v16 }
 0x119   : > { %2208 = vst.msk [vmem:[%s3461_s30 + $0x28] sm:$0xf] %vm2197_vm4, %v2643_v15  ;;  %v2644_v1 = vpack.c.bf16 %v1598_v18, %v1598_v18  ;;  %v1660_v20 = vsel %vm1416_vm11, %v1148_v12, %v1538_v17  ;;  %v904_v21 = vpop.f32.mrb[24].mxu0  ;;  %v1152_v22 = vpop.f32.mrb[24].mxu1 }
 0x11a   : > { %2270 = vst.msk [vmem:[%s3461_s30 + $0x120] sm:$0xf] %vm2197_vm4, %v2705_v19  ;;  %v2706_v23 = vpack.c.bf16 %v1660_v20, %v1660_v20  ;;  %v905_v24 = vadd.f32 %v3444_v59, %v904_v21  ;;  %v2854_v25 = vpop.f32.mrb[25].mxu0  ;;  %v1153_v26 = vadd.f32 %v3444_v59, %v1152_v22  ;;  %v2978_v27 = vpop.f32.mrb[25].mxu1 }
 0x11b   : > { %2209 = vst.msk [vmem:[%s3461_s30 + $0x2c] sm:$0xf] %vm2197_vm4, %v2644_v1  ;;  %v907_v28 = vpop.f32.mrb[26].mxu0  ;;  %v1155_v29 = vpop.f32.mrb[26].mxu1 }
 0x11c   : > { %2271 = vst.msk [vmem:[%s3461_s30 + $0x124] sm:$0xf] %vm2197_vm4, %v2706_v23  ;;  %vm1355_vm12 = vcmp.gt.f32.partialorder %v905_v24, 0.0  ;;  %v1477_v30 = vmul.f32 0.2, %v905_v24  ;;  %v908_v31 = vadd.f32 %v3444_v59, %v907_v28  ;;  %v2855_v32 = vpop.f32.mrb[27].mxu0  ;;  %v1156_v35 = vadd.f32 %v3444_v59, %v1155_v29 }
 0x11d   : > { %vm1417_vm13 = vcmp.gt.f32.partialorder %v1153_v26, 0.0  ;;  %v2979_v33 = vpop.f32.mrb[27].mxu1  ;;  %v1539_v34 = vmul.f32 0.2, %v1153_v26 }
 0x11e   : > { %v1599_v36 = vsel %vm1355_vm12, %v905_v24, %v1477_v30  ;;  %vm1356_vm14 = vcmp.gt.f32.partialorder %v908_v31, 0.0  ;;  %v1478_v37 = vmul.f32 0.2, %v908_v31  ;;  %vm1418_vm15 = vcmp.gt.f32.partialorder %v1156_v35, 0.0 }
 0x11f   : > { %v2645_v38 = vpack.c.bf16 %v1599_v36, %v1599_v36  ;;  %v1661_v39 = vsel %vm1417_vm13, %v1153_v26, %v1539_v34  ;;  %v1540_v40 = vmul.f32 0.2, %v1156_v35 }
 0x120   : > { %v1600_v41 = vsel %vm1356_vm14, %v908_v31, %v1478_v37  ;;  %v2707_v42 = vpack.c.bf16 %v1661_v39, %v1661_v39 }
 0x121   : > { %2210 = vst.msk [vmem:[%s3461_s30 + $0x30] sm:$0xf] %vm2197_vm4, %v2645_v38  ;;  %v2646_v43 = vpack.c.bf16 %v1600_v41, %v1600_v41  ;;  %v1662_v44 = vsel %vm1418_vm15, %v1156_v35, %v1540_v40  ;;  %v912_v45 = vpop.f32.mrb[28].mxu0  ;;  %v1160_v46 = vpop.f32.mrb[28].mxu1 }
 0x122   : > { %2272 = vst.msk [vmem:[%s3461_s30 + $0x128] sm:$0xf] %vm2197_vm4, %v2707_v42  ;;  %v2708_v47 = vpack.c.bf16 %v1662_v44, %v1662_v44  ;;  %v913_v48 = vadd.f32 %v3444_v59, %v912_v45  ;;  %v2858_v49 = vpop.f32.mrb[29].mxu0  ;;  %v1161_v50 = vadd.f32 %v3444_v59, %v1160_v46  ;;  %v2982_v51 = vpop.f32.mrb[29].mxu1 }
 0x123   : > { %2211 = vst.msk [vmem:[%s3461_s30 + $0x34] sm:$0xf] %vm2197_vm4, %v2646_v43  ;;  %v915_v52 = vpop.f32.mrb[30].mxu0  ;;  %v1163_v53 = vpop.f32.mrb[30].mxu1 }
 0x124   : > { %2273 = vst.msk [vmem:[%s3461_s30 + $0x12c] sm:$0xf] %vm2197_vm4, %v2708_v47  ;;  %vm1357_vm0 = vcmp.gt.f32.partialorder %v913_v48, 0.0  ;;  %v1479_v54 = vmul.f32 0.2, %v913_v48  ;;  %v916_v55 = vadd.f32 %v3444_v59, %v915_v52  ;;  %v2859_v56 = vpop.f32.mrb[31].mxu0  ;;  %v1164_v60 = vadd.f32 %v3444_v59, %v1163_v53 }
 0x125   : > { %vm1419_vm2 = vcmp.gt.f32.partialorder %v1161_v50, 0.0  ;;  %v2983_v57 = vpop.f32.mrb[31].mxu1  ;;  %v1541_v58 = vmul.f32 0.2, %v1161_v50 }
 0x126   : > { %v1601_v61 = vsel %vm1357_vm0, %v913_v48, %v1479_v54  ;;  %vm1358_vm3 = vcmp.gt.f32.partialorder %v916_v55, 0.0  ;;  %v1480_v62 = vmul.f32 0.2, %v916_v55  ;;  %vm1420_vm1 = vcmp.gt.f32.partialorder %v1164_v60, 0.0 }
 0x127   : > { %v2647_v63 = vpack.c.bf16 %v1601_v61, %v1601_v61  ;;  %v1663_v0 = vsel %vm1419_vm2, %v1161_v50, %v1541_v58  ;;  %v1542_v2 = vmul.f32 0.2, %v1164_v60 }
 0x128   : > { %v1602_v3 = vsel %vm1358_vm3, %v916_v55, %v1480_v62  ;;  %v2709_v4 = vpack.c.bf16 %v1663_v0, %v1663_v0 }
 0x129   : > { %2212 = vst.msk [vmem:[%s3461_s30 + $0x38] sm:$0xf] %vm2197_vm4, %v2647_v63  ;;  %v2648_v5 = vpack.c.bf16 %v1602_v3, %v1602_v3  ;;  %v1664_v6 = vsel %vm1420_vm1, %v1164_v60, %v1542_v2  ;;  %v920_v7 = vpop.f32.mrb[32].mxu0  ;;  %v1168_v8 = vpop.f32.mrb[32].mxu1 }
 0x12a   : > { %2274 = vst.msk [vmem:[%s3461_s30 + $0x130] sm:$0xf] %vm2197_vm4, %v2709_v4  ;;  %v2710_v9 = vpack.c.bf16 %v1664_v6, %v1664_v6  ;;  %v921_v10 = vadd.f32 %v3444_v59, %v920_v7  ;;  %v2862_v11 = vpop.f32.mrb[33].mxu0  ;;  %v1169_v12 = vadd.f32 %v3444_v59, %v1168_v8  ;;  %v2986_v13 = vpop.f32.mrb[33].mxu1 }
 0x12b   : > { %2213 = vst.msk [vmem:[%s3461_s30 + $0x3c] sm:$0xf] %vm2197_vm4, %v2648_v5  ;;  %v923_v14 = vpop.f32.mrb[34].mxu0  ;;  %v1171_v15 = vpop.f32.mrb[34].mxu1 }
 0x12c   : > { %2275 = vst.msk [vmem:[%s3461_s30 + $0x134] sm:$0xf] %vm2197_vm4, %v2710_v9  ;;  %vm1359_vm5 = vcmp.gt.f32.partialorder %v921_v10, 0.0  ;;  %v1481_v16 = vmul.f32 0.2, %v921_v10  ;;  %v924_v17 = vadd.f32 %v3444_v59, %v923_v14  ;;  %v2863_v18 = vpop.f32.mrb[35].mxu0  ;;  %v1172_v20 = vadd.f32 %v3444_v59, %v1171_v15 }
 0x12d   : > { %vm1421_vm6 = vcmp.gt.f32.partialorder %v1169_v12, 0.0  ;;  %v2987_v19 = vpop.f32.mrb[35].mxu1  ;;  %v1543_v1 = vmul.f32 0.2, %v1169_v12 }
 0x12e   : > { %v1603_v21 = vsel %vm1359_vm5, %v921_v10, %v1481_v16  ;;  %vm1360_vm7 = vcmp.gt.f32.partialorder %v924_v17, 0.0  ;;  %v1482_v22 = vmul.f32 0.2, %v924_v17  ;;  %vm1422_vm8 = vcmp.gt.f32.partialorder %v1172_v20, 0.0 }
 0x12f   : > { %v2649_v23 = vpack.c.bf16 %v1603_v21, %v1603_v21  ;;  %v1665_v24 = vsel %vm1421_vm6, %v1169_v12, %v1543_v1  ;;  %v1544_v25 = vmul.f32 0.2, %v1172_v20 }
 0x130   : > { %v1604_v26 = vsel %vm1360_vm7, %v924_v17, %v1482_v22  ;;  %v2711_v27 = vpack.c.bf16 %v1665_v24, %v1665_v24 }
 0x131   : > { %2214 = vst.msk [vmem:[%s3461_s30 + $0x40] sm:$0xf] %vm2197_vm4, %v2649_v23  ;;  %v2650_v28 = vpack.c.bf16 %v1604_v26, %v1604_v26  ;;  %v1666_v29 = vsel %vm1422_vm8, %v1172_v20, %v1544_v25  ;;  %v928_v30 = vpop.f32.mrb[36].mxu0  ;;  %v1176_v31 = vpop.f32.mrb[36].mxu1 }
 0x132   : > { %2276 = vst.msk [vmem:[%s3461_s30 + $0x138] sm:$0xf] %vm2197_vm4, %v2711_v27  ;;  %v2712_v32 = vpack.c.bf16 %v1666_v29, %v1666_v29  ;;  %v929_v33 = vadd.f32 %v3444_v59, %v928_v30  ;;  %v2866_v34 = vpop.f32.mrb[37].mxu0  ;;  %v1177_v35 = vadd.f32 %v3444_v59, %v1176_v31  ;;  %v2990_v36 = vpop.f32.mrb[37].mxu1 }
 0x133   : > { %2215 = vst.msk [vmem:[%s3461_s30 + $0x44] sm:$0xf] %vm2197_vm4, %v2650_v28  ;;  %v931_v37 = vpop.f32.mrb[38].mxu0  ;;  %v1179_v38 = vpop.f32.mrb[38].mxu1 }
 0x134   : > { %2277 = vst.msk [vmem:[%s3461_s30 + $0x13c] sm:$0xf] %vm2197_vm4, %v2712_v32  ;;  %vm1361_vm9 = vcmp.gt.f32.partialorder %v929_v33, 0.0  ;;  %v1483_v39 = vmul.f32 0.2, %v929_v33  ;;  %v932_v40 = vadd.f32 %v3444_v59, %v931_v37  ;;  %v2867_v41 = vpop.f32.mrb[39].mxu0  ;;  %v1180_v44 = vadd.f32 %v3444_v59, %v1179_v38 }
 0x135   : > { %vm1423_vm10 = vcmp.gt.f32.partialorder %v1177_v35, 0.0  ;;  %v2991_v42 = vpop.f32.mrb[39].mxu1  ;;  %v1545_v43 = vmul.f32 0.2, %v1177_v35 }
 0x136   : > { %v1605_v45 = vsel %vm1361_vm9, %v929_v33, %v1483_v39  ;;  %vm1362_vm11 = vcmp.gt.f32.partialorder %v932_v40, 0.0  ;;  %v1484_v46 = vmul.f32 0.2, %v932_v40  ;;  %vm1424_vm12 = vcmp.gt.f32.partialorder %v1180_v44, 0.0 }
 0x137   : > { %v2651_v47 = vpack.c.bf16 %v1605_v45, %v1605_v45  ;;  %v1667_v48 = vsel %vm1423_vm10, %v1177_v35, %v1545_v43  ;;  %v1546_v49 = vmul.f32 0.2, %v1180_v44 }
 0x138   : > { %v1606_v50 = vsel %vm1362_vm11, %v932_v40, %v1484_v46  ;;  %v2713_v51 = vpack.c.bf16 %v1667_v48, %v1667_v48 }
 0x139   : > { %2216 = vst.msk [vmem:[%s3461_s30 + $0x48] sm:$0xf] %vm2197_vm4, %v2651_v47  ;;  %v2652_v52 = vpack.c.bf16 %v1606_v50, %v1606_v50  ;;  %v1668_v53 = vsel %vm1424_vm12, %v1180_v44, %v1546_v49  ;;  %v936_v54 = vpop.f32.mrb[40].mxu0  ;;  %v1184_v55 = vpop.f32.mrb[40].mxu1 }
 0x13a   : > { %2278 = vst.msk [vmem:[%s3461_s30 + $0x140] sm:$0xf] %vm2197_vm4, %v2713_v51  ;;  %v2714_v56 = vpack.c.bf16 %v1668_v53, %v1668_v53  ;;  %v937_v57 = vadd.f32 %v3444_v59, %v936_v54  ;;  %v2870_v58 = vpop.f32.mrb[41].mxu0  ;;  %v1185_v60 = vadd.f32 %v3444_v59, %v1184_v55  ;;  %v2994_v61 = vpop.f32.mrb[41].mxu1 }
 0x13b   : > { %2217 = vst.msk [vmem:[%s3461_s30 + $0x4c] sm:$0xf] %vm2197_vm4, %v2652_v52  ;;  %v939_v62 = vpop.f32.mrb[42].mxu0  ;;  %v1187_v63 = vpop.f32.mrb[42].mxu1 }
 0x13c   : > { %2279 = vst.msk [vmem:[%s3461_s30 + $0x144] sm:$0xf] %vm2197_vm4, %v2714_v56  ;;  %vm1363_vm13 = vcmp.gt.f32.partialorder %v937_v57, 0.0  ;;  %v1485_v0 = vmul.f32 0.2, %v937_v57  ;;  %v940_v2 = vadd.f32 %v3444_v59, %v939_v62  ;;  %v2871_v3 = vpop.f32.mrb[43].mxu0  ;;  %v1188_v6 = vadd.f32 %v3444_v59, %v1187_v63 }
 0x13d   : > { %vm1425_vm14 = vcmp.gt.f32.partialorder %v1185_v60, 0.0  ;;  %v2995_v4 = vpop.f32.mrb[43].mxu1  ;;  %v1547_v5 = vmul.f32 0.2, %v1185_v60 }
 0x13e   : > { %v1607_v7 = vsel %vm1363_vm13, %v937_v57, %v1485_v0  ;;  %vm1364_vm15 = vcmp.gt.f32.partialorder %v940_v2, 0.0  ;;  %v1486_v8 = vmul.f32 0.2, %v940_v2  ;;  %vm1426_vm0 = vcmp.gt.f32.partialorder %v1188_v6, 0.0 }
 0x13f   : > { %v2653_v9 = vpack.c.bf16 %v1607_v7, %v1607_v7  ;;  %v1669_v10 = vsel %vm1425_vm14, %v1185_v60, %v1547_v5  ;;  %v1548_v11 = vmul.f32 0.2, %v1188_v6 }
 0x140   : > { %v1608_v12 = vsel %vm1364_vm15, %v940_v2, %v1486_v8  ;;  %v2715_v13 = vpack.c.bf16 %v1669_v10, %v1669_v10 }
 0x141   : > { %2218 = vst.msk [vmem:[%s3461_s30 + $0x50] sm:$0xf] %vm2197_vm4, %v2653_v9  ;;  %v2654_v14 = vpack.c.bf16 %v1608_v12, %v1608_v12  ;;  %v1670_v15 = vsel %vm1426_vm0, %v1188_v6, %v1548_v11  ;;  %v944_v16 = vpop.f32.mrb[44].mxu0  ;;  %v1192_v17 = vpop.f32.mrb[44].mxu1 }
 0x142   : > { %2280 = vst.msk [vmem:[%s3461_s30 + $0x148] sm:$0xf] %vm2197_vm4, %v2715_v13  ;;  %v2716_v18 = vpack.c.bf16 %v1670_v15, %v1670_v15  ;;  %v945_v19 = vadd.f32 %v3444_v59, %v944_v16  ;;  %v2874_v1 = vpop.f32.mrb[45].mxu0  ;;  %v1193_v20 = vadd.f32 %v3444_v59, %v1192_v17  ;;  %v2998_v21 = vpop.f32.mrb[45].mxu1 }
 0x143   : > { %2219 = vst.msk [vmem:[%s3461_s30 + $0x54] sm:$0xf] %vm2197_vm4, %v2654_v14  ;;  %v947_v22 = vpop.f32.mrb[46].mxu0  ;;  %v1195_v23 = vpop.f32.mrb[46].mxu1 }
 0x144   : > { %2281 = vst.msk [vmem:[%s3461_s30 + $0x14c] sm:$0xf] %vm2197_vm4, %v2716_v18  ;;  %vm1365_vm2 = vcmp.gt.f32.partialorder %v945_v19, 0.0  ;;  %v1487_v24 = vmul.f32 0.2, %v945_v19  ;;  %v948_v25 = vadd.f32 %v3444_v59, %v947_v22  ;;  %v2875_v26 = vpop.f32.mrb[47].mxu0  ;;  %v1196_v29 = vadd.f32 %v3444_v59, %v1195_v23 }
 0x145   : > { %vm1427_vm3 = vcmp.gt.f32.partialorder %v1193_v20, 0.0  ;;  %v2999_v27 = vpop.f32.mrb[47].mxu1  ;;  %v1549_v28 = vmul.f32 0.2, %v1193_v20 }
 0x146   : > { %v1609_v30 = vsel %vm1365_vm2, %v945_v19, %v1487_v24  ;;  %vm1366_vm1 = vcmp.gt.f32.partialorder %v948_v25, 0.0  ;;  %v1488_v31 = vmul.f32 0.2, %v948_v25  ;;  %vm1428_vm5 = vcmp.gt.f32.partialorder %v1196_v29, 0.0 }
 0x147   : > { %v2655_v32 = vpack.c.bf16 %v1609_v30, %v1609_v30  ;;  %v1671_v33 = vsel %vm1427_vm3, %v1193_v20, %v1549_v28  ;;  %v1550_v34 = vmul.f32 0.2, %v1196_v29 }
 0x148   : > { %v1610_v35 = vsel %vm1366_vm1, %v948_v25, %v1488_v31  ;;  %v2717_v36 = vpack.c.bf16 %v1671_v33, %v1671_v33 }
 0x149   : > { %2220 = vst.msk [vmem:[%s3461_s30 + $0x58] sm:$0xf] %vm2197_vm4, %v2655_v32  ;;  %v2656_v37 = vpack.c.bf16 %v1610_v35, %v1610_v35  ;;  %v1672_v38 = vsel %vm1428_vm5, %v1196_v29, %v1550_v34  ;;  %v952_v39 = vpop.f32.mrb[48].mxu0  ;;  %v1200_v40 = vpop.f32.mrb[48].mxu1 }
 0x14a   : > { %2282 = vst.msk [vmem:[%s3461_s30 + $0x150] sm:$0xf] %vm2197_vm4, %v2717_v36  ;;  %v2718_v41 = vpack.c.bf16 %v1672_v38, %v1672_v38  ;;  %v953_v42 = vadd.f32 %v3444_v59, %v952_v39  ;;  %v2878_v43 = vpop.f32.mrb[49].mxu0  ;;  %v1201_v44 = vadd.f32 %v3444_v59, %v1200_v40  ;;  %v3002_v45 = vpop.f32.mrb[49].mxu1 }
 0x14b   : > { %2221 = vst.msk [vmem:[%s3461_s30 + $0x5c] sm:$0xf] %vm2197_vm4, %v2656_v37  ;;  %v955_v46 = vpop.f32.mrb[50].mxu0  ;;  %v1203_v47 = vpop.f32.mrb[50].mxu1 }
 0x14c   : > { %2283 = vst.msk [vmem:[%s3461_s30 + $0x154] sm:$0xf] %vm2197_vm4, %v2718_v41  ;;  %vm1367_vm6 = vcmp.gt.f32.partialorder %v953_v42, 0.0  ;;  %v1489_v48 = vmul.f32 0.2, %v953_v42  ;;  %v956_v49 = vadd.f32 %v3444_v59, %v955_v46  ;;  %v2879_v50 = vpop.f32.mrb[51].mxu0  ;;  %v1204_v53 = vadd.f32 %v3444_v59, %v1203_v47 }
 0x14d   : > { %vm1429_vm7 = vcmp.gt.f32.partialorder %v1201_v44, 0.0  ;;  %v3003_v51 = vpop.f32.mrb[51].mxu1  ;;  %v1551_v52 = vmul.f32 0.2, %v1201_v44 }
 0x14e   : > { %v1611_v54 = vsel %vm1367_vm6, %v953_v42, %v1489_v48  ;;  %vm1368_vm8 = vcmp.gt.f32.partialorder %v956_v49, 0.0  ;;  %v1490_v55 = vmul.f32 0.2, %v956_v49  ;;  %vm1430_vm9 = vcmp.gt.f32.partialorder %v1204_v53, 0.0 }
 0x14f   : > { %v2657_v56 = vpack.c.bf16 %v1611_v54, %v1611_v54  ;;  %v1673_v57 = vsel %vm1429_vm7, %v1201_v44, %v1551_v52  ;;  %v1552_v58 = vmul.f32 0.2, %v1204_v53 }
 0x150   : > { %v1612_v60 = vsel %vm1368_vm8, %v956_v49, %v1490_v55  ;;  %v2719_v61 = vpack.c.bf16 %v1673_v57, %v1673_v57 }
 0x151   : > { %2222 = vst.msk [vmem:[%s3461_s30 + $0x60] sm:$0xf] %vm2197_vm4, %v2657_v56  ;;  %v2658_v62 = vpack.c.bf16 %v1612_v60, %v1612_v60  ;;  %v1674_v63 = vsel %vm1430_vm9, %v1204_v53, %v1552_v58  ;;  %v960_v0 = vpop.f32.mrb[52].mxu0  ;;  %v1208_v2 = vpop.f32.mrb[52].mxu1  ;;  %v3666_v58 = vld [vmem:[%s3857_s2] ss:$0 sm:$0xff] }
 0x152   : > { %2284 = vst.msk [vmem:[%s3461_s30 + $0x158] sm:$0xf] %vm2197_vm4, %v2719_v61  ;;  %v2720_v3 = vpack.c.bf16 %v1674_v63, %v1674_v63  ;;  %v961_v4 = vadd.f32 %v3444_v59, %v960_v0  ;;  %v2882_v5 = vpop.f32.mrb[53].mxu0  ;;  %v1209_v6 = vadd.f32 %v3444_v59, %v1208_v2  ;;  %v3006_v7 = vpop.f32.mrb[53].mxu1 }
 0x153   : > { %2223 = vst.msk [vmem:[%s3461_s30 + $0x64] sm:$0xf] %vm2197_vm4, %v2658_v62  ;;  %v963_v8 = vpop.f32.mrb[54].mxu0  ;;  %v1211_v9 = vpop.f32.mrb[54].mxu1 }
 0x154   : > { %2285 = vst.msk [vmem:[%s3461_s30 + $0x15c] sm:$0xf] %vm2197_vm4, %v2720_v3  ;;  %vm1369_vm10 = vcmp.gt.f32.partialorder %v961_v4, 0.0  ;;  %v1491_v10 = vmul.f32 0.2, %v961_v4  ;;  %v964_v11 = vadd.f32 %v3444_v59, %v963_v8  ;;  %v2883_v12 = vpop.f32.mrb[55].mxu0  ;;  %v1212_v15 = vadd.f32 %v3444_v59, %v1211_v9 }
 0x155   : > { %vm1431_vm11 = vcmp.gt.f32.partialorder %v1209_v6, 0.0  ;;  %v3007_v13 = vpop.f32.mrb[55].mxu1  ;;  %v1553_v14 = vmul.f32 0.2, %v1209_v6 }
 0x156   : > { %v1613_v16 = vsel %vm1369_vm10, %v961_v4, %v1491_v10  ;;  %vm1370_vm12 = vcmp.gt.f32.partialorder %v964_v11, 0.0  ;;  %v1492_v17 = vmul.f32 0.2, %v964_v11  ;;  %vm1432_vm13 = vcmp.gt.f32.partialorder %v1212_v15, 0.0 }
 0x157   : > { %v2659_v18 = vpack.c.bf16 %v1613_v16, %v1613_v16  ;;  %v1675_v19 = vsel %vm1431_vm11, %v1209_v6, %v1553_v14  ;;  %v1554_v1 = vmul.f32 0.2, %v1212_v15 }
 0x158   : > { %v1614_v20 = vsel %vm1370_vm12, %v964_v11, %v1492_v17  ;;  %v2721_v21 = vpack.c.bf16 %v1675_v19, %v1675_v19 }
 0x159   : > { %2224 = vst.msk [vmem:[%s3461_s30 + $0x68] sm:$0xf] %vm2197_vm4, %v2659_v18  ;;  %v2660_v22 = vpack.c.bf16 %v1614_v20, %v1614_v20  ;;  %v1676_v23 = vsel %vm1432_vm13, %v1212_v15, %v1554_v1  ;;  %v968_v24 = vpop.f32.mrb[56].mxu0  ;;  %v1216_v25 = vpop.f32.mrb[56].mxu1 }
 0x15a   : > { %2286 = vst.msk [vmem:[%s3461_s30 + $0x160] sm:$0xf] %vm2197_vm4, %v2721_v21  ;;  %v2722_v26 = vpack.c.bf16 %v1676_v23, %v1676_v23  ;;  %v969_v27 = vadd.f32 %v3444_v59, %v968_v24  ;;  %v2886_v28 = vpop.f32.mrb[57].mxu0  ;;  %v1217_v29 = vadd.f32 %v3444_v59, %v1216_v25  ;;  %v3010_v30 = vpop.f32.mrb[57].mxu1 }
 0x15b   : > { %2225 = vst.msk [vmem:[%s3461_s30 + $0x6c] sm:$0xf] %vm2197_vm4, %v2660_v22  ;;  %v971_v31 = vpop.f32.mrb[58].mxu0  ;;  %v1219_v32 = vpop.f32.mrb[58].mxu1 }
 0x15c   : > { %2287 = vst.msk [vmem:[%s3461_s30 + $0x164] sm:$0xf] %vm2197_vm4, %v2722_v26  ;;  %vm1371_vm14 = vcmp.gt.f32.partialorder %v969_v27, 0.0  ;;  %v1493_v33 = vmul.f32 0.2, %v969_v27  ;;  %v972_v34 = vadd.f32 %v3444_v59, %v971_v31  ;;  %v2887_v35 = vpop.f32.mrb[59].mxu0  ;;  %v1220_v38 = vadd.f32 %v3444_v59, %v1219_v32 }
 0x15d   : > { %vm1433_vm15 = vcmp.gt.f32.partialorder %v1217_v29, 0.0  ;;  %v3011_v36 = vpop.f32.mrb[59].mxu1  ;;  %v1555_v37 = vmul.f32 0.2, %v1217_v29 }
 0x15e   : > { %v1615_v39 = vsel %vm1371_vm14, %v969_v27, %v1493_v33  ;;  %vm1372_vm0 = vcmp.gt.f32.partialorder %v972_v34, 0.0  ;;  %v1494_v40 = vmul.f32 0.2, %v972_v34  ;;  %vm1434_vm2 = vcmp.gt.f32.partialorder %v1220_v38, 0.0 }
 0x15f   : > { %v2661_v41 = vpack.c.bf16 %v1615_v39, %v1615_v39  ;;  %v1677_v42 = vsel %vm1433_vm15, %v1217_v29, %v1555_v37  ;;  %v1556_v43 = vmul.f32 0.2, %v1220_v38 }
 0x160   : > { %v1616_v44 = vsel %vm1372_vm0, %v972_v34, %v1494_v40  ;;  %v2723_v45 = vpack.c.bf16 %v1677_v42, %v1677_v42 }
 0x161   : > { %2226 = vst.msk [vmem:[%s3461_s30 + $0x70] sm:$0xf] %vm2197_vm4, %v2661_v41  ;;  %v2662_v46 = vpack.c.bf16 %v1616_v44, %v1616_v44  ;;  %v1678_v47 = vsel %vm1434_vm2, %v1220_v38, %v1556_v43  ;;  %v976_v48 = vpop.f32.mrb[60].mxu0  ;;  %v1224_v49 = vpop.f32.mrb[60].mxu1 }
 0x162   : > { %2288 = vst.msk [vmem:[%s3461_s30 + $0x168] sm:$0xf] %vm2197_vm4, %v2723_v45  ;;  %v2724_v50 = vpack.c.bf16 %v1678_v47, %v1678_v47  ;;  %v977_v51 = vadd.f32 %v3444_v59, %v976_v48  ;;  %v2890_v52 = vpop.f32.mrb[61].mxu0  ;;  %v1225_v53 = vadd.f32 %v3444_v59, %v1224_v49  ;;  %v3014_v54 = vpop.f32.mrb[61].mxu1 }
 0x163   : > { %2227 = vst.msk [vmem:[%s3461_s30 + $0x74] sm:$0xf] %vm2197_vm4, %v2662_v46  ;;  %v979_v55 = vpop.f32.mrb[62].mxu0  ;;  %v1227_v56 = vpop.f32.mrb[62].mxu1 }
 0x164   : > { %2289 = vst.msk [vmem:[%s3461_s30 + $0x16c] sm:$0xf] %vm2197_vm4, %v2724_v50  ;;  %vm1373_vm3 = vcmp.gt.f32.partialorder %v977_v51, 0.0  ;;  %v1495_v57 = vmul.f32 0.2, %v977_v51  ;;  %v980_v60 = vadd.f32 %v3666_v58, %v979_v55  ;;  %v2891_v61 = vpop.f32.mrb[63].mxu0  ;;  %v1228_v63 = vadd.f32 %v3666_v58, %v1227_v56 }
 0x165   : > { %vm1435_vm1 = vcmp.gt.f32.partialorder %v1225_v53, 0.0  ;;  %v3015_v59 = vpop.f32.mrb[63].mxu1  ;;  %v1557_v62 = vmul.f32 0.2, %v1225_v53 }
 0x166   : > { %v1617_v0 = vsel %vm1373_vm3, %v977_v51, %v1495_v57  ;;  %vm1374_vm5 = vcmp.gt.f32.partialorder %v980_v60, 0.0  ;;  %v1496_v2 = vmul.f32 0.2, %v980_v60  ;;  %vm1436_vm6 = vcmp.gt.f32.partialorder %v1228_v63, 0.0 }
 0x167   : > { %v2663_v3 = vpack.c.bf16 %v1617_v0, %v1617_v0  ;;  %v1679_v4 = vsel %vm1435_vm1, %v1225_v53, %v1557_v62  ;;  %v1558_v5 = vmul.f32 0.2, %v1228_v63 }
 0x168   : > { %v1618_v6 = vsel %vm1374_vm5, %v980_v60, %v1496_v2  ;;  %v2725_v7 = vpack.c.bf16 %v1679_v4, %v1679_v4 }
 0x169   : > { %2228 = vst.msk [vmem:[%s3461_s30 + $0x78] sm:$0xf] %vm2197_vm4, %v2663_v3  ;;  %v2664_v8 = vpack.c.bf16 %v1618_v6, %v1618_v6  ;;  %v1680_v9 = vsel %vm1436_vm6, %v1228_v63, %v1558_v5  ;;  %v984_v10 = vpop.f32.mrb[64].mxu0  ;;  %v1232_v11 = vpop.f32.mrb[64].mxu1 }
 0x16a   : > { %2290 = vst.msk [vmem:[%s3461_s30 + $0x170] sm:$0xf] %vm2197_vm4, %v2725_v7  ;;  %v2726_v12 = vpack.c.bf16 %v1680_v9, %v1680_v9  ;;  %v985_v13 = vadd.f32 %v3666_v58, %v984_v10  ;;  %v2894_v14 = vpop.f32.mrb[65].mxu0  ;;  %v1233_v15 = vadd.f32 %v3666_v58, %v1232_v11  ;;  %v3018_v16 = vpop.f32.mrb[65].mxu1 }
 0x16b   : > { %2229 = vst.msk [vmem:[%s3461_s30 + $0x7c] sm:$0xf] %vm2197_vm4, %v2664_v8  ;;  %v987_v17 = vpop.f32.mrb[66].mxu0  ;;  %v1235_v18 = vpop.f32.mrb[66].mxu1 }
 0x16c   : > { %2291 = vst.msk [vmem:[%s3461_s30 + $0x174] sm:$0xf] %vm2197_vm4, %v2726_v12  ;;  %vm1375_vm7 = vcmp.gt.f32.partialorder %v985_v13, 0.0  ;;  %v1497_v19 = vmul.f32 0.2, %v985_v13  ;;  %v988_v1 = vadd.f32 %v3666_v58, %v987_v17  ;;  %v2895_v20 = vpop.f32.mrb[67].mxu0  ;;  %v1236_v23 = vadd.f32 %v3666_v58, %v1235_v18 }
 0x16d   : > { %vm1437_vm8 = vcmp.gt.f32.partialorder %v1233_v15, 0.0  ;;  %v3019_v21 = vpop.f32.mrb[67].mxu1  ;;  %v1559_v22 = vmul.f32 0.2, %v1233_v15 }
 0x16e   : > { %v1619_v24 = vsel %vm1375_vm7, %v985_v13, %v1497_v19  ;;  %vm1376_vm9 = vcmp.gt.f32.partialorder %v988_v1, 0.0  ;;  %v1498_v25 = vmul.f32 0.2, %v988_v1  ;;  %vm1438_vm10 = vcmp.gt.f32.partialorder %v1236_v23, 0.0 }
 0x16f   : > { %v2665_v26 = vpack.c.bf16 %v1619_v24, %v1619_v24  ;;  %v1681_v27 = vsel %vm1437_vm8, %v1233_v15, %v1559_v22  ;;  %v1560_v28 = vmul.f32 0.2, %v1236_v23 }
 0x170   : > { %v1620_v29 = vsel %vm1376_vm9, %v988_v1, %v1498_v25  ;;  %v2727_v30 = vpack.c.bf16 %v1681_v27, %v1681_v27 }
 0x171   : > { %2230 = vst.msk [vmem:[%s3461_s30 + $0x80] sm:$0xf] %vm2197_vm4, %v2665_v26  ;;  %v2666_v31 = vpack.c.bf16 %v1620_v29, %v1620_v29  ;;  %v1682_v32 = vsel %vm1438_vm10, %v1236_v23, %v1560_v28  ;;  %v992_v33 = vpop.f32.mrb[68].mxu0  ;;  %v1240_v34 = vpop.f32.mrb[68].mxu1 }
 0x172   : > { %2292 = vst.msk [vmem:[%s3461_s30 + $0x178] sm:$0xf] %vm2197_vm4, %v2727_v30  ;;  %v2728_v35 = vpack.c.bf16 %v1682_v32, %v1682_v32  ;;  %v993_v36 = vadd.f32 %v3666_v58, %v992_v33  ;;  %v2898_v37 = vpop.f32.mrb[69].mxu0  ;;  %v1241_v38 = vadd.f32 %v3666_v58, %v1240_v34  ;;  %v3022_v39 = vpop.f32.mrb[69].mxu1 }
 0x173   : > { %2231 = vst.msk [vmem:[%s3461_s30 + $0x84] sm:$0xf] %vm2197_vm4, %v2666_v31  ;;  %v995_v40 = vpop.f32.mrb[70].mxu0  ;;  %v1243_v41 = vpop.f32.mrb[70].mxu1 }
 0x174   : > { %2293 = vst.msk [vmem:[%s3461_s30 + $0x17c] sm:$0xf] %vm2197_vm4, %v2728_v35  ;;  %vm1377_vm11 = vcmp.gt.f32.partialorder %v993_v36, 0.0  ;;  %v1499_v42 = vmul.f32 0.2, %v993_v36  ;;  %v996_v43 = vadd.f32 %v3666_v58, %v995_v40  ;;  %v2899_v44 = vpop.f32.mrb[71].mxu0  ;;  %v1244_v47 = vadd.f32 %v3666_v58, %v1243_v41 }
 0x175   : > { %vm1439_vm12 = vcmp.gt.f32.partialorder %v1241_v38, 0.0  ;;  %v3023_v45 = vpop.f32.mrb[71].mxu1  ;;  %v1561_v46 = vmul.f32 0.2, %v1241_v38 }
 0x176   : > { %v1621_v48 = vsel %vm1377_vm11, %v993_v36, %v1499_v42  ;;  %vm1378_vm13 = vcmp.gt.f32.partialorder %v996_v43, 0.0  ;;  %v1500_v49 = vmul.f32 0.2, %v996_v43  ;;  %vm1440_vm14 = vcmp.gt.f32.partialorder %v1244_v47, 0.0 }
 0x177   : > { %v2667_v50 = vpack.c.bf16 %v1621_v48, %v1621_v48  ;;  %v1683_v51 = vsel %vm1439_vm12, %v1241_v38, %v1561_v46  ;;  %v1562_v52 = vmul.f32 0.2, %v1244_v47 }
 0x178   : > { %v1622_v53 = vsel %vm1378_vm13, %v996_v43, %v1500_v49  ;;  %v2729_v54 = vpack.c.bf16 %v1683_v51, %v1683_v51 }
 0x179   : > { %2232 = vst.msk [vmem:[%s3461_s30 + $0x88] sm:$0xf] %vm2197_vm4, %v2667_v50  ;;  %v2668_v55 = vpack.c.bf16 %v1622_v53, %v1622_v53  ;;  %v1684_v56 = vsel %vm1440_vm14, %v1244_v47, %v1562_v52  ;;  %v1000_v57 = vpop.f32.mrb[72].mxu0  ;;  %v1248_v60 = vpop.f32.mrb[72].mxu1 }
 0x17a   : > { %2294 = vst.msk [vmem:[%s3461_s30 + $0x180] sm:$0xf] %vm2197_vm4, %v2729_v54  ;;  %v2730_v61 = vpack.c.bf16 %v1684_v56, %v1684_v56  ;;  %v1001_v59 = vadd.f32 %v3666_v58, %v1000_v57  ;;  %v2902_v62 = vpop.f32.mrb[73].mxu0  ;;  %v1249_v63 = vadd.f32 %v3666_v58, %v1248_v60  ;;  %v3026_v0 = vpop.f32.mrb[73].mxu1 }
 0x17b   : > { %2233 = vst.msk [vmem:[%s3461_s30 + $0x8c] sm:$0xf] %vm2197_vm4, %v2668_v55  ;;  %v1003_v2 = vpop.f32.mrb[74].mxu0  ;;  %v1251_v3 = vpop.f32.mrb[74].mxu1 }
 0x17c   : > { %2295 = vst.msk [vmem:[%s3461_s30 + $0x184] sm:$0xf] %vm2197_vm4, %v2730_v61  ;;  %vm1379_vm15 = vcmp.gt.f32.partialorder %v1001_v59, 0.0  ;;  %v1501_v4 = vmul.f32 0.2, %v1001_v59  ;;  %v1004_v5 = vadd.f32 %v3666_v58, %v1003_v2  ;;  %v2903_v6 = vpop.f32.mrb[75].mxu0  ;;  %v1252_v9 = vadd.f32 %v3666_v58, %v1251_v3 }
 0x17d   : > { %vm1441_vm0 = vcmp.gt.f32.partialorder %v1249_v63, 0.0  ;;  %v3027_v7 = vpop.f32.mrb[75].mxu1  ;;  %v1563_v8 = vmul.f32 0.2, %v1249_v63 }
 0x17e   : > { %v1623_v10 = vsel %vm1379_vm15, %v1001_v59, %v1501_v4  ;;  %vm1380_vm2 = vcmp.gt.f32.partialorder %v1004_v5, 0.0  ;;  %v1502_v11 = vmul.f32 0.2, %v1004_v5  ;;  %vm1442_vm3 = vcmp.gt.f32.partialorder %v1252_v9, 0.0 }
 0x17f   : > { %v2669_v12 = vpack.c.bf16 %v1623_v10, %v1623_v10  ;;  %v1685_v13 = vsel %vm1441_vm0, %v1249_v63, %v1563_v8  ;;  %v1564_v14 = vmul.f32 0.2, %v1252_v9 }
 0x180   : > { %v1624_v15 = vsel %vm1380_vm2, %v1004_v5, %v1502_v11  ;;  %v2731_v16 = vpack.c.bf16 %v1685_v13, %v1685_v13 }
 0x181   : > { %2234 = vst.msk [vmem:[%s3461_s30 + $0x90] sm:$0xf] %vm2197_vm4, %v2669_v12  ;;  %v2670_v17 = vpack.c.bf16 %v1624_v15, %v1624_v15  ;;  %v1686_v18 = vsel %vm1442_vm3, %v1252_v9, %v1564_v14  ;;  %v1008_v19 = vpop.f32.mrb[76].mxu0  ;;  %v1256_v1 = vpop.f32.mrb[76].mxu1 }
 0x182   : > { %2296 = vst.msk [vmem:[%s3461_s30 + $0x188] sm:$0xf] %vm2197_vm4, %v2731_v16  ;;  %v2732_v20 = vpack.c.bf16 %v1686_v18, %v1686_v18  ;;  %v1009_v21 = vadd.f32 %v3666_v58, %v1008_v19  ;;  %v2906_v22 = vpop.f32.mrb[77].mxu0  ;;  %v1257_v23 = vadd.f32 %v3666_v58, %v1256_v1  ;;  %v3030_v24 = vpop.f32.mrb[77].mxu1 }
 0x183   : > { %2235 = vst.msk [vmem:[%s3461_s30 + $0x94] sm:$0xf] %vm2197_vm4, %v2670_v17  ;;  %v1011_v25 = vpop.f32.mrb[78].mxu0  ;;  %v1259_v26 = vpop.f32.mrb[78].mxu1 }
 0x184   : > { %2297 = vst.msk [vmem:[%s3461_s30 + $0x18c] sm:$0xf] %vm2197_vm4, %v2732_v20  ;;  %vm1381_vm1 = vcmp.gt.f32.partialorder %v1009_v21, 0.0  ;;  %v1503_v27 = vmul.f32 0.2, %v1009_v21  ;;  %v1012_v28 = vadd.f32 %v3666_v58, %v1011_v25  ;;  %v2907_v29 = vpop.f32.mrb[79].mxu0  ;;  %v1260_v32 = vadd.f32 %v3666_v58, %v1259_v26 }
 0x185   : > { %vm1443_vm5 = vcmp.gt.f32.partialorder %v1257_v23, 0.0  ;;  %v3031_v30 = vpop.f32.mrb[79].mxu1  ;;  %v1565_v31 = vmul.f32 0.2, %v1257_v23 }
 0x186   : > { %v1625_v33 = vsel %vm1381_vm1, %v1009_v21, %v1503_v27  ;;  %vm1382_vm6 = vcmp.gt.f32.partialorder %v1012_v28, 0.0  ;;  %v1504_v34 = vmul.f32 0.2, %v1012_v28  ;;  %vm1444_vm7 = vcmp.gt.f32.partialorder %v1260_v32, 0.0 }
 0x187   : > { %v2671_v35 = vpack.c.bf16 %v1625_v33, %v1625_v33  ;;  %v1687_v36 = vsel %vm1443_vm5, %v1257_v23, %v1565_v31  ;;  %v1566_v37 = vmul.f32 0.2, %v1260_v32 }
 0x188   : > { %v1626_v38 = vsel %vm1382_vm6, %v1012_v28, %v1504_v34  ;;  %v2733_v39 = vpack.c.bf16 %v1687_v36, %v1687_v36 }
 0x189   : > { %2236 = vst.msk [vmem:[%s3461_s30 + $0x98] sm:$0xf] %vm2197_vm4, %v2671_v35  ;;  %v2672_v40 = vpack.c.bf16 %v1626_v38, %v1626_v38  ;;  %v1688_v41 = vsel %vm1444_vm7, %v1260_v32, %v1566_v37  ;;  %v1016_v42 = vpop.f32.mrb[80].mxu0  ;;  %v1264_v43 = vpop.f32.mrb[80].mxu1 }
 0x18a   : > { %2298 = vst.msk [vmem:[%s3461_s30 + $0x190] sm:$0xf] %vm2197_vm4, %v2733_v39  ;;  %v2734_v44 = vpack.c.bf16 %v1688_v41, %v1688_v41  ;;  %v1017_v45 = vadd.f32 %v3666_v58, %v1016_v42  ;;  %v2910_v46 = vpop.f32.mrb[81].mxu0  ;;  %v1265_v47 = vadd.f32 %v3666_v58, %v1264_v43  ;;  %v3034_v48 = vpop.f32.mrb[81].mxu1 }
 0x18b   : > { %2237 = vst.msk [vmem:[%s3461_s30 + $0x9c] sm:$0xf] %vm2197_vm4, %v2672_v40  ;;  %v1019_v49 = vpop.f32.mrb[82].mxu0  ;;  %v1267_v50 = vpop.f32.mrb[82].mxu1 }
 0x18c   : > { %2299 = vst.msk [vmem:[%s3461_s30 + $0x194] sm:$0xf] %vm2197_vm4, %v2734_v44  ;;  %vm1383_vm8 = vcmp.gt.f32.partialorder %v1017_v45, 0.0  ;;  %v1505_v51 = vmul.f32 0.2, %v1017_v45  ;;  %v1020_v52 = vadd.f32 %v3666_v58, %v1019_v49  ;;  %v2911_v53 = vpop.f32.mrb[83].mxu0  ;;  %v1268_v56 = vadd.f32 %v3666_v58, %v1267_v50 }
 0x18d   : > { %vm1445_vm9 = vcmp.gt.f32.partialorder %v1265_v47, 0.0  ;;  %v3035_v54 = vpop.f32.mrb[83].mxu1  ;;  %v1567_v55 = vmul.f32 0.2, %v1265_v47 }
 0x18e   : > { %v1627_v57 = vsel %vm1383_vm8, %v1017_v45, %v1505_v51  ;;  %vm1384_vm10 = vcmp.gt.f32.partialorder %v1020_v52, 0.0  ;;  %v1506_v60 = vmul.f32 0.2, %v1020_v52  ;;  %vm1446_vm11 = vcmp.gt.f32.partialorder %v1268_v56, 0.0 }
 0x18f   : > { %v2673_v61 = vpack.c.bf16 %v1627_v57, %v1627_v57  ;;  %v1689_v59 = vsel %vm1445_vm9, %v1265_v47, %v1567_v55  ;;  %v1568_v62 = vmul.f32 0.2, %v1268_v56 }
 0x190   : > { %v1628_v63 = vsel %vm1384_vm10, %v1020_v52, %v1506_v60  ;;  %v2735_v0 = vpack.c.bf16 %v1689_v59, %v1689_v59 }
 0x191   : > { %2238 = vst.msk [vmem:[%s3461_s30 + $0xa0] sm:$0xf] %vm2197_vm4, %v2673_v61  ;;  %v2674_v2 = vpack.c.bf16 %v1628_v63, %v1628_v63  ;;  %v1690_v3 = vsel %vm1446_vm11, %v1268_v56, %v1568_v62  ;;  %v1024_v4 = vpop.f32.mrb[84].mxu0  ;;  %v1272_v5 = vpop.f32.mrb[84].mxu1 }
 0x192   : > { %2300 = vst.msk [vmem:[%s3461_s30 + $0x198] sm:$0xf] %vm2197_vm4, %v2735_v0  ;;  %v2736_v6 = vpack.c.bf16 %v1690_v3, %v1690_v3  ;;  %v1025_v7 = vadd.f32 %v3666_v58, %v1024_v4  ;;  %v2914_v8 = vpop.f32.mrb[85].mxu0  ;;  %v1273_v9 = vadd.f32 %v3666_v58, %v1272_v5  ;;  %v3038_v10 = vpop.f32.mrb[85].mxu1 }
 0x193   : > { %2239 = vst.msk [vmem:[%s3461_s30 + $0xa4] sm:$0xf] %vm2197_vm4, %v2674_v2  ;;  %v1027_v11 = vpop.f32.mrb[86].mxu0  ;;  %v1275_v12 = vpop.f32.mrb[86].mxu1 }
 0x194   : > { %2301 = vst.msk [vmem:[%s3461_s30 + $0x19c] sm:$0xf] %vm2197_vm4, %v2736_v6  ;;  %vm1385_vm12 = vcmp.gt.f32.partialorder %v1025_v7, 0.0  ;;  %v1507_v13 = vmul.f32 0.2, %v1025_v7  ;;  %v1028_v14 = vadd.f32 %v3666_v58, %v1027_v11  ;;  %v2915_v15 = vpop.f32.mrb[87].mxu0  ;;  %v1276_v18 = vadd.f32 %v3666_v58, %v1275_v12 }
 0x195   : > { %vm1447_vm13 = vcmp.gt.f32.partialorder %v1273_v9, 0.0  ;;  %v3039_v16 = vpop.f32.mrb[87].mxu1  ;;  %v1569_v17 = vmul.f32 0.2, %v1273_v9 }
 0x196   : > { %v1629_v19 = vsel %vm1385_vm12, %v1025_v7, %v1507_v13  ;;  %vm1386_vm14 = vcmp.gt.f32.partialorder %v1028_v14, 0.0  ;;  %v1508_v1 = vmul.f32 0.2, %v1028_v14  ;;  %vm1448_vm15 = vcmp.gt.f32.partialorder %v1276_v18, 0.0 }
 0x197   : > { %v2675_v20 = vpack.c.bf16 %v1629_v19, %v1629_v19  ;;  %v1691_v21 = vsel %vm1447_vm13, %v1273_v9, %v1569_v17  ;;  %v1570_v22 = vmul.f32 0.2, %v1276_v18 }
 0x198   : > { %v1630_v23 = vsel %vm1386_vm14, %v1028_v14, %v1508_v1  ;;  %v2737_v24 = vpack.c.bf16 %v1691_v21, %v1691_v21 }
 0x199   : > { %2240 = vst.msk [vmem:[%s3461_s30 + $0xa8] sm:$0xf] %vm2197_vm4, %v2675_v20  ;;  %v2676_v25 = vpack.c.bf16 %v1630_v23, %v1630_v23  ;;  %v1692_v26 = vsel %vm1448_vm15, %v1276_v18, %v1570_v22  ;;  %v1032_v27 = vpop.f32.mrb[88].mxu0  ;;  %v1280_v28 = vpop.f32.mrb[88].mxu1 }
 0x19a   : > { %2302 = vst.msk [vmem:[%s3461_s30 + $0x1a0] sm:$0xf] %vm2197_vm4, %v2737_v24  ;;  %v2738_v29 = vpack.c.bf16 %v1692_v26, %v1692_v26  ;;  %v1033_v30 = vadd.f32 %v3666_v58, %v1032_v27  ;;  %v2918_v31 = vpop.f32.mrb[89].mxu0  ;;  %v1281_v32 = vadd.f32 %v3666_v58, %v1280_v28  ;;  %v3042_v33 = vpop.f32.mrb[89].mxu1 }
 0x19b   : > { %2241 = vst.msk [vmem:[%s3461_s30 + $0xac] sm:$0xf] %vm2197_vm4, %v2676_v25  ;;  %v1035_v34 = vpop.f32.mrb[90].mxu0  ;;  %v1283_v35 = vpop.f32.mrb[90].mxu1 }
 0x19c   : > { %2303 = vst.msk [vmem:[%s3461_s30 + $0x1a4] sm:$0xf] %vm2197_vm4, %v2738_v29  ;;  %vm1387_vm0 = vcmp.gt.f32.partialorder %v1033_v30, 0.0  ;;  %v1509_v36 = vmul.f32 0.2, %v1033_v30  ;;  %v1036_v37 = vadd.f32 %v3666_v58, %v1035_v34  ;;  %v2919_v38 = vpop.f32.mrb[91].mxu0  ;;  %v1284_v41 = vadd.f32 %v3666_v58, %v1283_v35 }
 0x19d   : > { %vm1449_vm2 = vcmp.gt.f32.partialorder %v1281_v32, 0.0  ;;  %v3043_v39 = vpop.f32.mrb[91].mxu1  ;;  %v1571_v40 = vmul.f32 0.2, %v1281_v32 }
 0x19e   : > { %v1631_v42 = vsel %vm1387_vm0, %v1033_v30, %v1509_v36  ;;  %vm1388_vm3 = vcmp.gt.f32.partialorder %v1036_v37, 0.0  ;;  %v1510_v43 = vmul.f32 0.2, %v1036_v37  ;;  %vm1450_vm1 = vcmp.gt.f32.partialorder %v1284_v41, 0.0 }
 0x19f   : > { %v2677_v44 = vpack.c.bf16 %v1631_v42, %v1631_v42  ;;  %v1693_v45 = vsel %vm1449_vm2, %v1281_v32, %v1571_v40  ;;  %v1572_v46 = vmul.f32 0.2, %v1284_v41 }
 0x1a0   : > { %v1632_v47 = vsel %vm1388_vm3, %v1036_v37, %v1510_v43  ;;  %v2739_v48 = vpack.c.bf16 %v1693_v45, %v1693_v45 }
 0x1a1   : > { %2242 = vst.msk [vmem:[%s3461_s30 + $0xb0] sm:$0xf] %vm2197_vm4, %v2677_v44  ;;  %v2678_v49 = vpack.c.bf16 %v1632_v47, %v1632_v47  ;;  %v1694_v50 = vsel %vm1450_vm1, %v1284_v41, %v1572_v46  ;;  %v1040_v51 = vpop.f32.mrb[92].mxu0  ;;  %v1288_v52 = vpop.f32.mrb[92].mxu1 }
 0x1a2   : > { %2304 = vst.msk [vmem:[%s3461_s30 + $0x1a8] sm:$0xf] %vm2197_vm4, %v2739_v48  ;;  %v2740_v53 = vpack.c.bf16 %v1694_v50, %v1694_v50  ;;  %v1041_v54 = vadd.f32 %v3666_v58, %v1040_v51  ;;  %v2922_v55 = vpop.f32.mrb[93].mxu0  ;;  %v1289_v56 = vadd.f32 %v3666_v58, %v1288_v52  ;;  %v3046_v57 = vpop.f32.mrb[93].mxu1 }
 0x1a3   : > { %2243 = vst.msk [vmem:[%s3461_s30 + $0xb4] sm:$0xf] %vm2197_vm4, %v2678_v49  ;;  %v1043_v60 = vpop.f32.mrb[94].mxu0  ;;  %v1291_v61 = vpop.f32.mrb[94].mxu1 }
 0x1a4   : > { %2305 = vst.msk [vmem:[%s3461_s30 + $0x1ac] sm:$0xf] %vm2197_vm4, %v2740_v53  ;;  %vm1389_vm5 = vcmp.gt.f32.partialorder %v1041_v54, 0.0  ;;  %v1511_v59 = vmul.f32 0.2, %v1041_v54  ;;  %v1044_v62 = vadd.f32 %v3666_v58, %v1043_v60  ;;  %v2923_v63 = vpop.f32.mrb[95].mxu0  ;;  %v1292_v3 = vadd.f32 %v3666_v58, %v1291_v61 }
 0x1a5   : > { %vm1451_vm6 = vcmp.gt.f32.partialorder %v1289_v56, 0.0  ;;  %v3047_v0 = vpop.f32.mrb[95].mxu1  ;;  %v1573_v2 = vmul.f32 0.2, %v1289_v56 }
 0x1a6   : > { %v1633_v4 = vsel %vm1389_vm5, %v1041_v54, %v1511_v59  ;;  %vm1390_vm7 = vcmp.gt.f32.partialorder %v1044_v62, 0.0  ;;  %v1512_v5 = vmul.f32 0.2, %v1044_v62  ;;  %vm1452_vm8 = vcmp.gt.f32.partialorder %v1292_v3, 0.0 }
 0x1a7   : > { %v2679_v6 = vpack.c.bf16 %v1633_v4, %v1633_v4  ;;  %v1695_v7 = vsel %vm1451_vm6, %v1289_v56, %v1573_v2  ;;  %v1574_v8 = vmul.f32 0.2, %v1292_v3 }
 0x1a8   : > { %v1634_v9 = vsel %vm1390_vm7, %v1044_v62, %v1512_v5  ;;  %v2741_v10 = vpack.c.bf16 %v1695_v7, %v1695_v7 }
 0x1a9   : > { %2244 = vst.msk [vmem:[%s3461_s30 + $0xb8] sm:$0xf] %vm2197_vm4, %v2679_v6  ;;  %v2680_v11 = vpack.c.bf16 %v1634_v9, %v1634_v9  ;;  %v1696_v12 = vsel %vm1452_vm8, %v1292_v3, %v1574_v8  ;;  %v1048_v13 = vpop.f32.mrb[96].mxu0  ;;  %v1296_v14 = vpop.f32.mrb[96].mxu1 }
 0x1aa   : > { %2306 = vst.msk [vmem:[%s3461_s30 + $0x1b0] sm:$0xf] %vm2197_vm4, %v2741_v10  ;;  %v2742_v15 = vpack.c.bf16 %v1696_v12, %v1696_v12  ;;  %v1049_v16 = vadd.f32 %v3666_v58, %v1048_v13  ;;  %v2926_v17 = vpop.f32.mrb[97].mxu0  ;;  %v1297_v18 = vadd.f32 %v3666_v58, %v1296_v14  ;;  %v3050_v19 = vpop.f32.mrb[97].mxu1 }
 0x1ab   : > { %2245 = vst.msk [vmem:[%s3461_s30 + $0xbc] sm:$0xf] %vm2197_vm4, %v2680_v11  ;;  %v1051_v1 = vpop.f32.mrb[98].mxu0  ;;  %v1299_v20 = vpop.f32.mrb[98].mxu1 }
 0x1ac   : > { %2307 = vst.msk [vmem:[%s3461_s30 + $0x1b4] sm:$0xf] %vm2197_vm4, %v2742_v15  ;;  %vm1391_vm9 = vcmp.gt.f32.partialorder %v1049_v16, 0.0  ;;  %v1513_v21 = vmul.f32 0.2, %v1049_v16  ;;  %v1052_v22 = vadd.f32 %v3666_v58, %v1051_v1  ;;  %v2927_v23 = vpop.f32.mrb[99].mxu0  ;;  %v1300_v26 = vadd.f32 %v3666_v58, %v1299_v20 }
 0x1ad   : > { %vm1453_vm10 = vcmp.gt.f32.partialorder %v1297_v18, 0.0  ;;  %v3051_v24 = vpop.f32.mrb[99].mxu1  ;;  %v1575_v25 = vmul.f32 0.2, %v1297_v18 }
 0x1ae   : > { %v1635_v27 = vsel %vm1391_vm9, %v1049_v16, %v1513_v21  ;;  %vm1392_vm11 = vcmp.gt.f32.partialorder %v1052_v22, 0.0  ;;  %v1514_v28 = vmul.f32 0.2, %v1052_v22  ;;  %vm1454_vm12 = vcmp.gt.f32.partialorder %v1300_v26, 0.0 }
 0x1af   : > { %v2681_v29 = vpack.c.bf16 %v1635_v27, %v1635_v27  ;;  %v1697_v30 = vsel %vm1453_vm10, %v1297_v18, %v1575_v25  ;;  %v1576_v31 = vmul.f32 0.2, %v1300_v26 }
 0x1b0   : > { %v1636_v32 = vsel %vm1392_vm11, %v1052_v22, %v1514_v28  ;;  %v2743_v33 = vpack.c.bf16 %v1697_v30, %v1697_v30 }
 0x1b1   : > { %2246 = vst.msk [vmem:[%s3461_s30 + $0xc0] sm:$0xf] %vm2197_vm4, %v2681_v29  ;;  %v2682_v34 = vpack.c.bf16 %v1636_v32, %v1636_v32  ;;  %v1698_v35 = vsel %vm1454_vm12, %v1300_v26, %v1576_v31  ;;  %v1056_v36 = vpop.f32.mrb[100].mxu0  ;;  %v1304_v37 = vpop.f32.mrb[100].mxu1 }
 0x1b2   : > { %2308 = vst.msk [vmem:[%s3461_s30 + $0x1b8] sm:$0xf] %vm2197_vm4, %v2743_v33  ;;  %v2744_v38 = vpack.c.bf16 %v1698_v35, %v1698_v35  ;;  %v1057_v39 = vadd.f32 %v3666_v58, %v1056_v36  ;;  %v2930_v40 = vpop.f32.mrb[101].mxu0  ;;  %v1305_v41 = vadd.f32 %v3666_v58, %v1304_v37  ;;  %v3054_v42 = vpop.f32.mrb[101].mxu1 }
 0x1b3   : > { %2247 = vst.msk [vmem:[%s3461_s30 + $0xc4] sm:$0xf] %vm2197_vm4, %v2682_v34  ;;  %v1059_v43 = vpop.f32.mrb[102].mxu0  ;;  %v1307_v44 = vpop.f32.mrb[102].mxu1 }
 0x1b4   : > { %2309 = vst.msk [vmem:[%s3461_s30 + $0x1bc] sm:$0xf] %vm2197_vm4, %v2744_v38  ;;  %vm1393_vm13 = vcmp.gt.f32.partialorder %v1057_v39, 0.0  ;;  %v1515_v45 = vmul.f32 0.2, %v1057_v39  ;;  %v1060_v46 = vadd.f32 %v3666_v58, %v1059_v43  ;;  %v2931_v47 = vpop.f32.mrb[103].mxu0  ;;  %v1308_v50 = vadd.f32 %v3666_v58, %v1307_v44 }
 0x1b5   : > { %vm1455_vm14 = vcmp.gt.f32.partialorder %v1305_v41, 0.0  ;;  %v3055_v48 = vpop.f32.mrb[103].mxu1  ;;  %v1577_v49 = vmul.f32 0.2, %v1305_v41 }
 0x1b6   : > { %v1637_v51 = vsel %vm1393_vm13, %v1057_v39, %v1515_v45  ;;  %vm1394_vm15 = vcmp.gt.f32.partialorder %v1060_v46, 0.0  ;;  %v1516_v52 = vmul.f32 0.2, %v1060_v46  ;;  %vm1456_vm0 = vcmp.gt.f32.partialorder %v1308_v50, 0.0 }
 0x1b7   : > { %v2683_v53 = vpack.c.bf16 %v1637_v51, %v1637_v51  ;;  %v1699_v54 = vsel %vm1455_vm14, %v1305_v41, %v1577_v49  ;;  %v1578_v55 = vmul.f32 0.2, %v1308_v50 }
 0x1b8   : > { %v1638_v56 = vsel %vm1394_vm15, %v1060_v46, %v1516_v52  ;;  %v2745_v57 = vpack.c.bf16 %v1699_v54, %v1699_v54 }
 0x1b9   : > { %2248 = vst.msk [vmem:[%s3461_s30 + $0xc8] sm:$0xf] %vm2197_vm4, %v2683_v53  ;;  %v2684_v60 = vpack.c.bf16 %v1638_v56, %v1638_v56  ;;  %v1700_v61 = vsel %vm1456_vm0, %v1308_v50, %v1578_v55  ;;  %v1064_v59 = vpop.f32.mrb[104].mxu0  ;;  %v1312_v62 = vpop.f32.mrb[104].mxu1 }
 0x1ba   : > { %2310 = vst.msk [vmem:[%s3461_s30 + $0x1c0] sm:$0xf] %vm2197_vm4, %v2745_v57  ;;  %v2746_v63 = vpack.c.bf16 %v1700_v61, %v1700_v61  ;;  %v1065_v0 = vadd.f32 %v3666_v58, %v1064_v59  ;;  %v2934_v2 = vpop.f32.mrb[105].mxu0  ;;  %v1313_v3 = vadd.f32 %v3666_v58, %v1312_v62  ;;  %v3058_v4 = vpop.f32.mrb[105].mxu1 }
 0x1bb   : > { %2249 = vst.msk [vmem:[%s3461_s30 + $0xcc] sm:$0xf] %vm2197_vm4, %v2684_v60  ;;  %v1067_v5 = vpop.f32.mrb[106].mxu0  ;;  %v1315_v6 = vpop.f32.mrb[106].mxu1 }
 0x1bc   : > { %2311 = vst.msk [vmem:[%s3461_s30 + $0x1c4] sm:$0xf] %vm2197_vm4, %v2746_v63  ;;  %vm1395_vm2 = vcmp.gt.f32.partialorder %v1065_v0, 0.0  ;;  %v1517_v7 = vmul.f32 0.2, %v1065_v0  ;;  %v1068_v8 = vadd.f32 %v3666_v58, %v1067_v5  ;;  %v2935_v9 = vpop.f32.mrb[107].mxu0  ;;  %v1316_v12 = vadd.f32 %v3666_v58, %v1315_v6 }
 0x1bd   : > { %vm1457_vm3 = vcmp.gt.f32.partialorder %v1313_v3, 0.0  ;;  %v3059_v10 = vpop.f32.mrb[107].mxu1  ;;  %v1579_v11 = vmul.f32 0.2, %v1313_v3 }
 0x1be   : > { %v1639_v13 = vsel %vm1395_vm2, %v1065_v0, %v1517_v7  ;;  %vm1396_vm1 = vcmp.gt.f32.partialorder %v1068_v8, 0.0  ;;  %v1518_v14 = vmul.f32 0.2, %v1068_v8  ;;  %vm1458_vm5 = vcmp.gt.f32.partialorder %v1316_v12, 0.0 }
 0x1bf   : > { %v2685_v15 = vpack.c.bf16 %v1639_v13, %v1639_v13  ;;  %v1701_v16 = vsel %vm1457_vm3, %v1313_v3, %v1579_v11  ;;  %v1580_v17 = vmul.f32 0.2, %v1316_v12 }
 0x1c0   : > { %v1640_v18 = vsel %vm1396_vm1, %v1068_v8, %v1518_v14  ;;  %v2747_v19 = vpack.c.bf16 %v1701_v16, %v1701_v16 }
 0x1c1   : > { %2250 = vst.msk [vmem:[%s3461_s30 + $0xd0] sm:$0xf] %vm2197_vm4, %v2685_v15  ;;  %v2686_v1 = vpack.c.bf16 %v1640_v18, %v1640_v18  ;;  %v1702_v20 = vsel %vm1458_vm5, %v1316_v12, %v1580_v17  ;;  %v1072_v21 = vpop.f32.mrb[108].mxu0  ;;  %v1320_v22 = vpop.f32.mrb[108].mxu1 }
 0x1c2   : > { %2312 = vst.msk [vmem:[%s3461_s30 + $0x1c8] sm:$0xf] %vm2197_vm4, %v2747_v19  ;;  %v2748_v23 = vpack.c.bf16 %v1702_v20, %v1702_v20  ;;  %v1073_v24 = vadd.f32 %v3666_v58, %v1072_v21  ;;  %v2938_v25 = vpop.f32.mrb[109].mxu0  ;;  %v1321_v26 = vadd.f32 %v3666_v58, %v1320_v22  ;;  %v3062_v27 = vpop.f32.mrb[109].mxu1 }
 0x1c3   : > { %2251 = vst.msk [vmem:[%s3461_s30 + $0xd4] sm:$0xf] %vm2197_vm4, %v2686_v1  ;;  %v1075_v28 = vpop.f32.mrb[110].mxu0  ;;  %v1323_v29 = vpop.f32.mrb[110].mxu1 }
 0x1c4   : > { %2313 = vst.msk [vmem:[%s3461_s30 + $0x1cc] sm:$0xf] %vm2197_vm4, %v2748_v23  ;;  %vm1397_vm6 = vcmp.gt.f32.partialorder %v1073_v24, 0.0  ;;  %v1519_v30 = vmul.f32 0.2, %v1073_v24  ;;  %v1076_v31 = vadd.f32 %v3666_v58, %v1075_v28  ;;  %v2939_v32 = vpop.f32.mrb[111].mxu0  ;;  %v1324_v35 = vadd.f32 %v3666_v58, %v1323_v29 }
 0x1c5   : > { %vm1459_vm7 = vcmp.gt.f32.partialorder %v1321_v26, 0.0  ;;  %v3063_v33 = vpop.f32.mrb[111].mxu1  ;;  %v1581_v34 = vmul.f32 0.2, %v1321_v26 }
 0x1c6   : > { %v1641_v36 = vsel %vm1397_vm6, %v1073_v24, %v1519_v30  ;;  %vm1398_vm8 = vcmp.gt.f32.partialorder %v1076_v31, 0.0  ;;  %v1520_v37 = vmul.f32 0.2, %v1076_v31  ;;  %vm1460_vm9 = vcmp.gt.f32.partialorder %v1324_v35, 0.0 }
 0x1c7   : > { %v2687_v38 = vpack.c.bf16 %v1641_v36, %v1641_v36  ;;  %v1703_v39 = vsel %vm1459_vm7, %v1321_v26, %v1581_v34  ;;  %v1582_v40 = vmul.f32 0.2, %v1324_v35 }
 0x1c8   : > { %v1642_v41 = vsel %vm1398_vm8, %v1076_v31, %v1520_v37  ;;  %v2749_v42 = vpack.c.bf16 %v1703_v39, %v1703_v39 }
 0x1c9   : > { %2252 = vst.msk [vmem:[%s3461_s30 + $0xd8] sm:$0xf] %vm2197_vm4, %v2687_v38  ;;  %v2688_v43 = vpack.c.bf16 %v1642_v41, %v1642_v41  ;;  %v1704_v44 = vsel %vm1460_vm9, %v1324_v35, %v1582_v40  ;;  %v1080_v45 = vpop.f32.mrb[112].mxu0  ;;  %v1328_v46 = vpop.f32.mrb[112].mxu1 }
 0x1ca   : > { %2314 = vst.msk [vmem:[%s3461_s30 + $0x1d0] sm:$0xf] %vm2197_vm4, %v2749_v42  ;;  %v2750_v47 = vpack.c.bf16 %v1704_v44, %v1704_v44  ;;  %v1081_v48 = vadd.f32 %v3666_v58, %v1080_v45  ;;  %v2942_v49 = vpop.f32.mrb[113].mxu0  ;;  %v1329_v50 = vadd.f32 %v3666_v58, %v1328_v46  ;;  %v3066_v51 = vpop.f32.mrb[113].mxu1 }
 0x1cb   : > { %2253 = vst.msk [vmem:[%s3461_s30 + $0xdc] sm:$0xf] %vm2197_vm4, %v2688_v43  ;;  %v1083_v52 = vpop.f32.mrb[114].mxu0  ;;  %v1331_v53 = vpop.f32.mrb[114].mxu1 }
 0x1cc   : > { %2315 = vst.msk [vmem:[%s3461_s30 + $0x1d4] sm:$0xf] %vm2197_vm4, %v2750_v47  ;;  %vm1399_vm10 = vcmp.gt.f32.partialorder %v1081_v48, 0.0  ;;  %v1521_v54 = vmul.f32 0.2, %v1081_v48  ;;  %v1084_v55 = vadd.f32 %v3666_v58, %v1083_v52  ;;  %v2943_v56 = vpop.f32.mrb[115].mxu0  ;;  %v1332_v61 = vadd.f32 %v3666_v58, %v1331_v53 }
 0x1cd   : > { %vm1461_vm11 = vcmp.gt.f32.partialorder %v1329_v50, 0.0  ;;  %v3067_v57 = vpop.f32.mrb[115].mxu1  ;;  %v1583_v60 = vmul.f32 0.2, %v1329_v50 }
 0x1ce   : > { %v1643_v59 = vsel %vm1399_vm10, %v1081_v48, %v1521_v54  ;;  %vm1400_vm12 = vcmp.gt.f32.partialorder %v1084_v55, 0.0  ;;  %v1522_v62 = vmul.f32 0.2, %v1084_v55  ;;  %vm1462_vm13 = vcmp.gt.f32.partialorder %v1332_v61, 0.0 }
 0x1cf   : > { %v2689_v63 = vpack.c.bf16 %v1643_v59, %v1643_v59  ;;  %v1705_v0 = vsel %vm1461_vm11, %v1329_v50, %v1583_v60  ;;  %v1584_v2 = vmul.f32 0.2, %v1332_v61 }
 0x1d0   : > { %v1644_v3 = vsel %vm1400_vm12, %v1084_v55, %v1522_v62  ;;  %v2751_v4 = vpack.c.bf16 %v1705_v0, %v1705_v0 }
 0x1d1   : > { %2254 = vst.msk [vmem:[%s3461_s30 + $0xe0] sm:$0xf] %vm2197_vm4, %v2689_v63  ;;  %v2690_v5 = vpack.c.bf16 %v1644_v3, %v1644_v3  ;;  %v1706_v6 = vsel %vm1462_vm13, %v1332_v61, %v1584_v2  ;;  %v1088_v7 = vpop.f32.mrb[116].mxu0  ;;  %v1336_v8 = vpop.f32.mrb[116].mxu1 }
 0x1d2   : > { %2316 = vst.msk [vmem:[%s3461_s30 + $0x1d8] sm:$0xf] %vm2197_vm4, %v2751_v4  ;;  %v2752_v9 = vpack.c.bf16 %v1706_v6, %v1706_v6  ;;  %v1089_v10 = vadd.f32 %v3666_v58, %v1088_v7  ;;  %v2946_v11 = vpop.f32.mrb[117].mxu0  ;;  %v1337_v12 = vadd.f32 %v3666_v58, %v1336_v8  ;;  %v3070_v13 = vpop.f32.mrb[117].mxu1 }
 0x1d3   : > { %2255 = vst.msk [vmem:[%s3461_s30 + $0xe4] sm:$0xf] %vm2197_vm4, %v2690_v5  ;;  %v1091_v14 = vpop.f32.mrb[118].mxu0  ;;  %v1339_v15 = vpop.f32.mrb[118].mxu1 }
 0x1d4   : > { %2317 = vst.msk [vmem:[%s3461_s30 + $0x1dc] sm:$0xf] %vm2197_vm4, %v2752_v9  ;;  %vm1401_vm14 = vcmp.gt.f32.partialorder %v1089_v10, 0.0  ;;  %v1523_v16 = vmul.f32 0.2, %v1089_v10  ;;  %v1092_v17 = vadd.f32 %v3666_v58, %v1091_v14  ;;  %v2947_v18 = vpop.f32.mrb[119].mxu0  ;;  %v1340_v20 = vadd.f32 %v3666_v58, %v1339_v15 }
 0x1d5   : > { %vm1463_vm15 = vcmp.gt.f32.partialorder %v1337_v12, 0.0  ;;  %v3071_v19 = vpop.f32.mrb[119].mxu1  ;;  %v1585_v1 = vmul.f32 0.2, %v1337_v12 }
 0x1d6   : > { %v1645_v21 = vsel %vm1401_vm14, %v1089_v10, %v1523_v16  ;;  %vm1402_vm0 = vcmp.gt.f32.partialorder %v1092_v17, 0.0  ;;  %v1524_v22 = vmul.f32 0.2, %v1092_v17  ;;  %vm1464_vm2 = vcmp.gt.f32.partialorder %v1340_v20, 0.0 }
 0x1d7   : > { %v2691_v23 = vpack.c.bf16 %v1645_v21, %v1645_v21  ;;  %v1707_v24 = vsel %vm1463_vm15, %v1337_v12, %v1585_v1  ;;  %v1586_v25 = vmul.f32 0.2, %v1340_v20 }
 0x1d8   : > { %v1646_v26 = vsel %vm1402_vm0, %v1092_v17, %v1524_v22  ;;  %v2753_v27 = vpack.c.bf16 %v1707_v24, %v1707_v24 }
 0x1d9   : > { %2256 = vst.msk [vmem:[%s3461_s30 + $0xe8] sm:$0xf] %vm2197_vm4, %v2691_v23  ;;  %v2692_v28 = vpack.c.bf16 %v1646_v26, %v1646_v26  ;;  %v1708_v29 = vsel %vm1464_vm2, %v1340_v20, %v1586_v25  ;;  %v1096_v30 = vpop.f32.mrb[120].mxu0 }
 0x1da   : > { %2318 = vst.msk [vmem:[%s3461_s30 + $0x1e0] sm:$0xf] %vm2197_vm4, %v2753_v27  ;;  %v2754_v31 = vpack.c.bf16 %v1708_v29, %v1708_v29  ;;  %v1097_v32 = vadd.f32 %v3666_v58, %v1096_v30  ;;  %v2950_v33 = vpop.f32.mrb[121].mxu0 }
 0x1db   : > { %2257 = vst.msk [vmem:[%s3461_s30 + $0xec] sm:$0xf] %vm2197_vm4, %v2692_v28  ;;  %v1099_v34 = vpop.f32.mrb[122].mxu0 }
 0x1dc   : > { %2319 = vst.msk [vmem:[%s3461_s30 + $0x1e4] sm:$0xf] %vm2197_vm4, %v2754_v31  ;;  %vm1403_vm3 = vcmp.gt.f32.partialorder %v1097_v32, 0.0  ;;  %v1525_v35 = vmul.f32 0.2, %v1097_v32  ;;  %v1100_v36 = vadd.f32 %v3666_v58, %v1099_v34  ;;  %v2951_v37 = vpop.f32.mrb[123].mxu0 }
 0x1de   : > { %v1647_v38 = vsel %vm1403_vm3, %v1097_v32, %v1525_v35  ;;  %vm1404_vm1 = vcmp.gt.f32.partialorder %v1100_v36, 0.0  ;;  %v1526_v39 = vmul.f32 0.2, %v1100_v36 }
 0x1df   : > { %v2693_v40 = vpack.c.bf16 %v1647_v38, %v1647_v38 }
 0x1e0   : > { %v1648_v41 = vsel %vm1404_vm1, %v1100_v36, %v1526_v39 }
 0x1e1   : > { %2258 = vst.msk [vmem:[%s3461_s30 + $0xf0] sm:$0xf] %vm2197_vm4, %v2693_v40  ;;  %v2694_v42 = vpack.c.bf16 %v1648_v41, %v1648_v41 }
 0x1e3   : > { %2259 = vst.msk [vmem:[%s3461_s30 + $0xf4] sm:$0xf] %vm2197_vm4, %v2694_v42 }
 0x1e4 PF: > { %s13_s12 = sadd.s32 1, %s3163_s12  }
 0x1e5   : > { %p10_p4 = scmp.ge.s32.totalorder %s13_s12, 4  }
 0x1e7   :  { %12 = sbr.rel (!%p10_p4) target bundleno = 1 (0x1), region = 62 }

// kernel: discriminator_forward.5
= control target key start
LH: loop header
LB: loop body
LE: loop exit
PB: predicated region body
PF: predicated region fallthrough
CT: control target
= control target key end

     0   :  { %9 = vsyncpa [#allocation3], 0  ;;  %s3625_s15 = smov 0   ;;  %s4611_s0 = inlined_call_operand.vmem [shape: bf16[2,240,1024], index: 0, kind: input, shape index: {}]   ;;  %s4612_s1 = inlined_call_operand.vmem [shape: bf16[1024,128], index: 1, kind: input, shape index: {}]   ;;  %s4613_s2 = inlined_call_operand.vmem [shape: f32[1,128], index: 2, kind: input, shape index: {}]   ;;  %s4614_s3 = inlined_call_operand.vmem [shape: f32[2], index: 3, kind: input, shape index: {}]   ;;  %s4615_s4 = inlined_call_operand.vmem [shape: bf16[2,240,128], index: 4, kind: output, shape index: {}]  }
   0x1 LB: > { %s3631_s16 = sadd.s32 4294967295, %s3596_s15   ;;  %p2709_p0 = scmp.ge.s32.totalorder %s3596_s15, 1  ;;  %s3596_s15 = sphi %s3625_s15, %s15_s15  }
   0x2   : > { %p135_p1 = scmp.lt.s32.totalorder %s3596_s15, 3  ;;  %s154_s19 = sshll.u32 %s4614_s3, 4  ;;  %s155_s19 = int_to_ptr.vmem [resolvable:$true] %s154_s19 }
   0x3   : > { %p3493_p3 = scmp.eq.s32.totalorder %s3631_s16, 0  ;;  %s3571_s21 = scalar_lea.vmem %s155_s19, 16 }
   0x4   : > { %p3638_p2 = pnand %p2709_p0, %p135_p1  ;;  %p3572_p6 = scmp.ne.s32.totalorder %s155_s19, %s3571_s21 }
   0x5   : > { %p3579_p10 = scmp.lt.s32.totalorder %s155_s19, %s155_s19  ;;  %p3580_p11 = scmp.lt.s32.totalorder %s3571_s21, %s3571_s21 }
   0x6   : > { %p3489_p4 = pneg %p3638_p2 }
   0x7   : > { %p3581_p12 = por %p3580_p11, %p3579_p10 }
   0x8   : > { %p3490_p5 = pnand %p3493_p3, %p3489_p4 }
   0xa   : > { %p3573_p7 = pneg %p3490_p5 }
   0xc   : > { %p3574_p8 = pnand %p3573_p7, %p3572_p6 }
   0xe   : > { %p3575_p9 = pneg %p3574_p8 }
  0x10   : > { %p3582_p13 = pnand %p3581_p12, %p3575_p9 }
  0x12   : > { %3585 = shalt.err (!%p3582_p13)
}
  0x13   : > { %s3598_s22 = smov [#allocation2]   ;;  %175 = sbr.rel (%p3638_p2) target bundleno = 850 (0x352), region = 36 }
  0x14   : > { %3492 = dma.vmem_to_smem (!%p3490_p5), %s155_s19, 16, %s3598_s22, [#allocation3]  }
  0x1a   : > { %3591 = dma.done.wait (%p3493_p3), [#allocation3], 16  }
  0x1b   : > { %3593 = vsyncadd (%p3493_p3), [#allocation3], 4294967280 }
  0x1c   : > { %181 = sfence }
  0x1d   : > { %v3505_v0 = vld [vmem:[%s4612_s1 + $0x40] sm:$0xff]   ;;  %v3509_v4 = vld [vmem:[%s4612_s1 + $0x48] sm:$0xff]   ;;  %v3513_v8 = vld [vmem:[%s4612_s1 + $0x50] sm:$0xff]   ;;  %p202_p0 = scmp.lt.s32.totalorder %s3631_s16, 1  ;;  %s3599_s21 = smov 0.0  }
  0x1e   : > { %v3506_v1 = vld [vmem:[%s4612_s1 + $0xc0] sm:$0xff]   ;;  %3053 = vmatprep.subr.bf16.mxu0 %v3505_v0  ;;  %v3510_v5 = vld [vmem:[%s4612_s1 + $0xc8] sm:$0xff]   ;;  %v3514_v9 = vld [vmem:[%s4612_s1 + $0xd0] sm:$0xff]   ;;  %s2336_s24 = sld [smem:[#allocation2]]  ;;  %s2901_s25 = sld [smem:[#allocation2 + $0x1]] }
  0x1f   : > { %v3507_v2 = vld [vmem:[%s4612_s1] sm:$0xff]   ;;  %3159 = vmatprep.subr.bf16.mxu1 %v3506_v1  ;;  %v3511_v6 = vld [vmem:[%s4612_s1 + $0x8] sm:$0xff]   ;;  %v3515_v10 = vld [vmem:[%s4612_s1 + $0x10] sm:$0xff]   ;;  %s4631_s16 = smov (!%p202_p0, %s3631_s16), 1 }
  0x20   : > { %v3508_v3 = vld [vmem:[%s4612_s1 + $0x80] sm:$0xff]   ;;  %3054 = vmatpush3.bf16.msra.mxu0 %v3507_v2  ;;  %v3512_v7 = vld [vmem:[%s4612_s1 + $0x88] sm:$0xff]   ;;  %v3516_v11 = vld [vmem:[%s4612_s1 + $0x90] sm:$0xff]   ;;  %s3477_s27 = smul.u32 960, %s4631_s16 }
  0x21   : > { %3160 = vmatpush3.bf16.msra.mxu1 %v3508_v3  ;;  %3055 = vmatprep.subr.bf16.mxu0 %v3509_v4  ;;  %v3517_v12 = vld [vmem:[%s4612_s1 + $0x58] sm:$0xff]   ;;  %v3521_v16 = vld [vmem:[%s4612_s1 + $0x60] sm:$0xff]   ;;  %v3525_v20 = vld [vmem:[%s4612_s1 + $0x68] sm:$0xff]  }
  0x22   : > { %3161 = vmatprep.subr.bf16.mxu1 %v3510_v5  ;;  %v3518_v13 = vld [vmem:[%s4612_s1 + $0xd8] sm:$0xff]   ;;  %v3522_v17 = vld [vmem:[%s4612_s1 + $0xe0] sm:$0xff]   ;;  %v3526_v21 = vld [vmem:[%s4612_s1 + $0xe8] sm:$0xff]   ;;  %s3751_s12 = scalar_lea.vmem %s4611_s0, %s3477_s27  ;;  %s3478_s27 = smul.u32 120, %s4631_s16 }
  0x23   : > { %v3519_v14 = vld [vmem:[%s4612_s1 + $0x18] sm:$0xff]   ;;  %v3523_v18 = vld [vmem:[%s4612_s1 + $0x20] sm:$0xff]   ;;  %v3527_v22 = vld [vmem:[%s4612_s1 + $0x28] sm:$0xff]  }
  0x24   : > { %3056 = vmatpush3.bf16.msra.mxu0 %v3511_v6  ;;  %v3520_v15 = vld [vmem:[%s4612_s1 + $0x98] sm:$0xff]   ;;  %v3524_v19 = vld [vmem:[%s4612_s1 + $0xa0] sm:$0xff]   ;;  %v3528_v23 = vld [vmem:[%s4612_s1 + $0xa8] sm:$0xff]   ;;  %s4572_s29 = scalar_lea.vmem %s4615_s4, %s3478_s27 }
  0x25   : > { %3162 = vmatpush3.bf16.msra.mxu1 %v3512_v7  ;;  %3057 = vmatprep.subr.bf16.mxu0 %v3513_v8  ;;  %v3529_v24 = vld [vmem:[%s4612_s1 + $0x70] sm:$0xff]   ;;  %v3533_v28 = vld [vmem:[%s4612_s1 + $0x78] sm:$0xff]   ;;  %v213_v32 = vld [vmem:[%s3751_s12] sm:$0xff] }
  0x26   : > { %3163 = vmatprep.subr.bf16.mxu1 %v3514_v9  ;;  %v3530_v25 = vld [vmem:[%s4612_s1 + $0xf0] sm:$0xff]   ;;  %v3534_v29 = vld [vmem:[%s4612_s1 + $0xf8] sm:$0xff]   ;;  %v217_v33 = vld [vmem:[%s3751_s12 + $0x20] sm:$0xff] }
  0x27   : > { %v3531_v26 = vld [vmem:[%s4612_s1 + $0x30] sm:$0xff]   ;;  %v3535_v30 = vld [vmem:[%s4612_s1 + $0x38] sm:$0xff]   ;;  %v214_v34 = vld [vmem:[%s3751_s12 + $0x8] sm:$0xff]  ;;  %v2717_v35 = vcombine.low %v213_v32, %v217_v33  ;;  %v2718_v36 = vcombine.high %v213_v32, %v217_v33 }
  0x28   : > { %3058 = vmatpush3.bf16.msra.mxu0 %v3515_v10  ;;  %v3532_v27 = vld [vmem:[%s4612_s1 + $0xb0] sm:$0xff]   ;;  %v3536_v31 = vld [vmem:[%s4612_s1 + $0xb8] sm:$0xff]   ;;  %v218_v37 = vld [vmem:[%s3751_s12 + $0x28] sm:$0xff] }
  0x29   : > { %3164 = vmatpush3.bf16.msra.mxu1 %v3516_v11  ;;  %3059 = vmatprep.subr.bf16.mxu0 %v3517_v12  ;;  %v2719_v38 = vcombine.low %v214_v34, %v218_v37  ;;  %v2720_v39 = vcombine.high %v214_v34, %v218_v37  ;;  %v3537_v40 = vld [vmem:[%s4612_s1 + $0x140] sm:$0xff]   ;;  %v222_v47 = vld [vmem:[%s3751_s12 + $0x48] sm:$0xff]  ;;  %v3545_v0 = vld [vmem:[%s4612_s1 + $0x150] sm:$0xff]  }
  0x2a   : > { %3165 = vmatprep.subr.bf16.mxu1 %v3518_v13  ;;  %1484 = vmatprep.mubr.bf16.mxu0 %v2718_v36  ;;  %v3538_v41 = vld [vmem:[%s4612_s1 + $0x100] sm:$0xff]   ;;  %v226_v48 = vld [vmem:[%s3751_s12 + $0x68] sm:$0xff]  ;;  %v3546_v4 = vld [vmem:[%s4612_s1 + $0x110] sm:$0xff]  }
  0x2b   : > { %1637 = vmatprep.mubr.bf16.mxu1 %v2720_v39  ;;  %v3539_v42 = vld [vmem:[%s4612_s1 + $0x1c0] sm:$0xff]   ;;  %v2728_v50 = vcombine.high %v222_v47, %v226_v48  ;;  %v230_v52 = vld [vmem:[%s3751_s12 + $0x88] sm:$0xff]  ;;  %v2727_v56 = vcombine.low %v222_v47, %v226_v48  ;;  %v3547_v7 = vld [vmem:[%s4612_s1 + $0x1d0] sm:$0xff]  }
  0x2c   : > { %3060 = vmatpush3.bf16.msra.mxu0 %v3519_v14  ;;  %v3540_v43 = vld [vmem:[%s4612_s1 + $0x180] sm:$0xff]   ;;  %v234_v53 = vld [vmem:[%s3751_s12 + $0xa8] sm:$0xff]  ;;  %v3548_v9 = vld [vmem:[%s4612_s1 + $0x190] sm:$0xff]  }
  0x2d   : > { %3166 = vmatpush3.bf16.msra.mxu1 %v3520_v15  ;;  %3061 = vmatprep.subr.bf16.mxu0 %v3521_v16  ;;  %v221_v44 = vld [vmem:[%s3751_s12 + $0x40] sm:$0xff]  ;;  %v3541_v55 = vld [vmem:[%s4612_s1 + $0x148] sm:$0xff]   ;;  %v2736_v59 = vcombine.high %v230_v52, %v234_v53  ;;  %v2735_v5 = vcombine.low %v230_v52, %v234_v53  ;;  %v3549_v10 = vld [vmem:[%s4612_s1 + $0x158] sm:$0xff]  }
  0x2e   : > { %3167 = vmatprep.subr.bf16.mxu1 %v3522_v17  ;;  %v225_v45 = vld [vmem:[%s3751_s12 + $0x60] sm:$0xff]  ;;  %v3542_v58 = vld [vmem:[%s4612_s1 + $0x108] sm:$0xff]   ;;  %v3550_v11 = vld [vmem:[%s4612_s1 + $0x118] sm:$0xff]  }
  0x2f   : > { %v2726_v46 = vcombine.high %v221_v44, %v225_v45  ;;  %v229_v49 = vld [vmem:[%s3751_s12 + $0x80] sm:$0xff]  ;;  %v2725_v54 = vcombine.low %v221_v44, %v225_v45  ;;  %v3543_v60 = vld [vmem:[%s4612_s1 + $0x1c8] sm:$0xff]   ;;  %v3551_v17 = vld [vmem:[%s4612_s1 + $0x1d8] sm:$0xff]  }
  0x30   : > { %3062 = vmatpush3.bf16.msra.mxu0 %v3523_v18  ;;  %v233_v51 = vld [vmem:[%s3751_s12 + $0xa0] sm:$0xff]  ;;  %v3544_v61 = vld [vmem:[%s4612_s1 + $0x188] sm:$0xff]   ;;  %v3563_v48 = vld [vmem:[%s4612_s1 + $0x1f0] sm:$0xff]  }
  0x31   : > { %3168 = vmatpush3.bf16.msra.mxu1 %v3524_v19  ;;  %3063 = vmatprep.subr.bf16.mxu0 %v3525_v20  ;;  %v2734_v57 = vcombine.high %v229_v49, %v233_v51  ;;  %v237_v62 = vld [vmem:[%s3751_s12 + $0xc0] sm:$0xff]  ;;  %v238_v1 = vld [vmem:[%s3751_s12 + $0xc8] sm:$0xff]  ;;  %v2733_v3 = vcombine.low %v229_v49, %v233_v51  ;;  %v3552_v20 = vld [vmem:[%s4612_s1 + $0x198] sm:$0xff]  }
  0x32   : > { %3169 = vmatprep.subr.bf16.mxu1 %v3526_v21  ;;  %v241_v63 = vld [vmem:[%s3751_s12 + $0xe0] sm:$0xff]  ;;  %v242_v2 = vld [vmem:[%s3751_s12 + $0xe8] sm:$0xff]  ;;  %v3564_v49 = vld [vmem:[%s4612_s1 + $0x1b0] sm:$0xff]  }
  0x33   : > { %v2742_v6 = vcombine.high %v237_v62, %v241_v63  ;;  %v2744_v8 = vcombine.high %v238_v1, %v242_v2  ;;  %v245_v12 = vld [vmem:[%s3751_s12 + $0x100] sm:$0xff]  ;;  %v246_v14 = vld [vmem:[%s3751_s12 + $0x108] sm:$0xff]  ;;  %v2741_v16 = vcombine.low %v237_v62, %v241_v63  ;;  %v2743_v18 = vcombine.low %v238_v1, %v242_v2 }
  0x34   : > { %3064 = vmatpush3.bf16.msra.mxu0 %v3527_v22  ;;  %v249_v13 = vld [vmem:[%s3751_s12 + $0x120] sm:$0xff]  ;;  %v250_v15 = vld [vmem:[%s3751_s12 + $0x128] sm:$0xff] }
  0x35   : > { %3170 = vmatpush3.bf16.msra.mxu1 %v3528_v23  ;;  %3065 = vmatprep.subr.bf16.mxu0 %v3529_v24  ;;  %v2750_v19 = vcombine.high %v245_v12, %v249_v13  ;;  %v2752_v21 = vcombine.high %v246_v14, %v250_v15  ;;  %v3553_v22 = vld [vmem:[%s4612_s1 + $0x160] sm:$0xff]   ;;  %v3557_v34 = vld [vmem:[%s4612_s1 + $0x168] sm:$0xff]  }
  0x36   : > { %3171 = vmatprep.subr.bf16.mxu1 %v3530_v25  ;;  %v3554_v23 = vld [vmem:[%s4612_s1 + $0x120] sm:$0xff]   ;;  %v3559_v36 = vld [vmem:[%s4612_s1 + $0x1e8] sm:$0xff]  }
  0x37   : > { %v253_v24 = vld [vmem:[%s3751_s12 + $0x140] sm:$0xff]  ;;  %v3560_v37 = vld [vmem:[%s4612_s1 + $0x1a8] sm:$0xff]  }
  0x38   : > { %3066 = vmatpush3.bf16.msra.mxu0 %v3531_v26  ;;  %v3555_v25 = vld [vmem:[%s4612_s1 + $0x1e0] sm:$0xff]   ;;  %v270_v52 = vld [vmem:[%s3751_s12 + $0x1c8] sm:$0xff] }
  0x39   : > { %3172 = vmatpush3.bf16.msra.mxu1 %v3532_v27  ;;  %3067 = vmatprep.subr.bf16.mxu0 %v3533_v28  ;;  %v257_v26 = vld [vmem:[%s3751_s12 + $0x160] sm:$0xff]  ;;  %v254_v27 = vld [vmem:[%s3751_s12 + $0x148] sm:$0xff] }
  0x3a   : > { %3173 = vmatprep.subr.bf16.mxu1 %v3534_v29  ;;  %v258_v28 = vld [vmem:[%s3751_s12 + $0x168] sm:$0xff]  ;;  %v3556_v29 = vld [vmem:[%s4612_s1 + $0x1a0] sm:$0xff]   ;;  %v2758_v32 = vcombine.high %v253_v24, %v257_v26 }
  0x3b   : > { %v2760_v33 = vcombine.high %v254_v27, %v258_v28  ;;  %v265_v39 = vld [vmem:[%s3751_s12 + $0x1a0] sm:$0xff]  ;;  %v2759_v44 = vcombine.low %v254_v27, %v258_v28  ;;  %v274_v53 = vld [vmem:[%s3751_s12 + $0x1e8] sm:$0xff] }
  0x3c   : > { %3068 = vmatpush3.bf16.msra.mxu0 %v3535_v30  ;;  %v2749_v30 = vcombine.low %v245_v12, %v249_v13  ;;  %v273_v51 = vld [vmem:[%s3751_s12 + $0x1e0] sm:$0xff]  ;;  %v282_v1 = vld [vmem:[%s3751_s12 + $0x228] sm:$0xff] }
  0x3d   : > { %3174 = vmatpush3.bf16.msra.mxu1 %v3536_v31  ;;  %3265 = vmatprep.subr.bf16.mxu0 %v3537_v40  ;;  %v2751_v31 = vcombine.low %v246_v14, %v250_v15  ;;  %v262_v40 = vld [vmem:[%s3751_s12 + $0x188] sm:$0xff]  ;;  %v277_v62 = vld [vmem:[%s3751_s12 + $0x200] sm:$0xff] }
  0x3e   : > { %3371 = vmatprep.subr.bf16.mxu1 %v3539_v42  ;;  %v2757_v42 = vcombine.low %v253_v24, %v257_v26  ;;  %v281_v63 = vld [vmem:[%s3751_s12 + $0x220] sm:$0xff]  ;;  %v302_v24 = vld [vmem:[%s3751_s12 + $0x2c8] sm:$0xff] }
  0x3f   : > { %1485 = vmatmul.mubr.bf16.vlgmr.msra.gmra.mrb[0].mxu0 %v2717_v35  ;;  %v3558_v35 = vld [vmem:[%s4612_s1 + $0x128] sm:$0xff]   ;;  %v293_v14 = vld [vmem:[%s3751_s12 + $0x280] sm:$0xff] }
  0x40   : > { %1638 = vmatmul.mubr.bf16.vlgmr.msra.gmra.mrb[0].mxu1 %v2719_v38  ;;  %3266 = vmatpush3.bf16.msra.mxu0 %v3538_v41  ;;  %v261_v38 = vld [vmem:[%s3751_s12 + $0x180] sm:$0xff]  ;;  %v266_v41 = vld [vmem:[%s3751_s12 + $0x1a8] sm:$0xff] }
  0x41   : > { %3372 = vmatpush3.bf16.msra.mxu1 %v3540_v43  ;;  %1492 = vmatprep.mubr.bf16.mxu0 %v2726_v46  ;;  %v3561_v43 = vld [vmem:[%s4612_s1 + $0x170] sm:$0xff]   ;;  %v2766_v45 = vcombine.high %v261_v38, %v265_v39  ;;  %v2768_v47 = vcombine.high %v262_v40, %v266_v41  ;;  %v297_v15 = vld [vmem:[%s3751_s12 + $0x2a0] sm:$0xff] }
  0x42   : > { %1645 = vmatprep.mubr.bf16.mxu1 %v2728_v50  ;;  %3267 = vmatprep.subr.bf16.mxu0 %v3541_v55  ;;  %v3562_v46 = vld [vmem:[%s4612_s1 + $0x130] sm:$0xff]   ;;  %v269_v50 = vld [vmem:[%s3751_s12 + $0x1c0] sm:$0xff]  ;;  %v2765_v55 = vcombine.low %v261_v38, %v265_v39  ;;  %v2797_v26 = vcombine.low %v293_v14, %v297_v15 }
  0x43   : > { %3373 = vmatprep.subr.bf16.mxu1 %v3543_v60  ;;  %v2776_v60 = vcombine.high %v270_v52, %v274_v53  ;;  %v2773_v2 = vcombine.low %v269_v50, %v273_v51  ;;  %v317_v38 = vld [vmem:[%s3751_s12 + $0x340] sm:$0xff] }
  0x44   : > { %3268 = vmatpush3.bf16.msra.mxu0 %v3542_v58  ;;  %v2774_v58 = vcombine.high %v269_v50, %v273_v51  ;;  %v321_v39 = vld [vmem:[%s3751_s12 + $0x360] sm:$0xff] }
  0x45   : > { %3374 = vmatpush3.bf16.msra.mxu1 %v3544_v61  ;;  %3269 = vmatprep.subr.bf16.mxu0 %v3545_v0  ;;  %v3568_v61 = vld [vmem:[%s4612_s1 + $0x1b8] sm:$0xff]   ;;  %v278_v0 = vld [vmem:[%s3751_s12 + $0x208] sm:$0xff]  ;;  %v2821_v50 = vcombine.low %v317_v38, %v321_v39 }
  0x46   : > { %3375 = vmatprep.subr.bf16.mxu1 %v3547_v7  ;;  %v289_v7 = vld [vmem:[%s3751_s12 + $0x260] sm:$0xff] }
  0x47   : > { %1493 = vmatmul.mubr.bf16.gmra.mrb[4].mxu0 %v2725_v54  ;;  %v3565_v54 = vld [vmem:[%s4612_s1 + $0x178] sm:$0xff]  }
  0x48   : > { %1646 = vmatmul.mubr.bf16.gmra.mrb[4].mxu1 %v2727_v56  ;;  %1500 = vmatprep.mubr.bf16.mxu0 %v2734_v57  ;;  %v3566_v56 = vld [vmem:[%s4612_s1 + $0x138] sm:$0xff]   ;;  %v2767_v57 = vcombine.low %v262_v40, %v266_v41  ;;  %v318_v40 = vld [vmem:[%s3751_s12 + $0x348] sm:$0xff] }
  0x49   : > { %1653 = vmatprep.mubr.bf16.mxu1 %v2736_v59  ;;  %3270 = vmatpush3.bf16.msra.mxu0 %v3546_v4  ;;  %v3567_v59 = vld [vmem:[%s4612_s1 + $0x1f8] sm:$0xff]   ;;  %v2782_v4 = vcombine.high %v277_v62, %v281_v63  ;;  %v322_v41 = vld [vmem:[%s3751_s12 + $0x368] sm:$0xff] }
  0x4a   : > { %3376 = vmatpush3.bf16.msra.mxu1 %v3548_v9  ;;  %3271 = vmatprep.subr.bf16.mxu0 %v3549_v10  ;;  %v290_v9 = vld [vmem:[%s3751_s12 + $0x268] sm:$0xff]  ;;  %v2781_v10 = vcombine.low %v277_v62, %v281_v63  ;;  %v2823_v51 = vcombine.low %v318_v40, %v322_v41  ;;  %v223_v62 = vld [vmem:[%s3751_s12 + $0x50] sm:$0xff] }
  0x4b   : > { %3377 = vmatprep.subr.bf16.mxu1 %v3551_v17  ;;  %v298_v17 = vld [vmem:[%s3751_s12 + $0x2a8] sm:$0xff]  ;;  %v227_v63 = vld [vmem:[%s3751_s12 + $0x70] sm:$0xff] }
  0x4d   : > { %3272 = vmatpush3.bf16.msra.mxu0 %v3550_v11  ;;  %v2783_v11 = vcombine.low %v278_v0, %v282_v1 }
  0x4e   : > { %3378 = vmatpush3.bf16.msra.mxu1 %v3552_v20  ;;  %3273 = vmatprep.subr.bf16.mxu0 %v3553_v22  ;;  %v2798_v20 = vcombine.high %v293_v14, %v297_v15  ;;  %v301_v22 = vld [vmem:[%s3751_s12 + $0x2c0] sm:$0xff]  ;;  %v239_v14 = vld [vmem:[%s3751_s12 + $0xd0] sm:$0xff] }
  0x4f   : > { %1501 = vmatmul.mubr.bf16.gmra.mrb[8].mxu0 %v2733_v3  ;;  %3379 = vmatprep.subr.bf16.mxu1 %v3555_v25  ;;  %v2775_v3 = vcombine.low %v270_v52, %v274_v53  ;;  %v306_v25 = vld [vmem:[%s3751_s12 + $0x2e8] sm:$0xff]  ;;  %v243_v15 = vld [vmem:[%s3751_s12 + $0xf0] sm:$0xff] }
  0x50   : > { %1654 = vmatmul.mubr.bf16.gmra.mrb[8].mxu1 %v2735_v5  ;;  %1508 = vmatprep.mubr.bf16.mxu0 %v2742_v6  ;;  %v2784_v5 = vcombine.high %v278_v0, %v282_v1  ;;  %v285_v6 = vld [vmem:[%s3751_s12 + $0x240] sm:$0xff]  ;;  %v224_v0 = vld [vmem:[%s3751_s12 + $0x58] sm:$0xff] }
  0x51   : > { %1661 = vmatprep.mubr.bf16.mxu1 %v2744_v8  ;;  %3274 = vmatpush3.bf16.msra.mxu0 %v3554_v23  ;;  %v286_v8 = vld [vmem:[%s3751_s12 + $0x248] sm:$0xff]  ;;  %v2790_v12 = vcombine.high %v285_v6, %v289_v7  ;;  %v305_v23 = vld [vmem:[%s3751_s12 + $0x2e0] sm:$0xff]  ;;  %v228_v1 = vld [vmem:[%s3751_s12 + $0x78] sm:$0xff] }
  0x52   : > { %3380 = vmatpush3.bf16.msra.mxu1 %v3556_v29  ;;  %3275 = vmatprep.subr.bf16.mxu0 %v3557_v34  ;;  %v2792_v13 = vcombine.high %v286_v8, %v290_v9  ;;  %v2806_v28 = vcombine.high %v301_v22, %v305_v23  ;;  %v2808_v29 = vcombine.high %v302_v24, %v306_v25 }
  0x53   : > { %3381 = vmatprep.subr.bf16.mxu1 %v3559_v36  ;;  %v2805_v34 = vcombine.low %v301_v22, %v305_v23  ;;  %v247_v22 = vld [vmem:[%s3751_s12 + $0x110] sm:$0xff] }
  0x54   : > { %v251_v23 = vld [vmem:[%s3751_s12 + $0x130] sm:$0xff] }
  0x55   : > { %3276 = vmatpush3.bf16.msra.mxu0 %v3558_v35  ;;  %v2807_v35 = vcombine.low %v302_v24, %v306_v25  ;;  %v248_v24 = vld [vmem:[%s3751_s12 + $0x118] sm:$0xff] }
  0x56   : > { %3382 = vmatpush3.bf16.msra.mxu1 %v3560_v37  ;;  %3277 = vmatprep.subr.bf16.mxu0 %v3561_v43  ;;  %v252_v25 = vld [vmem:[%s3751_s12 + $0x138] sm:$0xff] }
  0x57   : > { %1509 = vmatmul.mubr.bf16.gmra.mrb[12].mxu0 %v2741_v16  ;;  %3383 = vmatprep.subr.bf16.mxu1 %v3563_v48  ;;  %v294_v16 = vld [vmem:[%s3751_s12 + $0x288] sm:$0xff] }
  0x58   : > { %1662 = vmatmul.mubr.bf16.gmra.mrb[12].mxu1 %v2743_v18  ;;  %1516 = vmatprep.mubr.bf16.mxu0 %v2750_v19  ;;  %v2789_v18 = vcombine.low %v285_v6, %v289_v7  ;;  %v2791_v19 = vcombine.low %v286_v8, %v290_v9  ;;  %v2799_v27 = vcombine.low %v294_v16, %v298_v17  ;;  %v326_v48 = vld [vmem:[%s3751_s12 + $0x388] sm:$0xff]  ;;  %v231_v6 = vld [vmem:[%s3751_s12 + $0x90] sm:$0xff]  ;;  %v232_v8 = vld [vmem:[%s3751_s12 + $0x98] sm:$0xff] }
  0x59   : > { %1669 = vmatprep.mubr.bf16.mxu1 %v2752_v21  ;;  %3278 = vmatpush3.bf16.msra.mxu0 %v3562_v46  ;;  %v2800_v21 = vcombine.high %v294_v16, %v298_v17  ;;  %v325_v46 = vld [vmem:[%s3751_s12 + $0x380] sm:$0xff]  ;;  %v235_v7 = vld [vmem:[%s3751_s12 + $0xb0] sm:$0xff]  ;;  %v236_v9 = vld [vmem:[%s3751_s12 + $0xb8] sm:$0xff] }
  0x5a   : > { %3384 = vmatpush3.bf16.msra.mxu1 %v3564_v49  ;;  %3279 = vmatprep.subr.bf16.mxu0 %v3565_v54  ;;  %v330_v49 = vld [vmem:[%s3751_s12 + $0x3a8] sm:$0xff]  ;;  %v215_v54 = vld [vmem:[%s3751_s12 + $0x10] sm:$0xff]  ;;  %v240_v16 = vld [vmem:[%s3751_s12 + $0xd8] sm:$0xff] }
  0x5b   : > { %3385 = vmatprep.subr.bf16.mxu1 %v3567_v59  ;;  %v2832_v53 = vcombine.high %v326_v48, %v330_v49  ;;  %v2831_v59 = vcombine.low %v326_v48, %v330_v49  ;;  %v244_v17 = vld [vmem:[%s3751_s12 + $0xf8] sm:$0xff] }
  0x5c   : > { %v272_v48 = vld [vmem:[%s3751_s12 + $0x1d8] sm:$0xff] }
  0x5d   : > { %3280 = vmatpush3.bf16.msra.mxu0 %v3566_v56  ;;  %v216_v56 = vld [vmem:[%s3751_s12 + $0x18] sm:$0xff] }
  0x5e   : > { %3386 = vmatpush3.bf16.msra.mxu1 %v3568_v61  ;;  %v276_v49 = vld [vmem:[%s3751_s12 + $0x1f8] sm:$0xff] }
  0x5f   : > { %1517 = vmatmul.mubr.bf16.gmra.mrb[16].mxu0 %v2749_v30  ;;  %v309_v30 = vld [vmem:[%s3751_s12 + $0x300] sm:$0xff] }
  0x60   : > { %1670 = vmatmul.mubr.bf16.gmra.mrb[16].mxu1 %v2751_v31  ;;  %1524 = vmatprep.mubr.bf16.mxu0 %v2758_v32  ;;  %v313_v31 = vld [vmem:[%s3751_s12 + $0x320] sm:$0xff]  ;;  %v310_v32 = vld [vmem:[%s3751_s12 + $0x308] sm:$0xff] }
  0x61   : > { %1677 = vmatprep.mubr.bf16.mxu1 %v2760_v33  ;;  %v314_v33 = vld [vmem:[%s3751_s12 + $0x328] sm:$0xff]  ;;  %v2814_v36 = vcombine.high %v309_v30, %v313_v31 }
  0x62   : > { %v2816_v37 = vcombine.high %v310_v32, %v314_v33  ;;  %v2815_v43 = vcombine.low %v310_v32, %v314_v33  ;;  %v256_v32 = vld [vmem:[%s3751_s12 + $0x158] sm:$0xff] }
  0x63   : > { %v260_v33 = vld [vmem:[%s3751_s12 + $0x178] sm:$0xff] }
  0x67   : > { %1525 = vmatmul.mubr.bf16.gmra.mrb[20].mxu0 %v2757_v42  ;;  %v2813_v42 = vcombine.low %v309_v30, %v313_v31  ;;  %v255_v30 = vld [vmem:[%s3751_s12 + $0x150] sm:$0xff] }
  0x68   : > { %1678 = vmatmul.mubr.bf16.gmra.mrb[20].mxu1 %v2759_v44  ;;  %1532 = vmatprep.mubr.bf16.mxu0 %v2766_v45  ;;  %v2822_v44 = vcombine.high %v317_v38, %v321_v39  ;;  %v2824_v45 = vcombine.high %v318_v40, %v322_v41  ;;  %v259_v31 = vld [vmem:[%s3751_s12 + $0x170] sm:$0xff]  ;;  %v264_v40 = vld [vmem:[%s3751_s12 + $0x198] sm:$0xff] }
  0x69   : > { %1685 = vmatprep.mubr.bf16.mxu1 %v2768_v47  ;;  %v329_v47 = vld [vmem:[%s3751_s12 + $0x3a0] sm:$0xff]  ;;  %v263_v38 = vld [vmem:[%s3751_s12 + $0x190] sm:$0xff]  ;;  %v268_v41 = vld [vmem:[%s3751_s12 + $0x1b8] sm:$0xff] }
  0x6a   : > { %v2830_v52 = vcombine.high %v325_v46, %v329_v47  ;;  %v267_v39 = vld [vmem:[%s3751_s12 + $0x1b0] sm:$0xff] }
  0x6f   : > { %1533 = vmatmul.mubr.bf16.gmra.mrb[24].mxu0 %v2765_v55  ;;  %v219_v55 = vld [vmem:[%s3751_s12 + $0x30] sm:$0xff] }
  0x70   : > { %1686 = vmatmul.mubr.bf16.gmra.mrb[24].mxu1 %v2767_v57  ;;  %1540 = vmatprep.mubr.bf16.mxu0 %v2774_v58  ;;  %v220_v57 = vld [vmem:[%s3751_s12 + $0x38] sm:$0xff]  ;;  %v2829_v58 = vcombine.low %v325_v46, %v329_v47  ;;  %v271_v46 = vld [vmem:[%s3751_s12 + $0x1d0] sm:$0xff] }
  0x71   : > { %1693 = vmatprep.mubr.bf16.mxu1 %v2776_v60  ;;  %v2722_v60 = vcombine.high %v215_v54, %v219_v55  ;;  %v2724_v61 = vcombine.high %v216_v56, %v220_v57  ;;  %v275_v47 = vld [vmem:[%s3751_s12 + $0x1f0] sm:$0xff] }
  0x77   : > { %1541 = vmatmul.mubr.bf16.gmra.mrb[28].mxu0 %v2773_v2  ;;  %v2721_v2 = vcombine.low %v215_v54, %v219_v55  ;;  %v279_v54 = vld [vmem:[%s3751_s12 + $0x210] sm:$0xff] }
  0x78   : > { %1694 = vmatmul.mubr.bf16.gmra.mrb[28].mxu1 %v2775_v3  ;;  %1548 = vmatprep.mubr.bf16.mxu0 %v2782_v4  ;;  %v2723_v3 = vcombine.low %v216_v56, %v220_v57  ;;  %v2730_v4 = vcombine.high %v223_v62, %v227_v63  ;;  %v283_v55 = vld [vmem:[%s3751_s12 + $0x230] sm:$0xff]  ;;  %v280_v56 = vld [vmem:[%s3751_s12 + $0x218] sm:$0xff] }
  0x79   : > { %1701 = vmatprep.mubr.bf16.mxu1 %v2784_v5  ;;  %v2732_v5 = vcombine.high %v224_v0, %v228_v1  ;;  %v284_v57 = vld [vmem:[%s3751_s12 + $0x238] sm:$0xff] }
  0x7f   : > { %1549 = vmatmul.mubr.bf16.gmra.mrb[32].mxu0 %v2781_v10  ;;  %v2729_v10 = vcombine.low %v223_v62, %v227_v63  ;;  %v287_v62 = vld [vmem:[%s3751_s12 + $0x250] sm:$0xff] }
  0x80   : > { %1702 = vmatmul.mubr.bf16.gmra.mrb[32].mxu1 %v2783_v11  ;;  %1556 = vmatprep.mubr.bf16.mxu0 %v2790_v12  ;;  %v2731_v11 = vcombine.low %v224_v0, %v228_v1  ;;  %v2738_v12 = vcombine.high %v231_v6, %v235_v7  ;;  %v291_v63 = vld [vmem:[%s3751_s12 + $0x270] sm:$0xff]  ;;  %v288_v0 = vld [vmem:[%s3751_s12 + $0x258] sm:$0xff] }
  0x81   : > { %1709 = vmatprep.mubr.bf16.mxu1 %v2792_v13  ;;  %v2740_v13 = vcombine.high %v232_v8, %v236_v9  ;;  %v292_v1 = vld [vmem:[%s3751_s12 + $0x278] sm:$0xff] }
  0x87   : > { %1557 = vmatmul.mubr.bf16.gmra.mrb[36].mxu0 %v2789_v18  ;;  %v2737_v18 = vcombine.low %v231_v6, %v235_v7  ;;  %v295_v6 = vld [vmem:[%s3751_s12 + $0x290] sm:$0xff] }
  0x88   : > { %1710 = vmatmul.mubr.bf16.gmra.mrb[36].mxu1 %v2791_v19  ;;  %1564 = vmatprep.mubr.bf16.mxu0 %v2798_v20  ;;  %v2739_v19 = vcombine.low %v232_v8, %v236_v9  ;;  %v2746_v20 = vcombine.high %v239_v14, %v243_v15  ;;  %v299_v7 = vld [vmem:[%s3751_s12 + $0x2b0] sm:$0xff]  ;;  %v296_v8 = vld [vmem:[%s3751_s12 + $0x298] sm:$0xff] }
  0x89   : > { %1717 = vmatprep.mubr.bf16.mxu1 %v2800_v21  ;;  %v2748_v21 = vcombine.high %v240_v16, %v244_v17  ;;  %v300_v9 = vld [vmem:[%s3751_s12 + $0x2b8] sm:$0xff] }
  0x8f   : > { %1565 = vmatmul.mubr.bf16.gmra.mrb[40].mxu0 %v2797_v26  ;;  %v2745_v26 = vcombine.low %v239_v14, %v243_v15  ;;  %v303_v14 = vld [vmem:[%s3751_s12 + $0x2d0] sm:$0xff] }
  0x90   : > { %1718 = vmatmul.mubr.bf16.gmra.mrb[40].mxu1 %v2799_v27  ;;  %1572 = vmatprep.mubr.bf16.mxu0 %v2806_v28  ;;  %v2747_v27 = vcombine.low %v240_v16, %v244_v17  ;;  %v2754_v28 = vcombine.high %v247_v22, %v251_v23  ;;  %v307_v15 = vld [vmem:[%s3751_s12 + $0x2f0] sm:$0xff]  ;;  %v304_v16 = vld [vmem:[%s3751_s12 + $0x2d8] sm:$0xff] }
  0x91   : > { %1725 = vmatprep.mubr.bf16.mxu1 %v2808_v29  ;;  %v2756_v29 = vcombine.high %v248_v24, %v252_v25  ;;  %v308_v17 = vld [vmem:[%s3751_s12 + $0x2f8] sm:$0xff] }
  0x97   : > { %1573 = vmatmul.mubr.bf16.gmra.mrb[44].mxu0 %v2805_v34  ;;  %v2753_v34 = vcombine.low %v247_v22, %v251_v23  ;;  %v311_v22 = vld [vmem:[%s3751_s12 + $0x310] sm:$0xff] }
  0x98   : > { %1726 = vmatmul.mubr.bf16.gmra.mrb[44].mxu1 %v2807_v35  ;;  %1580 = vmatprep.mubr.bf16.mxu0 %v2814_v36  ;;  %v2755_v35 = vcombine.low %v248_v24, %v252_v25  ;;  %v2762_v36 = vcombine.high %v255_v30, %v259_v31  ;;  %v315_v23 = vld [vmem:[%s3751_s12 + $0x330] sm:$0xff]  ;;  %v312_v24 = vld [vmem:[%s3751_s12 + $0x318] sm:$0xff] }
  0x99   : > { %1733 = vmatprep.mubr.bf16.mxu1 %v2816_v37  ;;  %v2764_v37 = vcombine.high %v256_v32, %v260_v33  ;;  %v316_v25 = vld [vmem:[%s3751_s12 + $0x338] sm:$0xff] }
  0x9f   : > { %1581 = vmatmul.mubr.bf16.gmra.mrb[48].mxu0 %v2813_v42  ;;  %v2761_v42 = vcombine.low %v255_v30, %v259_v31  ;;  %v319_v30 = vld [vmem:[%s3751_s12 + $0x350] sm:$0xff] }
  0xa0   : > { %1734 = vmatmul.mubr.bf16.gmra.mrb[48].mxu1 %v2815_v43  ;;  %1588 = vmatprep.mubr.bf16.mxu0 %v2822_v44  ;;  %v2763_v43 = vcombine.low %v256_v32, %v260_v33  ;;  %v2770_v44 = vcombine.high %v263_v38, %v267_v39  ;;  %v323_v31 = vld [vmem:[%s3751_s12 + $0x370] sm:$0xff]  ;;  %v320_v33 = vld [vmem:[%s3751_s12 + $0x358] sm:$0xff] }
  0xa1   : > { %1741 = vmatprep.mubr.bf16.mxu1 %v2824_v45  ;;  %v2772_v45 = vcombine.high %v264_v40, %v268_v41 }
  0xa7   : > { %1589 = vmatmul.mubr.bf16.gmra.mrb[52].mxu0 %v2821_v50  ;;  %v2769_v50 = vcombine.low %v263_v38, %v267_v39  ;;  %v2817_v38 = vcombine.low %v311_v22, %v315_v23 }
  0xa8   : > { %1742 = vmatmul.mubr.bf16.gmra.mrb[52].mxu1 %v2823_v51  ;;  %1596 = vmatprep.mubr.bf16.mxu0 %v2830_v52  ;;  %v2771_v51 = vcombine.low %v264_v40, %v268_v41  ;;  %v2778_v52 = vcombine.high %v271_v46, %v275_v47 }
  0xa9   : > { %1749 = vmatprep.mubr.bf16.mxu1 %v2832_v53  ;;  %v2780_v53 = vcombine.high %v272_v48, %v276_v49 }
  0xaf   : > { %1597 = vmatmul.mubr.bf16.gmra.mrb[56].mxu0 %v2829_v58  ;;  %v2777_v58 = vcombine.low %v271_v46, %v275_v47 }
  0xb0   : > { %1750 = vmatmul.mubr.bf16.gmra.mrb[56].mxu1 %v2831_v59  ;;  %1790 = vmatprep.mubr.bf16.mxu0 %v2722_v60  ;;  %v2779_v59 = vcombine.low %v272_v48, %v276_v49  ;;  %v2786_v60 = vcombine.high %v279_v54, %v283_v55 }
  0xb1   : > { %1943 = vmatprep.mubr.bf16.mxu1 %v2724_v61  ;;  %v2788_v61 = vcombine.high %v280_v56, %v284_v57 }
  0xb7   : > { %1791 = vmatmul.mubr.bf16.vlgmr.msra.gmra.mrb[60].mxu0 %v2721_v2  ;;  %v2785_v2 = vcombine.low %v279_v54, %v283_v55  ;;  %v327_v54 = vld [vmem:[%s3751_s12 + $0x390] sm:$0xff] }
  0xb8   : > { %1944 = vmatmul.mubr.bf16.vlgmr.msra.gmra.mrb[60].mxu1 %v2723_v3  ;;  %1798 = vmatprep.mubr.bf16.mxu0 %v2730_v4  ;;  %v2787_v3 = vcombine.low %v280_v56, %v284_v57  ;;  %v2794_v4 = vcombine.high %v287_v62, %v291_v63  ;;  %v331_v55 = vld [vmem:[%s3751_s12 + $0x3b0] sm:$0xff] }
  0xb9   : > { %1951 = vmatprep.mubr.bf16.mxu1 %v2732_v5  ;;  %v2796_v5 = vcombine.high %v288_v0, %v292_v1 }
  0xbf   : > { %1799 = vmatmul.mubr.bf16.gmra.mrb[64].mxu0 %v2729_v10  ;;  %v2793_v10 = vcombine.low %v287_v62, %v291_v63  ;;  %v2825_v62 = vcombine.low %v319_v30, %v323_v31 }
  0xc0   : > { %1952 = vmatmul.mubr.bf16.gmra.mrb[64].mxu1 %v2731_v11  ;;  %1806 = vmatprep.mubr.bf16.mxu0 %v2738_v12  ;;  %v2795_v11 = vcombine.low %v288_v0, %v292_v1  ;;  %v2802_v12 = vcombine.high %v295_v6, %v299_v7 }
  0xc1   : > { %1959 = vmatprep.mubr.bf16.mxu1 %v2740_v13  ;;  %v2804_v13 = vcombine.high %v296_v8, %v300_v9 }
  0xc7   : > { %1807 = vmatmul.mubr.bf16.gmra.mrb[68].mxu0 %v2737_v18  ;;  %v2801_v18 = vcombine.low %v295_v6, %v299_v7 }
  0xc8   : > { %1960 = vmatmul.mubr.bf16.gmra.mrb[68].mxu1 %v2739_v19  ;;  %1814 = vmatprep.mubr.bf16.mxu0 %v2746_v20  ;;  %v2803_v19 = vcombine.low %v296_v8, %v300_v9  ;;  %v2810_v20 = vcombine.high %v303_v14, %v307_v15 }
  0xc9   : > { %1967 = vmatprep.mubr.bf16.mxu1 %v2748_v21  ;;  %v2812_v21 = vcombine.high %v304_v16, %v308_v17 }
  0xcf   : > { %1815 = vmatmul.mubr.bf16.gmra.mrb[72].mxu0 %v2745_v26  ;;  %v2809_v26 = vcombine.low %v303_v14, %v307_v15 }
  0xd0   : > { %1968 = vmatmul.mubr.bf16.gmra.mrb[72].mxu1 %v2747_v27  ;;  %1822 = vmatprep.mubr.bf16.mxu0 %v2754_v28  ;;  %v2811_v27 = vcombine.low %v304_v16, %v308_v17  ;;  %v2818_v28 = vcombine.high %v311_v22, %v315_v23 }
  0xd1   : > { %1975 = vmatprep.mubr.bf16.mxu1 %v2756_v29  ;;  %v2820_v29 = vcombine.high %v312_v24, %v316_v25 }
  0xd7   : > { %1823 = vmatmul.mubr.bf16.gmra.mrb[76].mxu0 %v2753_v34  ;;  %v324_v34 = vld [vmem:[%s3751_s12 + $0x378] sm:$0xff] }
  0xd8   : > { %1976 = vmatmul.mubr.bf16.gmra.mrb[76].mxu1 %v2755_v35  ;;  %1830 = vmatprep.mubr.bf16.mxu0 %v2762_v36  ;;  %v3974_v36 = vld [vmem:[%s4613_s2] ss:$0 sm:$0xff]  ;;  %v2828_v47 = vcombine.high %v320_v33, %v324_v34 }
  0xd9   : > { %1983 = vmatprep.mubr.bf16.mxu1 %v2764_v37 }
  0xdf   : > { %1831 = vmatmul.mubr.bf16.gmra.mrb[80].mxu0 %v2761_v42  ;;  %v2819_v42 = vcombine.low %v312_v24, %v316_v25 }
  0xe0   : > { %1984 = vmatmul.mubr.bf16.gmra.mrb[80].mxu1 %v2763_v43  ;;  %1838 = vmatprep.mubr.bf16.mxu0 %v2770_v44  ;;  %v2826_v43 = vcombine.high %v319_v30, %v323_v31 }
  0xe1   : > { %1991 = vmatprep.mubr.bf16.mxu1 %v2772_v45 }
  0xe7   : > { %1839 = vmatmul.mubr.bf16.gmra.mrb[84].mxu0 %v2769_v50 }
  0xe8   : > { %1992 = vmatmul.mubr.bf16.gmra.mrb[84].mxu1 %v2771_v51  ;;  %1846 = vmatprep.mubr.bf16.mxu0 %v2778_v52 }
  0xe9   : > { %1999 = vmatprep.mubr.bf16.mxu1 %v2780_v53 }
  0xef   : > { %1847 = vmatmul.mubr.bf16.gmra.mrb[88].mxu0 %v2777_v58  ;;  %v328_v58 = vld [vmem:[%s3751_s12 + $0x398] sm:$0xff] }
  0xf0   : > { %2000 = vmatmul.mubr.bf16.gmra.mrb[88].mxu1 %v2779_v59  ;;  %1854 = vmatprep.mubr.bf16.mxu0 %v2786_v60  ;;  %v332_v59 = vld [vmem:[%s3751_s12 + $0x3b8] sm:$0xff] }
  0xf1   : > { %2007 = vmatprep.mubr.bf16.mxu1 %v2788_v61  ;;  %v2836_v7 = vcombine.high %v328_v58, %v332_v59  ;;  %v2835_v22 = vcombine.low %v328_v58, %v332_v59 }
  0xf7   : > { %1855 = vmatmul.mubr.bf16.gmra.mrb[92].mxu0 %v2785_v2  ;;  %v2827_v2 = vcombine.low %v320_v33, %v324_v34 }
  0xf8   : > { %2008 = vmatmul.mubr.bf16.gmra.mrb[92].mxu1 %v2787_v3  ;;  %1862 = vmatprep.mubr.bf16.mxu0 %v2794_v4  ;;  %v2834_v3 = vcombine.high %v327_v54, %v331_v55 }
  0xf9   : > { %2015 = vmatprep.mubr.bf16.mxu1 %v2796_v5 }
  0xff   : > { %1863 = vmatmul.mubr.bf16.gmra.mrb[96].mxu0 %v2793_v10 }
 0x100   : > { %2016 = vmatmul.mubr.bf16.gmra.mrb[96].mxu1 %v2795_v11  ;;  %1870 = vmatprep.mubr.bf16.mxu0 %v2802_v12 }
 0x101   : > { %2023 = vmatprep.mubr.bf16.mxu1 %v2804_v13 }
 0x107   : > { %1871 = vmatmul.mubr.bf16.gmra.mrb[100].mxu0 %v2801_v18  ;;  %v2833_v18 = vcombine.low %v327_v54, %v331_v55 }
 0x108   : > { %2024 = vmatmul.mubr.bf16.gmra.mrb[100].mxu1 %v2803_v19  ;;  %1878 = vmatprep.mubr.bf16.mxu0 %v2810_v20 }
 0x109   : > { %2031 = vmatprep.mubr.bf16.mxu1 %v2812_v21 }
 0x10f   : > { %1879 = vmatmul.mubr.bf16.gmra.mrb[104].mxu0 %v2809_v26 }
 0x110   : > { %2032 = vmatmul.mubr.bf16.gmra.mrb[104].mxu1 %v2811_v27  ;;  %1886 = vmatprep.mubr.bf16.mxu0 %v2818_v28 }
 0x111   : > { %2039 = vmatprep.mubr.bf16.mxu1 %v2820_v29 }
 0x112   : > { %v3069_v32 = vpop.f32.mrb[0].mxu0 }
 0x113   : > { %v3175_v35 = vpop.f32.mrb[0].mxu1  ;;  %v3070_v37 = vpop.f32.mrb[1].mxu0 }
 0x114   : > { %v3071_v39 = vadd.f32 %v3070_v37, %v3069_v32  ;;  %v3176_v40 = vpop.f32.mrb[1].mxu1  ;;  %v3072_v41 = vpop.f32.mrb[2].mxu0 }
 0x115   : > { %v3177_v44 = vadd.f32 %v3176_v40, %v3175_v35  ;;  %v3178_v45 = vpop.f32.mrb[2].mxu1  ;;  %v3073_v46 = vpop.f32.mrb[3].mxu0 }
 0x116   : > { %v1487_v48 = vadd.f32 %v3071_v39, %v3974_v36  ;;  %v3074_v49 = vadd.f32 %v3073_v46, %v3072_v41  ;;  %v3179_v50 = vpop.f32.mrb[3].mxu1 }
 0x117   : > { %v3180_v51 = vadd.f32 %v3179_v50, %v3178_v45  ;;  %1887 = vmatmul.mubr.bf16.gmra.mrb[108].mxu0 %v2817_v38 }
 0x118   : > { %v3977_v52 = vadd.f32 %v3177_v44, %v1487_v48  ;;  %v1490_v53 = vadd.f32 %v3074_v49, %v3974_v36  ;;  %2040 = vmatmul.mubr.bf16.gmra.mrb[108].mxu1 %v2819_v42  ;;  %1894 = vmatprep.mubr.bf16.mxu0 %v2826_v43 }
 0x119   : > { %2047 = vmatprep.mubr.bf16.mxu1 %v2828_v47 }
 0x11a   : > { %v3982_v56 = vadd.f32 %v3180_v51, %v1490_v53  ;;  %v3075_v57 = vpop.f32.mrb[4].mxu0 }
 0x11b   : > { %v3181_v60 = vpop.f32.mrb[4].mxu1  ;;  %v3076_v61 = vpop.f32.mrb[5].mxu0 }
 0x11c   : > { %v3077_v63 = vadd.f32 %v3076_v61, %v3075_v57  ;;  %v3182_v0 = vpop.f32.mrb[5].mxu1  ;;  %v3078_v1 = vpop.f32.mrb[6].mxu0 }
 0x11d   : > { %v3183_v4 = vadd.f32 %v3182_v0, %v3181_v60  ;;  %v3184_v5 = vpop.f32.mrb[6].mxu1  ;;  %v3079_v6 = vpop.f32.mrb[7].mxu0 }
 0x11e   : > { %v1495_v8 = vadd.f32 %v3077_v63, %v3974_v36  ;;  %v3080_v9 = vadd.f32 %v3079_v6, %v3078_v1  ;;  %v3185_v10 = vpop.f32.mrb[7].mxu1 }
 0x11f   : > { %v3186_v11 = vadd.f32 %v3185_v10, %v3184_v5  ;;  %1895 = vmatmul.mubr.bf16.gmra.mrb[112].mxu0 %v2825_v62 }
 0x120   : > { %v3987_v12 = vadd.f32 %v3183_v4, %v1495_v8  ;;  %v1498_v13 = vadd.f32 %v3080_v9, %v3974_v36  ;;  %2048 = vmatmul.mubr.bf16.gmra.mrb[112].mxu1 %v2827_v2  ;;  %1902 = vmatprep.mubr.bf16.mxu0 %v2834_v3 }
 0x121   : > { %2055 = vmatprep.mubr.bf16.mxu1 %v2836_v7 }
 0x122   : > { %v3990_v14 = vadd.f32 %v3186_v11, %v1498_v13  ;;  %v3081_v15 = vpop.f32.mrb[8].mxu0 }
 0x123   : > { %v3187_v16 = vpop.f32.mrb[8].mxu1  ;;  %v3082_v17 = vpop.f32.mrb[9].mxu0 }
 0x124   : > { %v3083_v19 = vadd.f32 %v3082_v17, %v3081_v15  ;;  %v3188_v20 = vpop.f32.mrb[9].mxu1  ;;  %v3084_v21 = vpop.f32.mrb[10].mxu0 }
 0x125   : > { %v3189_v23 = vadd.f32 %v3188_v20, %v3187_v16  ;;  %v3190_v24 = vpop.f32.mrb[10].mxu1  ;;  %v3085_v25 = vpop.f32.mrb[11].mxu0 }
 0x126   : > { %v1503_v26 = vadd.f32 %v3083_v19, %v3974_v36  ;;  %v3086_v27 = vadd.f32 %v3085_v25, %v3084_v21  ;;  %v3191_v28 = vpop.f32.mrb[11].mxu1 }
 0x127   : > { %v3192_v29 = vadd.f32 %v3191_v28, %v3190_v24  ;;  %1903 = vmatmul.mubr.bf16.gmra.mrb[116].mxu0 %v2833_v18 }
 0x128   : > { %v3993_v30 = vadd.f32 %v3189_v23, %v1503_v26  ;;  %v1506_v31 = vadd.f32 %v3086_v27, %v3974_v36  ;;  %2056 = vmatmul.mubr.bf16.gmra.mrb[116].mxu1 %v2835_v22 }
 0x12a   : > { %v3996_v32 = vadd.f32 %v3192_v29, %v1506_v31  ;;  %v3087_v33 = vpop.f32.mrb[12].mxu0 }
 0x12b   : > { %v3193_v34 = vpop.f32.mrb[12].mxu1  ;;  %v3088_v35 = vpop.f32.mrb[13].mxu0 }
 0x12c   : > { %v3089_v37 = vadd.f32 %v3088_v35, %v3087_v33  ;;  %v3194_v38 = vpop.f32.mrb[13].mxu1  ;;  %v3090_v39 = vpop.f32.mrb[14].mxu0 }
 0x12d   : > { %v3195_v40 = vadd.f32 %v3194_v38, %v3193_v34  ;;  %v3196_v41 = vpop.f32.mrb[14].mxu1  ;;  %v3091_v42 = vpop.f32.mrb[15].mxu0 }
 0x12e   : > { %v1511_v43 = vadd.f32 %v3089_v37, %v3974_v36  ;;  %v3092_v44 = vadd.f32 %v3091_v42, %v3090_v39  ;;  %v3197_v45 = vpop.f32.mrb[15].mxu1 }
 0x12f   : > { %v3198_v46 = vadd.f32 %v3197_v45, %v3196_v41 }
 0x130   : > { %v3999_v47 = vadd.f32 %v3195_v40, %v1511_v43  ;;  %v1514_v48 = vadd.f32 %v3092_v44, %v3974_v36 }
 0x132   : > { %v4002_v49 = vadd.f32 %v3198_v46, %v1514_v48  ;;  %v3093_v50 = vpop.f32.mrb[16].mxu0 }
 0x133   : > { %v3199_v51 = vpop.f32.mrb[16].mxu1  ;;  %v3094_v53 = vpop.f32.mrb[17].mxu0 }
 0x134   : > { %v3095_v54 = vadd.f32 %v3094_v53, %v3093_v50  ;;  %v3200_v55 = vpop.f32.mrb[17].mxu1  ;;  %v3096_v57 = vpop.f32.mrb[18].mxu0 }
 0x135   : > { %v3201_v58 = vadd.f32 %v3200_v55, %v3199_v51  ;;  %v3202_v59 = vpop.f32.mrb[18].mxu1  ;;  %v3097_v60 = vpop.f32.mrb[19].mxu0 }
 0x136   : > { %v1519_v61 = vadd.f32 %v3095_v54, %v3974_v36  ;;  %v3098_v62 = vadd.f32 %v3097_v60, %v3096_v57  ;;  %v3203_v63 = vpop.f32.mrb[19].mxu1 }
 0x137   : > { %v3204_v0 = vadd.f32 %v3203_v63, %v3202_v59 }
 0x138   : > { %v4005_v1 = vadd.f32 %v3201_v58, %v1519_v61  ;;  %v1522_v2 = vadd.f32 %v3098_v62, %v3974_v36 }
 0x13a   : > { %v4008_v3 = vadd.f32 %v3204_v0, %v1522_v2  ;;  %v3099_v4 = vpop.f32.mrb[20].mxu0 }
 0x13b   : > { %v3205_v5 = vpop.f32.mrb[20].mxu1  ;;  %v3100_v6 = vpop.f32.mrb[21].mxu0 }
 0x13c   : > { %v3101_v7 = vadd.f32 %v3100_v6, %v3099_v4  ;;  %v3206_v8 = vpop.f32.mrb[21].mxu1  ;;  %v3102_v9 = vpop.f32.mrb[22].mxu0 }
 0x13d   : > { %v3207_v10 = vadd.f32 %v3206_v8, %v3205_v5  ;;  %v3208_v11 = vpop.f32.mrb[22].mxu1  ;;  %v3103_v13 = vpop.f32.mrb[23].mxu0 }
 0x13e   : > { %v1527_v15 = vadd.f32 %v3101_v7, %v3974_v36  ;;  %v3104_v16 = vadd.f32 %v3103_v13, %v3102_v9  ;;  %v3209_v17 = vpop.f32.mrb[23].mxu1 }
 0x13f   : > { %v3210_v18 = vadd.f32 %v3209_v17, %v3208_v11 }
 0x140   : > { %v4011_v19 = vadd.f32 %v3207_v10, %v1527_v15  ;;  %v1530_v20 = vadd.f32 %v3104_v16, %v3974_v36 }
 0x142   : > { %v4014_v21 = vadd.f32 %v3210_v18, %v1530_v20  ;;  %v3105_v22 = vpop.f32.mrb[24].mxu0 }
 0x143   : > { %v3211_v23 = vpop.f32.mrb[24].mxu1  ;;  %v3106_v24 = vpop.f32.mrb[25].mxu0 }
 0x144   : > { %v3107_v25 = vadd.f32 %v3106_v24, %v3105_v22  ;;  %v3212_v26 = vpop.f32.mrb[25].mxu1  ;;  %v3108_v27 = vpop.f32.mrb[26].mxu0 }
 0x145   : > { %v3213_v28 = vadd.f32 %v3212_v26, %v3211_v23  ;;  %v3214_v29 = vpop.f32.mrb[26].mxu1  ;;  %v3109_v31 = vpop.f32.mrb[27].mxu0 }
 0x146   : > { %v1535_v33 = vadd.f32 %v3107_v25, %v3974_v36  ;;  %v3110_v34 = vadd.f32 %v3109_v31, %v3108_v27  ;;  %v3215_v35 = vpop.f32.mrb[27].mxu1 }
 0x147   : > { %v3216_v37 = vadd.f32 %v3215_v35, %v3214_v29 }
 0x148   : > { %v4017_v38 = vadd.f32 %v3213_v28, %v1535_v33  ;;  %v1538_v39 = vadd.f32 %v3110_v34, %v3974_v36 }
 0x14a   : > { %v4020_v40 = vadd.f32 %v3216_v37, %v1538_v39  ;;  %v3111_v41 = vpop.f32.mrb[28].mxu0 }
 0x14b   : > { %v3217_v42 = vpop.f32.mrb[28].mxu1  ;;  %v3112_v43 = vpop.f32.mrb[29].mxu0 }
 0x14c   : > { %v3113_v44 = vadd.f32 %v3112_v43, %v3111_v41  ;;  %v3218_v45 = vpop.f32.mrb[29].mxu1  ;;  %v3114_v46 = vpop.f32.mrb[30].mxu0 }
 0x14d   : > { %v3219_v48 = vadd.f32 %v3218_v45, %v3217_v42  ;;  %v3220_v50 = vpop.f32.mrb[30].mxu1  ;;  %v3115_v51 = vpop.f32.mrb[31].mxu0 }
 0x14e   : > { %v1543_v53 = vadd.f32 %v3113_v44, %v3974_v36  ;;  %v3116_v54 = vadd.f32 %v3115_v51, %v3114_v46  ;;  %v3221_v55 = vpop.f32.mrb[31].mxu1 }
 0x14f   : > { %v3222_v57 = vadd.f32 %v3221_v55, %v3220_v50 }
 0x150   : > { %v4023_v58 = vadd.f32 %v3219_v48, %v1543_v53  ;;  %v1546_v59 = vadd.f32 %v3116_v54, %v3974_v36 }
 0x152   : > { %v4026_v60 = vadd.f32 %v3222_v57, %v1546_v59  ;;  %v3117_v61 = vpop.f32.mrb[32].mxu0 }
 0x153   : > { %v3223_v62 = vpop.f32.mrb[32].mxu1  ;;  %v3118_v63 = vpop.f32.mrb[33].mxu0 }
 0x154   : > { %v3119_v0 = vadd.f32 %v3118_v63, %v3117_v61  ;;  %v3224_v2 = vpop.f32.mrb[33].mxu1  ;;  %v3120_v4 = vpop.f32.mrb[34].mxu0 }
 0x155   : > { %v3225_v5 = vadd.f32 %v3224_v2, %v3223_v62  ;;  %v3226_v6 = vpop.f32.mrb[34].mxu1  ;;  %v3121_v7 = vpop.f32.mrb[35].mxu0 }
 0x156   : > { %v1551_v8 = vadd.f32 %v3119_v0, %v3974_v36  ;;  %v3122_v9 = vadd.f32 %v3121_v7, %v3120_v4  ;;  %v3227_v10 = vpop.f32.mrb[35].mxu1 }
 0x157   : > { %v3228_v11 = vadd.f32 %v3227_v10, %v3226_v6 }
 0x158   : > { %v4029_v13 = vadd.f32 %v3225_v5, %v1551_v8  ;;  %v1554_v15 = vadd.f32 %v3122_v9, %v3974_v36 }
 0x15a   : > { %v4032_v16 = vadd.f32 %v3228_v11, %v1554_v15  ;;  %v3123_v17 = vpop.f32.mrb[36].mxu0 }
 0x15b   : > { %v3229_v18 = vpop.f32.mrb[36].mxu1  ;;  %v3124_v20 = vpop.f32.mrb[37].mxu0 }
 0x15c   : > { %v3125_v22 = vadd.f32 %v3124_v20, %v3123_v17  ;;  %v3230_v23 = vpop.f32.mrb[37].mxu1  ;;  %v3126_v24 = vpop.f32.mrb[38].mxu0 }
 0x15d   : > { %v3231_v25 = vadd.f32 %v3230_v23, %v3229_v18  ;;  %v3232_v26 = vpop.f32.mrb[38].mxu1  ;;  %v3127_v27 = vpop.f32.mrb[39].mxu0 }
 0x15e   : > { %v1559_v28 = vadd.f32 %v3125_v22, %v3974_v36  ;;  %v3128_v29 = vadd.f32 %v3127_v27, %v3126_v24  ;;  %v3233_v31 = vpop.f32.mrb[39].mxu1 }
 0x15f   : > { %v3234_v33 = vadd.f32 %v3233_v31, %v3232_v26 }
 0x160   : > { %v4035_v34 = vadd.f32 %v3231_v25, %v1559_v28  ;;  %v1562_v35 = vadd.f32 %v3128_v29, %v3974_v36 }
 0x162   : > { %v4038_v37 = vadd.f32 %v3234_v33, %v1562_v35  ;;  %v3129_v39 = vpop.f32.mrb[40].mxu0 }
 0x163   : > { %v3235_v41 = vpop.f32.mrb[40].mxu1  ;;  %v3130_v42 = vpop.f32.mrb[41].mxu0 }
 0x164   : > { %v3131_v43 = vadd.f32 %v3130_v42, %v3129_v39  ;;  %v3236_v44 = vpop.f32.mrb[41].mxu1  ;;  %v3132_v45 = vpop.f32.mrb[42].mxu0 }
 0x165   : > { %v3237_v46 = vadd.f32 %v3236_v44, %v3235_v41  ;;  %v3238_v48 = vpop.f32.mrb[42].mxu1  ;;  %v3133_v50 = vpop.f32.mrb[43].mxu0 }
 0x166   : > { %v1567_v51 = vadd.f32 %v3131_v43, %v3974_v36  ;;  %v3134_v53 = vadd.f32 %v3133_v50, %v3132_v45  ;;  %v3239_v54 = vpop.f32.mrb[43].mxu1 }
 0x167   : > { %v3240_v55 = vadd.f32 %v3239_v54, %v3238_v48 }
 0x168   : > { %v4041_v57 = vadd.f32 %v3237_v46, %v1567_v51  ;;  %v1570_v59 = vadd.f32 %v3134_v53, %v3974_v36 }
 0x16a   : > { %v4044_v61 = vadd.f32 %v3240_v55, %v1570_v59  ;;  %v3135_v62 = vpop.f32.mrb[44].mxu0 }
 0x16b   : > { %v3241_v63 = vpop.f32.mrb[44].mxu1  ;;  %v3136_v0 = vpop.f32.mrb[45].mxu0 }
 0x16c   : > { %v3137_v2 = vadd.f32 %v3136_v0, %v3135_v62  ;;  %v3242_v4 = vpop.f32.mrb[45].mxu1  ;;  %v3138_v5 = vpop.f32.mrb[46].mxu0 }
 0x16d   : > { %v3243_v6 = vadd.f32 %v3242_v4, %v3241_v63  ;;  %v3244_v7 = vpop.f32.mrb[46].mxu1  ;;  %v3139_v8 = vpop.f32.mrb[47].mxu0 }
 0x16e   : > { %v1575_v9 = vadd.f32 %v3137_v2, %v3974_v36  ;;  %v3140_v10 = vadd.f32 %v3139_v8, %v3138_v5  ;;  %v3245_v11 = vpop.f32.mrb[47].mxu1 }
 0x16f   : > { %v3246_v15 = vadd.f32 %v3245_v11, %v3244_v7 }
 0x170   : > { %v4047_v17 = vadd.f32 %v3243_v6, %v1575_v9  ;;  %v1578_v18 = vadd.f32 %v3140_v10, %v3974_v36 }
 0x172   : > { %v4050_v20 = vadd.f32 %v3246_v15, %v1578_v18  ;;  %v3141_v22 = vpop.f32.mrb[48].mxu0 }
 0x173   : > { %v3247_v23 = vpop.f32.mrb[48].mxu1  ;;  %v3142_v24 = vpop.f32.mrb[49].mxu0 }
 0x174   : > { %v3143_v25 = vadd.f32 %v3142_v24, %v3141_v22  ;;  %v3248_v26 = vpop.f32.mrb[49].mxu1  ;;  %v3144_v27 = vpop.f32.mrb[50].mxu0 }
 0x175   : > { %v3249_v28 = vadd.f32 %v3248_v26, %v3247_v23  ;;  %v3250_v29 = vpop.f32.mrb[50].mxu1  ;;  %v3145_v31 = vpop.f32.mrb[51].mxu0 }
 0x176   : > { %v1583_v33 = vadd.f32 %v3143_v25, %v3974_v36  ;;  %v3146_v35 = vadd.f32 %v3145_v31, %v3144_v27  ;;  %v3251_v39 = vpop.f32.mrb[51].mxu1 }
 0x177   : > { %v3252_v41 = vadd.f32 %v3251_v39, %v3250_v29 }
 0x178   : > { %v4053_v42 = vadd.f32 %v3249_v28, %v1583_v33  ;;  %v1586_v43 = vadd.f32 %v3146_v35, %v3974_v36 }
 0x17a   : > { %v4056_v44 = vadd.f32 %v3252_v41, %v1586_v43  ;;  %v3147_v45 = vpop.f32.mrb[52].mxu0 }
 0x17b   : > { %v3253_v46 = vpop.f32.mrb[52].mxu1  ;;  %v3148_v48 = vpop.f32.mrb[53].mxu0 }
 0x17c   : > { %v3149_v50 = vadd.f32 %v3148_v48, %v3147_v45  ;;  %v3254_v51 = vpop.f32.mrb[53].mxu1  ;;  %v3150_v53 = vpop.f32.mrb[54].mxu0 }
 0x17d   : > { %v3255_v54 = vadd.f32 %v3254_v51, %v3253_v46  ;;  %v3256_v55 = vpop.f32.mrb[54].mxu1  ;;  %v3151_v59 = vpop.f32.mrb[55].mxu0 }
 0x17e   : > { %v1591_v62 = vadd.f32 %v3149_v50, %v3974_v36  ;;  %v3152_v63 = vadd.f32 %v3151_v59, %v3150_v53  ;;  %v3257_v0 = vpop.f32.mrb[55].mxu1 }
 0x17f   : > { %v3258_v2 = vadd.f32 %v3257_v0, %v3256_v55 }
 0x180   : > { %v4059_v4 = vadd.f32 %v3255_v54, %v1591_v62  ;;  %v1594_v5 = vadd.f32 %v3152_v63, %v3974_v36 }
 0x182   : > { %v4062_v6 = vadd.f32 %v3258_v2, %v1594_v5  ;;  %v3153_v7 = vpop.f32.mrb[56].mxu0 }
 0x183   : > { %v3259_v8 = vpop.f32.mrb[56].mxu1  ;;  %v3154_v9 = vpop.f32.mrb[57].mxu0 }
 0x184   : > { %v3155_v10 = vadd.f32 %v3154_v9, %v3153_v7  ;;  %v3260_v11 = vpop.f32.mrb[57].mxu1  ;;  %v3156_v15 = vpop.f32.mrb[58].mxu0 }
 0x185   : > { %v3261_v18 = vadd.f32 %v3260_v11, %v3259_v8  ;;  %v3262_v22 = vpop.f32.mrb[58].mxu1  ;;  %v3157_v23 = vpop.f32.mrb[59].mxu0 }
 0x186   : > { %v1599_v24 = vadd.f32 %v3155_v10, %v3974_v36  ;;  %v3158_v25 = vadd.f32 %v3157_v23, %v3156_v15  ;;  %v3263_v26 = vpop.f32.mrb[59].mxu1 }
 0x187   : > { %v3264_v27 = vadd.f32 %v3263_v26, %v3262_v22 }
 0x188   : > { %v4065_v28 = vadd.f32 %v3261_v18, %v1599_v24  ;;  %v1602_v29 = vadd.f32 %v3158_v25, %v3974_v36 }
 0x18a   : > { %v4068_v31 = vadd.f32 %v3264_v27, %v1602_v29  ;;  %v3281_v33 = vpop.f32.mrb[60].mxu0 }
 0x18b   : > { %v3387_v35 = vpop.f32.mrb[60].mxu1  ;;  %v3282_v39 = vpop.f32.mrb[61].mxu0 }
 0x18c   : > { %v3283_v41 = vadd.f32 %v3282_v39, %v3281_v33  ;;  %v3388_v43 = vpop.f32.mrb[61].mxu1  ;;  %v3284_v45 = vpop.f32.mrb[62].mxu0 }
 0x18d   : > { %v3389_v46 = vadd.f32 %v3388_v43, %v3387_v35  ;;  %v3390_v48 = vpop.f32.mrb[62].mxu1  ;;  %v3285_v50 = vpop.f32.mrb[63].mxu0 }
 0x18e   : > { %v1793_v51 = vadd.f32 %v3283_v41, %v3977_v52  ;;  %v3286_v53 = vadd.f32 %v3285_v50, %v3284_v45  ;;  %v3391_v54 = vpop.f32.mrb[63].mxu1 }
 0x18f   : > { %v3392_v55 = vadd.f32 %v3391_v54, %v3390_v48 }
 0x190   : > { %v4071_v59 = vadd.f32 %v3389_v46, %v1793_v51  ;;  %v1796_v36 = vadd.f32 %v3286_v53, %v3982_v56 }
 0x192   : > { %v4074_v62 = vadd.f32 %v3392_v55, %v1796_v36  ;;  %v3287_v63 = vpop.f32.mrb[64].mxu0 }
 0x193   : > { %v3393_v0 = vpop.f32.mrb[64].mxu1  ;;  %v3288_v2 = vpop.f32.mrb[65].mxu0 }
 0x194   : > { %v3289_v5 = vadd.f32 %v3288_v2, %v3287_v63  ;;  %v3394_v7 = vpop.f32.mrb[65].mxu1  ;;  %v3290_v8 = vpop.f32.mrb[66].mxu0 }
 0x195   : > { %v3395_v9 = vadd.f32 %v3394_v7, %v3393_v0  ;;  %v3396_v10 = vpop.f32.mrb[66].mxu1  ;;  %v3291_v11 = vpop.f32.mrb[67].mxu0 }
 0x196   : > { %v1801_v52 = vadd.f32 %v3289_v5, %v3987_v12  ;;  %v3292_v15 = vadd.f32 %v3291_v11, %v3290_v8  ;;  %v3397_v18 = vpop.f32.mrb[67].mxu1 }
 0x197   : > { %v3398_v22 = vadd.f32 %v3397_v18, %v3396_v10 }
 0x198   : > { %v4077_v23 = vadd.f32 %v3395_v9, %v1801_v52  ;;  %v1804_v56 = vadd.f32 %v3292_v15, %v3990_v14 }
 0x19a   : > { %v4080_v24 = vadd.f32 %v3398_v22, %v1804_v56  ;;  %v3293_v25 = vpop.f32.mrb[68].mxu0 }
 0x19b   : > { %v3399_v26 = vpop.f32.mrb[68].mxu1  ;;  %v3294_v27 = vpop.f32.mrb[69].mxu0 }
 0x19c   : > { %v3295_v29 = vadd.f32 %v3294_v27, %v3293_v25  ;;  %v3400_v33 = vpop.f32.mrb[69].mxu1  ;;  %v3296_v35 = vpop.f32.mrb[70].mxu0 }
 0x19d   : > { %v3401_v39 = vadd.f32 %v3400_v33, %v3399_v26  ;;  %v3402_v41 = vpop.f32.mrb[70].mxu1  ;;  %v3297_v43 = vpop.f32.mrb[71].mxu0 }
 0x19e   : > { %v1809_v12 = vadd.f32 %v3295_v29, %v3993_v30  ;;  %v3298_v45 = vadd.f32 %v3297_v43, %v3296_v35  ;;  %v3403_v46 = vpop.f32.mrb[71].mxu1 }
 0x19f   : > { %v3404_v48 = vadd.f32 %v3403_v46, %v3402_v41  ;;  %v2155_v46 = vadd.f32 %v4074_v62, %v4071_v59 }
 0x1a0   : > { %v4083_v50 = vadd.f32 %v3401_v39, %v1809_v12  ;;  %v1812_v14 = vadd.f32 %v3298_v45, %v3996_v32 }
 0x1a2   : > { %v4086_v51 = vadd.f32 %v3404_v48, %v1812_v14  ;;  %v3299_v53 = vpop.f32.mrb[72].mxu0  ;;  %v2197_v48 = vmul.f32 %v4074_v62, %v4074_v62 }
 0x1a3   : > { %v3405_v54 = vpop.f32.mrb[72].mxu1  ;;  %v3300_v55 = vpop.f32.mrb[73].mxu0 }
 0x1a4   : > { %v3301_v36 = vadd.f32 %v3300_v55, %v3299_v53  ;;  %v3406_v63 = vpop.f32.mrb[73].mxu1  ;;  %v3302_v0 = vpop.f32.mrb[74].mxu0 }
 0x1a5   : > { %v3407_v2 = vadd.f32 %v3406_v63, %v3405_v54  ;;  %v3408_v5 = vpop.f32.mrb[74].mxu1  ;;  %v3303_v7 = vpop.f32.mrb[75].mxu0  ;;  %v2156_v63 = vadd.f32 %v2155_v46, %v4077_v23 }
 0x1a6   : > { %v1817_v30 = vadd.f32 %v3301_v36, %v3999_v47  ;;  %v3304_v8 = vadd.f32 %v3303_v7, %v3302_v0  ;;  %v3409_v9 = vpop.f32.mrb[75].mxu1  ;;  %v2196_v36 = vmul.f32 %v4071_v59, %v4071_v59 }
 0x1a7   : > { %v3410_v10 = vadd.f32 %v3409_v9, %v3408_v5 }
 0x1a8   : > { %v4089_v11 = vadd.f32 %v3407_v2, %v1817_v30  ;;  %v1820_v32 = vadd.f32 %v3304_v8, %v4002_v49  ;;  %v2226_v9 = vadd.f32 %v2197_v48, %v2196_v36 }
 0x1aa   : > { %v4092_v52 = vadd.f32 %v3410_v10, %v1820_v32  ;;  %v3305_v15 = vpop.f32.mrb[76].mxu0 }
 0x1ab   : > { %v3411_v18 = vpop.f32.mrb[76].mxu1  ;;  %v3306_v22 = vpop.f32.mrb[77].mxu0 }
 0x1ac   : > { %v3307_v56 = vadd.f32 %v3306_v22, %v3305_v15  ;;  %v3412_v25 = vpop.f32.mrb[77].mxu1  ;;  %v3308_v26 = vpop.f32.mrb[78].mxu0  ;;  %v2157_v22 = vadd.f32 %v2156_v63, %v4080_v24 }
 0x1ad   : > { %v3413_v27 = vadd.f32 %v3412_v25, %v3411_v18  ;;  %v3414_v29 = vpop.f32.mrb[78].mxu1  ;;  %v3309_v33 = vpop.f32.mrb[79].mxu0 }
 0x1ae   : > { %v1825_v47 = vadd.f32 %v3307_v56, %v4005_v1  ;;  %v3310_v35 = vadd.f32 %v3309_v33, %v3308_v26  ;;  %v3415_v39 = vpop.f32.mrb[79].mxu1  ;;  %v2199_v56 = vmul.f32 %v4080_v24, %v4080_v24 }
 0x1af   : > { %v3416_v41 = vadd.f32 %v3415_v39, %v3414_v29 }
 0x1b0   : > { %v4095_v43 = vadd.f32 %v3413_v27, %v1825_v47  ;;  %v1828_v49 = vadd.f32 %v3310_v35, %v4008_v3  ;;  %v2198_v3 = vmul.f32 %v4077_v23, %v4077_v23  ;;  %v2158_v27 = vadd.f32 %v2157_v22, %v4083_v50 }
 0x1b2   : > { %v4098_v12 = vadd.f32 %v3416_v41, %v1828_v49  ;;  %v3311_v45 = vpop.f32.mrb[80].mxu0  ;;  %v2227_v18 = vadd.f32 %v2226_v9, %v2198_v3 }
 0x1b3   : > { %v3417_v14 = vpop.f32.mrb[80].mxu1  ;;  %v3312_v53 = vpop.f32.mrb[81].mxu0 }
 0x1b4   : > { %v3313_v54 = vadd.f32 %v3312_v53, %v3311_v45  ;;  %v3418_v1 = vpop.f32.mrb[81].mxu1  ;;  %v3314_v55 = vpop.f32.mrb[82].mxu0 }
 0x1b5   : > { %v3419_v0 = vadd.f32 %v3418_v1, %v3417_v14  ;;  %v3420_v2 = vpop.f32.mrb[82].mxu1  ;;  %v3315_v5 = vpop.f32.mrb[83].mxu0  ;;  %v2201_v1 = vmul.f32 %v4086_v51, %v4086_v51 }
 0x1b6   : > { %v1833_v7 = vadd.f32 %v3313_v54, %v4011_v19  ;;  %v3316_v30 = vadd.f32 %v3315_v5, %v3314_v55  ;;  %v3421_v8 = vpop.f32.mrb[83].mxu1  ;;  %v2200_v19 = vmul.f32 %v4083_v50, %v4083_v50  ;;  %v2159_v54 = vadd.f32 %v2158_v27, %v4086_v51 }
 0x1b7   : > { %v3422_v10 = vadd.f32 %v3421_v8, %v3420_v2 }
 0x1b8   : > { %v4110_v32 = vadd.f32 %v3419_v0, %v1833_v7  ;;  %v1836_v15 = vadd.f32 %v3316_v30, %v4014_v21  ;;  %v2228_v21 = vadd.f32 %v2227_v18, %v2199_v56  ;;  %v2160_v3 = vadd.f32 %v2159_v54, %v4089_v11 }
 0x1b9   : > { %v2202_v0 = vmul.f32 %v4089_v11, %v4089_v11 }
 0x1ba   : > { %v4116_v25 = vadd.f32 %v3422_v10, %v1836_v15  ;;  %v3317_v26 = vpop.f32.mrb[84].mxu0  ;;  %v2229_v53 = vadd.f32 %v2228_v21, %v2200_v19  ;;  %v2161_v18 = vadd.f32 %v2160_v3, %v4092_v52 }
 0x1bb   : > { %v3423_v29 = vpop.f32.mrb[84].mxu1  ;;  %v3318_v33 = vpop.f32.mrb[85].mxu0 }
 0x1bc   : > { %v3319_v47 = vadd.f32 %v3318_v33, %v3317_v26  ;;  %v3424_v35 = vpop.f32.mrb[85].mxu1  ;;  %v3320_v39 = vpop.f32.mrb[86].mxu0  ;;  %v2230_v5 = vadd.f32 %v2229_v53, %v2201_v1  ;;  %v2162_v33 = vadd.f32 %v2161_v18, %v4095_v43 }
 0x1bd   : > { %v3425_v41 = vadd.f32 %v3424_v35, %v3423_v29  ;;  %v3426_v49 = vpop.f32.mrb[86].mxu1  ;;  %v3321_v45 = vpop.f32.mrb[87].mxu0 }
 0x1be   : > { %v1841_v46 = vadd.f32 %v3319_v47, %v4017_v38  ;;  %v3322_v48 = vadd.f32 %v3321_v45, %v3320_v39  ;;  %v3427_v14 = vpop.f32.mrb[87].mxu1  ;;  %v2231_v15 = vadd.f32 %v2230_v5, %v2202_v0  ;;  %v2204_v47 = vmul.f32 %v4095_v43, %v4095_v43 }
 0x1bf   : > { %v3428_v55 = vadd.f32 %v3427_v14, %v3426_v49 }
 0x1c0   : > { %v4125_v36 = vadd.f32 %v3425_v41, %v1841_v46  ;;  %v1844_v63 = vadd.f32 %v3322_v48, %v4020_v40  ;;  %v2203_v40 = vmul.f32 %v4092_v52, %v4092_v52  ;;  %v2163_v48 = vadd.f32 %v2162_v33, %v4098_v12 }
 0x1c2   : > { %v4131_v2 = vadd.f32 %v3428_v55, %v1844_v63  ;;  %v3323_v38 = vpop.f32.mrb[88].mxu0  ;;  %v2232_v41 = vadd.f32 %v2231_v15, %v2203_v40  ;;  %v2164_v63 = vadd.f32 %v2163_v48, %v4110_v32 }
 0x1c3   : > { %v3429_v7 = vpop.f32.mrb[88].mxu1  ;;  %v3324_v30 = vpop.f32.mrb[89].mxu0 }
 0x1c4   : > { %v3325_v8 = vadd.f32 %v3324_v30, %v3323_v38  ;;  %v3430_v9 = vpop.f32.mrb[89].mxu1  ;;  %v3326_v10 = vpop.f32.mrb[90].mxu0  ;;  %v2233_v46 = vadd.f32 %v2232_v41, %v2204_v47  ;;  %v2165_v40 = vadd.f32 %v2164_v63, %v4116_v25 }
 0x1c5   : > { %v3431_v22 = vadd.f32 %v3430_v9, %v3429_v7  ;;  %v3432_v56 = vpop.f32.mrb[90].mxu1  ;;  %v3327_v26 = vpop.f32.mrb[91].mxu0 }
 0x1c6   : > { %v1849_v27 = vadd.f32 %v3325_v8, %v4023_v58  ;;  %v3328_v19 = vadd.f32 %v3327_v26, %v3326_v10  ;;  %v3433_v29 = vpop.f32.mrb[91].mxu1  ;;  %v2205_v58 = vmul.f32 %v4098_v12, %v4098_v12 }
 0x1c7   : > { %v3434_v35 = vadd.f32 %v3433_v29, %v3432_v56 }
 0x1c8   : > { %v4140_v39 = vadd.f32 %v3431_v22, %v1849_v27  ;;  %v1852_v21 = vadd.f32 %v3328_v19, %v4026_v60  ;;  %v2206_v60 = vmul.f32 %v4110_v32, %v4110_v32  ;;  %v2234_v8 = vadd.f32 %v2233_v46, %v2205_v58 }
 0x1c9   : > { %v2207_v22 = vmul.f32 %v4116_v25, %v4116_v25  ;;  %v2166_v27 = vadd.f32 %v2165_v40, %v4125_v36 }
 0x1ca   : > { %v4143_v49 = vadd.f32 %v3434_v35, %v1852_v21  ;;  %v3329_v45 = vpop.f32.mrb[92].mxu0  ;;  %v2235_v18 = vadd.f32 %v2234_v8, %v2206_v60 }
 0x1cb   : > { %v3435_v14 = vpop.f32.mrb[92].mxu1  ;;  %v3330_v53 = vpop.f32.mrb[93].mxu0 }
 0x1cc   : > { %v3331_v54 = vadd.f32 %v3330_v53, %v3329_v45  ;;  %v3436_v1 = vpop.f32.mrb[93].mxu1  ;;  %v3332_v55 = vpop.f32.mrb[94].mxu0  ;;  %v2167_v53 = vadd.f32 %v2166_v27, %v4131_v2 }
 0x1cd   : > { %v3437_v3 = vadd.f32 %v3436_v1, %v3435_v14  ;;  %v3438_v0 = vpop.f32.mrb[94].mxu1  ;;  %v3333_v38 = vpop.f32.mrb[95].mxu0 }
 0x1ce   : > { %v1857_v5 = vadd.f32 %v3331_v54, %v4029_v13  ;;  %v3334_v7 = vadd.f32 %v3333_v38, %v3332_v55  ;;  %v3439_v30 = vpop.f32.mrb[95].mxu1  ;;  %v2208_v13 = vmul.f32 %v4125_v36, %v4125_v36  ;;  %v2209_v54 = vmul.f32 %v4131_v2, %v4131_v2 }
 0x1cf   : > { %v3440_v9 = vadd.f32 %v3439_v30, %v3438_v0  ;;  %v2168_v60 = vadd.f32 %v2167_v53, %v4140_v39 }
 0x1d0   : > { %v4152_v10 = vadd.f32 %v3437_v3, %v1857_v5  ;;  %v1860_v15 = vadd.f32 %v3334_v7, %v4032_v16  ;;  %v2236_v16 = vadd.f32 %v2235_v18, %v2207_v22  ;;  %v2210_v3 = vmul.f32 %v4140_v39, %v4140_v39 }
 0x1d1   : > { %v2169_v18 = vadd.f32 %v2168_v60, %v4143_v49 }
 0x1d2   : > { %v4158_v56 = vadd.f32 %v3440_v9, %v1860_v15  ;;  %v3335_v26 = vpop.f32.mrb[96].mxu0  ;;  %v2237_v14 = vadd.f32 %v2236_v16, %v2208_v13 }
 0x1d3   : > { %v3441_v19 = vpop.f32.mrb[96].mxu1  ;;  %v3336_v29 = vpop.f32.mrb[97].mxu0 }
 0x1d4   : > { %v3337_v33 = vadd.f32 %v3336_v29, %v3335_v26  ;;  %v3442_v47 = vpop.f32.mrb[97].mxu1  ;;  %v3338_v35 = vpop.f32.mrb[98].mxu0  ;;  %v2238_v38 = vadd.f32 %v2237_v14, %v2209_v54  ;;  %v2170_v29 = vadd.f32 %v2169_v18, %v4152_v10 }
 0x1d5   : > { %v3443_v21 = vadd.f32 %v3442_v47, %v3441_v19  ;;  %v3444_v41 = vpop.f32.mrb[98].mxu1  ;;  %v3339_v45 = vpop.f32.mrb[99].mxu0 }
 0x1d6   : > { %v1865_v46 = vadd.f32 %v3337_v33, %v4035_v34  ;;  %v3340_v48 = vadd.f32 %v3339_v45, %v3338_v35  ;;  %v3445_v58 = vpop.f32.mrb[99].mxu1  ;;  %v2239_v15 = vadd.f32 %v2238_v38, %v2210_v3  ;;  %v2212_v33 = vmul.f32 %v4152_v10, %v4152_v10 }
 0x1d7   : > { %v3446_v1 = vadd.f32 %v3445_v58, %v3444_v41 }
 0x1d8   : > { %v4167_v55 = vadd.f32 %v3443_v21, %v1865_v46  ;;  %v1868_v63 = vadd.f32 %v3340_v48, %v4038_v37  ;;  %v2211_v37 = vmul.f32 %v4143_v49, %v4143_v49  ;;  %v2171_v48 = vadd.f32 %v2170_v29, %v4158_v56 }
 0x1da   : > { %v4173_v0 = vadd.f32 %v3446_v1, %v1868_v63  ;;  %v3341_v34 = vpop.f32.mrb[100].mxu0  ;;  %v2240_v21 = vadd.f32 %v2239_v15, %v2211_v37  ;;  %v2172_v63 = vadd.f32 %v2171_v48, %v4167_v55 }
 0x1db   : > { %v3447_v5 = vpop.f32.mrb[100].mxu1  ;;  %v3342_v7 = vpop.f32.mrb[101].mxu0 }
 0x1dc   : > { %v3343_v30 = vadd.f32 %v3342_v7, %v3341_v34  ;;  %v3448_v8 = vpop.f32.mrb[101].mxu1  ;;  %v3344_v9 = vpop.f32.mrb[102].mxu0  ;;  %v2241_v46 = vadd.f32 %v2240_v21, %v2212_v33  ;;  %v2173_v37 = vadd.f32 %v2172_v63, %v4173_v0 }
 0x1dd   : > { %v3449_v40 = vadd.f32 %v3448_v8, %v3447_v5  ;;  %v3450_v22 = vpop.f32.mrb[102].mxu1  ;;  %v3345_v26 = vpop.f32.mrb[103].mxu0 }
 0x1de   : > { %v1873_v27 = vadd.f32 %v3343_v30, %v4041_v57  ;;  %v3346_v13 = vadd.f32 %v3345_v26, %v3344_v9  ;;  %v3451_v19 = vpop.f32.mrb[103].mxu1  ;;  %v2213_v57 = vmul.f32 %v4158_v56, %v4158_v56 }
 0x1df   : > { %v3452_v47 = vadd.f32 %v3451_v19, %v3450_v22 }
 0x1e0   : > { %v4182_v35 = vadd.f32 %v3449_v40, %v1873_v27  ;;  %v1876_v16 = vadd.f32 %v3346_v13, %v4044_v61  ;;  %v2214_v61 = vmul.f32 %v4167_v55, %v4167_v55  ;;  %v2242_v30 = vadd.f32 %v2241_v46, %v2213_v57 }
 0x1e1   : > { %v2215_v40 = vmul.f32 %v4173_v0, %v4173_v0 }
 0x1e2   : > { %v4185_v41 = vadd.f32 %v3452_v47, %v1876_v16  ;;  %v3347_v45 = vpop.f32.mrb[104].mxu0  ;;  %v2243_v18 = vadd.f32 %v2242_v30, %v2214_v61  ;;  %v2174_v27 = vadd.f32 %v2173_v37, %v4182_v35 }
 0x1e3   : > { %v3453_v58 = vpop.f32.mrb[104].mxu1  ;;  %v3348_v14 = vpop.f32.mrb[105].mxu0 }
 0x1e4   : > { %v3349_v53 = vadd.f32 %v3348_v14, %v3347_v45  ;;  %v3454_v54 = vpop.f32.mrb[105].mxu1  ;;  %v3350_v1 = vpop.f32.mrb[106].mxu0  ;;  %v2175_v14 = vadd.f32 %v2174_v27, %v4185_v41 }
 0x1e5   : > { %v3455_v60 = vadd.f32 %v3454_v54, %v3453_v58  ;;  %v3456_v3 = vpop.f32.mrb[106].mxu1  ;;  %v3351_v34 = vpop.f32.mrb[107].mxu0 }
 0x1e6   : > { %v1881_v38 = vadd.f32 %v3349_v53, %v4047_v17  ;;  %v3352_v5 = vadd.f32 %v3351_v34, %v3350_v1  ;;  %v3457_v7 = vpop.f32.mrb[107].mxu1  ;;  %v2216_v17 = vmul.f32 %v4182_v35, %v4182_v35  ;;  %v2217_v53 = vmul.f32 %v4185_v41, %v4185_v41 }
 0x1e7   : > { %v3458_v8 = vadd.f32 %v3457_v7, %v3456_v3  ;;  %v2064_v7 = vlaneseq }
 0x1e8   : > { %v4194_v9 = vadd.f32 %v3455_v60, %v1881_v38  ;;  %v1884_v15 = vadd.f32 %v3352_v5, %v4050_v20  ;;  %v2244_v20 = vadd.f32 %v2243_v18, %v2215_v40 }
 0x1ea   : > { %v4200_v22 = vadd.f32 %v3458_v8, %v1884_v15  ;;  %v3353_v26 = vpop.f32.mrb[108].mxu0  ;;  %v2245_v58 = vadd.f32 %v2244_v20, %v2216_v17  ;;  %v2176_v61 = vadd.f32 %v2175_v14, %v4194_v9  ;;  %v2218_v60 = vmul.f32 %v4194_v9, %v4194_v9 }
 0x1eb   : > { %v3459_v13 = vpop.f32.mrb[108].mxu1  ;;  %v3354_v19 = vpop.f32.mrb[109].mxu0  ;;  %v2065_v20 = vshrl.u32 %v2064_v7, 7 }
 0x1ec   : > { %v3355_v29 = vadd.f32 %v3354_v19, %v3353_v26  ;;  %v3460_v33 = vpop.f32.mrb[109].mxu1  ;;  %v3356_v47 = vpop.f32.mrb[110].mxu0  ;;  %v2246_v34 = vadd.f32 %v2245_v58, %v2217_v53  ;;  %v2177_v37 = vadd.f32 %v2176_v61, %v4200_v22 }
 0x1ed   : > { %v3461_v16 = vadd.f32 %v3460_v33, %v3459_v13  ;;  %v3462_v21 = vpop.f32.mrb[110].mxu1  ;;  %v3357_v45 = vpop.f32.mrb[111].mxu0  ;;  %v2093_v53 = vadd.s32 224, %v2065_v20 }
 0x1ee   : > { %v1889_v46 = vadd.f32 %v3355_v29, %v4053_v42  ;;  %v3358_v48 = vadd.f32 %v3357_v45, %v3356_v47  ;;  %v3463_v57 = vpop.f32.mrb[111].mxu1  ;;  %v2247_v18 = vadd.f32 %v2246_v34, %v2218_v60 }
 0x1ef   : > { %v3464_v54 = vadd.f32 %v3463_v57, %v3462_v21  ;;  %vm2123_vm0 = vcmp.lt.s32.totalorder %v2093_v53, 225 }
 0x1f0   : > { %v4209_v1 = vadd.f32 %v3461_v16, %v1889_v46  ;;  %v1892_v63 = vadd.f32 %v3358_v48, %v4056_v44  ;;  %v2219_v44 = vmul.f32 %v4200_v22, %v4200_v22 }
 0x1f2   : > { %v4215_v3 = vadd.f32 %v3464_v54, %v1892_v63  ;;  %v3359_v42 = vpop.f32.mrb[112].mxu0  ;;  %v2178_v29 = vadd.f32 %v2177_v37, %v4209_v1  ;;  %v2220_v33 = vmul.f32 %v4209_v1, %v4209_v1  ;;  %v2248_v45 = vadd.f32 %v2247_v18, %v2219_v44 }
 0x1f3   : > { %v3465_v38 = vpop.f32.mrb[112].mxu1  ;;  %v3360_v5 = vpop.f32.mrb[113].mxu0 }
 0x1f4   : > { %v3361_v30 = vadd.f32 %v3360_v5, %v3359_v42  ;;  %v3466_v8 = vpop.f32.mrb[113].mxu1  ;;  %v3362_v15 = vpop.f32.mrb[114].mxu0  ;;  %v2249_v57 = vadd.f32 %v2248_v45, %v2220_v33  ;;  %v2179_v54 = vadd.f32 %v2178_v29, %v4215_v3 }
 0x1f5   : > { %v3467_v40 = vadd.f32 %v3466_v8, %v3465_v38  ;;  %v3468_v26 = vpop.f32.mrb[114].mxu1  ;;  %v3363_v27 = vpop.f32.mrb[115].mxu0 }
 0x1f6   : > { %v1897_v17 = vadd.f32 %v3361_v30, %v4059_v4  ;;  %v3364_v13 = vadd.f32 %v3363_v27, %v3362_v15  ;;  %v3469_v19 = vpop.f32.mrb[115].mxu1  ;;  %v2221_v4 = vmul.f32 %v4215_v3, %v4215_v3 }
 0x1f7   : > { %v3470_v47 = vadd.f32 %v3469_v19, %v3468_v26 }
 0x1f8   : > { %v4224_v16 = vadd.f32 %v3467_v40, %v1897_v17  ;;  %v1900_v21 = vadd.f32 %v3364_v13, %v4062_v6  ;;  %v2250_v18 = vadd.f32 %v2249_v57, %v2221_v4 }
 0x1fa   : > { %v4227_v46 = vadd.f32 %v3470_v47, %v1900_v21  ;;  %v3365_v48 = vpop.f32.mrb[116].mxu0  ;;  %v2222_v42 = vmul.f32 %v4224_v16, %v4224_v16  ;;  %v2180_v5 = vadd.f32 %v2179_v54, %v4224_v16 }
 0x1fb   : > { %v3471_v58 = vpop.f32.mrb[116].mxu1  ;;  %v3366_v14 = vpop.f32.mrb[117].mxu0 }
 0x1fc   : > { %v3367_v63 = vadd.f32 %v3366_v14, %v3365_v48  ;;  %v3472_v61 = vpop.f32.mrb[117].mxu1  ;;  %v3368_v60 = vpop.f32.mrb[118].mxu0  ;;  %v2181_v40 = vadd.f32 %v2180_v5, %v4227_v46  ;;  %v2223_v26 = vmul.f32 %v4227_v46, %v4227_v46  ;;  %v2251_v27 = vadd.f32 %v2250_v18, %v2222_v42 }
 0x1fd   : > { %v3473_v6 = vadd.f32 %v3472_v61, %v3471_v58  ;;  %v3474_v34 = vpop.f32.mrb[118].mxu1  ;;  %v3369_v38 = vpop.f32.mrb[119].mxu0 }
 0x1fe   : > { %v1905_v7 = vadd.f32 %v3367_v63, %v4065_v28  ;;  %v3370_v30 = vadd.f32 %v3369_v38, %v3368_v60  ;;  %v3475_v8 = vpop.f32.mrb[119].mxu1  ;;  %v2252_v29 = vadd.f32 %v2251_v27, %v2223_v26  ;;  %v4249_v38 = vstv %s2336_s24 }
 0x1ff   : > { %v3476_v15 = vadd.f32 %v3475_v8, %v3474_v34  ;;  %v4257_v8 = vstv %s2901_s25 }
 0x200   : > { %v4236_v37 = vadd.f32 %v3473_v6, %v1905_v7  ;;  %v1908_v44 = vadd.f32 %v3370_v30, %v4068_v31 }
 0x202   : > { %v4242_v17 = vadd.f32 %v3476_v15, %v1908_v44  ;;  %v2153_v13 = vsel %vm2123_vm0, %v4236_v37, 0.0 }
 0x203   : > { %v2182_v28 = vadd.f32 %v2181_v40, %v2153_v13  ;;  %v2224_v19 = vmul.f32 %v2153_v13, %v2153_v13 }
 0x205   : > { %2184 = vadd.xlane.f32.xlu0 %v2182_v28  ;;  %v2253_v33 = vadd.f32 %v2252_v29, %v2224_v19 }
 0x209   : > { %2255 = vadd.xlane.f32.xlu0 %v2253_v33 }
 0x292   : > { %v2185_v47 = vpop.xlane.xlu0 %2184 }
 0x293   : > { %v2186_v20 = vrot.slane %v2185_v47, 4 }
 0x295   : > { %v2187_v21 = vadd.f32 %v2186_v20, %v2185_v47 }
 0x296   : > { %v2256_v31 = vpop.xlane.xlu0 %2255 }
 0x297   : > { %v2188_v45 = vrot.slane %v2187_v21, 2  ;;  %v2257_v48 = vrot.slane %v2256_v31, 4 }
 0x299   : > { %v2258_v57 = vadd.f32 %v2257_v48, %v2256_v31  ;;  %v2189_v4 = vadd.f32 %v2188_v45, %v2187_v21 }
 0x29b   : > { %v2259_v58 = vrot.slane %v2258_v57, 2  ;;  %v2190_v14 = vrot.slane %v2189_v4, 1 }
 0x29d   : > { %v2260_v53 = vadd.f32 %v2259_v58, %v2258_v57  ;;  %v2191_v54 = vadd.f32 %v2190_v14, %v2189_v4 }
 0x29f   : > { %3479 = vpush %v2191_v54  ;;  %v2261_v63 = vrot.slane %v2260_v53, 1 }
 0x2a1   : > { %v2262_v61 = vadd.f32 %v2261_v63, %v2260_v53 }
 0x2a3   : > { %3481 = vpush %v2262_v61 }
 0x2d0   : > { %s3480_s12 = spop %3479 }
 0x2d1   : > { %s2195_s14 = smul.f32 3.4722223e-05, %s3480_s12 }
 0x2d3   : > { %s2267_s17 = smul.f32 %s2195_s14, %s2195_s14  ;;  %v4245_v60 = vstv %s2195_s14 }
 0x2d4   : > { %s3482_s18 = spop %3481  ;;  %v2304_v42 = vsub.f32 %v4242_v17, %v4245_v60  ;;  %v2275_v5 = vsub.f32 %v4071_v59, %v4245_v60  ;;  %v2276_v7 = vsub.f32 %v4074_v62, %v4245_v60  ;;  %v2277_v30 = vsub.f32 %v4077_v23, %v4245_v60 }
 0x2d5   : > { %s2266_s19 = smul.f32 3.4722223e-05, %s3482_s18  ;;  %v2278_v15 = vsub.f32 %v4080_v24, %v4245_v60  ;;  %v2279_v18 = vsub.f32 %v4083_v50, %v4245_v60  ;;  %v2280_v44 = vsub.f32 %v4086_v51, %v4245_v60  ;;  %v2281_v59 = vsub.f32 %v4089_v11, %v4245_v60 }
 0x2d6   : > { %v2282_v62 = vsub.f32 %v4092_v52, %v4245_v60  ;;  %v2283_v23 = vsub.f32 %v4095_v43, %v4245_v60  ;;  %v2284_v40 = vsub.f32 %v4098_v12, %v4245_v60  ;;  %v2285_v24 = vsub.f32 %v4110_v32, %v4245_v60 }
 0x2d7   : > { %s2268_s20 = ssub.f32 %s2266_s19, %s2267_s17  ;;  %v2286_v50 = vsub.f32 %v4116_v25, %v4245_v60  ;;  %v2287_v51 = vsub.f32 %v4125_v36, %v4245_v60  ;;  %v2288_v11 = vsub.f32 %v4131_v2, %v4245_v60  ;;  %v2289_v52 = vsub.f32 %v4140_v39, %v4245_v60 }
 0x2d8   : > { %v2290_v43 = vsub.f32 %v4143_v49, %v4245_v60  ;;  %v2291_v12 = vsub.f32 %v4152_v10, %v4245_v60  ;;  %v2292_v32 = vsub.f32 %v4158_v56, %v4245_v60  ;;  %v2293_v25 = vsub.f32 %v4167_v55, %v4245_v60 }
 0x2d9   : > { %s2269_s22 = smax.f32 %s3599_s21, %s2268_s20  ;;  %v2294_v36 = vsub.f32 %v4173_v0, %v4245_v60  ;;  %v2295_v2 = vsub.f32 %v4182_v35, %v4245_v60  ;;  %v2296_v39 = vsub.f32 %v4185_v41, %v4245_v60  ;;  %v2297_v49 = vsub.f32 %v4194_v9, %v4245_v60 }
 0x2da   : > { %s2270_s23 = sadd.f32 0.001, %s2269_s22  ;;  %v2298_v10 = vsub.f32 %v4200_v22, %v4245_v60  ;;  %v2299_v56 = vsub.f32 %v4209_v1, %v4245_v60  ;;  %v2300_v55 = vsub.f32 %v4215_v3, %v4245_v60  ;;  %v2301_v0 = vsub.f32 %v4224_v16, %v4245_v60 }
 0x2db   : > { %v2302_v35 = vsub.f32 %v4227_v46, %v4245_v60  ;;  %v2303_v41 = vsub.f32 %v4236_v37, %v4245_v60 }
 0x2dc   : > { %v2271_v6 = vstv %s2270_s23 }
 0x2dd   : > { %3569 = vrsqrt.f32 %v2271_v6 }
 0x2e7   : > { %v3570_v34 = vpop.eup %3569 }
 0x2e8   : > { %3483 = vpush %v3570_v34 }
 0x319   : > { %s3484_s26 = spop %3483 }
 0x31a   : > { %v2305_v26 = vstv %s3484_s26 }
 0x31b   : > { %v2306_v27 = vmul.f32 %v2305_v26, %v2275_v5  ;;  %v2307_v9 = vmul.f32 %v2305_v26, %v2276_v7  ;;  %v2308_v13 = vmul.f32 %v2305_v26, %v2277_v30  ;;  %v2309_v28 = vmul.f32 %v2305_v26, %v2278_v15 }
 0x31c   : > { %v2310_v22 = vmul.f32 %v2305_v26, %v2279_v18  ;;  %v2311_v19 = vmul.f32 %v2305_v26, %v2280_v44  ;;  %v2312_v29 = vmul.f32 %v2305_v26, %v2281_v59  ;;  %v2313_v1 = vmul.f32 %v2305_v26, %v2282_v62 }
 0x31d   : > { %v2314_v33 = vmul.f32 %v2305_v26, %v2283_v23  ;;  %v2315_v47 = vmul.f32 %v2305_v26, %v2284_v40  ;;  %v2316_v3 = vmul.f32 %v2305_v26, %v2285_v24  ;;  %v2317_v20 = vmul.f32 %v2305_v26, %v2286_v50 }
 0x31e   : > { %v2318_v21 = vmul.f32 %v2305_v26, %v2287_v51  ;;  %v2319_v16 = vmul.f32 %v2305_v26, %v2288_v11  ;;  %v2320_v31 = vmul.f32 %v2305_v26, %v2289_v52  ;;  %v2321_v45 = vmul.f32 %v2305_v26, %v2290_v43 }
 0x31f   : > { %v2322_v46 = vmul.f32 %v2305_v26, %v2291_v12  ;;  %v2323_v48 = vmul.f32 %v2305_v26, %v2292_v32  ;;  %v2324_v57 = vmul.f32 %v2305_v26, %v2293_v25  ;;  %v2325_v37 = vmul.f32 %v2305_v26, %v2294_v36 }
 0x320   : > { %v2326_v4 = vmul.f32 %v2305_v26, %v2295_v2  ;;  %v2327_v58 = vmul.f32 %v2305_v26, %v2296_v39  ;;  %v2328_v14 = vmul.f32 %v2305_v26, %v2297_v49  ;;  %v2329_v53 = vmul.f32 %v2305_v26, %v2298_v10 }
 0x321   : > { %v2330_v54 = vmul.f32 %v2305_v26, %v2299_v56  ;;  %v2331_v63 = vmul.f32 %v2305_v26, %v2300_v55  ;;  %v2332_v61 = vmul.f32 %v2305_v26, %v2301_v0  ;;  %v2333_v6 = vmul.f32 %v2305_v26, %v2302_v35 }
 0x322   : > { %v2334_v34 = vmul.f32 %v2305_v26, %v2303_v41  ;;  %v2335_v5 = vmul.f32 %v2305_v26, %v2304_v42  ;;  %v2338_v7 = vmul.f32 %v4249_v38, %v2306_v27  ;;  %v2339_v30 = vmul.f32 %v4249_v38, %v2307_v9 }
 0x323   : > { %v2340_v15 = vmul.f32 %v4249_v38, %v2308_v13  ;;  %v2341_v18 = vmul.f32 %v4249_v38, %v2309_v28  ;;  %v2342_v44 = vmul.f32 %v4249_v38, %v2310_v22  ;;  %v2343_v59 = vmul.f32 %v4249_v38, %v2311_v19 }
 0x324   : > { %v2344_v62 = vmul.f32 %v4249_v38, %v2312_v29  ;;  %v2345_v23 = vmul.f32 %v4249_v38, %v2313_v1  ;;  %v2346_v40 = vmul.f32 %v4249_v38, %v2314_v33  ;;  %v2347_v17 = vmul.f32 %v4249_v38, %v2315_v47 }
 0x325   : > { %v2348_v60 = vmul.f32 %v4249_v38, %v2316_v3  ;;  %v2349_v42 = vmul.f32 %v4249_v38, %v2317_v20  ;;  %v2350_v24 = vmul.f32 %v4249_v38, %v2318_v21  ;;  %v2351_v50 = vmul.f32 %v4249_v38, %v2319_v16 }
 0x326   : > { %v2352_v51 = vmul.f32 %v4249_v38, %v2320_v31  ;;  %v2353_v11 = vmul.f32 %v4249_v38, %v2321_v45  ;;  %v2354_v52 = vmul.f32 %v4249_v38, %v2322_v46  ;;  %v2355_v43 = vmul.f32 %v4249_v38, %v2323_v48 }
 0x327   : > { %v2356_v12 = vmul.f32 %v4249_v38, %v2324_v57  ;;  %v2357_v32 = vmul.f32 %v4249_v38, %v2325_v37  ;;  %v2358_v26 = vmul.f32 %v4249_v38, %v2326_v4  ;;  %v2359_v25 = vmul.f32 %v4249_v38, %v2327_v58 }
 0x328   : > { %v2360_v36 = vmul.f32 %v4249_v38, %v2328_v14  ;;  %v2361_v2 = vmul.f32 %v4249_v38, %v2329_v53  ;;  %v2362_v39 = vmul.f32 %v4249_v38, %v2330_v54  ;;  %v2363_v49 = vmul.f32 %v4249_v38, %v2331_v63 }
 0x329   : > { %v2364_v10 = vmul.f32 %v4249_v38, %v2332_v61  ;;  %v2365_v56 = vmul.f32 %v4249_v38, %v2333_v6  ;;  %v2366_v55 = vmul.f32 %v4249_v38, %v2334_v34  ;;  %v2367_v0 = vmul.f32 %v4249_v38, %v2335_v5 }
 0x32a   : > { %v4345_v35 = vadd.f32 %v4257_v8, %v2338_v7  ;;  %v4348_v41 = vadd.f32 %v4257_v8, %v2339_v30  ;;  %v4351_v27 = vadd.f32 %v4257_v8, %v2340_v15  ;;  %v4354_v9 = vadd.f32 %v4257_v8, %v2341_v18 }
 0x32b   : > { %v4357_v13 = vadd.f32 %v4257_v8, %v2342_v44  ;;  %v4360_v28 = vadd.f32 %v4257_v8, %v2343_v59  ;;  %v4363_v38 = vadd.f32 %v4257_v8, %v2344_v62  ;;  %v4366_v22 = vadd.f32 %v4257_v8, %v2345_v23 }
 0x32c   : > { %v4369_v19 = vadd.f32 %v4257_v8, %v2346_v40  ;;  %v4372_v29 = vadd.f32 %v4257_v8, %v2347_v17  ;;  %v4375_v1 = vadd.f32 %v4257_v8, %v2348_v60  ;;  %v4378_v33 = vadd.f32 %v4257_v8, %v2349_v42 }
 0x32d   : > { %v4381_v47 = vadd.f32 %v4257_v8, %v2350_v24  ;;  %v4384_v3 = vadd.f32 %v4257_v8, %v2351_v50  ;;  %v4387_v20 = vadd.f32 %v4257_v8, %v2352_v51  ;;  %v4390_v21 = vadd.f32 %v4257_v8, %v2353_v11 }
 0x32e   : > { %v4393_v16 = vadd.f32 %v4257_v8, %v2354_v52  ;;  %v4396_v31 = vadd.f32 %v4257_v8, %v2355_v43  ;;  %v4399_v45 = vadd.f32 %v4257_v8, %v2356_v12  ;;  %v4402_v46 = vadd.f32 %v4257_v8, %v2357_v32 }
 0x32f   : > { %v4405_v48 = vadd.f32 %v4257_v8, %v2358_v26  ;;  %v4408_v57 = vadd.f32 %v4257_v8, %v2359_v25  ;;  %v4411_v37 = vadd.f32 %v4257_v8, %v2360_v36  ;;  %v4414_v4 = vadd.f32 %v4257_v8, %v2361_v2 }
 0x330   : > { %v4417_v58 = vadd.f32 %v4257_v8, %v2362_v39  ;;  %v4420_v14 = vadd.f32 %v4257_v8, %v2363_v49  ;;  %v4423_v53 = vadd.f32 %v4257_v8, %v2364_v10  ;;  %v4426_v54 = vadd.f32 %v4257_v8, %v2365_v56 }
 0x331   : > { %v4429_v63 = vadd.f32 %v4257_v8, %v2366_v55  ;;  %vm2400_vm1 = vcmp.gt.f32.partialorder %v4345_v35, 0.0  ;;  %vm2401_vm2 = vcmp.gt.f32.partialorder %v4348_v41, 0.0  ;;  %vm2402_vm3 = vcmp.gt.f32.partialorder %v4351_v27, 0.0 }
 0x332   : > { %vm2403_vm4 = vcmp.gt.f32.partialorder %v4354_v9, 0.0  ;;  %vm2404_vm5 = vcmp.gt.f32.partialorder %v4357_v13, 0.0  ;;  %vm2405_vm6 = vcmp.gt.f32.partialorder %v4360_v28, 0.0  ;;  %vm2406_vm7 = vcmp.gt.f32.partialorder %v4363_v38, 0.0 }
 0x333   : > { %vm2407_vm8 = vcmp.gt.f32.partialorder %v4366_v22, 0.0  ;;  %vm2408_vm9 = vcmp.gt.f32.partialorder %v4369_v19, 0.0  ;;  %v4444_v61 = vadd.f32 %v4257_v8, %v2367_v0  ;;  %v2430_v6 = vmul.f32 0.2, %v4345_v35 }
 0x334   : > { %v2431_v34 = vmul.f32 0.2, %v4348_v41  ;;  %v2432_v5 = vmul.f32 0.2, %v4351_v27  ;;  %vm2417_vm12 = vcmp.gt.f32.partialorder %v4396_v31, 0.0  ;;  %vm2418_vm10 = vcmp.gt.f32.partialorder %v4399_v45, 0.0 }
 0x335   : > { %v2433_v8 = vmul.f32 0.2, %v4354_v9  ;;  %v2434_v7 = vmul.f32 0.2, %v4357_v13  ;;  %v2435_v30 = vmul.f32 0.2, %v4360_v28  ;;  %v4470_v59 = vsel %vm2400_vm1, %v4345_v35, %v2430_v6 }
 0x336   : > { %vm2423_vm11 = vcmp.gt.f32.partialorder %v4414_v4, 0.0  ;;  %v2436_v15 = vmul.f32 0.2, %v4363_v38  ;;  %v2437_v18 = vmul.f32 0.2, %v4366_v22  ;;  %vm2425_vm0 = vcmp.gt.f32.partialorder %v4420_v14, 0.0 }
 0x337   : > { %v2438_v44 = vmul.f32 0.2, %v4369_v19  ;;  %vm2426_vm15 = vcmp.gt.f32.partialorder %v4423_v53, 0.0  ;;  %vm2427_vm14 = vcmp.gt.f32.partialorder %v4426_v54, 0.0  ;;  %v2439_v62 = vmul.f32 0.2, %v4372_v29 }
 0x338   : > { %v2440_v23 = vmul.f32 0.2, %v4375_v1  ;;  %v2441_v40 = vmul.f32 0.2, %v4378_v33  ;;  %v2461_v17 = vsel %vm2401_vm2, %v4348_v41, %v2431_v34  ;;  %vm2428_vm1 = vcmp.gt.f32.partialorder %v4429_v63, 0.0 }
 0x339   : > { %vm2429_vm13 = vcmp.gt.f32.partialorder %v4444_v61, 0.0  ;;  %v2442_v60 = vmul.f32 0.2, %v4381_v47  ;;  %v2443_v42 = vmul.f32 0.2, %v4384_v3  ;;  %v2462_v50 = vsel %vm2402_vm3, %v4351_v27, %v2432_v5 }
 0x33a   : > { %v2444_v24 = vmul.f32 0.2, %v4387_v20  ;;  %v2445_v51 = vmul.f32 0.2, %v4390_v21  ;;  %v2446_v11 = vmul.f32 0.2, %v4393_v16  ;;  %v2463_v43 = vsel %vm2403_vm4, %v4354_v9, %v2433_v8 }
 0x33b   : > { %v2447_v52 = vmul.f32 0.2, %v4396_v31  ;;  %v2448_v12 = vmul.f32 0.2, %v4399_v45  ;;  %v2449_v32 = vmul.f32 0.2, %v4402_v46  ;;  %v2464_v25 = vsel %vm2404_vm5, %v4357_v13, %v2434_v7 }
 0x33c   : > { %v2450_v26 = vmul.f32 0.2, %v4405_v48  ;;  %v2451_v36 = vmul.f32 0.2, %v4408_v57  ;;  %v2452_v2 = vmul.f32 0.2, %v4411_v37  ;;  %v2465_v49 = vsel %vm2405_vm6, %v4360_v28, %v2435_v30 }
 0x33d   : > { %v2453_v39 = vmul.f32 0.2, %v4414_v4  ;;  %v2454_v10 = vmul.f32 0.2, %v4417_v58  ;;  %v2455_v56 = vmul.f32 0.2, %v4420_v14  ;;  %v2466_v0 = vsel %vm2406_vm7, %v4363_v38, %v2436_v15 }
 0x33e   : > { %v2456_v55 = vmul.f32 0.2, %v4423_v53  ;;  %v2457_v35 = vmul.f32 0.2, %v4426_v54  ;;  %v2458_v41 = vmul.f32 0.2, %v4429_v63  ;;  %v2467_v9 = vsel %vm2407_vm8, %v4366_v22, %v2437_v18 }
 0x33f   : > { %v2459_v27 = vmul.f32 0.2, %v4444_v61  ;;  %v2468_v13 = vsel %vm2408_vm9, %v4369_v19, %v2438_v44  ;;  %vm4617_vm2 = vcmp.gt.f32.partialorder %v4372_v29, 0.0  ;;  %vm4618_vm3 = vcmp.gt.f32.partialorder %v4375_v1, 0.0 }
 0x340   : > { %v2469_v28 = vsel %vm4617_vm2, %v4372_v29, %v2439_v62  ;;  %v2470_v38 = vsel %vm4618_vm3, %v4375_v1, %v2440_v23  ;;  %vm4619_vm4 = vcmp.gt.f32.partialorder %v4378_v33, 0.0  ;;  %vm4620_vm5 = vcmp.gt.f32.partialorder %v4381_v47, 0.0 }
 0x341   : > { %v2471_v6 = vsel %vm4619_vm4, %v4378_v33, %v2441_v40  ;;  %v2472_v22 = vsel %vm4620_vm5, %v4381_v47, %v2442_v60  ;;  %vm4621_vm6 = vcmp.gt.f32.partialorder %v4384_v3, 0.0  ;;  %vm4622_vm7 = vcmp.gt.f32.partialorder %v4387_v20, 0.0 }
 0x342   : > { %v2473_v19 = vsel %vm4621_vm6, %v4384_v3, %v2443_v42  ;;  %v2474_v29 = vsel %vm4622_vm7, %v4387_v20, %v2444_v24  ;;  %vm4623_vm8 = vcmp.gt.f32.partialorder %v4390_v21, 0.0  ;;  %vm4624_vm9 = vcmp.gt.f32.partialorder %v4393_v16, 0.0 }
 0x343   : > { %v2475_v1 = vsel %vm4623_vm8, %v4390_v21, %v2445_v51  ;;  %v2476_v33 = vsel %vm4624_vm9, %v4393_v16, %v2446_v11  ;;  %v2477_v47 = vsel %vm2417_vm12, %v4396_v31, %v2447_v52  ;;  %v2478_v3 = vsel %vm2418_vm10, %v4399_v45, %v2448_v12 }
 0x344   : > { %vm4625_vm2 = vcmp.gt.f32.partialorder %v4402_v46, 0.0  ;;  %vm4626_vm3 = vcmp.gt.f32.partialorder %v4405_v48, 0.0  ;;  %vm4627_vm4 = vcmp.gt.f32.partialorder %v4408_v57, 0.0  ;;  %vm4628_vm5 = vcmp.gt.f32.partialorder %v4411_v37, 0.0 }
 0x345   : > { %v2479_v20 = vsel %vm4625_vm2, %v4402_v46, %v2449_v32  ;;  %v2480_v21 = vsel %vm4626_vm3, %v4405_v48, %v2450_v26  ;;  %v2481_v16 = vsel %vm4627_vm4, %v4408_v57, %v2451_v36  ;;  %v2482_v31 = vsel %vm4628_vm5, %v4411_v37, %v2452_v2 }
 0x346   : > { %v2483_v45 = vsel %vm2423_vm11, %v4414_v4, %v2453_v39  ;;  %vm4629_vm10 = vcmp.gt.f32.partialorder %v4417_v58, 0.0  ;;  %v2485_v48 = vsel %vm2425_vm0, %v4420_v14, %v2455_v56  ;;  %v2486_v57 = vsel %vm2426_vm15, %v4423_v53, %v2456_v55 }
 0x347   : > { %v2484_v46 = vsel %vm4629_vm10, %v4417_v58, %v2454_v10  ;;  %v2487_v37 = vsel %vm2427_vm14, %v4426_v54, %v2457_v35  ;;  %v2488_v4 = vsel %vm2428_vm1, %v4429_v63, %v2458_v41  ;;  %v2489_v58 = vsel %vm2429_vm13, %v4444_v61, %v2459_v27 }
 0x348   : > { %v2967_v14 = vpack.c.bf16 %v2461_v17, %v4470_v59  ;;  %v2972_v34 = vpack.c.bf16 %v2463_v43, %v2462_v50  ;;  %v2977_v53 = vpack.c.bf16 %v2465_v49, %v2464_v25  ;;  %v2982_v5 = vpack.c.bf16 %v2467_v9, %v2466_v0 }
 0x349   : > { %v2987_v8 = vpack.c.bf16 %v2469_v28, %v2468_v13  ;;  %v2992_v7 = vpack.c.bf16 %v2471_v6, %v2470_v38  ;;  %v2997_v54 = vpack.c.bf16 %v2473_v19, %v2472_v22  ;;  %v3002_v63 = vpack.c.bf16 %v2475_v1, %v2474_v29 }
 0x34a   : > { %2968 = vst [vmem:[%s4572_s29] sm:$0xff] %v2967_v14   ;;  %3039 = vst [vmem:[%s4572_s29 + $0x8] sm:$0xff] %v2972_v34   ;;  %v3007_v30 = vpack.c.bf16 %v2477_v47, %v2476_v33  ;;  %v3012_v61 = vpack.c.bf16 %v2479_v20, %v2478_v3  ;;  %v3017_v15 = vpack.c.bf16 %v2481_v16, %v2480_v21 }
 0x34b   : > { %3040 = vst [vmem:[%s4572_s29 + $0x10] sm:$0xff] %v2977_v53   ;;  %3041 = vst [vmem:[%s4572_s29 + $0x18] sm:$0xff] %v2982_v5   ;;  %v3022_v18 = vpack.c.bf16 %v2483_v45, %v2482_v31  ;;  %v3027_v44 = vpack.c.bf16 %v2485_v48, %v2484_v46  ;;  %v3032_v59 = vpack.c.bf16 %v2487_v37, %v2486_v57 }
 0x34c   : > { %3042 = vst [vmem:[%s4572_s29 + $0x20] sm:$0xff] %v2987_v8   ;;  %3043 = vst [vmem:[%s4572_s29 + $0x28] sm:$0xff] %v2992_v7   ;;  %v3037_v62 = vpack.c.bf16 %v2489_v58, %v2488_v4 }
 0x34d   : > { %3044 = vst [vmem:[%s4572_s29 + $0x30] sm:$0xff] %v2997_v54   ;;  %3045 = vst [vmem:[%s4572_s29 + $0x38] sm:$0xff] %v3002_v63  }
 0x34e   : > { %3046 = vst [vmem:[%s4572_s29 + $0x40] sm:$0xff] %v3007_v30   ;;  %3047 = vst [vmem:[%s4572_s29 + $0x48] sm:$0xff] %v3012_v61  }
 0x34f   : > { %3048 = vst [vmem:[%s4572_s29 + $0x50] sm:$0xff] %v3017_v15   ;;  %3049 = vst [vmem:[%s4572_s29 + $0x58] sm:$0xff] %v3022_v18  }
 0x350   : > { %3050 = vst [vmem:[%s4572_s29 + $0x60] sm:$0xff] %v3027_v44   ;;  %3051 = vst [vmem:[%s4572_s29 + $0x68] sm:$0xff] %v3032_v59  }
 0x351   : > { %3052 = vst [vmem:[%s4572_s29 + $0x70] sm:$0xff] %v3037_v62  }
 0x352 PF: > { %s15_s15 = sadd.s32 1, %s3596_s15  }
 0x353   : > { %p12_p1 = scmp.ge.s32.totalorder %s15_s15, 4  }
 0x355   :  { %14 = sbr.rel (!%p12_p1) target bundleno = 1 (0x1), region = 71 }
 0x35c   :  { %2661 = vsyncpa [#allocation3], 1 }
 0x35d   :  { %2663 = vsyncpa [#allocation3 + $0x1], 1 }

// kernel: discriminator_forward.6
= control target key start
LH: loop header
LB: loop body
LE: loop exit
PB: predicated region body
PF: predicated region fallthrough
CT: control target
= control target key end

     0   :  { %9 = vsyncpa [#allocation3], 0  ;;  %s4025_s15 = smov 0   ;;  %s5082_s0 = inlined_call_operand.vmem [shape: bf16[2,64,2048], index: 0, kind: input, shape index: {}]   ;;  %s5083_s1 = inlined_call_operand.vmem [shape: bf16[2048,256], index: 1, kind: input, shape index: {}]   ;;  %s5084_s2 = inlined_call_operand.vmem [shape: f32[1,256], index: 2, kind: input, shape index: {}]   ;;  %s5085_s3 = inlined_call_operand.vmem [shape: f32[2], index: 3, kind: input, shape index: {}]   ;;  %s5086_s4 = inlined_call_operand.vmem [shape: bf16[2,64,256], index: 4, kind: output, shape index: {}]  }
   0x1 LB: > { %s4031_s16 = sadd.s32 4294967295, %s3996_s15   ;;  %p3081_p0 = scmp.ge.s32.totalorder %s3996_s15, 1  ;;  %s3996_s15 = sphi %s4025_s15, %s15_s15  }
   0x2   : > { %p135_p1 = scmp.lt.s32.totalorder %s3996_s15, 3  ;;  %s154_s19 = sshll.u32 %s5085_s3, 4  ;;  %s155_s19 = int_to_ptr.vmem [resolvable:$true] %s154_s19 }
   0x3   : > { %p3573_p3 = scmp.eq.s32.totalorder %s4031_s16, 0  ;;  %s3971_s21 = scalar_lea.vmem %s155_s19, 16 }
   0x4   : > { %p4038_p2 = pnand %p3081_p0, %p135_p1  ;;  %p3972_p6 = scmp.ne.s32.totalorder %s155_s19, %s3971_s21 }
   0x5   : > { %p3979_p10 = scmp.lt.s32.totalorder %s155_s19, %s155_s19  ;;  %p3980_p11 = scmp.lt.s32.totalorder %s3971_s21, %s3971_s21 }
   0x6   : > { %p3569_p4 = pneg %p4038_p2 }
   0x7   : > { %p3981_p12 = por %p3980_p11, %p3979_p10 }
   0x8   : > { %p3570_p5 = pnand %p3573_p3, %p3569_p4 }
   0xa   : > { %p3973_p7 = pneg %p3570_p5 }
   0xc   : > { %p3974_p8 = pnand %p3973_p7, %p3972_p6 }
   0xe   : > { %p3975_p9 = pneg %p3974_p8 }
  0x10   : > { %p3982_p13 = pnand %p3981_p12, %p3975_p9 }
  0x12   : > { %3985 = shalt.err (!%p3982_p13)
}
  0x13   : > { %s3998_s22 = smov [#allocation2]   ;;  %175 = sbr.rel (%p4038_p2) target bundleno = 839 (0x347), region = 36 }
  0x14   : > { %3572 = dma.vmem_to_smem (!%p3570_p5), %s155_s19, 16, %s3998_s22, [#allocation3]  }
  0x1a   : > { %3991 = dma.done.wait (%p3573_p3), [#allocation3], 16  }
  0x1b   : > { %3993 = vsyncadd (%p3573_p3), [#allocation3], 4294967280 }
  0x1c   : > { %181 = sfence }
  0x1d   : > { %v3585_v0 = vld [vmem:[%s5083_s1 + $0x4] ss:$8 sps:$4 sm:$0xff]   ;;  %v3589_v2 = vld [vmem:[%s5083_s1] ss:$8 sps:$4 sm:$0xff]   ;;  %v3591_v4 = vld [vmem:[%s5083_s1 + $0x14] ss:$8 sps:$4 sm:$0xff]  }
  0x1e   : > { %v3587_v1 = vld [vmem:[%s5083_s1 + $0x404] ss:$8 sps:$4 sm:$0xff]   ;;  %2144 = vmatprep.subr.bf16.mxu1 %v3585_v0  ;;  %v3590_v3 = vld [vmem:[%s5083_s1 + $0x400] ss:$8 sps:$4 sm:$0xff]   ;;  %v3593_v5 = vld [vmem:[%s5083_s1 + $0x414] ss:$8 sps:$4 sm:$0xff]  }
  0x1f   : > { %2436 = vmatprep.subr.bf16.mxu0 %v3587_v1  ;;  %2145 = vmatpush1.bf16.msra.mxu1 %v3589_v2  ;;  %v3595_v6 = vld [vmem:[%s5083_s1 + $0x10] ss:$8 sps:$4 sm:$0xff]   ;;  %v3597_v8 = vld [vmem:[%s5083_s1 + $0x24] ss:$8 sps:$4 sm:$0xff]   ;;  %v3601_v10 = vld [vmem:[%s5083_s1 + $0x20] ss:$8 sps:$4 sm:$0xff]  }
  0x20   : > { %2437 = vmatpush1.bf16.msra.mxu0 %v3590_v3  ;;  %2146 = vmatprep.subr.bf16.mxu1 %v3591_v4  ;;  %v3596_v7 = vld [vmem:[%s5083_s1 + $0x410] ss:$8 sps:$4 sm:$0xff]   ;;  %v3599_v9 = vld [vmem:[%s5083_s1 + $0x424] ss:$8 sps:$4 sm:$0xff]   ;;  %v3602_v11 = vld [vmem:[%s5083_s1 + $0x420] ss:$8 sps:$4 sm:$0xff]  }
  0x21   : > { %2438 = vmatprep.subr.bf16.mxu0 %v3593_v5  ;;  %v3603_v12 = vld [vmem:[%s5083_s1 + $0x34] ss:$8 sps:$4 sm:$0xff]   ;;  %v3607_v14 = vld [vmem:[%s5083_s1 + $0x30] ss:$8 sps:$4 sm:$0xff]   ;;  %v3609_v16 = vld [vmem:[%s5083_s1 + $0x44] ss:$8 sps:$4 sm:$0xff]  }
  0x22   : > { %v3605_v13 = vld [vmem:[%s5083_s1 + $0x434] ss:$8 sps:$4 sm:$0xff]   ;;  %v3608_v15 = vld [vmem:[%s5083_s1 + $0x430] ss:$8 sps:$4 sm:$0xff]   ;;  %v3611_v17 = vld [vmem:[%s5083_s1 + $0x444] ss:$8 sps:$4 sm:$0xff]  }
  0x23   : > { %2147 = vmatpush1.bf16.msra.mxu1 %v3595_v6  ;;  %v3613_v18 = vld [vmem:[%s5083_s1 + $0x40] ss:$8 sps:$4 sm:$0xff]   ;;  %v3615_v20 = vld [vmem:[%s5083_s1 + $0x54] ss:$8 sps:$4 sm:$0xff]   ;;  %v3619_v22 = vld [vmem:[%s5083_s1 + $0x50] ss:$8 sps:$4 sm:$0xff]  }
  0x24   : > { %2439 = vmatpush1.bf16.msra.mxu0 %v3596_v7  ;;  %2148 = vmatprep.subr.bf16.mxu1 %v3597_v8  ;;  %v3614_v19 = vld [vmem:[%s5083_s1 + $0x440] ss:$8 sps:$4 sm:$0xff]   ;;  %v3617_v21 = vld [vmem:[%s5083_s1 + $0x454] ss:$8 sps:$4 sm:$0xff]   ;;  %v3620_v23 = vld [vmem:[%s5083_s1 + $0x450] ss:$8 sps:$4 sm:$0xff]  }
  0x25   : > { %2440 = vmatprep.subr.bf16.mxu0 %v3599_v9  ;;  %v3621_v24 = vld [vmem:[%s5083_s1 + $0x64] ss:$8 sps:$4 sm:$0xff]   ;;  %v3625_v26 = vld [vmem:[%s5083_s1 + $0x60] ss:$8 sps:$4 sm:$0xff]   ;;  %v3627_v28 = vld [vmem:[%s5083_s1 + $0x74] ss:$8 sps:$4 sm:$0xff]  }
  0x26   : > { %v3623_v25 = vld [vmem:[%s5083_s1 + $0x464] ss:$8 sps:$4 sm:$0xff]   ;;  %v3626_v27 = vld [vmem:[%s5083_s1 + $0x460] ss:$8 sps:$4 sm:$0xff]   ;;  %v3629_v29 = vld [vmem:[%s5083_s1 + $0x474] ss:$8 sps:$4 sm:$0xff]  }
  0x27   : > { %2149 = vmatpush1.bf16.msra.mxu1 %v3601_v10  ;;  %v3631_v30 = vld [vmem:[%s5083_s1 + $0x70] ss:$8 sps:$4 sm:$0xff]   ;;  %v3633_v32 = vld [vmem:[%s5083_s1 + $0x84] ss:$8 sps:$4 sm:$0xff]   ;;  %p202_p0 = scmp.lt.s32.totalorder %s4031_s16, 1  ;;  %s3999_s10 = smov 0.0  }
  0x28   : > { %2441 = vmatpush1.bf16.msra.mxu0 %v3602_v11  ;;  %2150 = vmatprep.subr.bf16.mxu1 %v3603_v12  ;;  %v3632_v31 = vld [vmem:[%s5083_s1 + $0x470] ss:$8 sps:$4 sm:$0xff]   ;;  %v3635_v33 = vld [vmem:[%s5083_s1 + $0x484] ss:$8 sps:$4 sm:$0xff]   ;;  %v3637_v34 = vld [vmem:[%s5083_s1 + $0x80] ss:$8 sps:$4 sm:$0xff]  }
  0x29   : > { %2442 = vmatprep.subr.bf16.mxu0 %v3605_v13  ;;  %v3638_v35 = vld [vmem:[%s5083_s1 + $0x480] ss:$8 sps:$4 sm:$0xff]   ;;  %v3639_v36 = vld [vmem:[%s5083_s1 + $0x94] ss:$8 sps:$4 sm:$0xff]   ;;  %s5089_s16 = smov (!%p202_p0, %s4031_s16), 1  ;;  %s2872_s13 = sld [smem:[#allocation2]] }
  0x2a   : > { %v3641_v37 = vld [vmem:[%s5083_s1 + $0x494] ss:$8 sps:$4 sm:$0xff]   ;;  %v3643_v38 = vld [vmem:[%s5083_s1 + $0x90] ss:$8 sps:$4 sm:$0xff]   ;;  %v3645_v40 = vld [vmem:[%s5083_s1 + $0xa4] ss:$8 sps:$4 sm:$0xff]  }
  0x2b   : > { %2151 = vmatpush1.bf16.msra.mxu1 %v3607_v14  ;;  %v3644_v39 = vld [vmem:[%s5083_s1 + $0x490] ss:$8 sps:$4 sm:$0xff]   ;;  %s3421_s7 = sshll.u32 %s5089_s16, 9  ;;  %v3647_v41 = vld [vmem:[%s5083_s1 + $0x4a4] ss:$8 sps:$4 sm:$0xff]   ;;  %s3410_s14 = sld [smem:[#allocation2 + $0x1]] }
  0x2c   : > { %2443 = vmatpush1.bf16.msra.mxu0 %v3608_v15  ;;  %2152 = vmatprep.subr.bf16.mxu1 %v3609_v16  ;;  %v3649_v42 = vld [vmem:[%s5083_s1 + $0xa0] ss:$8 sps:$4 sm:$0xff]   ;;  %s4193_s18 = scalar_lea.vmem %s5082_s0, %s3421_s7  ;;  %v3651_v44 = vld [vmem:[%s5083_s1 + $0xb4] ss:$8 sps:$4 sm:$0xff]   ;;  %v3655_v46 = vld [vmem:[%s5083_s1 + $0xb0] ss:$8 sps:$4 sm:$0xff]  }
  0x2d   : > { %2444 = vmatprep.subr.bf16.mxu0 %v3611_v17  ;;  %v3650_v43 = vld [vmem:[%s5083_s1 + $0x4a0] ss:$8 sps:$4 sm:$0xff]   ;;  %v3653_v45 = vld [vmem:[%s5083_s1 + $0x4b4] ss:$8 sps:$4 sm:$0xff]   ;;  %v3656_v47 = vld [vmem:[%s5083_s1 + $0x4b0] ss:$8 sps:$4 sm:$0xff]  }
  0x2e   : > { %v212_v48 = vld [vmem:[%s4193_s18] sm:$0xff]  ;;  %v3663_v58 = vld [vmem:[%s5083_s1 + $0xd4] ss:$8 sps:$4 sm:$0xff]   ;;  %v3667_v60 = vld [vmem:[%s5083_s1 + $0xd0] ss:$8 sps:$4 sm:$0xff]   ;;  %s3422_s19 = sshll.u32 %s5089_s16, 6 }
  0x2f   : > { %2153 = vmatpush1.bf16.msra.mxu1 %v3613_v18  ;;  %v220_v49 = vld [vmem:[%s4193_s18 + $0x40] sm:$0xff]  ;;  %v3665_v59 = vld [vmem:[%s5083_s1 + $0x4d4] ss:$8 sps:$4 sm:$0xff]   ;;  %v3668_v61 = vld [vmem:[%s5083_s1 + $0x4d0] ss:$8 sps:$4 sm:$0xff]   ;;  %s211_s22 = scalar_lea.vmem %s5086_s4, %s3422_s19 }
  0x30   : > { %2445 = vmatpush1.bf16.msra.mxu0 %v3614_v19  ;;  %2154 = vmatprep.subr.bf16.mxu1 %v3615_v20  ;;  %v3657_v50 = vld [vmem:[%s5083_s1 + $0xc4] ss:$8 sps:$4 sm:$0xff]   ;;  %v3091_v52 = vcombine.high %v212_v48, %v220_v49  ;;  %v3661_v56 = vld [vmem:[%s5083_s1 + $0xc0] ss:$8 sps:$4 sm:$0xff]   ;;  %v3675_v2 = vld [vmem:[%s5083_s1 + $0xf4] ss:$8 sps:$4 sm:$0xff]   ;;  %v3090_v8 = vcombine.low %v212_v48, %v220_v49 }
  0x31   : > { %2446 = vmatprep.subr.bf16.mxu0 %v3617_v21  ;;  %v3659_v51 = vld [vmem:[%s5083_s1 + $0x4c4] ss:$8 sps:$4 sm:$0xff]   ;;  %v3662_v57 = vld [vmem:[%s5083_s1 + $0x4c0] ss:$8 sps:$4 sm:$0xff]   ;;  %v3677_v3 = vld [vmem:[%s5083_s1 + $0x4f4] ss:$8 sps:$4 sm:$0xff]  }
  0x32   : > { %v216_v53 = vld [vmem:[%s4193_s18 + $0x20] sm:$0xff]  ;;  %2176 = vmatprep.mubr.bf16.mxu1 %v3091_v52  ;;  %v3679_v4 = vld [vmem:[%s5083_s1 + $0xf0] ss:$8 sps:$4 sm:$0xff]   ;;  %v3689_v12 = vld [vmem:[%s5083_s1 + $0x114] ss:$8 sps:$4 sm:$0xff]  }
  0x33   : > { %2155 = vmatpush1.bf16.msra.mxu1 %v3619_v22  ;;  %v224_v54 = vld [vmem:[%s4193_s18 + $0x60] sm:$0xff]  ;;  %v3680_v5 = vld [vmem:[%s5083_s1 + $0x4f0] ss:$8 sps:$4 sm:$0xff]   ;;  %v3692_v13 = vld [vmem:[%s5083_s1 + $0x514] ss:$8 sps:$4 sm:$0xff]  }
  0x34   : > { %2447 = vmatpush1.bf16.msra.mxu0 %v3620_v23  ;;  %2156 = vmatprep.subr.bf16.mxu1 %v3621_v24  ;;  %v3099_v55 = vcombine.high %v216_v53, %v224_v54  ;;  %v3669_v62 = vld [vmem:[%s5083_s1 + $0xe4] ss:$8 sps:$4 sm:$0xff]   ;;  %v3673_v0 = vld [vmem:[%s5083_s1 + $0xe0] ss:$8 sps:$4 sm:$0xff]   ;;  %v3098_v10 = vcombine.low %v216_v53, %v224_v54  ;;  %v3687_v14 = vld [vmem:[%s5083_s1 + $0x110] ss:$8 sps:$4 sm:$0xff]  }
  0x35   : > { %2448 = vmatprep.subr.bf16.mxu0 %v3623_v25  ;;  %v3671_v63 = vld [vmem:[%s5083_s1 + $0x4e4] ss:$8 sps:$4 sm:$0xff]   ;;  %v3674_v1 = vld [vmem:[%s5083_s1 + $0x4e0] ss:$8 sps:$4 sm:$0xff]   ;;  %v3690_v15 = vld [vmem:[%s5083_s1 + $0x510] ss:$8 sps:$4 sm:$0xff]  }
  0x36   : > { %2468 = vmatprep.mubr.bf16.mxu0 %v3099_v55  ;;  %v3683_v6 = vld [vmem:[%s5083_s1 + $0x104] ss:$8 sps:$4 sm:$0xff]   ;;  %v3681_v9 = vld [vmem:[%s5083_s1 + $0x100] ss:$8 sps:$4 sm:$0xff]   ;;  %v3701_v22 = vld [vmem:[%s5083_s1 + $0x134] ss:$8 sps:$4 sm:$0xff]  }
  0x37   : > { %2157 = vmatpush1.bf16.msra.mxu1 %v3625_v26  ;;  %v3686_v7 = vld [vmem:[%s5083_s1 + $0x504] ss:$8 sps:$4 sm:$0xff]   ;;  %v3684_v11 = vld [vmem:[%s5083_s1 + $0x500] ss:$8 sps:$4 sm:$0xff]   ;;  %v3704_v23 = vld [vmem:[%s5083_s1 + $0x534] ss:$8 sps:$4 sm:$0xff]  }
  0x38   : > { %2449 = vmatpush1.bf16.msra.mxu0 %v3626_v27  ;;  %2158 = vmatprep.subr.bf16.mxu1 %v3627_v28  ;;  %v3695_v16 = vld [vmem:[%s5083_s1 + $0x124] ss:$8 sps:$4 sm:$0xff]   ;;  %v3693_v18 = vld [vmem:[%s5083_s1 + $0x120] ss:$8 sps:$4 sm:$0xff]  }
  0x39   : > { %2450 = vmatprep.subr.bf16.mxu0 %v3629_v29  ;;  %v3698_v17 = vld [vmem:[%s5083_s1 + $0x524] ss:$8 sps:$4 sm:$0xff]   ;;  %v3696_v19 = vld [vmem:[%s5083_s1 + $0x520] ss:$8 sps:$4 sm:$0xff]   ;;  %v3699_v29 = vld [vmem:[%s5083_s1 + $0x130] ss:$8 sps:$4 sm:$0xff]  }
  0x3a   : > { %v228_v20 = vld [vmem:[%s4193_s18 + $0x80] sm:$0xff] }
  0x3b   : > { %2159 = vmatpush1.bf16.msra.mxu1 %v3631_v30  ;;  %v236_v21 = vld [vmem:[%s4193_s18 + $0xc0] sm:$0xff]  ;;  %v3702_v30 = vld [vmem:[%s5083_s1 + $0x530] ss:$8 sps:$4 sm:$0xff]  }
  0x3c   : > { %2451 = vmatpush1.bf16.msra.mxu0 %v3632_v31  ;;  %2160 = vmatprep.subr.bf16.mxu1 %v3633_v32  ;;  %v3107_v24 = vcombine.high %v228_v20, %v236_v21  ;;  %v232_v25 = vld [vmem:[%s4193_s18 + $0xa0] sm:$0xff]  ;;  %v3106_v26 = vcombine.low %v228_v20, %v236_v21  ;;  %v3747_v20 = vld [vmem:[%s5083_s1 + $0x1b0] ss:$8 sps:$4 sm:$0xff]  }
  0x3d   : > { %2452 = vmatprep.subr.bf16.mxu0 %v3635_v33  ;;  %v240_v27 = vld [vmem:[%s4193_s18 + $0xe0] sm:$0xff]  ;;  %v3750_v21 = vld [vmem:[%s5083_s1 + $0x5b0] ss:$8 sps:$4 sm:$0xff]  }
  0x3e   : > { %v3115_v28 = vcombine.high %v232_v25, %v240_v27  ;;  %v3114_v31 = vcombine.low %v232_v25, %v240_v27  ;;  %v3707_v32 = vld [vmem:[%s5083_s1 + $0x144] ss:$8 sps:$4 sm:$0xff]   ;;  %v3717_v55 = vld [vmem:[%s5083_s1 + $0x160] ss:$8 sps:$4 sm:$0xff]   ;;  %v3764_v27 = vld [vmem:[%s5083_s1 + $0x5d4] ss:$8 sps:$4 sm:$0xff]  }
  0x3f   : > { %2161 = vmatpush1.bf16.msra.mxu1 %v3637_v34  ;;  %v3710_v33 = vld [vmem:[%s5083_s1 + $0x544] ss:$8 sps:$4 sm:$0xff]   ;;  %v3756_v25 = vld [vmem:[%s5083_s1 + $0x5c0] ss:$8 sps:$4 sm:$0xff]  }
  0x40   : > { %2453 = vmatpush1.bf16.msra.mxu0 %v3638_v35  ;;  %2162 = vmatprep.subr.bf16.mxu1 %v3639_v36  ;;  %v244_v34 = vld [vmem:[%s4193_s18 + $0x100] sm:$0xff] }
  0x41   : > { %2454 = vmatprep.subr.bf16.mxu0 %v3641_v37  ;;  %v252_v35 = vld [vmem:[%s4193_s18 + $0x140] sm:$0xff] }
  0x42   : > { %v3705_v36 = vld [vmem:[%s5083_s1 + $0x140] ss:$8 sps:$4 sm:$0xff]   ;;  %v3123_v37 = vcombine.high %v244_v34, %v252_v35 }
  0x43   : > { %2163 = vmatpush1.bf16.msra.mxu1 %v3643_v38  ;;  %v3708_v38 = vld [vmem:[%s5083_s1 + $0x540] ss:$8 sps:$4 sm:$0xff]  }
  0x44   : > { %2455 = vmatpush1.bf16.msra.mxu0 %v3644_v39  ;;  %2164 = vmatprep.subr.bf16.mxu1 %v3645_v40  ;;  %v248_v39 = vld [vmem:[%s4193_s18 + $0x120] sm:$0xff] }
  0x45   : > { %2456 = vmatprep.subr.bf16.mxu0 %v3647_v41  ;;  %v256_v40 = vld [vmem:[%s4193_s18 + $0x160] sm:$0xff]  ;;  %v3122_v41 = vcombine.low %v244_v34, %v252_v35  ;;  %v3773_v34 = vld [vmem:[%s5083_s1 + $0x1f4] ss:$8 sps:$4 sm:$0xff]  }
  0x46   : > { %v260_v48 = vld [vmem:[%s4193_s18 + $0x180] sm:$0xff]  ;;  %v3776_v35 = vld [vmem:[%s5083_s1 + $0x5f4] ss:$8 sps:$4 sm:$0xff]  }
  0x47   : > { %2165 = vmatpush1.bf16.msra.mxu1 %v3649_v42  ;;  %v3713_v42 = vld [vmem:[%s5083_s1 + $0x154] ss:$8 sps:$4 sm:$0xff]   ;;  %v268_v49 = vld [vmem:[%s4193_s18 + $0x1c0] sm:$0xff] }
  0x48   : > { %2457 = vmatpush1.bf16.msra.mxu0 %v3650_v43  ;;  %2166 = vmatprep.subr.bf16.mxu1 %v3651_v44  ;;  %v3131_v43 = vcombine.high %v248_v39, %v256_v40  ;;  %v3716_v44 = vld [vmem:[%s5083_s1 + $0x554] ss:$8 sps:$4 sm:$0xff]   ;;  %v3139_v52 = vcombine.high %v260_v48, %v268_v49  ;;  %v264_v53 = vld [vmem:[%s4193_s18 + $0x1a0] sm:$0xff] }
  0x49   : > { %2458 = vmatprep.subr.bf16.mxu0 %v3653_v45  ;;  %v3711_v45 = vld [vmem:[%s5083_s1 + $0x150] ss:$8 sps:$4 sm:$0xff]   ;;  %v272_v54 = vld [vmem:[%s4193_s18 + $0x1e0] sm:$0xff] }
  0x4b   : > { %2167 = vmatpush1.bf16.msra.mxu1 %v3655_v46  ;;  %v3714_v46 = vld [vmem:[%s5083_s1 + $0x550] ss:$8 sps:$4 sm:$0xff]  }
  0x4c   : > { %2459 = vmatpush1.bf16.msra.mxu0 %v3656_v47  ;;  %2168 = vmatprep.subr.bf16.mxu1 %v3657_v50  ;;  %v3130_v47 = vcombine.low %v248_v39, %v256_v40  ;;  %v3719_v50 = vld [vmem:[%s5083_s1 + $0x164] ss:$8 sps:$4 sm:$0xff]   ;;  %v3777_v40 = vld [vmem:[%s5083_s1 + $0x200] ss:$8 sps:$4 sm:$0xff]  }
  0x4d   : > { %2460 = vmatprep.subr.bf16.mxu0 %v3659_v51  ;;  %v3722_v51 = vld [vmem:[%s5083_s1 + $0x564] ss:$8 sps:$4 sm:$0xff]  }
  0x4e   : > { %v3782_v39 = vld [vmem:[%s5083_s1 + $0x604] ss:$8 sps:$4 sm:$0xff]  }
  0x4f   : > { %2169 = vmatpush1.bf16.msra.mxu1 %v3661_v56  ;;  %v3720_v56 = vld [vmem:[%s5083_s1 + $0x560] ss:$8 sps:$4 sm:$0xff]  }
  0x50   : > { %2461 = vmatpush1.bf16.msra.mxu0 %v3662_v57  ;;  %2170 = vmatprep.subr.bf16.mxu1 %v3663_v58  ;;  %v3147_v57 = vcombine.high %v264_v53, %v272_v54  ;;  %v3138_v58 = vcombine.low %v260_v48, %v268_v49  ;;  %v3785_v48 = vld [vmem:[%s5083_s1 + $0x214] ss:$8 sps:$4 sm:$0xff]  }
  0x51   : > { %2462 = vmatprep.subr.bf16.mxu0 %v3665_v59  ;;  %v3725_v59 = vld [vmem:[%s5083_s1 + $0x174] ss:$8 sps:$4 sm:$0xff]  }
  0x52   : > { %v3788_v49 = vld [vmem:[%s5083_s1 + $0x614] ss:$8 sps:$4 sm:$0xff]  }
  0x53   : > { %2171 = vmatpush1.bf16.msra.mxu1 %v3667_v60  ;;  %v3728_v60 = vld [vmem:[%s5083_s1 + $0x574] ss:$8 sps:$4 sm:$0xff]  }
  0x54   : > { %2463 = vmatpush1.bf16.msra.mxu0 %v3668_v61  ;;  %2172 = vmatprep.subr.bf16.mxu1 %v3669_v62  ;;  %v3723_v61 = vld [vmem:[%s5083_s1 + $0x170] ss:$8 sps:$4 sm:$0xff]  }
  0x55   : > { %2464 = vmatprep.subr.bf16.mxu0 %v3671_v63  ;;  %v3726_v62 = vld [vmem:[%s5083_s1 + $0x570] ss:$8 sps:$4 sm:$0xff]   ;;  %v4368_v63 = vld [vmem:[%s4193_s18 + $0x8] sm:$0xff] }
  0x57   : > { %2173 = vmatpush1.bf16.msra.mxu1 %v3673_v0  ;;  %v3146_v0 = vcombine.low %v264_v53, %v272_v54  ;;  %v3786_v53 = vld [vmem:[%s5083_s1 + $0x610] ss:$8 sps:$4 sm:$0xff]   ;;  %v3791_v54 = vld [vmem:[%s5083_s1 + $0x224] ss:$8 sps:$4 sm:$0xff]  }
  0x58   : > { %2465 = vmatpush1.bf16.msra.mxu0 %v3674_v1  ;;  %2174 = vmatprep.subr.bf16.mxu1 %v3675_v2  ;;  %v4371_v1 = vld [vmem:[%s4193_s18 + $0x48] sm:$0xff] }
  0x59   : > { %2466 = vmatprep.subr.bf16.mxu0 %v3677_v3  ;;  %v3731_v2 = vld [vmem:[%s5083_s1 + $0x184] ss:$8 sps:$4 sm:$0xff]  }
  0x5a   : > { %v3734_v3 = vld [vmem:[%s5083_s1 + $0x584] ss:$8 sps:$4 sm:$0xff]  }
  0x5b   : > { %2175 = vmatpush1.bf16.msra.mxu1 %v3679_v4  ;;  %v3093_v4 = vcombine.high %v4368_v63, %v4371_v1 }
  0x5c   : > { %2467 = vmatpush1.bf16.msra.mxu0 %v3680_v5  ;;  %2217 = vmatprep.subr.bf16.mxu1 %v3683_v6  ;;  %v4382_v5 = vld [vmem:[%s4193_s18 + $0x28] sm:$0xff] }
  0x5d   : > { %2509 = vmatprep.subr.bf16.mxu0 %v3686_v7  ;;  %v4385_v6 = vld [vmem:[%s4193_s18 + $0x68] sm:$0xff] }
  0x5e   : > { %2177 = vmatmul.mubr.bf16.vlgmr.msra.gmra.mrb[0].mxu1 %v3090_v8  ;;  %v3101_v7 = vcombine.high %v4382_v5, %v4385_v6  ;;  %v3729_v8 = vld [vmem:[%s5083_s1 + $0x180] ss:$8 sps:$4 sm:$0xff]  }
  0x5f   : > { %2469 = vmatmul.mubr.bf16.vlgmr.msra.gmra.mrb[0].mxu0 %v3098_v10  ;;  %2218 = vmatpush1.bf16.msra.mxu1 %v3681_v9  ;;  %v3732_v9 = vld [vmem:[%s5083_s1 + $0x580] ss:$8 sps:$4 sm:$0xff]   ;;  %v3737_v10 = vld [vmem:[%s5083_s1 + $0x194] ss:$8 sps:$4 sm:$0xff]  }
  0x60   : > { %2510 = vmatpush1.bf16.msra.mxu0 %v3684_v11  ;;  %2219 = vmatprep.subr.bf16.mxu1 %v3689_v12  ;;  %v3740_v11 = vld [vmem:[%s5083_s1 + $0x594] ss:$8 sps:$4 sm:$0xff]   ;;  %v3735_v12 = vld [vmem:[%s5083_s1 + $0x190] ss:$8 sps:$4 sm:$0xff]  }
  0x61   : > { %2511 = vmatprep.subr.bf16.mxu0 %v3692_v13  ;;  %2186 = vmatprep.mubr.bf16.mxu1 %v3107_v24  ;;  %v3738_v13 = vld [vmem:[%s5083_s1 + $0x590] ss:$8 sps:$4 sm:$0xff]   ;;  %v3753_v24 = vld [vmem:[%s5083_s1 + $0x1c0] ss:$8 sps:$4 sm:$0xff]  }
  0x62   : > { %2478 = vmatprep.mubr.bf16.mxu0 %v3115_v28  ;;  %v3759_v28 = vld [vmem:[%s5083_s1 + $0x1d0] ss:$8 sps:$4 sm:$0xff]  }
  0x63   : > { %2220 = vmatpush1.bf16.msra.mxu1 %v3687_v14  ;;  %v3743_v14 = vld [vmem:[%s5083_s1 + $0x1a4] ss:$8 sps:$4 sm:$0xff]  }
  0x64   : > { %2512 = vmatpush1.bf16.msra.mxu0 %v3690_v15  ;;  %2221 = vmatprep.subr.bf16.mxu1 %v3695_v16  ;;  %v3746_v15 = vld [vmem:[%s5083_s1 + $0x5a4] ss:$8 sps:$4 sm:$0xff]   ;;  %v3741_v16 = vld [vmem:[%s5083_s1 + $0x1a0] ss:$8 sps:$4 sm:$0xff]  }
  0x65   : > { %2513 = vmatprep.subr.bf16.mxu0 %v3698_v17  ;;  %v3744_v17 = vld [vmem:[%s5083_s1 + $0x5a0] ss:$8 sps:$4 sm:$0xff]  }
  0x66   : > { %2187 = vmatmul.mubr.bf16.gmra.mrb[4].mxu1 %v3106_v26  ;;  %v3761_v26 = vld [vmem:[%s5083_s1 + $0x1d4] ss:$8 sps:$4 sm:$0xff]  }
  0x67   : > { %2222 = vmatpush1.bf16.msra.mxu1 %v3693_v18  ;;  %2479 = vmatmul.mubr.bf16.gmra.mrb[4].mxu0 %v3114_v31  ;;  %v3749_v18 = vld [vmem:[%s5083_s1 + $0x1b4] ss:$8 sps:$4 sm:$0xff]   ;;  %v3770_v31 = vld [vmem:[%s5083_s1 + $0x5e4] ss:$8 sps:$4 sm:$0xff]  }
  0x68   : > { %2514 = vmatpush1.bf16.msra.mxu0 %v3696_v19  ;;  %2223 = vmatprep.subr.bf16.mxu1 %v3701_v22  ;;  %v3752_v19 = vld [vmem:[%s5083_s1 + $0x5b4] ss:$8 sps:$4 sm:$0xff]   ;;  %v3755_v22 = vld [vmem:[%s5083_s1 + $0x1c4] ss:$8 sps:$4 sm:$0xff]  }
  0x69   : > { %2515 = vmatprep.subr.bf16.mxu0 %v3704_v23  ;;  %2196 = vmatprep.mubr.bf16.mxu1 %v3123_v37  ;;  %v3758_v23 = vld [vmem:[%s5083_s1 + $0x5c4] ss:$8 sps:$4 sm:$0xff]   ;;  %v3774_v37 = vld [vmem:[%s5083_s1 + $0x5f0] ss:$8 sps:$4 sm:$0xff]  }
  0x6a   : > { %2488 = vmatprep.mubr.bf16.mxu0 %v3131_v43  ;;  %v3092_v43 = vcombine.low %v4368_v63, %v4371_v1  ;;  %v257_v63 = vld [vmem:[%s4193_s18 + $0x168] sm:$0xff]  ;;  %v3800_v1 = vld [vmem:[%s5083_s1 + $0x634] ss:$8 sps:$4 sm:$0xff]  }
  0x6b   : > { %2224 = vmatpush1.bf16.msra.mxu1 %v3699_v29  ;;  %v3762_v29 = vld [vmem:[%s5083_s1 + $0x5d0] ss:$8 sps:$4 sm:$0xff]  }
  0x6c   : > { %2516 = vmatpush1.bf16.msra.mxu0 %v3702_v30  ;;  %2225 = vmatprep.subr.bf16.mxu1 %v3707_v32  ;;  %v3767_v30 = vld [vmem:[%s5083_s1 + $0x1e4] ss:$8 sps:$4 sm:$0xff]   ;;  %v3765_v32 = vld [vmem:[%s5083_s1 + $0x1e0] ss:$8 sps:$4 sm:$0xff]  }
  0x6d   : > { %2517 = vmatprep.subr.bf16.mxu0 %v3710_v33  ;;  %v3768_v33 = vld [vmem:[%s5083_s1 + $0x5e0] ss:$8 sps:$4 sm:$0xff]  }
  0x6e   : > { %2197 = vmatmul.mubr.bf16.gmra.mrb[8].mxu1 %v3122_v41  ;;  %v3780_v41 = vld [vmem:[%s5083_s1 + $0x600] ss:$8 sps:$4 sm:$0xff]  }
  0x6f   : > { %2226 = vmatpush1.bf16.msra.mxu1 %v3705_v36  ;;  %2489 = vmatmul.mubr.bf16.gmra.mrb[8].mxu0 %v3130_v47  ;;  %v3771_v36 = vld [vmem:[%s5083_s1 + $0x1f0] ss:$8 sps:$4 sm:$0xff]   ;;  %v241_v47 = vld [vmem:[%s4193_s18 + $0xe8] sm:$0xff] }
  0x70   : > { %2518 = vmatpush1.bf16.msra.mxu0 %v3708_v38  ;;  %2227 = vmatprep.subr.bf16.mxu1 %v3713_v42  ;;  %v3779_v38 = vld [vmem:[%s5083_s1 + $0x204] ss:$8 sps:$4 sm:$0xff]  }
  0x71   : > { %2519 = vmatprep.subr.bf16.mxu0 %v3716_v44  ;;  %2206 = vmatprep.mubr.bf16.mxu1 %v3139_v52  ;;  %v229_v42 = vld [vmem:[%s4193_s18 + $0x88] sm:$0xff]  ;;  %v3100_v44 = vcombine.low %v4382_v5, %v4385_v6  ;;  %v3783_v52 = vld [vmem:[%s5083_s1 + $0x210] ss:$8 sps:$4 sm:$0xff]  }
  0x72   : > { %2498 = vmatprep.mubr.bf16.mxu0 %v3147_v57  ;;  %v3792_v57 = vld [vmem:[%s5083_s1 + $0x620] ss:$8 sps:$4 sm:$0xff]   ;;  %v3798_v5 = vld [vmem:[%s5083_s1 + $0x630] ss:$8 sps:$4 sm:$0xff]   ;;  %v3803_v6 = vld [vmem:[%s5083_s1 + $0x244] ss:$8 sps:$4 sm:$0xff]  }
  0x73   : > { %2228 = vmatpush1.bf16.msra.mxu1 %v3711_v45  ;;  %v237_v45 = vld [vmem:[%s4193_s18 + $0xc8] sm:$0xff] }
  0x74   : > { %2520 = vmatpush1.bf16.msra.mxu0 %v3714_v46  ;;  %2229 = vmatprep.subr.bf16.mxu1 %v3719_v50  ;;  %v233_v46 = vld [vmem:[%s4193_s18 + $0xa8] sm:$0xff]  ;;  %v3109_v50 = vcombine.high %v229_v42, %v237_v45 }
  0x75   : > { %2521 = vmatprep.subr.bf16.mxu0 %v3722_v51  ;;  %v3117_v51 = vcombine.high %v233_v46, %v241_v47 }
  0x76   : > { %2207 = vmatmul.mubr.bf16.gmra.mrb[12].mxu1 %v3138_v58  ;;  %v245_v58 = vld [vmem:[%s4193_s18 + $0x108] sm:$0xff] }
  0x77   : > { %2230 = vmatpush1.bf16.msra.mxu1 %v3717_v55  ;;  %2249 = vmatprep.mubr.bf16.mxu1 %v3093_v4  ;;  %v3794_v55 = vld [vmem:[%s5083_s1 + $0x624] ss:$8 sps:$4 sm:$0xff]   ;;  %v3795_v4 = vld [vmem:[%s5083_s1 + $0x230] ss:$8 sps:$4 sm:$0xff]  }
  0x78   : > { %2522 = vmatpush1.bf16.msra.mxu0 %v3720_v56  ;;  %2231 = vmatprep.subr.bf16.mxu1 %v3725_v59  ;;  %v3789_v56 = vld [vmem:[%s5083_s1 + $0x220] ss:$8 sps:$4 sm:$0xff]  }
  0x79   : > { %2523 = vmatprep.subr.bf16.mxu0 %v3728_v60  ;;  %2499 = vmatmul.mubr.bf16.gmra.mrb[12].mxu0 %v3146_v0  ;;  %v253_v59 = vld [vmem:[%s4193_s18 + $0x148] sm:$0xff]  ;;  %v3108_v60 = vcombine.low %v229_v42, %v237_v45  ;;  %v3797_v0 = vld [vmem:[%s5083_s1 + $0x234] ss:$8 sps:$4 sm:$0xff]   ;;  %v3834_v45 = vld [vmem:[%s5083_s1 + $0x690] ss:$8 sps:$4 sm:$0xff]  }
  0x7a   : > { %2541 = vmatprep.mubr.bf16.mxu0 %v3101_v7  ;;  %v3806_v7 = vld [vmem:[%s5083_s1 + $0x644] ss:$8 sps:$4 sm:$0xff]   ;;  %v3833_v42 = vld [vmem:[%s5083_s1 + $0x294] ss:$8 sps:$4 sm:$0xff]  }
  0x7b   : > { %2232 = vmatpush1.bf16.msra.mxu1 %v3723_v61  ;;  %v3116_v61 = vcombine.low %v233_v46, %v241_v47  ;;  %v3839_v46 = vld [vmem:[%s5083_s1 + $0x2a4] ss:$8 sps:$4 sm:$0xff]  }
  0x7c   : > { %2524 = vmatpush1.bf16.msra.mxu0 %v3726_v62  ;;  %2233 = vmatprep.subr.bf16.mxu1 %v3731_v2  ;;  %v249_v62 = vld [vmem:[%s4193_s18 + $0x128] sm:$0xff]  ;;  %v3125_v2 = vcombine.high %v245_v58, %v253_v59 }
  0x7d   : > { %2525 = vmatprep.subr.bf16.mxu0 %v3734_v3  ;;  %v3133_v3 = vcombine.high %v249_v62, %v257_v63  ;;  %v3842_v47 = vld [vmem:[%s5083_s1 + $0x6a4] ss:$8 sps:$4 sm:$0xff]  }
  0x7f   : > { %2234 = vmatpush1.bf16.msra.mxu1 %v3729_v8  ;;  %v3801_v8 = vld [vmem:[%s5083_s1 + $0x240] ss:$8 sps:$4 sm:$0xff]  }
  0x80   : > { %2526 = vmatpush1.bf16.msra.mxu0 %v3732_v9  ;;  %2235 = vmatprep.subr.bf16.mxu1 %v3737_v10  ;;  %v3804_v9 = vld [vmem:[%s5083_s1 + $0x640] ss:$8 sps:$4 sm:$0xff]  }
  0x81   : > { %2527 = vmatprep.subr.bf16.mxu0 %v3740_v11  ;;  %v261_v10 = vld [vmem:[%s4193_s18 + $0x188] sm:$0xff] }
  0x82   : > { %v269_v11 = vld [vmem:[%s4193_s18 + $0x1c8] sm:$0xff] }
  0x83   : > { %2236 = vmatpush1.bf16.msra.mxu1 %v3735_v12  ;;  %v3124_v12 = vcombine.low %v245_v58, %v253_v59  ;;  %v3857_v58 = vld [vmem:[%s5083_s1 + $0x2d4] ss:$8 sps:$4 sm:$0xff]  }
  0x84   : > { %2528 = vmatpush1.bf16.msra.mxu0 %v3738_v13  ;;  %2237 = vmatprep.subr.bf16.mxu1 %v3743_v14  ;;  %v3132_v13 = vcombine.low %v249_v62, %v257_v63  ;;  %v265_v14 = vld [vmem:[%s4193_s18 + $0x1a8] sm:$0xff]  ;;  %v3860_v59 = vld [vmem:[%s5083_s1 + $0x6d4] ss:$8 sps:$4 sm:$0xff]  }
  0x85   : > { %2529 = vmatprep.subr.bf16.mxu0 %v3746_v15  ;;  %v273_v15 = vld [vmem:[%s4193_s18 + $0x1e8] sm:$0xff] }
  0x86   : > { %v3863_v62 = vld [vmem:[%s5083_s1 + $0x2e4] ss:$8 sps:$4 sm:$0xff]  }
  0x87   : > { %2238 = vmatpush1.bf16.msra.mxu1 %v3741_v16  ;;  %v3809_v16 = vld [vmem:[%s5083_s1 + $0x254] ss:$8 sps:$4 sm:$0xff]   ;;  %v3866_v63 = vld [vmem:[%s5083_s1 + $0x6e4] ss:$8 sps:$4 sm:$0xff]  }
  0x88   : > { %2530 = vmatpush1.bf16.msra.mxu0 %v3744_v17  ;;  %2239 = vmatprep.subr.bf16.mxu1 %v3749_v18  ;;  %v3812_v17 = vld [vmem:[%s5083_s1 + $0x654] ss:$8 sps:$4 sm:$0xff]   ;;  %v3141_v18 = vcombine.high %v261_v10, %v269_v11 }
  0x89   : > { %2531 = vmatprep.subr.bf16.mxu0 %v3752_v19  ;;  %v3149_v19 = vcombine.high %v265_v14, %v273_v15 }
  0x8b   : > { %2240 = vmatpush1.bf16.msra.mxu1 %v3747_v20  ;;  %v3807_v20 = vld [vmem:[%s5083_s1 + $0x250] ss:$8 sps:$4 sm:$0xff]  }
  0x8c   : > { %2532 = vmatpush1.bf16.msra.mxu0 %v3750_v21  ;;  %2241 = vmatprep.subr.bf16.mxu1 %v3755_v22  ;;  %v3810_v21 = vld [vmem:[%s5083_s1 + $0x650] ss:$8 sps:$4 sm:$0xff]   ;;  %v3815_v22 = vld [vmem:[%s5083_s1 + $0x264] ss:$8 sps:$4 sm:$0xff]  }
  0x8d   : > { %2533 = vmatprep.subr.bf16.mxu0 %v3758_v23  ;;  %v3818_v23 = vld [vmem:[%s5083_s1 + $0x664] ss:$8 sps:$4 sm:$0xff]  }
  0x8f   : > { %2242 = vmatpush1.bf16.msra.mxu1 %v3753_v24  ;;  %v3813_v24 = vld [vmem:[%s5083_s1 + $0x260] ss:$8 sps:$4 sm:$0xff]  }
  0x90   : > { %2534 = vmatpush1.bf16.msra.mxu0 %v3756_v25  ;;  %2243 = vmatprep.subr.bf16.mxu1 %v3761_v26  ;;  %v3816_v25 = vld [vmem:[%s5083_s1 + $0x660] ss:$8 sps:$4 sm:$0xff]   ;;  %v4580_v26 = vld [vmem:[%s4193_s18 + $0x10] sm:$0xff] }
  0x91   : > { %2535 = vmatprep.subr.bf16.mxu0 %v3764_v27  ;;  %v4583_v27 = vld [vmem:[%s4193_s18 + $0x50] sm:$0xff] }
  0x93   : > { %2244 = vmatpush1.bf16.msra.mxu1 %v3759_v28  ;;  %v3140_v28 = vcombine.low %v261_v10, %v269_v11  ;;  %v238_v11 = vld [vmem:[%s4193_s18 + $0xd0] sm:$0xff] }
  0x94   : > { %2536 = vmatpush1.bf16.msra.mxu0 %v3762_v29  ;;  %2245 = vmatprep.subr.bf16.mxu1 %v3767_v30  ;;  %v3148_v29 = vcombine.low %v265_v14, %v273_v15  ;;  %v4586_v30 = vld [vmem:[%s4193_s18 + $0x30] sm:$0xff]  ;;  %v3873_v14 = vld [vmem:[%s5083_s1 + $0x300] ss:$8 sps:$4 sm:$0xff]  }
  0x95   : > { %2537 = vmatprep.subr.bf16.mxu0 %v3770_v31  ;;  %v4589_v31 = vld [vmem:[%s4193_s18 + $0x70] sm:$0xff]  ;;  %v3876_v15 = vld [vmem:[%s5083_s1 + $0x700] ss:$8 sps:$4 sm:$0xff]  }
  0x96   : > { %v3102_v10 = vcombine.low %v4586_v30, %v4589_v31 }
  0x97   : > { %2246 = vmatpush1.bf16.msra.mxu1 %v3765_v32  ;;  %v3821_v32 = vld [vmem:[%s5083_s1 + $0x274] ss:$8 sps:$4 sm:$0xff]  }
  0x98   : > { %2538 = vmatpush1.bf16.msra.mxu0 %v3768_v33  ;;  %2247 = vmatprep.subr.bf16.mxu1 %v3773_v34  ;;  %v3824_v33 = vld [vmem:[%s5083_s1 + $0x674] ss:$8 sps:$4 sm:$0xff]   ;;  %v3095_v34 = vcombine.high %v4580_v26, %v4583_v27 }
  0x99   : > { %2539 = vmatprep.subr.bf16.mxu0 %v3776_v35  ;;  %v3103_v35 = vcombine.high %v4586_v30, %v4589_v31  ;;  %v3885_v30 = vld [vmem:[%s5083_s1 + $0x320] ss:$8 sps:$4 sm:$0xff]  }
  0x9a   : > { %v3888_v31 = vld [vmem:[%s5083_s1 + $0x720] ss:$8 sps:$4 sm:$0xff]  }
  0x9b   : > { %2248 = vmatpush1.bf16.msra.mxu1 %v3771_v36  ;;  %v3819_v36 = vld [vmem:[%s5083_s1 + $0x270] ss:$8 sps:$4 sm:$0xff]  }
  0x9c   : > { %2540 = vmatpush1.bf16.msra.mxu0 %v3774_v37  ;;  %2290 = vmatprep.subr.bf16.mxu1 %v3779_v38  ;;  %v3822_v37 = vld [vmem:[%s5083_s1 + $0x670] ss:$8 sps:$4 sm:$0xff]   ;;  %v3827_v38 = vld [vmem:[%s5083_s1 + $0x284] ss:$8 sps:$4 sm:$0xff]  }
  0x9d   : > { %2582 = vmatprep.subr.bf16.mxu0 %v3782_v39  ;;  %v3830_v39 = vld [vmem:[%s5083_s1 + $0x684] ss:$8 sps:$4 sm:$0xff]  }
  0x9e   : > { %2250 = vmatmul.mubr.bf16.vlgmr.msra.gmra.mrb[0].mxu1 %v3092_v43  ;;  %v3836_v43 = vld [vmem:[%s5083_s1 + $0x694] ss:$8 sps:$4 sm:$0xff]  }
  0x9f   : > { %2542 = vmatmul.mubr.bf16.vlgmr.msra.gmra.mrb[0].mxu0 %v3100_v44  ;;  %2291 = vmatpush1.bf16.msra.mxu1 %v3777_v40  ;;  %v3825_v40 = vld [vmem:[%s5083_s1 + $0x280] ss:$8 sps:$4 sm:$0xff]   ;;  %v3831_v44 = vld [vmem:[%s5083_s1 + $0x290] ss:$8 sps:$4 sm:$0xff]  }
  0xa0   : > { %2583 = vmatpush1.bf16.msra.mxu0 %v3780_v41  ;;  %2292 = vmatprep.subr.bf16.mxu1 %v3785_v48  ;;  %v3828_v41 = vld [vmem:[%s5083_s1 + $0x680] ss:$8 sps:$4 sm:$0xff]  }
  0xa1   : > { %2584 = vmatprep.subr.bf16.mxu0 %v3788_v49  ;;  %2259 = vmatprep.mubr.bf16.mxu1 %v3109_v50  ;;  %v3837_v48 = vld [vmem:[%s5083_s1 + $0x2a0] ss:$8 sps:$4 sm:$0xff]   ;;  %v3845_v50 = vld [vmem:[%s5083_s1 + $0x2b4] ss:$8 sps:$4 sm:$0xff]  }
  0xa2   : > { %2551 = vmatprep.mubr.bf16.mxu0 %v3117_v51  ;;  %v3840_v49 = vld [vmem:[%s5083_s1 + $0x6a0] ss:$8 sps:$4 sm:$0xff]   ;;  %v3848_v51 = vld [vmem:[%s5083_s1 + $0x6b4] ss:$8 sps:$4 sm:$0xff]  }
  0xa3   : > { %2293 = vmatpush1.bf16.msra.mxu1 %v3783_v52  ;;  %v3843_v52 = vld [vmem:[%s5083_s1 + $0x2b0] ss:$8 sps:$4 sm:$0xff]  }
  0xa4   : > { %2585 = vmatpush1.bf16.msra.mxu0 %v3786_v53  ;;  %2294 = vmatprep.subr.bf16.mxu1 %v3791_v54  ;;  %v3846_v53 = vld [vmem:[%s5083_s1 + $0x6b0] ss:$8 sps:$4 sm:$0xff]   ;;  %v3851_v54 = vld [vmem:[%s5083_s1 + $0x2c4] ss:$8 sps:$4 sm:$0xff]  }
  0xa5   : > { %2586 = vmatprep.subr.bf16.mxu0 %v3794_v55  ;;  %v3854_v55 = vld [vmem:[%s5083_s1 + $0x6c4] ss:$8 sps:$4 sm:$0xff]  }
  0xa6   : > { %2260 = vmatmul.mubr.bf16.gmra.mrb[4].mxu1 %v3108_v60  ;;  %v3855_v60 = vld [vmem:[%s5083_s1 + $0x2d0] ss:$8 sps:$4 sm:$0xff]  }
  0xa7   : > { %2552 = vmatmul.mubr.bf16.gmra.mrb[4].mxu0 %v3116_v61  ;;  %2295 = vmatpush1.bf16.msra.mxu1 %v3789_v56  ;;  %v3849_v56 = vld [vmem:[%s5083_s1 + $0x2c0] ss:$8 sps:$4 sm:$0xff]   ;;  %v3858_v61 = vld [vmem:[%s5083_s1 + $0x6d0] ss:$8 sps:$4 sm:$0xff]  }
  0xa8   : > { %2587 = vmatpush1.bf16.msra.mxu0 %v3792_v57  ;;  %2296 = vmatprep.subr.bf16.mxu1 %v3797_v0  ;;  %v3852_v57 = vld [vmem:[%s5083_s1 + $0x6c0] ss:$8 sps:$4 sm:$0xff]  }
  0xa9   : > { %2588 = vmatprep.subr.bf16.mxu0 %v3800_v1  ;;  %2269 = vmatprep.mubr.bf16.mxu1 %v3125_v2  ;;  %v3861_v0 = vld [vmem:[%s5083_s1 + $0x2e0] ss:$8 sps:$4 sm:$0xff]   ;;  %v3869_v2 = vld [vmem:[%s5083_s1 + $0x2f4] ss:$8 sps:$4 sm:$0xff]  }
  0xaa   : > { %2561 = vmatprep.mubr.bf16.mxu0 %v3133_v3  ;;  %v3864_v1 = vld [vmem:[%s5083_s1 + $0x6e0] ss:$8 sps:$4 sm:$0xff]   ;;  %v3872_v3 = vld [vmem:[%s5083_s1 + $0x6f4] ss:$8 sps:$4 sm:$0xff]  }
  0xab   : > { %2297 = vmatpush1.bf16.msra.mxu1 %v3795_v4  ;;  %v3867_v4 = vld [vmem:[%s5083_s1 + $0x2f0] ss:$8 sps:$4 sm:$0xff]  }
  0xac   : > { %2589 = vmatpush1.bf16.msra.mxu0 %v3798_v5  ;;  %2298 = vmatprep.subr.bf16.mxu1 %v3803_v6  ;;  %v3870_v5 = vld [vmem:[%s5083_s1 + $0x6f0] ss:$8 sps:$4 sm:$0xff]   ;;  %v3875_v6 = vld [vmem:[%s5083_s1 + $0x304] ss:$8 sps:$4 sm:$0xff]  }
  0xad   : > { %2590 = vmatprep.subr.bf16.mxu0 %v3806_v7  ;;  %v3878_v7 = vld [vmem:[%s5083_s1 + $0x704] ss:$8 sps:$4 sm:$0xff]  }
  0xae   : > { %2270 = vmatmul.mubr.bf16.gmra.mrb[8].mxu1 %v3124_v12  ;;  %v234_v12 = vld [vmem:[%s4193_s18 + $0xb0] sm:$0xff] }
  0xaf   : > { %2562 = vmatmul.mubr.bf16.gmra.mrb[8].mxu0 %v3132_v13  ;;  %2299 = vmatpush1.bf16.msra.mxu1 %v3801_v8  ;;  %v230_v8 = vld [vmem:[%s4193_s18 + $0x90] sm:$0xff] }
  0xb0   : > { %2591 = vmatpush1.bf16.msra.mxu0 %v3804_v9  ;;  %2300 = vmatprep.subr.bf16.mxu1 %v3809_v16  ;;  %v3094_v9 = vcombine.low %v4580_v26, %v4583_v27  ;;  %v242_v13 = vld [vmem:[%s4193_s18 + $0xf0] sm:$0xff] }
  0xb1   : > { %2592 = vmatprep.subr.bf16.mxu0 %v3812_v17  ;;  %2279 = vmatprep.mubr.bf16.mxu1 %v3141_v18  ;;  %v3881_v16 = vld [vmem:[%s5083_s1 + $0x314] ss:$8 sps:$4 sm:$0xff]   ;;  %v3111_v18 = vcombine.high %v230_v8, %v238_v11  ;;  %v3118_v26 = vcombine.low %v234_v12, %v242_v13 }
  0xb2   : > { %2571 = vmatprep.mubr.bf16.mxu0 %v3149_v19  ;;  %v3884_v17 = vld [vmem:[%s5083_s1 + $0x714] ss:$8 sps:$4 sm:$0xff]   ;;  %v3119_v19 = vcombine.high %v234_v12, %v242_v13  ;;  %v3927_v12 = vld [vmem:[%s5083_s1 + $0x390] ss:$8 sps:$4 sm:$0xff]  }
  0xb3   : > { %2301 = vmatpush1.bf16.msra.mxu1 %v3807_v20  ;;  %v3879_v20 = vld [vmem:[%s5083_s1 + $0x310] ss:$8 sps:$4 sm:$0xff]  }
  0xb4   : > { %2593 = vmatpush1.bf16.msra.mxu0 %v3810_v21  ;;  %2302 = vmatprep.subr.bf16.mxu1 %v3815_v22  ;;  %v3882_v21 = vld [vmem:[%s5083_s1 + $0x710] ss:$8 sps:$4 sm:$0xff]   ;;  %v3887_v22 = vld [vmem:[%s5083_s1 + $0x324] ss:$8 sps:$4 sm:$0xff]  }
  0xb5   : > { %2594 = vmatprep.subr.bf16.mxu0 %v3818_v23  ;;  %v3890_v23 = vld [vmem:[%s5083_s1 + $0x724] ss:$8 sps:$4 sm:$0xff]   ;;  %v254_v27 = vld [vmem:[%s4193_s18 + $0x150] sm:$0xff] }
  0xb6   : > { %2280 = vmatmul.mubr.bf16.gmra.mrb[12].mxu1 %v3140_v28  ;;  %v250_v28 = vld [vmem:[%s4193_s18 + $0x130] sm:$0xff] }
  0xb7   : > { %2572 = vmatmul.mubr.bf16.gmra.mrb[12].mxu0 %v3148_v29  ;;  %2303 = vmatpush1.bf16.msra.mxu1 %v3813_v24  ;;  %v246_v24 = vld [vmem:[%s4193_s18 + $0x110] sm:$0xff] }
  0xb8   : > { %2595 = vmatpush1.bf16.msra.mxu0 %v3816_v25  ;;  %2304 = vmatprep.subr.bf16.mxu1 %v3821_v32  ;;  %v3110_v25 = vcombine.low %v230_v8, %v238_v11  ;;  %v258_v29 = vld [vmem:[%s4193_s18 + $0x170] sm:$0xff]  ;;  %v3921_v8 = vld [vmem:[%s5083_s1 + $0x380] ss:$8 sps:$4 sm:$0xff]  }
  0xb9   : > { %2596 = vmatprep.subr.bf16.mxu0 %v3824_v33  ;;  %2322 = vmatprep.mubr.bf16.mxu1 %v3095_v34  ;;  %v3893_v32 = vld [vmem:[%s5083_s1 + $0x334] ss:$8 sps:$4 sm:$0xff]   ;;  %v3127_v34 = vcombine.high %v246_v24, %v254_v27  ;;  %v3930_v13 = vld [vmem:[%s5083_s1 + $0x790] ss:$8 sps:$4 sm:$0xff]  }
  0xba   : > { %2614 = vmatprep.mubr.bf16.mxu0 %v3103_v35  ;;  %v3896_v33 = vld [vmem:[%s5083_s1 + $0x734] ss:$8 sps:$4 sm:$0xff]   ;;  %v3135_v35 = vcombine.high %v250_v28, %v258_v29 }
  0xbb   : > { %2305 = vmatpush1.bf16.msra.mxu1 %v3819_v36  ;;  %v3891_v36 = vld [vmem:[%s5083_s1 + $0x330] ss:$8 sps:$4 sm:$0xff]   ;;  %v3932_v11 = vld [vmem:[%s5083_s1 + $0x794] ss:$8 sps:$4 sm:$0xff]  }
  0xbc   : > { %2597 = vmatpush1.bf16.msra.mxu0 %v3822_v37  ;;  %2306 = vmatprep.subr.bf16.mxu1 %v3827_v38  ;;  %v3894_v37 = vld [vmem:[%s5083_s1 + $0x730] ss:$8 sps:$4 sm:$0xff]   ;;  %v3899_v38 = vld [vmem:[%s5083_s1 + $0x344] ss:$8 sps:$4 sm:$0xff]  }
  0xbd   : > { %2598 = vmatprep.subr.bf16.mxu0 %v3830_v39  ;;  %v3902_v39 = vld [vmem:[%s5083_s1 + $0x744] ss:$8 sps:$4 sm:$0xff]  }
  0xbf   : > { %2307 = vmatpush1.bf16.msra.mxu1 %v3825_v40  ;;  %v262_v40 = vld [vmem:[%s4193_s18 + $0x190] sm:$0xff] }
  0xc0   : > { %2599 = vmatpush1.bf16.msra.mxu0 %v3828_v41  ;;  %2308 = vmatprep.subr.bf16.mxu1 %v3833_v42  ;;  %v3126_v41 = vcombine.low %v246_v24, %v254_v27  ;;  %v3134_v42 = vcombine.low %v250_v28, %v258_v29  ;;  %v3945_v24 = vld [vmem:[%s5083_s1 + $0x3c0] ss:$8 sps:$4 sm:$0xff]   ;;  %v3956_v27 = vld [vmem:[%s5083_s1 + $0x7d4] ss:$8 sps:$4 sm:$0xff]   ;;  %v3951_v28 = vld [vmem:[%s5083_s1 + $0x3d0] ss:$8 sps:$4 sm:$0xff]  }
  0xc1   : > { %2600 = vmatprep.subr.bf16.mxu0 %v3836_v43  ;;  %v270_v43 = vld [vmem:[%s4193_s18 + $0x1d0] sm:$0xff] }
  0xc2   : > { %v3954_v29 = vld [vmem:[%s5083_s1 + $0x7d0] ss:$8 sps:$4 sm:$0xff]  }
  0xc3   : > { %2309 = vmatpush1.bf16.msra.mxu1 %v3831_v44  ;;  %v266_v44 = vld [vmem:[%s4193_s18 + $0x1b0] sm:$0xff] }
  0xc4   : > { %2601 = vmatpush1.bf16.msra.mxu0 %v3834_v45  ;;  %2310 = vmatprep.subr.bf16.mxu1 %v3839_v46  ;;  %v274_v45 = vld [vmem:[%s4193_s18 + $0x1f0] sm:$0xff]  ;;  %v3897_v46 = vld [vmem:[%s5083_s1 + $0x340] ss:$8 sps:$4 sm:$0xff]  }
  0xc5   : > { %2602 = vmatprep.subr.bf16.mxu0 %v3842_v47  ;;  %v3900_v47 = vld [vmem:[%s5083_s1 + $0x740] ss:$8 sps:$4 sm:$0xff]  }
  0xc7   : > { %2311 = vmatpush1.bf16.msra.mxu1 %v3837_v48  ;;  %v3905_v48 = vld [vmem:[%s5083_s1 + $0x354] ss:$8 sps:$4 sm:$0xff]  }
  0xc8   : > { %2603 = vmatpush1.bf16.msra.mxu0 %v3840_v49  ;;  %2312 = vmatprep.subr.bf16.mxu1 %v3845_v50  ;;  %v3908_v49 = vld [vmem:[%s5083_s1 + $0x754] ss:$8 sps:$4 sm:$0xff]   ;;  %v3143_v50 = vcombine.high %v262_v40, %v270_v43 }
  0xc9   : > { %2604 = vmatprep.subr.bf16.mxu0 %v3848_v51  ;;  %v3151_v51 = vcombine.high %v266_v44, %v274_v45 }
  0xcb   : > { %2313 = vmatpush1.bf16.msra.mxu1 %v3843_v52  ;;  %v3903_v52 = vld [vmem:[%s5083_s1 + $0x350] ss:$8 sps:$4 sm:$0xff]  }
  0xcc   : > { %2605 = vmatpush1.bf16.msra.mxu0 %v3846_v53  ;;  %2314 = vmatprep.subr.bf16.mxu1 %v3851_v54  ;;  %v3906_v53 = vld [vmem:[%s5083_s1 + $0x750] ss:$8 sps:$4 sm:$0xff]   ;;  %v3911_v54 = vld [vmem:[%s5083_s1 + $0x364] ss:$8 sps:$4 sm:$0xff]  }
  0xcd   : > { %2606 = vmatprep.subr.bf16.mxu0 %v3854_v55  ;;  %v3914_v55 = vld [vmem:[%s5083_s1 + $0x764] ss:$8 sps:$4 sm:$0xff]  }
  0xcf   : > { %2315 = vmatpush1.bf16.msra.mxu1 %v3849_v56  ;;  %v4798_v56 = vld [vmem:[%s4193_s18 + $0x18] sm:$0xff] }
  0xd0   : > { %2607 = vmatpush1.bf16.msra.mxu0 %v3852_v57  ;;  %2316 = vmatprep.subr.bf16.mxu1 %v3857_v58  ;;  %v3142_v57 = vcombine.low %v262_v40, %v270_v43  ;;  %v3150_v58 = vcombine.low %v266_v44, %v274_v45  ;;  %v235_v40 = vld [vmem:[%s4193_s18 + $0xb8] sm:$0xff] }
  0xd1   : > { %2608 = vmatprep.subr.bf16.mxu0 %v3860_v59  ;;  %v4801_v59 = vld [vmem:[%s4193_s18 + $0x58] sm:$0xff] }
  0xd3   : > { %2317 = vmatpush1.bf16.msra.mxu1 %v3855_v60  ;;  %v4804_v60 = vld [vmem:[%s4193_s18 + $0x38] sm:$0xff] }
  0xd4   : > { %2609 = vmatpush1.bf16.msra.mxu0 %v3858_v61  ;;  %2318 = vmatprep.subr.bf16.mxu1 %v3863_v62  ;;  %v4807_v61 = vld [vmem:[%s4193_s18 + $0x78] sm:$0xff]  ;;  %v3909_v62 = vld [vmem:[%s5083_s1 + $0x360] ss:$8 sps:$4 sm:$0xff]  }
  0xd5   : > { %2610 = vmatprep.subr.bf16.mxu0 %v3866_v63  ;;  %v3912_v63 = vld [vmem:[%s5083_s1 + $0x760] ss:$8 sps:$4 sm:$0xff]   ;;  %v3104_v43 = vcombine.low %v4804_v60, %v4807_v61 }
  0xd7   : > { %2319 = vmatpush1.bf16.msra.mxu1 %v3861_v0  ;;  %v3917_v0 = vld [vmem:[%s5083_s1 + $0x374] ss:$8 sps:$4 sm:$0xff]  }
  0xd8   : > { %2611 = vmatpush1.bf16.msra.mxu0 %v3864_v1  ;;  %2320 = vmatprep.subr.bf16.mxu1 %v3869_v2  ;;  %v3920_v1 = vld [vmem:[%s5083_s1 + $0x774] ss:$8 sps:$4 sm:$0xff]   ;;  %v3097_v2 = vcombine.high %v4798_v56, %v4801_v59 }
  0xd9   : > { %2612 = vmatprep.subr.bf16.mxu0 %v3872_v3  ;;  %v3105_v3 = vcombine.high %v4804_v60, %v4807_v61 }
  0xdb   : > { %2321 = vmatpush1.bf16.msra.mxu1 %v3867_v4  ;;  %v3915_v4 = vld [vmem:[%s5083_s1 + $0x370] ss:$8 sps:$4 sm:$0xff]  }
  0xdc   : > { %2613 = vmatpush1.bf16.msra.mxu0 %v3870_v5  ;;  %2363 = vmatprep.subr.bf16.mxu1 %v3875_v6  ;;  %v3918_v5 = vld [vmem:[%s5083_s1 + $0x770] ss:$8 sps:$4 sm:$0xff]   ;;  %v3923_v6 = vld [vmem:[%s5083_s1 + $0x384] ss:$8 sps:$4 sm:$0xff]  }
  0xdd   : > { %2655 = vmatprep.subr.bf16.mxu0 %v3878_v7  ;;  %v3926_v7 = vld [vmem:[%s5083_s1 + $0x784] ss:$8 sps:$4 sm:$0xff]  }
  0xde   : > { %2323 = vmatmul.mubr.bf16.vlgmr.msra.gmra.mrb[0].mxu1 %v3094_v9  ;;  %v3924_v9 = vld [vmem:[%s5083_s1 + $0x780] ss:$8 sps:$4 sm:$0xff]  }
  0xdf   : > { %2615 = vmatmul.mubr.bf16.vlgmr.msra.gmra.mrb[0].mxu0 %v3102_v10  ;;  %2364 = vmatpush1.bf16.msra.mxu1 %v3873_v14  ;;  %v3929_v10 = vld [vmem:[%s5083_s1 + $0x394] ss:$8 sps:$4 sm:$0xff]   ;;  %v3935_v14 = vld [vmem:[%s5083_s1 + $0x3a4] ss:$8 sps:$4 sm:$0xff]  }
  0xe0   : > { %2656 = vmatpush1.bf16.msra.mxu0 %v3876_v15  ;;  %2365 = vmatprep.subr.bf16.mxu1 %v3881_v16  ;;  %v3938_v15 = vld [vmem:[%s5083_s1 + $0x7a4] ss:$8 sps:$4 sm:$0xff]   ;;  %v3933_v16 = vld [vmem:[%s5083_s1 + $0x3a0] ss:$8 sps:$4 sm:$0xff]  }
  0xe1   : > { %2657 = vmatprep.subr.bf16.mxu0 %v3884_v17  ;;  %2332 = vmatprep.mubr.bf16.mxu1 %v3111_v18  ;;  %v3936_v17 = vld [vmem:[%s5083_s1 + $0x7a0] ss:$8 sps:$4 sm:$0xff]   ;;  %v3941_v18 = vld [vmem:[%s5083_s1 + $0x3b4] ss:$8 sps:$4 sm:$0xff]  }
  0xe2   : > { %2624 = vmatprep.mubr.bf16.mxu0 %v3119_v19  ;;  %v3944_v19 = vld [vmem:[%s5083_s1 + $0x7b4] ss:$8 sps:$4 sm:$0xff]  }
  0xe3   : > { %2366 = vmatpush1.bf16.msra.mxu1 %v3879_v20  ;;  %v3939_v20 = vld [vmem:[%s5083_s1 + $0x3b0] ss:$8 sps:$4 sm:$0xff]  }
  0xe4   : > { %2658 = vmatpush1.bf16.msra.mxu0 %v3882_v21  ;;  %2367 = vmatprep.subr.bf16.mxu1 %v3887_v22  ;;  %v3942_v21 = vld [vmem:[%s5083_s1 + $0x7b0] ss:$8 sps:$4 sm:$0xff]   ;;  %v3947_v22 = vld [vmem:[%s5083_s1 + $0x3c4] ss:$8 sps:$4 sm:$0xff]  }
  0xe5   : > { %2659 = vmatprep.subr.bf16.mxu0 %v3890_v23  ;;  %v3950_v23 = vld [vmem:[%s5083_s1 + $0x7c4] ss:$8 sps:$4 sm:$0xff]  }
  0xe6   : > { %2333 = vmatmul.mubr.bf16.gmra.mrb[4].mxu1 %v3110_v25  ;;  %v3948_v25 = vld [vmem:[%s5083_s1 + $0x7c0] ss:$8 sps:$4 sm:$0xff]  }
  0xe7   : > { %2625 = vmatmul.mubr.bf16.gmra.mrb[4].mxu0 %v3118_v26  ;;  %2368 = vmatpush1.bf16.msra.mxu1 %v3885_v30  ;;  %v3953_v26 = vld [vmem:[%s5083_s1 + $0x3d4] ss:$8 sps:$4 sm:$0xff]   ;;  %v3959_v30 = vld [vmem:[%s5083_s1 + $0x3e4] ss:$8 sps:$4 sm:$0xff]  }
  0xe8   : > { %2660 = vmatpush1.bf16.msra.mxu0 %v3888_v31  ;;  %2369 = vmatprep.subr.bf16.mxu1 %v3893_v32  ;;  %v3962_v31 = vld [vmem:[%s5083_s1 + $0x7e4] ss:$8 sps:$4 sm:$0xff]   ;;  %v3957_v32 = vld [vmem:[%s5083_s1 + $0x3e0] ss:$8 sps:$4 sm:$0xff]  }
  0xe9   : > { %2661 = vmatprep.subr.bf16.mxu0 %v3896_v33  ;;  %2342 = vmatprep.mubr.bf16.mxu1 %v3127_v34  ;;  %v3960_v33 = vld [vmem:[%s5083_s1 + $0x7e0] ss:$8 sps:$4 sm:$0xff]   ;;  %v3965_v34 = vld [vmem:[%s5083_s1 + $0x3f4] ss:$8 sps:$4 sm:$0xff]  }
  0xea   : > { %2634 = vmatprep.mubr.bf16.mxu0 %v3135_v35  ;;  %v3968_v35 = vld [vmem:[%s5083_s1 + $0x7f4] ss:$8 sps:$4 sm:$0xff]  }
  0xeb   : > { %2370 = vmatpush1.bf16.msra.mxu1 %v3891_v36  ;;  %v3963_v36 = vld [vmem:[%s5083_s1 + $0x3f0] ss:$8 sps:$4 sm:$0xff]  }
  0xec   : > { %2662 = vmatpush1.bf16.msra.mxu0 %v3894_v37  ;;  %2371 = vmatprep.subr.bf16.mxu1 %v3899_v38  ;;  %v3966_v37 = vld [vmem:[%s5083_s1 + $0x7f0] ss:$8 sps:$4 sm:$0xff]  }
  0xed   : > { %2663 = vmatprep.subr.bf16.mxu0 %v3902_v39  ;;  %v231_v38 = vld [vmem:[%s4193_s18 + $0x98] sm:$0xff] }
  0xee   : > { %2343 = vmatmul.mubr.bf16.gmra.mrb[8].mxu1 %v3126_v41  ;;  %v239_v39 = vld [vmem:[%s4193_s18 + $0xd8] sm:$0xff] }
  0xef   : > { %2635 = vmatmul.mubr.bf16.gmra.mrb[8].mxu0 %v3134_v42  ;;  %2372 = vmatpush1.bf16.msra.mxu1 %v3897_v46  ;;  %v243_v41 = vld [vmem:[%s4193_s18 + $0xf8] sm:$0xff]  ;;  %v3096_v42 = vcombine.low %v4798_v56, %v4801_v59  ;;  %v3113_v44 = vcombine.high %v231_v38, %v239_v39 }
  0xf0   : > { %2664 = vmatpush1.bf16.msra.mxu0 %v3900_v47  ;;  %2373 = vmatprep.subr.bf16.mxu1 %v3905_v48  ;;  %v3121_v45 = vcombine.high %v235_v40, %v243_v41  ;;  %v247_v46 = vld [vmem:[%s4193_s18 + $0x118] sm:$0xff] }
  0xf1   : > { %2665 = vmatprep.subr.bf16.mxu0 %v3908_v49  ;;  %2352 = vmatprep.mubr.bf16.mxu1 %v3143_v50  ;;  %v255_v47 = vld [vmem:[%s4193_s18 + $0x158] sm:$0xff]  ;;  %v3112_v50 = vcombine.low %v231_v38, %v239_v39 }
  0xf2   : > { %2644 = vmatprep.mubr.bf16.mxu0 %v3151_v51  ;;  %v251_v48 = vld [vmem:[%s4193_s18 + $0x138] sm:$0xff]  ;;  %v3120_v51 = vcombine.low %v235_v40, %v243_v41 }
  0xf3   : > { %2374 = vmatpush1.bf16.msra.mxu1 %v3903_v52  ;;  %v259_v49 = vld [vmem:[%s4193_s18 + $0x178] sm:$0xff]  ;;  %v3129_v52 = vcombine.high %v247_v46, %v255_v47 }
  0xf4   : > { %2666 = vmatpush1.bf16.msra.mxu0 %v3906_v53  ;;  %2375 = vmatprep.subr.bf16.mxu1 %v3911_v54  ;;  %v3137_v53 = vcombine.high %v251_v48, %v259_v49  ;;  %v263_v54 = vld [vmem:[%s4193_s18 + $0x198] sm:$0xff]  ;;  %v3136_v59 = vcombine.low %v251_v48, %v259_v49 }
  0xf5   : > { %2667 = vmatprep.subr.bf16.mxu0 %v3914_v55  ;;  %v271_v55 = vld [vmem:[%s4193_s18 + $0x1d8] sm:$0xff] }
  0xf6   : > { %2353 = vmatmul.mubr.bf16.gmra.mrb[12].mxu1 %v3142_v57  ;;  %v267_v56 = vld [vmem:[%s4193_s18 + $0x1b8] sm:$0xff]  ;;  %v3145_v60 = vcombine.high %v263_v54, %v271_v55 }
  0xf7   : > { %2645 = vmatmul.mubr.bf16.gmra.mrb[12].mxu0 %v3150_v58  ;;  %2376 = vmatpush1.bf16.msra.mxu1 %v3909_v62  ;;  %v275_v57 = vld [vmem:[%s4193_s18 + $0x1f8] sm:$0xff]  ;;  %v3128_v58 = vcombine.low %v247_v46, %v255_v47  ;;  %v3144_v62 = vcombine.low %v263_v54, %v271_v55 }
  0xf8   : > { %2668 = vmatpush1.bf16.msra.mxu0 %v3912_v63  ;;  %2377 = vmatprep.subr.bf16.mxu1 %v3917_v0  ;;  %v3153_v61 = vcombine.high %v267_v56, %v275_v57  ;;  %v3152_v63 = vcombine.low %v267_v56, %v275_v57  ;;  %v534_v0 = vlaneseq }
  0xf9   : > { %2669 = vmatprep.subr.bf16.mxu0 %v3920_v1  ;;  %2395 = vmatprep.mubr.bf16.mxu1 %v3097_v2 }
  0xfa   : > { %2687 = vmatprep.mubr.bf16.mxu0 %v3105_v3  ;;  %v4943_v1 = vshrl.u32 %v534_v0, 7  ;;  %v532_v3 = vld [vmem:[%s5084_s2] sm:$0x3] }
  0xfb   : > { %2378 = vmatpush1.bf16.msra.mxu1 %v3915_v4 }
  0xfc   : > { %2670 = vmatpush1.bf16.msra.mxu0 %v3918_v5  ;;  %2379 = vmatprep.subr.bf16.mxu1 %v3923_v6  ;;  %v536_v2 = vsub.s32 0, %v4943_v1  ;;  %v540_v4 = vsub.s32 1, %v4943_v1 }
  0xfd   : > { %2671 = vmatprep.subr.bf16.mxu0 %v3926_v7 }
  0xfe   : > { %v4950_v5 = vrot.slane %v532_v3, %v536_v2  ;;  %v4952_v6 = vrot.slane %v532_v3, %v540_v4 }
  0xff   : > { %2380 = vmatpush1.bf16.msra.mxu1 %v3921_v8 }
 0x100   : > { %2672 = vmatpush1.bf16.msra.mxu0 %v3924_v9  ;;  %2381 = vmatprep.subr.bf16.mxu1 %v3929_v10 }
 0x101   : > { %2673 = vmatprep.subr.bf16.mxu0 %v3932_v11 }
 0x103   : > { %2382 = vmatpush1.bf16.msra.mxu1 %v3927_v12 }
 0x104   : > { %2674 = vmatpush1.bf16.msra.mxu0 %v3930_v13  ;;  %2383 = vmatprep.subr.bf16.mxu1 %v3935_v14 }
 0x105   : > { %2675 = vmatprep.subr.bf16.mxu0 %v3938_v15 }
 0x107   : > { %2384 = vmatpush1.bf16.msra.mxu1 %v3933_v16 }
 0x108   : > { %2676 = vmatpush1.bf16.msra.mxu0 %v3936_v17  ;;  %2385 = vmatprep.subr.bf16.mxu1 %v3941_v18 }
 0x109   : > { %2677 = vmatprep.subr.bf16.mxu0 %v3944_v19 }
 0x10b   : > { %2386 = vmatpush1.bf16.msra.mxu1 %v3939_v20 }
 0x10c   : > { %2678 = vmatpush1.bf16.msra.mxu0 %v3942_v21  ;;  %2387 = vmatprep.subr.bf16.mxu1 %v3947_v22 }
 0x10d   : > { %2679 = vmatprep.subr.bf16.mxu0 %v3950_v23 }
 0x10f   : > { %2388 = vmatpush1.bf16.msra.mxu1 %v3945_v24 }
 0x110   : > { %2680 = vmatpush1.bf16.msra.mxu0 %v3948_v25  ;;  %2389 = vmatprep.subr.bf16.mxu1 %v3953_v26 }
 0x111   : > { %2681 = vmatprep.subr.bf16.mxu0 %v3956_v27 }
 0x113   : > { %2390 = vmatpush1.bf16.msra.mxu1 %v3951_v28 }
 0x114   : > { %2682 = vmatpush1.bf16.msra.mxu0 %v3954_v29  ;;  %2391 = vmatprep.subr.bf16.mxu1 %v3959_v30 }
 0x115   : > { %2683 = vmatprep.subr.bf16.mxu0 %v3962_v31 }
 0x117   : > { %2392 = vmatpush1.bf16.msra.mxu1 %v3957_v32 }
 0x118   : > { %2684 = vmatpush1.bf16.msra.mxu0 %v3960_v33  ;;  %2393 = vmatprep.subr.bf16.mxu1 %v3965_v34 }
 0x119   : > { %2685 = vmatprep.subr.bf16.mxu0 %v3968_v35 }
 0x11b   : > { %2394 = vmatpush1.bf16.msra.mxu1 %v3963_v36 }
 0x11c   : > { %2686 = vmatpush1.bf16.msra.mxu0 %v3966_v37 }
 0x11e   : > { %2396 = vmatmul.mubr.bf16.vlgmr.msra.gmra.mrb[0].mxu1 %v3096_v42 }
 0x11f   : > { %2688 = vmatmul.mubr.bf16.vlgmr.msra.gmra.mrb[0].mxu0 %v3104_v43  ;;  %2405 = vmatprep.mubr.bf16.mxu1 %v3113_v44 }
 0x120   : > { %2697 = vmatprep.mubr.bf16.mxu0 %v3121_v45 }
 0x126   : > { %2406 = vmatmul.mubr.bf16.gmra.mrb[4].mxu1 %v3112_v50 }
 0x127   : > { %2698 = vmatmul.mubr.bf16.gmra.mrb[4].mxu0 %v3120_v51  ;;  %2415 = vmatprep.mubr.bf16.mxu1 %v3129_v52 }
 0x128   : > { %2707 = vmatprep.mubr.bf16.mxu0 %v3137_v53 }
 0x12e   : > { %2416 = vmatmul.mubr.bf16.gmra.mrb[8].mxu1 %v3128_v58 }
 0x12f   : > { %2708 = vmatmul.mubr.bf16.gmra.mrb[8].mxu0 %v3136_v59  ;;  %2425 = vmatprep.mubr.bf16.mxu1 %v3145_v60 }
 0x130   : > { %2717 = vmatprep.mubr.bf16.mxu0 %v3153_v61 }
 0x136   : > { %2426 = vmatmul.mubr.bf16.gmra.mrb[12].mxu1 %v3144_v62 }
 0x137   : > { %2718 = vmatmul.mubr.bf16.gmra.mrb[12].mxu0 %v3152_v63 }
 0x1f1   : > { %v2397_v7 = vpop.f32.mrb[0].mxu1 }
 0x1f2   : > { %v2689_v8 = vpop.f32.mrb[0].mxu0  ;;  %v3431_v9 = vadd.f32 %v2397_v7, %v4950_v5  ;;  %v2399_v10 = vpop.f32.mrb[1].mxu1 }
 0x1f3   : > { %v2691_v11 = vpop.f32.mrb[1].mxu0  ;;  %v3433_v12 = vadd.f32 %v2399_v10, %v4952_v6  ;;  %v2401_v13 = vpop.f32.mrb[2].mxu1 }
 0x1f4   : > { %v2693_v14 = vpop.f32.mrb[2].mxu0  ;;  %v4956_v15 = vadd.f32 %v3431_v9, %v2689_v8  ;;  %v3435_v16 = vadd.f32 %v2401_v13, %v4950_v5  ;;  %v2403_v17 = vpop.f32.mrb[3].mxu1 }
 0x1f5   : > { %v2695_v18 = vpop.f32.mrb[3].mxu0  ;;  %v4959_v19 = vadd.f32 %v3433_v12, %v2691_v11  ;;  %v3437_v20 = vadd.f32 %v2403_v17, %v4952_v6 }
 0x1f6   : > { %v2788_v21 = vmul.f32 %v4956_v15, %v4956_v15  ;;  %v4964_v22 = vadd.f32 %v3435_v16, %v2693_v14 }
 0x1f7   : > { %v2761_v23 = vadd.f32 %v4959_v19, %v4956_v15  ;;  %v2789_v24 = vmul.f32 %v4959_v19, %v4959_v19  ;;  %v4970_v25 = vadd.f32 %v3437_v20, %v2695_v18 }
 0x1f8   : > { %v2790_v26 = vmul.f32 %v4964_v22, %v4964_v22 }
 0x1f9   : > { %v2804_v27 = vadd.f32 %v2789_v24, %v2788_v21  ;;  %v2762_v28 = vadd.f32 %v4964_v22, %v2761_v23  ;;  %v2407_v29 = vpop.f32.mrb[4].mxu1  ;;  %v2791_v36 = vmul.f32 %v4970_v25, %v4970_v25  ;;  %v2735_v21 = vadd.s32 48, %v4943_v1 }
 0x1fa   : > { %v2699_v30 = vpop.f32.mrb[4].mxu0  ;;  %v3439_v31 = vadd.f32 %v2407_v29, %v4950_v5  ;;  %v2409_v32 = vpop.f32.mrb[5].mxu1 }
 0x1fb   : > { %v2701_v33 = vpop.f32.mrb[5].mxu0  ;;  %v2805_v34 = vadd.f32 %v2804_v27, %v2790_v26  ;;  %v2763_v35 = vadd.f32 %v4970_v25, %v2762_v28  ;;  %v3441_v37 = vadd.f32 %v2409_v32, %v4952_v6  ;;  %v2411_v38 = vpop.f32.mrb[6].mxu1  ;;  %vm2743_vm0 = vcmp.lt.s32.totalorder %v2735_v21, 49 }
 0x1fc   : > { %v2703_v39 = vpop.f32.mrb[6].mxu0  ;;  %v4980_v40 = vadd.f32 %v3439_v31, %v2699_v30  ;;  %v3443_v41 = vadd.f32 %v2411_v38, %v4950_v5  ;;  %v2413_v42 = vpop.f32.mrb[7].mxu1 }
 0x1fd   : > { %v2705_v43 = vpop.f32.mrb[7].mxu0  ;;  %v2806_v44 = vadd.f32 %v2805_v34, %v2791_v36  ;;  %v4983_v45 = vadd.f32 %v3441_v37, %v2701_v33  ;;  %v3445_v46 = vadd.f32 %v2413_v42, %v4952_v6 }
 0x1fe   : > { %v2764_v47 = vadd.f32 %v4980_v40, %v2763_v35  ;;  %v2792_v48 = vmul.f32 %v4980_v40, %v4980_v40  ;;  %v4989_v49 = vadd.f32 %v3443_v41, %v2703_v39 }
 0x1ff   : > { %v2793_v50 = vmul.f32 %v4983_v45, %v4983_v45  ;;  %v4993_v51 = vadd.f32 %v3445_v46, %v2705_v43 }
 0x200   : > { %v2807_v52 = vadd.f32 %v2806_v44, %v2792_v48  ;;  %v2765_v53 = vadd.f32 %v4983_v45, %v2764_v47  ;;  %v2794_v58 = vmul.f32 %v4989_v49, %v4989_v49 }
 0x201   : > { %v2417_v54 = vpop.f32.mrb[8].mxu1  ;;  %v2795_v62 = vmul.f32 %v4993_v51, %v4993_v51 }
 0x202   : > { %v2709_v55 = vpop.f32.mrb[8].mxu0  ;;  %v2808_v56 = vadd.f32 %v2807_v52, %v2793_v50  ;;  %v2766_v57 = vadd.f32 %v4989_v49, %v2765_v53  ;;  %v3447_v59 = vadd.f32 %v2417_v54, %v4950_v5  ;;  %v2419_v60 = vpop.f32.mrb[9].mxu1 }
 0x203   : > { %v2711_v61 = vpop.f32.mrb[9].mxu0  ;;  %v3449_v63 = vadd.f32 %v2419_v60, %v4952_v6  ;;  %v2421_v0 = vpop.f32.mrb[10].mxu1 }
 0x204   : > { %v2713_v2 = vpop.f32.mrb[10].mxu0  ;;  %v2809_v3 = vadd.f32 %v2808_v56, %v2794_v58  ;;  %v2767_v4 = vadd.f32 %v4993_v51, %v2766_v57  ;;  %v5004_v7 = vadd.f32 %v3447_v59, %v2709_v55  ;;  %v3451_v8 = vadd.f32 %v2421_v0, %v4950_v5  ;;  %v2423_v9 = vpop.f32.mrb[11].mxu1 }
 0x205   : > { %v2715_v10 = vpop.f32.mrb[11].mxu0  ;;  %v5007_v11 = vadd.f32 %v3449_v63, %v2711_v61  ;;  %v3453_v12 = vadd.f32 %v2423_v9, %v4952_v6 }
 0x206   : > { %v2810_v13 = vadd.f32 %v2809_v3, %v2795_v62  ;;  %v2768_v14 = vadd.f32 %v5004_v7, %v2767_v4  ;;  %v2796_v16 = vmul.f32 %v5004_v7, %v5004_v7  ;;  %v5013_v17 = vadd.f32 %v3451_v8, %v2713_v2 }
 0x207   : > { %v2797_v18 = vmul.f32 %v5007_v11, %v5007_v11  ;;  %v5017_v20 = vadd.f32 %v3453_v12, %v2715_v10 }
 0x208   : > { %v2811_v23 = vadd.f32 %v2810_v13, %v2796_v16  ;;  %v2769_v24 = vadd.f32 %v5007_v11, %v2768_v14  ;;  %v2798_v30 = vmul.f32 %v5013_v17, %v5013_v17 }
 0x209   : > { %v2427_v26 = vpop.f32.mrb[12].mxu1  ;;  %v2799_v34 = vmul.f32 %v5017_v20, %v5017_v20 }
 0x20a   : > { %v2719_v27 = vpop.f32.mrb[12].mxu0  ;;  %v2812_v28 = vadd.f32 %v2811_v23, %v2797_v18  ;;  %v2770_v29 = vadd.f32 %v5013_v17, %v2769_v24  ;;  %v3455_v31 = vadd.f32 %v2427_v26, %v4950_v5  ;;  %v2429_v32 = vpop.f32.mrb[13].mxu1  ;;  %v2873_v23 = vstv %s2872_s13 }
 0x20b   : > { %v2721_v33 = vpop.f32.mrb[13].mxu0  ;;  %v3457_v1 = vadd.f32 %v2429_v32, %v4952_v6  ;;  %v2431_v35 = vpop.f32.mrb[14].mxu1 }
 0x20c   : > { %v2723_v36 = vpop.f32.mrb[14].mxu0  ;;  %v2813_v37 = vadd.f32 %v2812_v28, %v2798_v30  ;;  %v5028_v38 = vadd.f32 %v3455_v31, %v2719_v27  ;;  %v3459_v39 = vadd.f32 %v2431_v35, %v4950_v5  ;;  %v2433_v41 = vpop.f32.mrb[15].mxu1  ;;  %v2771_v43 = vadd.f32 %v5017_v20, %v2770_v29 }
 0x20d   : > { %v2725_v42 = vpop.f32.mrb[15].mxu0  ;;  %v5032_v44 = vadd.f32 %v3457_v1, %v2721_v33  ;;  %v3461_v46 = vadd.f32 %v2433_v41, %v4952_v6  ;;  %v2891_v28 = vstv %s3410_s14 }
 0x20e   : > { %v5035_v47 = vadd.f32 %v3459_v39, %v2723_v36  ;;  %v2757_v48 = vsel %vm2743_vm0, %v5028_v38, 0.0  ;;  %v2814_v50 = vadd.f32 %v2813_v37, %v2799_v34 }
 0x20f   : > { %v5038_v52 = vadd.f32 %v3461_v46, %v2725_v42  ;;  %v2758_v53 = vsel %vm2743_vm0, %v5032_v44, 0.0  ;;  %v2772_v54 = vadd.f32 %v2771_v43, %v2757_v48  ;;  %v2800_v55 = vmul.f32 %v2757_v48, %v2757_v48 }
 0x210   : > { %v2801_v56 = vmul.f32 %v2758_v53, %v2758_v53 }
 0x211   : > { %v2773_v5 = vadd.f32 %v2772_v54, %v2758_v53  ;;  %v2815_v57 = vadd.f32 %v2814_v50, %v2800_v55 }
 0x213   : > { %2776 = vadd.xlane.f32.xlu0 %v2773_v5  ;;  %v2816_v58 = vadd.f32 %v2815_v57, %v2801_v56 }
 0x217   : > { %2819 = vadd.xlane.f32.xlu0 %v2816_v58 }
 0x2a0   : > { %v2777_v59 = vpop.xlane.xlu0 %2776 }
 0x2a1   : > { %v2778_v60 = vrot.slane %v2777_v59, 4 }
 0x2a3   : > { %v2779_v6 = vadd.f32 %v2778_v60, %v2777_v59 }
 0x2a4   : > { %v2820_v61 = vpop.xlane.xlu0 %2819 }
 0x2a5   : > { %v2780_v62 = vrot.slane %v2779_v6, 2  ;;  %v2821_v63 = vrot.slane %v2820_v61, 4 }
 0x2a7   : > { %v2822_v0 = vadd.f32 %v2821_v63, %v2820_v61  ;;  %v2781_v2 = vadd.f32 %v2780_v62, %v2779_v6 }
 0x2a9   : > { %v2823_v3 = vrot.slane %v2822_v0, 2  ;;  %v2782_v4 = vrot.slane %v2781_v2, 1 }
 0x2ab   : > { %v2824_v8 = vadd.f32 %v2823_v3, %v2822_v0  ;;  %v2783_v9 = vadd.f32 %v2782_v4, %v2781_v2 }
 0x2ad   : > { %3559 = vpush %v2783_v9  ;;  %v2825_v10 = vrot.slane %v2824_v8, 1 }
 0x2af   : > { %v2826_v12 = vadd.f32 %v2825_v10, %v2824_v8 }
 0x2b1   : > { %3561 = vpush %v2826_v12 }
 0x2de   : > { %s3560_s18 = spop %3559 }
 0x2df   : > { %s2787_s5 = smul.f32 7.9719386e-05, %s3560_s18 }
 0x2e1   : > { %s2831_s6 = smul.f32 %s2787_s5, %s2787_s5  ;;  %v2838_v13 = vstv %s2787_s5 }
 0x2e2   : > { %s3562_s7 = spop %3561  ;;  %v2853_v14 = vsub.f32 %v5035_v47, %v2838_v13  ;;  %v2854_v16 = vsub.f32 %v5038_v52, %v2838_v13  ;;  %v2839_v24 = vsub.f32 %v4956_v15, %v2838_v13  ;;  %v2840_v26 = vsub.f32 %v4959_v19, %v2838_v13 }
 0x2e3   : > { %s2830_s8 = smul.f32 7.9719386e-05, %s3562_s7  ;;  %v2841_v27 = vsub.f32 %v4964_v22, %v2838_v13  ;;  %v2842_v29 = vsub.f32 %v4970_v25, %v2838_v13  ;;  %v2843_v30 = vsub.f32 %v4980_v40, %v2838_v13  ;;  %v2844_v31 = vsub.f32 %v4983_v45, %v2838_v13 }
 0x2e4   : > { %v2845_v32 = vsub.f32 %v4989_v49, %v2838_v13  ;;  %v2846_v33 = vsub.f32 %v4993_v51, %v2838_v13  ;;  %v2847_v34 = vsub.f32 %v5004_v7, %v2838_v13  ;;  %v2848_v15 = vsub.f32 %v5007_v11, %v2838_v13 }
 0x2e5   : > { %s2832_s9 = ssub.f32 %s2830_s8, %s2831_s6  ;;  %v2849_v19 = vsub.f32 %v5013_v17, %v2838_v13  ;;  %v2850_v22 = vsub.f32 %v5017_v20, %v2838_v13  ;;  %v2851_v1 = vsub.f32 %v5028_v38, %v2838_v13  ;;  %v2852_v25 = vsub.f32 %v5032_v44, %v2838_v13 }
 0x2e7   : > { %s2833_s11 = smax.f32 %s3999_s10, %s2832_s9 }
 0x2e8   : > { %s2834_s12 = sadd.f32 0.001, %s2833_s11 }
 0x2ea   : > { %v2835_v18 = vstv %s2834_s12 }
 0x2eb   : > { %3969 = vrsqrt.f32 %v2835_v18 }
 0x2f5   : > { %v3970_v21 = vpop.eup %3969 }
 0x2f6   : > { %3563 = vpush %v3970_v21 }
 0x327   : > { %s3564_s17 = spop %3563 }
 0x328   : > { %v2855_v40 = vstv %s3564_s17 }
 0x329   : > { %v2856_v35 = vmul.f32 %v2855_v40, %v2839_v24  ;;  %v2857_v45 = vmul.f32 %v2855_v40, %v2840_v26  ;;  %v2858_v36 = vmul.f32 %v2855_v40, %v2841_v27  ;;  %v2859_v49 = vmul.f32 %v2855_v40, %v2842_v29 }
 0x32a   : > { %v2860_v37 = vmul.f32 %v2855_v40, %v2843_v30  ;;  %v2861_v39 = vmul.f32 %v2855_v40, %v2844_v31  ;;  %v2862_v51 = vmul.f32 %v2855_v40, %v2845_v32  ;;  %v2863_v41 = vmul.f32 %v2855_v40, %v2846_v33 }
 0x32b   : > { %v2864_v7 = vmul.f32 %v2855_v40, %v2847_v34  ;;  %v2865_v42 = vmul.f32 %v2855_v40, %v2848_v15  ;;  %v2866_v11 = vmul.f32 %v2855_v40, %v2849_v19  ;;  %v2867_v43 = vmul.f32 %v2855_v40, %v2850_v22 }
 0x32c   : > { %v2868_v17 = vmul.f32 %v2855_v40, %v2851_v1  ;;  %v2869_v46 = vmul.f32 %v2855_v40, %v2852_v25  ;;  %v2870_v20 = vmul.f32 %v2855_v40, %v2853_v14  ;;  %v2871_v47 = vmul.f32 %v2855_v40, %v2854_v16 }
 0x32d   : > { %v2874_v38 = vmul.f32 %v2873_v23, %v2856_v35  ;;  %v2875_v48 = vmul.f32 %v2873_v23, %v2857_v45  ;;  %v2876_v44 = vmul.f32 %v2873_v23, %v2858_v36  ;;  %v2877_v50 = vmul.f32 %v2873_v23, %v2859_v49 }
 0x32e   : > { %v2878_v52 = vmul.f32 %v2873_v23, %v2860_v37  ;;  %v2879_v53 = vmul.f32 %v2873_v23, %v2861_v39  ;;  %v2880_v54 = vmul.f32 %v2873_v23, %v2862_v51  ;;  %v2881_v55 = vmul.f32 %v2873_v23, %v2863_v41 }
 0x32f   : > { %v2882_v5 = vmul.f32 %v2873_v23, %v2864_v7  ;;  %v2883_v56 = vmul.f32 %v2873_v23, %v2865_v42  ;;  %v2884_v57 = vmul.f32 %v2873_v23, %v2866_v11  ;;  %v2885_v58 = vmul.f32 %v2873_v23, %v2867_v43 }
 0x330   : > { %v2886_v59 = vmul.f32 %v2873_v23, %v2868_v17  ;;  %v2887_v60 = vmul.f32 %v2873_v23, %v2869_v46  ;;  %v2888_v6 = vmul.f32 %v2873_v23, %v2870_v20  ;;  %v2889_v61 = vmul.f32 %v2873_v23, %v2871_v47 }
 0x331   : > { %v2892_v62 = vadd.f32 %v2891_v28, %v2874_v38  ;;  %v2893_v63 = vadd.f32 %v2891_v28, %v2875_v48  ;;  %v2894_v0 = vadd.f32 %v2891_v28, %v2876_v44  ;;  %v2895_v2 = vadd.f32 %v2891_v28, %v2877_v50 }
 0x332   : > { %v2896_v3 = vadd.f32 %v2891_v28, %v2878_v52  ;;  %v2897_v4 = vadd.f32 %v2891_v28, %v2879_v53  ;;  %v2898_v8 = vadd.f32 %v2891_v28, %v2880_v54  ;;  %v2899_v9 = vadd.f32 %v2891_v28, %v2881_v55 }
 0x333   : > { %v2900_v10 = vadd.f32 %v2891_v28, %v2882_v5  ;;  %v2901_v12 = vadd.f32 %v2891_v28, %v2883_v56  ;;  %v2902_v13 = vadd.f32 %v2891_v28, %v2884_v57  ;;  %v2903_v14 = vadd.f32 %v2891_v28, %v2885_v58 }
 0x334   : > { %v2904_v16 = vadd.f32 %v2891_v28, %v2886_v59  ;;  %v2905_v18 = vadd.f32 %v2891_v28, %v2887_v60  ;;  %v2906_v21 = vadd.f32 %v2891_v28, %v2888_v6  ;;  %v2907_v24 = vadd.f32 %v2891_v28, %v2889_v61 }
 0x335   : > { %vm2908_vm1 = vcmp.gt.f32.partialorder %v2892_v62, 0.0  ;;  %vm2909_vm2 = vcmp.gt.f32.partialorder %v2893_v63, 0.0  ;;  %vm2910_vm3 = vcmp.gt.f32.partialorder %v2894_v0, 0.0  ;;  %vm2911_vm4 = vcmp.gt.f32.partialorder %v2895_v2, 0.0 }
 0x336   : > { %vm2912_vm5 = vcmp.gt.f32.partialorder %v2896_v3, 0.0  ;;  %vm2913_vm6 = vcmp.gt.f32.partialorder %v2897_v4, 0.0  ;;  %vm2914_vm7 = vcmp.gt.f32.partialorder %v2898_v8, 0.0  ;;  %vm2915_vm8 = vcmp.gt.f32.partialorder %v2899_v9, 0.0 }
 0x337   : > { %vm2916_vm9 = vcmp.gt.f32.partialorder %v2900_v10, 0.0  ;;  %vm2917_vm10 = vcmp.gt.f32.partialorder %v2901_v12, 0.0  ;;  %vm2918_vm11 = vcmp.gt.f32.partialorder %v2902_v13, 0.0  ;;  %vm2919_vm12 = vcmp.gt.f32.partialorder %v2903_v14, 0.0 }
 0x338   : > { %vm2920_vm13 = vcmp.gt.f32.partialorder %v2904_v16, 0.0  ;;  %vm2921_vm14 = vcmp.gt.f32.partialorder %v2905_v18, 0.0  ;;  %vm2922_vm15 = vcmp.gt.f32.partialorder %v2906_v21, 0.0  ;;  %vm2923_vm0 = vcmp.gt.f32.partialorder %v2907_v24, 0.0 }
 0x339   : > { %v2924_v23 = vmul.f32 0.2, %v2892_v62  ;;  %v2925_v26 = vmul.f32 0.2, %v2893_v63  ;;  %v2926_v27 = vmul.f32 0.2, %v2894_v0 }
 0x33a   : > { %v2927_v28 = vmul.f32 0.2, %v2895_v2  ;;  %v2928_v29 = vmul.f32 0.2, %v2896_v3  ;;  %v2929_v30 = vmul.f32 0.2, %v2897_v4 }
 0x33b   : > { %v2930_v31 = vmul.f32 0.2, %v2898_v8  ;;  %v2931_v32 = vmul.f32 0.2, %v2899_v9  ;;  %v2932_v33 = vmul.f32 0.2, %v2900_v10  ;;  %v2940_v34 = vsel %vm2908_vm1, %v2892_v62, %v2924_v23 }
 0x33c   : > { %v2933_v15 = vmul.f32 0.2, %v2901_v12  ;;  %v2934_v19 = vmul.f32 0.2, %v2902_v13  ;;  %v2935_v22 = vmul.f32 0.2, %v2903_v14  ;;  %v2941_v1 = vsel %vm2909_vm2, %v2893_v63, %v2925_v26 }
 0x33d   : > { %v2936_v25 = vmul.f32 0.2, %v2904_v16  ;;  %v2937_v40 = vmul.f32 0.2, %v2905_v18  ;;  %v2938_v35 = vmul.f32 0.2, %v2906_v21  ;;  %v2942_v45 = vsel %vm2910_vm3, %v2894_v0, %v2926_v27 }
 0x33e   : > { %v2939_v36 = vmul.f32 0.2, %v2907_v24  ;;  %v2943_v49 = vsel %vm2911_vm4, %v2895_v2, %v2927_v28  ;;  %v2944_v37 = vsel %vm2912_vm5, %v2896_v3, %v2928_v29  ;;  %v2945_v39 = vsel %vm2913_vm6, %v2897_v4, %v2929_v30 }
 0x33f   : > { %v2946_v51 = vsel %vm2914_vm7, %v2898_v8, %v2930_v31  ;;  %v2947_v41 = vsel %vm2915_vm8, %v2899_v9, %v2931_v32  ;;  %v2948_v7 = vsel %vm2916_vm9, %v2900_v10, %v2932_v33  ;;  %v2949_v42 = vsel %vm2917_vm10, %v2901_v12, %v2933_v15 }
 0x340   : > { %v2950_v11 = vsel %vm2918_vm11, %v2902_v13, %v2934_v19  ;;  %v2951_v43 = vsel %vm2919_vm12, %v2903_v14, %v2935_v22  ;;  %v2952_v17 = vsel %vm2920_vm13, %v2904_v16, %v2936_v25  ;;  %v2953_v46 = vsel %vm2921_vm14, %v2905_v18, %v2937_v40 }
 0x341   : > { %v2954_v20 = vsel %vm2922_vm15, %v2906_v21, %v2938_v35  ;;  %v2955_v47 = vsel %vm2923_vm0, %v2907_v24, %v2939_v36  ;;  %v3423_v38 = vpack.c.bf16 %v2941_v1, %v2940_v34  ;;  %v3424_v48 = vpack.c.bf16 %v2943_v49, %v2942_v45 }
 0x342   : > { %v3425_v44 = vpack.c.bf16 %v2945_v39, %v2944_v37  ;;  %v3426_v50 = vpack.c.bf16 %v2947_v41, %v2946_v51  ;;  %v3427_v52 = vpack.c.bf16 %v2949_v42, %v2948_v7  ;;  %v3428_v53 = vpack.c.bf16 %v2951_v43, %v2950_v11 }
 0x343   : > { %v3429_v54 = vpack.c.bf16 %v2953_v46, %v2952_v17  ;;  %v3430_v55 = vpack.c.bf16 %v2955_v47, %v2954_v20  ;;  %3004 = vst [vmem:[%s211_s22] sm:$0xff] %v3423_v38  ;;  %3005 = vst [vmem:[%s211_s22 + $0x8] sm:$0xff] %v3424_v48 }
 0x344   : > { %3006 = vst [vmem:[%s211_s22 + $0x10] sm:$0xff] %v3425_v44  ;;  %3007 = vst [vmem:[%s211_s22 + $0x18] sm:$0xff] %v3426_v50 }
 0x345   : > { %3008 = vst [vmem:[%s211_s22 + $0x20] sm:$0xff] %v3427_v52  ;;  %3009 = vst [vmem:[%s211_s22 + $0x28] sm:$0xff] %v3428_v53 }
 0x346   : > { %3010 = vst [vmem:[%s211_s22 + $0x30] sm:$0xff] %v3429_v54  ;;  %3011 = vst [vmem:[%s211_s22 + $0x38] sm:$0xff] %v3430_v55 }
 0x347 PF: > { %s15_s15 = sadd.s32 1, %s3996_s15  }
 0x348   : > { %p12_p1 = scmp.ge.s32.totalorder %s15_s15, 4  }
 0x34a   :  { %14 = sbr.rel (!%p12_p1) target bundleno = 1 (0x1), region = 71 }
 0x351   :  { %3033 = vsyncpa [#allocation3], 1 }
 0x352   :  { %3035 = vsyncpa [#allocation3 + $0x1], 1 }

// kernel: discriminator_forward.7
= control target key start
LH: loop header
LB: loop body
LE: loop exit
PB: predicated region body
PF: predicated region fallthrough
CT: control target
= control target key end

     0   :  { %10 = vsyncpa [#allocation3], 0  ;;  %s11032_s18 = smov 0   ;;  %s14372_s0 = inlined_call_operand.vmem [shape: bf16[2,16,4096], index: 0, kind: input, shape index: {}]   ;;  %s14373_s1 = inlined_call_operand.vmem [shape: bf16[4096,512], index: 1, kind: input, shape index: {}]   ;;  %s14374_s2 = inlined_call_operand.vmem [shape: f32[1,512], index: 2, kind: input, shape index: {}]   ;;  %s14375_s3 = inlined_call_operand.vmem [shape: f32[2], index: 3, kind: input, shape index: {}]   ;;  %s14376_s4 = inlined_call_operand.vmem [shape: f32[16,512], index: 4, kind: input, shape index: {}]   ;;  %s14377_s5 = inlined_call_operand.vmem [shape: f32[2,8,128], index: 5, kind: output, shape index: {}]  }
   0x1 LB: > { %s11038_s19 = sadd.s32 4294967295, %s10998_s18   ;;  %p8206_p0 = scmp.ge.s32.totalorder %s10998_s18, 1  ;;  %s10998_s18 = sphi %s11032_s18, %s16_s18  }
   0x2   : > { %p157_p1 = scmp.lt.s32.totalorder %s10998_s18, 3  ;;  %s176_s22 = sshll.u32 %s14375_s3, 4  ;;  %s177_s22 = int_to_ptr.vmem [resolvable:$true] %s176_s22 }
   0x3   : > { %p9419_p3 = scmp.eq.s32.totalorder %s11038_s19, 0  ;;  %s10973_s24 = scalar_lea.vmem %s177_s22, 16 }
   0x4   : > { %p11045_p2 = pnand %p8206_p0, %p157_p1  ;;  %p10974_p6 = scmp.ne.s32.totalorder %s177_s22, %s10973_s24 }
   0x5   : > { %p10981_p10 = scmp.lt.s32.totalorder %s177_s22, %s177_s22  ;;  %p10982_p11 = scmp.lt.s32.totalorder %s10973_s24, %s10973_s24 }
   0x6   : > { %p9415_p4 = pneg %p11045_p2 }
   0x7   : > { %p10983_p12 = por %p10982_p11, %p10981_p10 }
   0x8   : > { %p9416_p5 = pnand %p9419_p3, %p9415_p4 }
   0xa   : > { %p10975_p7 = pneg %p9416_p5 }
   0xc   : > { %p10976_p8 = pnand %p10975_p7, %p10974_p6 }
   0xe   : > { %p10977_p9 = pneg %p10976_p8 }
  0x10   : > { %p10984_p13 = pnand %p10983_p12, %p10977_p9 }
  0x12   : > { %10987 = shalt.err (!%p10984_p13)
}
  0x13   : > { %s11000_s25 = smov [#allocation2]   ;;  %200 = sbr.rel (%p11045_p2) target bundleno = 1819 (0x71b), region = 40 }
  0x14   : > { %9418 = dma.vmem_to_smem (!%p9416_p5), %s177_s22, 16, %s11000_s25, [#allocation3]  }
  0x1a   : > { %10993 = dma.done.wait (%p9419_p3), [#allocation3], 16  }
  0x1b   : > { %10995 = vsyncadd (%p9419_p3), [#allocation3], 4294967280 }
  0x1c   : > { %206 = sfence }
  0x1d   : > { %v9431_v0 = vld [vmem:[%s14373_s1 + $0x4] ss:$16 sps:$4 sm:$0xff]   ;;  %v9433_v1 = vld [vmem:[%s14373_s1 + $0xc] ss:$16 sps:$4 sm:$0xff]   ;;  %v9435_v2 = vld [vmem:[%s14373_s1] ss:$16 sps:$4 sm:$0xff]  }
  0x1e   : > { %6595 = vmatprep.subr.bf16.mxu0 %v9431_v0  ;;  %v9436_v3 = vld [vmem:[%s14373_s1 + $0x8] ss:$16 sps:$4 sm:$0xff]   ;;  %7283 = vmatprep.subr.bf16.mxu1 %v9433_v1  ;;  %v9437_v4 = vld [vmem:[%s14373_s1 + $0x24] ss:$16 sps:$4 sm:$0xff]   ;;  %v9439_v5 = vld [vmem:[%s14373_s1 + $0x2c] ss:$16 sps:$4 sm:$0xff]  }
  0x1f   : > { %6596 = vmatpush1.bf16.msra.mxu0 %v9435_v2  ;;  %7284 = vmatpush1.bf16.msra.mxu1 %v9436_v3  ;;  %v9441_v6 = vld [vmem:[%s14373_s1 + $0x20] ss:$16 sps:$4 sm:$0xff]   ;;  %v9442_v7 = vld [vmem:[%s14373_s1 + $0x28] ss:$16 sps:$4 sm:$0xff]   ;;  %v9443_v8 = vld [vmem:[%s14373_s1 + $0x44] ss:$16 sps:$4 sm:$0xff]  }
  0x20   : > { %6597 = vmatprep.subr.bf16.mxu0 %v9437_v4  ;;  %7285 = vmatprep.subr.bf16.mxu1 %v9439_v5  ;;  %v9445_v9 = vld [vmem:[%s14373_s1 + $0x4c] ss:$16 sps:$4 sm:$0xff]   ;;  %v9447_v10 = vld [vmem:[%s14373_s1 + $0x40] ss:$16 sps:$4 sm:$0xff]   ;;  %v9448_v11 = vld [vmem:[%s14373_s1 + $0x48] ss:$16 sps:$4 sm:$0xff]  }
  0x21   : > { %v9449_v12 = vld [vmem:[%s14373_s1 + $0x64] ss:$16 sps:$4 sm:$0xff]   ;;  %v9451_v13 = vld [vmem:[%s14373_s1 + $0x6c] ss:$16 sps:$4 sm:$0xff]   ;;  %v9453_v14 = vld [vmem:[%s14373_s1 + $0x60] ss:$16 sps:$4 sm:$0xff]  }
  0x22   : > { %v9454_v15 = vld [vmem:[%s14373_s1 + $0x68] ss:$16 sps:$4 sm:$0xff]   ;;  %v9455_v16 = vld [vmem:[%s14373_s1 + $0x84] ss:$16 sps:$4 sm:$0xff]   ;;  %v9457_v17 = vld [vmem:[%s14373_s1 + $0x8c] ss:$16 sps:$4 sm:$0xff]  }
  0x23   : > { %6598 = vmatpush1.bf16.msra.mxu0 %v9441_v6  ;;  %7286 = vmatpush1.bf16.msra.mxu1 %v9442_v7  ;;  %v9459_v18 = vld [vmem:[%s14373_s1 + $0x80] ss:$16 sps:$4 sm:$0xff]   ;;  %v9460_v19 = vld [vmem:[%s14373_s1 + $0x88] ss:$16 sps:$4 sm:$0xff]   ;;  %v9461_v20 = vld [vmem:[%s14373_s1 + $0xa4] ss:$16 sps:$4 sm:$0xff]  }
  0x24   : > { %6599 = vmatprep.subr.bf16.mxu0 %v9443_v8  ;;  %7287 = vmatprep.subr.bf16.mxu1 %v9445_v9  ;;  %v9463_v21 = vld [vmem:[%s14373_s1 + $0xac] ss:$16 sps:$4 sm:$0xff]   ;;  %v9465_v22 = vld [vmem:[%s14373_s1 + $0xa0] ss:$16 sps:$4 sm:$0xff]   ;;  %v9466_v23 = vld [vmem:[%s14373_s1 + $0xa8] ss:$16 sps:$4 sm:$0xff]  }
  0x25   : > { %v9467_v24 = vld [vmem:[%s14373_s1 + $0xc4] ss:$16 sps:$4 sm:$0xff]   ;;  %v9469_v25 = vld [vmem:[%s14373_s1 + $0xcc] ss:$16 sps:$4 sm:$0xff]   ;;  %v9471_v26 = vld [vmem:[%s14373_s1 + $0xc0] ss:$16 sps:$4 sm:$0xff]  }
  0x26   : > { %v9472_v27 = vld [vmem:[%s14373_s1 + $0xc8] ss:$16 sps:$4 sm:$0xff]   ;;  %v9473_v28 = vld [vmem:[%s14373_s1 + $0xe4] ss:$16 sps:$4 sm:$0xff]   ;;  %v9475_v29 = vld [vmem:[%s14373_s1 + $0xec] ss:$16 sps:$4 sm:$0xff]  }
  0x27   : > { %6600 = vmatpush1.bf16.msra.mxu0 %v9447_v10  ;;  %7288 = vmatpush1.bf16.msra.mxu1 %v9448_v11  ;;  %v9477_v30 = vld [vmem:[%s14373_s1 + $0xe0] ss:$16 sps:$4 sm:$0xff]   ;;  %v9478_v31 = vld [vmem:[%s14373_s1 + $0xe8] ss:$16 sps:$4 sm:$0xff]   ;;  %v9479_v32 = vld [vmem:[%s14373_s1 + $0x104] ss:$16 sps:$4 sm:$0xff]  }
  0x28   : > { %6601 = vmatprep.subr.bf16.mxu0 %v9449_v12  ;;  %7289 = vmatprep.subr.bf16.mxu1 %v9451_v13  ;;  %p228_p0 = scmp.lt.s32.totalorder %s11038_s19, 1  ;;  %v9481_v33 = vld [vmem:[%s14373_s1 + $0x10c] ss:$16 sps:$4 sm:$0xff]   ;;  %v9483_v34 = vld [vmem:[%s14373_s1 + $0x100] ss:$16 sps:$4 sm:$0xff]   ;;  %s11001_s30 = smov 0.0  }
  0x29   : > { %v9484_v35 = vld [vmem:[%s14373_s1 + $0x108] ss:$16 sps:$4 sm:$0xff]   ;;  %v9485_v36 = vld [vmem:[%s14373_s1 + $0x124] ss:$16 sps:$4 sm:$0xff]   ;;  %v9487_v37 = vld [vmem:[%s14373_s1 + $0x12c] ss:$16 sps:$4 sm:$0xff]  }
  0x2a   : > { %s14380_s19 = smov (!%p228_p0, %s11038_s19), 1  ;;  %v9489_v38 = vld [vmem:[%s14373_s1 + $0x120] ss:$16 sps:$4 sm:$0xff]   ;;  %v9490_v39 = vld [vmem:[%s14373_s1 + $0x128] ss:$16 sps:$4 sm:$0xff]   ;;  %s8055_s8 = sld [smem:[#allocation2]] }
  0x2b   : > { %6602 = vmatpush1.bf16.msra.mxu0 %v9453_v14  ;;  %7290 = vmatpush1.bf16.msra.mxu1 %v9454_v15  ;;  %v9491_v40 = vld [vmem:[%s14373_s1 + $0x144] ss:$16 sps:$4 sm:$0xff]   ;;  %s9274_s14 = sshll.u32 %s14380_s19, 8  ;;  %v9493_v41 = vld [vmem:[%s14373_s1 + $0x14c] ss:$16 sps:$4 sm:$0xff]   ;;  %s9270_s9 = sld [smem:[#allocation2 + $0x1]] }
  0x2c   : > { %6603 = vmatprep.subr.bf16.mxu0 %v9455_v16  ;;  %7291 = vmatprep.subr.bf16.mxu1 %v9457_v17  ;;  %v9495_v42 = vld [vmem:[%s14373_s1 + $0x140] ss:$16 sps:$4 sm:$0xff]   ;;  %v9496_v43 = vld [vmem:[%s14373_s1 + $0x148] ss:$16 sps:$4 sm:$0xff]   ;;  %s11200_s25 = scalar_lea.vmem %s14372_s0, %s9274_s14  ;;  %v9497_v44 = vld [vmem:[%s14373_s1 + $0x164] ss:$16 sps:$4 sm:$0xff]  }
  0x2d   : > { %v9499_v45 = vld [vmem:[%s14373_s1 + $0x16c] ss:$16 sps:$4 sm:$0xff]   ;;  %v237_v46 = vld [vmem:[%s11200_s25] sm:$0xff]  ;;  %v9502_v49 = vld [vmem:[%s14373_s1 + $0x168] ss:$16 sps:$4 sm:$0xff]  }
  0x2e   : > { %v253_v47 = vld [vmem:[%s11200_s25 + $0x80] sm:$0xff]  ;;  %v9505_v52 = vld [vmem:[%s14373_s1 + $0x18c] ss:$16 sps:$4 sm:$0xff]   ;;  %v9508_v54 = vld [vmem:[%s14373_s1 + $0x188] ss:$16 sps:$4 sm:$0xff]  }
  0x2f   : > { %6604 = vmatpush1.bf16.msra.mxu0 %v9459_v18  ;;  %7292 = vmatpush1.bf16.msra.mxu1 %v9460_v19  ;;  %v9501_v48 = vld [vmem:[%s14373_s1 + $0x160] ss:$16 sps:$4 sm:$0xff]   ;;  %v8215_v50 = vcombine.high %v237_v46, %v253_v47  ;;  %v9503_v51 = vld [vmem:[%s14373_s1 + $0x184] ss:$16 sps:$4 sm:$0xff]   ;;  %v9511_v56 = vld [vmem:[%s14373_s1 + $0x1ac] ss:$16 sps:$4 sm:$0xff]   ;;  %v8214_v5 = vcombine.low %v237_v46, %v253_v47 }
  0x30   : > { %6605 = vmatprep.subr.bf16.mxu0 %v9461_v20  ;;  %7293 = vmatprep.subr.bf16.mxu1 %v9463_v21  ;;  %v9507_v53 = vld [vmem:[%s14373_s1 + $0x180] ss:$16 sps:$4 sm:$0xff]   ;;  %v9509_v55 = vld [vmem:[%s14373_s1 + $0x1a4] ss:$16 sps:$4 sm:$0xff]   ;;  %v9514_v58 = vld [vmem:[%s14373_s1 + $0x1a8] ss:$16 sps:$4 sm:$0xff]  }
  0x31   : > { %6627 = vmatprep.mubr.bf16.mxu0 %v8215_v50  ;;  %7315 = vmatprep.mubr.bf16.mxu1 %v8215_v50  ;;  %v9513_v57 = vld [vmem:[%s14373_s1 + $0x1a0] ss:$16 sps:$4 sm:$0xff]   ;;  %v9515_v59 = vld [vmem:[%s14373_s1 + $0x1c4] ss:$16 sps:$4 sm:$0xff]   ;;  %v9517_v60 = vld [vmem:[%s14373_s1 + $0x1cc] ss:$16 sps:$4 sm:$0xff]  }
  0x32   : > { %v9519_v61 = vld [vmem:[%s14373_s1 + $0x1c0] ss:$16 sps:$4 sm:$0xff]   ;;  %v9520_v62 = vld [vmem:[%s14373_s1 + $0x1c8] ss:$16 sps:$4 sm:$0xff]   ;;  %v9521_v63 = vld [vmem:[%s14373_s1 + $0x1e4] ss:$16 sps:$4 sm:$0xff]  }
  0x33   : > { %6606 = vmatpush1.bf16.msra.mxu0 %v9465_v22  ;;  %7294 = vmatpush1.bf16.msra.mxu1 %v9466_v23  ;;  %v9523_v0 = vld [vmem:[%s14373_s1 + $0x1ec] ss:$16 sps:$4 sm:$0xff]   ;;  %v9525_v1 = vld [vmem:[%s14373_s1 + $0x1e0] ss:$16 sps:$4 sm:$0xff]   ;;  %v9526_v2 = vld [vmem:[%s14373_s1 + $0x1e8] ss:$16 sps:$4 sm:$0xff]  }
  0x34   : > { %6607 = vmatprep.subr.bf16.mxu0 %v9467_v24  ;;  %7295 = vmatprep.subr.bf16.mxu1 %v9469_v25  ;;  %v9529_v3 = vld [vmem:[%s14373_s1 + $0x204] ss:$16 sps:$4 sm:$0xff]   ;;  %v9532_v4 = vld [vmem:[%s14373_s1 + $0x20c] ss:$16 sps:$4 sm:$0xff]   ;;  %v9527_v6 = vld [vmem:[%s14373_s1 + $0x200] ss:$16 sps:$4 sm:$0xff]  }
  0x35   : > { %v9530_v7 = vld [vmem:[%s14373_s1 + $0x208] ss:$16 sps:$4 sm:$0xff]   ;;  %v9535_v8 = vld [vmem:[%s14373_s1 + $0x224] ss:$16 sps:$4 sm:$0xff]   ;;  %v9538_v9 = vld [vmem:[%s14373_s1 + $0x22c] ss:$16 sps:$4 sm:$0xff]  }
  0x36   : > { %v9533_v10 = vld [vmem:[%s14373_s1 + $0x220] ss:$16 sps:$4 sm:$0xff]   ;;  %v9536_v11 = vld [vmem:[%s14373_s1 + $0x228] ss:$16 sps:$4 sm:$0xff]   ;;  %v9541_v12 = vld [vmem:[%s14373_s1 + $0x244] ss:$16 sps:$4 sm:$0xff]  }
  0x37   : > { %6608 = vmatpush1.bf16.msra.mxu0 %v9471_v26  ;;  %7296 = vmatpush1.bf16.msra.mxu1 %v9472_v27  ;;  %v9544_v13 = vld [vmem:[%s14373_s1 + $0x24c] ss:$16 sps:$4 sm:$0xff]   ;;  %v9539_v14 = vld [vmem:[%s14373_s1 + $0x240] ss:$16 sps:$4 sm:$0xff]   ;;  %v9542_v15 = vld [vmem:[%s14373_s1 + $0x248] ss:$16 sps:$4 sm:$0xff]  }
  0x38   : > { %6609 = vmatprep.subr.bf16.mxu0 %v9473_v28  ;;  %7297 = vmatprep.subr.bf16.mxu1 %v9475_v29  ;;  %v9547_v16 = vld [vmem:[%s14373_s1 + $0x264] ss:$16 sps:$4 sm:$0xff]   ;;  %v9550_v17 = vld [vmem:[%s14373_s1 + $0x26c] ss:$16 sps:$4 sm:$0xff]   ;;  %v9545_v18 = vld [vmem:[%s14373_s1 + $0x260] ss:$16 sps:$4 sm:$0xff]  }
  0x39   : > { %v9548_v19 = vld [vmem:[%s14373_s1 + $0x268] ss:$16 sps:$4 sm:$0xff]   ;;  %v9553_v20 = vld [vmem:[%s14373_s1 + $0x284] ss:$16 sps:$4 sm:$0xff]   ;;  %v9556_v21 = vld [vmem:[%s14373_s1 + $0x28c] ss:$16 sps:$4 sm:$0xff]  }
  0x3a   : > { %v9551_v22 = vld [vmem:[%s14373_s1 + $0x280] ss:$16 sps:$4 sm:$0xff]   ;;  %v9554_v23 = vld [vmem:[%s14373_s1 + $0x288] ss:$16 sps:$4 sm:$0xff]   ;;  %v9559_v24 = vld [vmem:[%s14373_s1 + $0x2a4] ss:$16 sps:$4 sm:$0xff]  }
  0x3b   : > { %6610 = vmatpush1.bf16.msra.mxu0 %v9477_v30  ;;  %7298 = vmatpush1.bf16.msra.mxu1 %v9478_v31  ;;  %v9562_v25 = vld [vmem:[%s14373_s1 + $0x2ac] ss:$16 sps:$4 sm:$0xff]   ;;  %v9557_v26 = vld [vmem:[%s14373_s1 + $0x2a0] ss:$16 sps:$4 sm:$0xff]   ;;  %v9560_v27 = vld [vmem:[%s14373_s1 + $0x2a8] ss:$16 sps:$4 sm:$0xff]  }
  0x3c   : > { %6611 = vmatprep.subr.bf16.mxu0 %v9479_v32  ;;  %7299 = vmatprep.subr.bf16.mxu1 %v9481_v33  ;;  %v9565_v28 = vld [vmem:[%s14373_s1 + $0x2c4] ss:$16 sps:$4 sm:$0xff]   ;;  %v9568_v29 = vld [vmem:[%s14373_s1 + $0x2cc] ss:$16 sps:$4 sm:$0xff]   ;;  %v9563_v32 = vld [vmem:[%s14373_s1 + $0x2c0] ss:$16 sps:$4 sm:$0xff]  }
  0x3d   : > { %v11343_v30 = vld [vmem:[%s11200_s25 + $0x8] sm:$0xff]  ;;  %v9589_v47 = vld [vmem:[%s14373_s1 + $0x344] ss:$16 sps:$4 sm:$0xff]  }
  0x3e   : > { %v11346_v31 = vld [vmem:[%s11200_s25 + $0x88] sm:$0xff] }
  0x3f   : > { %6612 = vmatpush1.bf16.msra.mxu0 %v9483_v34  ;;  %7300 = vmatpush1.bf16.msra.mxu1 %v9484_v35  ;;  %v9566_v33 = vld [vmem:[%s14373_s1 + $0x2c8] ss:$16 sps:$4 sm:$0xff]   ;;  %v8217_v34 = vcombine.high %v11343_v30, %v11346_v31  ;;  %v9571_v35 = vld [vmem:[%s14373_s1 + $0x2e4] ss:$16 sps:$4 sm:$0xff]  }
  0x40   : > { %6613 = vmatprep.subr.bf16.mxu0 %v9485_v36  ;;  %7301 = vmatprep.subr.bf16.mxu1 %v9487_v37  ;;  %v9574_v36 = vld [vmem:[%s14373_s1 + $0x2ec] ss:$16 sps:$4 sm:$0xff]   ;;  %v9569_v37 = vld [vmem:[%s14373_s1 + $0x2e0] ss:$16 sps:$4 sm:$0xff]   ;;  %v9584_v46 = vld [vmem:[%s14373_s1 + $0x328] ss:$16 sps:$4 sm:$0xff]  }
  0x41   : > { %v9590_v50 = vld [vmem:[%s14373_s1 + $0x348] ss:$16 sps:$4 sm:$0xff]  }
  0x43   : > { %6614 = vmatpush1.bf16.msra.mxu0 %v9489_v38  ;;  %7302 = vmatpush1.bf16.msra.mxu1 %v9490_v39  ;;  %v9572_v38 = vld [vmem:[%s14373_s1 + $0x2e8] ss:$16 sps:$4 sm:$0xff]   ;;  %v9577_v39 = vld [vmem:[%s14373_s1 + $0x304] ss:$16 sps:$4 sm:$0xff]  }
  0x44   : > { %6615 = vmatprep.subr.bf16.mxu0 %v9491_v40  ;;  %7303 = vmatprep.subr.bf16.mxu1 %v9493_v41  ;;  %v9580_v40 = vld [vmem:[%s14373_s1 + $0x30c] ss:$16 sps:$4 sm:$0xff]   ;;  %v9575_v41 = vld [vmem:[%s14373_s1 + $0x300] ss:$16 sps:$4 sm:$0xff]  }
  0x47   : > { %6616 = vmatpush1.bf16.msra.mxu0 %v9495_v42  ;;  %7304 = vmatpush1.bf16.msra.mxu1 %v9496_v43  ;;  %v9578_v42 = vld [vmem:[%s14373_s1 + $0x308] ss:$16 sps:$4 sm:$0xff]   ;;  %v9583_v43 = vld [vmem:[%s14373_s1 + $0x324] ss:$16 sps:$4 sm:$0xff]  }
  0x48   : > { %6617 = vmatprep.subr.bf16.mxu0 %v9497_v44  ;;  %7305 = vmatprep.subr.bf16.mxu1 %v9499_v45  ;;  %v9586_v44 = vld [vmem:[%s14373_s1 + $0x32c] ss:$16 sps:$4 sm:$0xff]   ;;  %v9581_v45 = vld [vmem:[%s14373_s1 + $0x320] ss:$16 sps:$4 sm:$0xff]  }
  0x4b   : > { %6618 = vmatpush1.bf16.msra.mxu0 %v9501_v48  ;;  %7306 = vmatpush1.bf16.msra.mxu1 %v9502_v49  ;;  %v9592_v48 = vld [vmem:[%s14373_s1 + $0x34c] ss:$16 sps:$4 sm:$0xff]   ;;  %v9587_v49 = vld [vmem:[%s14373_s1 + $0x340] ss:$16 sps:$4 sm:$0xff]  }
  0x4c   : > { %6619 = vmatprep.subr.bf16.mxu0 %v9503_v51  ;;  %7307 = vmatprep.subr.bf16.mxu1 %v9505_v52  ;;  %v9595_v51 = vld [vmem:[%s14373_s1 + $0x364] ss:$16 sps:$4 sm:$0xff]   ;;  %v9598_v52 = vld [vmem:[%s14373_s1 + $0x36c] ss:$16 sps:$4 sm:$0xff]  }
  0x4f   : > { %6620 = vmatpush1.bf16.msra.mxu0 %v9507_v53  ;;  %7308 = vmatpush1.bf16.msra.mxu1 %v9508_v54  ;;  %v9593_v53 = vld [vmem:[%s14373_s1 + $0x360] ss:$16 sps:$4 sm:$0xff]   ;;  %v9596_v54 = vld [vmem:[%s14373_s1 + $0x368] ss:$16 sps:$4 sm:$0xff]  }
  0x50   : > { %6621 = vmatprep.subr.bf16.mxu0 %v9509_v55  ;;  %7309 = vmatprep.subr.bf16.mxu1 %v9511_v56  ;;  %v9601_v55 = vld [vmem:[%s14373_s1 + $0x384] ss:$16 sps:$4 sm:$0xff]   ;;  %v9604_v56 = vld [vmem:[%s14373_s1 + $0x38c] ss:$16 sps:$4 sm:$0xff]  }
  0x53   : > { %6622 = vmatpush1.bf16.msra.mxu0 %v9513_v57  ;;  %7310 = vmatpush1.bf16.msra.mxu1 %v9514_v58  ;;  %v9599_v57 = vld [vmem:[%s14373_s1 + $0x380] ss:$16 sps:$4 sm:$0xff]   ;;  %v9602_v58 = vld [vmem:[%s14373_s1 + $0x388] ss:$16 sps:$4 sm:$0xff]  }
  0x54   : > { %6623 = vmatprep.subr.bf16.mxu0 %v9515_v59  ;;  %7311 = vmatprep.subr.bf16.mxu1 %v9517_v60  ;;  %v9607_v59 = vld [vmem:[%s14373_s1 + $0x3a4] ss:$16 sps:$4 sm:$0xff]   ;;  %v9610_v60 = vld [vmem:[%s14373_s1 + $0x3ac] ss:$16 sps:$4 sm:$0xff]  }
  0x57   : > { %6624 = vmatpush1.bf16.msra.mxu0 %v9519_v61  ;;  %7312 = vmatpush1.bf16.msra.mxu1 %v9520_v62  ;;  %v9605_v61 = vld [vmem:[%s14373_s1 + $0x3a0] ss:$16 sps:$4 sm:$0xff]   ;;  %v9608_v62 = vld [vmem:[%s14373_s1 + $0x3a8] ss:$16 sps:$4 sm:$0xff]  }
  0x58   : > { %6625 = vmatprep.subr.bf16.mxu0 %v9521_v63  ;;  %7313 = vmatprep.subr.bf16.mxu1 %v9523_v0  ;;  %v9613_v63 = vld [vmem:[%s14373_s1 + $0x3c4] ss:$16 sps:$4 sm:$0xff]   ;;  %v9616_v0 = vld [vmem:[%s14373_s1 + $0x3cc] ss:$16 sps:$4 sm:$0xff]  }
  0x5b   : > { %6626 = vmatpush1.bf16.msra.mxu0 %v9525_v1  ;;  %7314 = vmatpush1.bf16.msra.mxu1 %v9526_v2  ;;  %v9611_v1 = vld [vmem:[%s14373_s1 + $0x3c0] ss:$16 sps:$4 sm:$0xff]   ;;  %v9614_v2 = vld [vmem:[%s14373_s1 + $0x3c8] ss:$16 sps:$4 sm:$0xff]  }
  0x5c   : > { %6638 = vmatprep.subr.bf16.mxu0 %v9529_v3  ;;  %7326 = vmatprep.subr.bf16.mxu1 %v9532_v4  ;;  %v9619_v3 = vld [vmem:[%s14373_s1 + $0x3e4] ss:$16 sps:$4 sm:$0xff]   ;;  %v9622_v4 = vld [vmem:[%s14373_s1 + $0x3ec] ss:$16 sps:$4 sm:$0xff]  }
  0x5e   : > { %6628 = vmatmul.mubr.bf16.vlgmr.msra.gmra.mrb[0].mxu0 %v8214_v5  ;;  %7316 = vmatmul.mubr.bf16.vlgmr.msra.gmra.mrb[0].mxu1 %v8214_v5  ;;  %v9617_v5 = vld [vmem:[%s14373_s1 + $0x3e0] ss:$16 sps:$4 sm:$0xff]  }
  0x5f   : > { %6639 = vmatpush1.bf16.msra.mxu0 %v9527_v6  ;;  %7327 = vmatpush1.bf16.msra.mxu1 %v9530_v7  ;;  %v9620_v6 = vld [vmem:[%s14373_s1 + $0x3e8] ss:$16 sps:$4 sm:$0xff]   ;;  %v9625_v7 = vld [vmem:[%s14373_s1 + $0x404] ss:$16 sps:$4 sm:$0xff]  }
  0x60   : > { %6640 = vmatprep.subr.bf16.mxu0 %v9535_v8  ;;  %7328 = vmatprep.subr.bf16.mxu1 %v9538_v9  ;;  %v9628_v8 = vld [vmem:[%s14373_s1 + $0x40c] ss:$16 sps:$4 sm:$0xff]   ;;  %v8216_v9 = vcombine.low %v11343_v30, %v11346_v31  ;;  %v9650_v30 = vld [vmem:[%s14373_s1 + $0x488] ss:$16 sps:$4 sm:$0xff]   ;;  %v9655_v31 = vld [vmem:[%s14373_s1 + $0x4a4] ss:$16 sps:$4 sm:$0xff]  }
  0x61   : > { %6670 = vmatprep.mubr.bf16.mxu0 %v8217_v34  ;;  %7358 = vmatprep.mubr.bf16.mxu1 %v8217_v34  ;;  %v9656_v34 = vld [vmem:[%s14373_s1 + $0x4a8] ss:$16 sps:$4 sm:$0xff]  }
  0x63   : > { %6641 = vmatpush1.bf16.msra.mxu0 %v9533_v10  ;;  %7329 = vmatpush1.bf16.msra.mxu1 %v9536_v11  ;;  %v9623_v10 = vld [vmem:[%s14373_s1 + $0x400] ss:$16 sps:$4 sm:$0xff]   ;;  %v9626_v11 = vld [vmem:[%s14373_s1 + $0x408] ss:$16 sps:$4 sm:$0xff]  }
  0x64   : > { %6642 = vmatprep.subr.bf16.mxu0 %v9541_v12  ;;  %7330 = vmatprep.subr.bf16.mxu1 %v9544_v13  ;;  %v9631_v12 = vld [vmem:[%s14373_s1 + $0x424] ss:$16 sps:$4 sm:$0xff]   ;;  %v9634_v13 = vld [vmem:[%s14373_s1 + $0x42c] ss:$16 sps:$4 sm:$0xff]  }
  0x67   : > { %6643 = vmatpush1.bf16.msra.mxu0 %v9539_v14  ;;  %7331 = vmatpush1.bf16.msra.mxu1 %v9542_v15  ;;  %v11485_v14 = vld [vmem:[%s11200_s25 + $0x10] sm:$0xff] }
  0x68   : > { %6644 = vmatprep.subr.bf16.mxu0 %v9547_v16  ;;  %7332 = vmatprep.subr.bf16.mxu1 %v9550_v17  ;;  %v11488_v15 = vld [vmem:[%s11200_s25 + $0x90] sm:$0xff] }
  0x69   : > { %v8219_v16 = vcombine.high %v11485_v14, %v11488_v15  ;;  %v9629_v17 = vld [vmem:[%s14373_s1 + $0x420] ss:$16 sps:$4 sm:$0xff]  }
  0x6b   : > { %6645 = vmatpush1.bf16.msra.mxu0 %v9545_v18  ;;  %7333 = vmatpush1.bf16.msra.mxu1 %v9548_v19  ;;  %v9632_v18 = vld [vmem:[%s14373_s1 + $0x428] ss:$16 sps:$4 sm:$0xff]   ;;  %v9637_v19 = vld [vmem:[%s14373_s1 + $0x444] ss:$16 sps:$4 sm:$0xff]  }
  0x6c   : > { %6646 = vmatprep.subr.bf16.mxu0 %v9553_v20  ;;  %7334 = vmatprep.subr.bf16.mxu1 %v9556_v21  ;;  %v9640_v20 = vld [vmem:[%s14373_s1 + $0x44c] ss:$16 sps:$4 sm:$0xff]   ;;  %v9635_v21 = vld [vmem:[%s14373_s1 + $0x440] ss:$16 sps:$4 sm:$0xff]  }
  0x6f   : > { %6647 = vmatpush1.bf16.msra.mxu0 %v9551_v22  ;;  %7335 = vmatpush1.bf16.msra.mxu1 %v9554_v23  ;;  %v9638_v22 = vld [vmem:[%s14373_s1 + $0x448] ss:$16 sps:$4 sm:$0xff]   ;;  %v9643_v23 = vld [vmem:[%s14373_s1 + $0x464] ss:$16 sps:$4 sm:$0xff]  }
  0x70   : > { %6648 = vmatprep.subr.bf16.mxu0 %v9559_v24  ;;  %7336 = vmatprep.subr.bf16.mxu1 %v9562_v25  ;;  %v9646_v24 = vld [vmem:[%s14373_s1 + $0x46c] ss:$16 sps:$4 sm:$0xff]   ;;  %v9641_v25 = vld [vmem:[%s14373_s1 + $0x460] ss:$16 sps:$4 sm:$0xff]  }
  0x73   : > { %6649 = vmatpush1.bf16.msra.mxu0 %v9557_v26  ;;  %7337 = vmatpush1.bf16.msra.mxu1 %v9560_v27  ;;  %v9644_v26 = vld [vmem:[%s14373_s1 + $0x468] ss:$16 sps:$4 sm:$0xff]   ;;  %v9649_v27 = vld [vmem:[%s14373_s1 + $0x484] ss:$16 sps:$4 sm:$0xff]  }
  0x74   : > { %6650 = vmatprep.subr.bf16.mxu0 %v9565_v28  ;;  %7338 = vmatprep.subr.bf16.mxu1 %v9568_v29  ;;  %v9652_v28 = vld [vmem:[%s14373_s1 + $0x48c] ss:$16 sps:$4 sm:$0xff]   ;;  %v9647_v29 = vld [vmem:[%s14373_s1 + $0x480] ss:$16 sps:$4 sm:$0xff]  }
  0x77   : > { %6651 = vmatpush1.bf16.msra.mxu0 %v9563_v32  ;;  %7339 = vmatpush1.bf16.msra.mxu1 %v9566_v33  ;;  %v9658_v32 = vld [vmem:[%s14373_s1 + $0x4ac] ss:$16 sps:$4 sm:$0xff]   ;;  %v9653_v33 = vld [vmem:[%s14373_s1 + $0x4a0] ss:$16 sps:$4 sm:$0xff]  }
  0x78   : > { %6652 = vmatprep.subr.bf16.mxu0 %v9571_v35  ;;  %7340 = vmatprep.subr.bf16.mxu1 %v9574_v36  ;;  %v9661_v35 = vld [vmem:[%s14373_s1 + $0x4c4] ss:$16 sps:$4 sm:$0xff]   ;;  %v9664_v36 = vld [vmem:[%s14373_s1 + $0x4cc] ss:$16 sps:$4 sm:$0xff]  }
  0x7b   : > { %6653 = vmatpush1.bf16.msra.mxu0 %v9569_v37  ;;  %7341 = vmatpush1.bf16.msra.mxu1 %v9572_v38  ;;  %v9659_v37 = vld [vmem:[%s14373_s1 + $0x4c0] ss:$16 sps:$4 sm:$0xff]   ;;  %v9662_v38 = vld [vmem:[%s14373_s1 + $0x4c8] ss:$16 sps:$4 sm:$0xff]  }
  0x7c   : > { %6654 = vmatprep.subr.bf16.mxu0 %v9577_v39  ;;  %7342 = vmatprep.subr.bf16.mxu1 %v9580_v40  ;;  %v9667_v39 = vld [vmem:[%s14373_s1 + $0x4e4] ss:$16 sps:$4 sm:$0xff]   ;;  %v9670_v40 = vld [vmem:[%s14373_s1 + $0x4ec] ss:$16 sps:$4 sm:$0xff]  }
  0x7f   : > { %6655 = vmatpush1.bf16.msra.mxu0 %v9575_v41  ;;  %7343 = vmatpush1.bf16.msra.mxu1 %v9578_v42  ;;  %v9665_v41 = vld [vmem:[%s14373_s1 + $0x4e0] ss:$16 sps:$4 sm:$0xff]   ;;  %v9668_v42 = vld [vmem:[%s14373_s1 + $0x4e8] ss:$16 sps:$4 sm:$0xff]  }
  0x80   : > { %6656 = vmatprep.subr.bf16.mxu0 %v9583_v43  ;;  %7344 = vmatprep.subr.bf16.mxu1 %v9586_v44  ;;  %v9673_v43 = vld [vmem:[%s14373_s1 + $0x504] ss:$16 sps:$4 sm:$0xff]   ;;  %v9676_v44 = vld [vmem:[%s14373_s1 + $0x50c] ss:$16 sps:$4 sm:$0xff]  }
  0x83   : > { %6657 = vmatpush1.bf16.msra.mxu0 %v9581_v45  ;;  %7345 = vmatpush1.bf16.msra.mxu1 %v9584_v46  ;;  %v9671_v45 = vld [vmem:[%s14373_s1 + $0x500] ss:$16 sps:$4 sm:$0xff]   ;;  %v9674_v46 = vld [vmem:[%s14373_s1 + $0x508] ss:$16 sps:$4 sm:$0xff]  }
  0x84   : > { %6658 = vmatprep.subr.bf16.mxu0 %v9589_v47  ;;  %7346 = vmatprep.subr.bf16.mxu1 %v9592_v48  ;;  %v9679_v47 = vld [vmem:[%s14373_s1 + $0x524] ss:$16 sps:$4 sm:$0xff]   ;;  %v9682_v48 = vld [vmem:[%s14373_s1 + $0x52c] ss:$16 sps:$4 sm:$0xff]  }
  0x87   : > { %6659 = vmatpush1.bf16.msra.mxu0 %v9587_v49  ;;  %7347 = vmatpush1.bf16.msra.mxu1 %v9590_v50  ;;  %v9677_v49 = vld [vmem:[%s14373_s1 + $0x520] ss:$16 sps:$4 sm:$0xff]   ;;  %v9680_v50 = vld [vmem:[%s14373_s1 + $0x528] ss:$16 sps:$4 sm:$0xff]  }
  0x88   : > { %6660 = vmatprep.subr.bf16.mxu0 %v9595_v51  ;;  %7348 = vmatprep.subr.bf16.mxu1 %v9598_v52  ;;  %v9685_v51 = vld [vmem:[%s14373_s1 + $0x544] ss:$16 sps:$4 sm:$0xff]   ;;  %v9688_v52 = vld [vmem:[%s14373_s1 + $0x54c] ss:$16 sps:$4 sm:$0xff]  }
  0x8b   : > { %6661 = vmatpush1.bf16.msra.mxu0 %v9593_v53  ;;  %7349 = vmatpush1.bf16.msra.mxu1 %v9596_v54  ;;  %v9683_v53 = vld [vmem:[%s14373_s1 + $0x540] ss:$16 sps:$4 sm:$0xff]   ;;  %v9686_v54 = vld [vmem:[%s14373_s1 + $0x548] ss:$16 sps:$4 sm:$0xff]  }
  0x8c   : > { %6662 = vmatprep.subr.bf16.mxu0 %v9601_v55  ;;  %7350 = vmatprep.subr.bf16.mxu1 %v9604_v56  ;;  %v9691_v55 = vld [vmem:[%s14373_s1 + $0x564] ss:$16 sps:$4 sm:$0xff]   ;;  %v9694_v56 = vld [vmem:[%s14373_s1 + $0x56c] ss:$16 sps:$4 sm:$0xff]  }
  0x8f   : > { %6663 = vmatpush1.bf16.msra.mxu0 %v9599_v57  ;;  %7351 = vmatpush1.bf16.msra.mxu1 %v9602_v58  ;;  %v9689_v57 = vld [vmem:[%s14373_s1 + $0x560] ss:$16 sps:$4 sm:$0xff]   ;;  %v9692_v58 = vld [vmem:[%s14373_s1 + $0x568] ss:$16 sps:$4 sm:$0xff]  }
  0x90   : > { %6664 = vmatprep.subr.bf16.mxu0 %v9607_v59  ;;  %7352 = vmatprep.subr.bf16.mxu1 %v9610_v60  ;;  %v9697_v59 = vld [vmem:[%s14373_s1 + $0x584] ss:$16 sps:$4 sm:$0xff]   ;;  %v9700_v60 = vld [vmem:[%s14373_s1 + $0x58c] ss:$16 sps:$4 sm:$0xff]  }
  0x93   : > { %6665 = vmatpush1.bf16.msra.mxu0 %v9605_v61  ;;  %7353 = vmatpush1.bf16.msra.mxu1 %v9608_v62  ;;  %v9695_v61 = vld [vmem:[%s14373_s1 + $0x580] ss:$16 sps:$4 sm:$0xff]   ;;  %v9698_v62 = vld [vmem:[%s14373_s1 + $0x588] ss:$16 sps:$4 sm:$0xff]  }
  0x94   : > { %6666 = vmatprep.subr.bf16.mxu0 %v9613_v63  ;;  %7354 = vmatprep.subr.bf16.mxu1 %v9616_v0  ;;  %v9703_v63 = vld [vmem:[%s14373_s1 + $0x5a4] ss:$16 sps:$4 sm:$0xff]   ;;  %v9706_v0 = vld [vmem:[%s14373_s1 + $0x5ac] ss:$16 sps:$4 sm:$0xff]  }
  0x97   : > { %6667 = vmatpush1.bf16.msra.mxu0 %v9611_v1  ;;  %7355 = vmatpush1.bf16.msra.mxu1 %v9614_v2  ;;  %v9701_v1 = vld [vmem:[%s14373_s1 + $0x5a0] ss:$16 sps:$4 sm:$0xff]   ;;  %v9704_v2 = vld [vmem:[%s14373_s1 + $0x5a8] ss:$16 sps:$4 sm:$0xff]  }
  0x98   : > { %6668 = vmatprep.subr.bf16.mxu0 %v9619_v3  ;;  %7356 = vmatprep.subr.bf16.mxu1 %v9622_v4  ;;  %v9709_v3 = vld [vmem:[%s14373_s1 + $0x5c4] ss:$16 sps:$4 sm:$0xff]   ;;  %v9712_v4 = vld [vmem:[%s14373_s1 + $0x5cc] ss:$16 sps:$4 sm:$0xff]  }
  0x9b   : > { %6669 = vmatpush1.bf16.msra.mxu0 %v9617_v5  ;;  %7357 = vmatpush1.bf16.msra.mxu1 %v9620_v6  ;;  %v9707_v5 = vld [vmem:[%s14373_s1 + $0x5c0] ss:$16 sps:$4 sm:$0xff]   ;;  %v9710_v6 = vld [vmem:[%s14373_s1 + $0x5c8] ss:$16 sps:$4 sm:$0xff]  }
  0x9c   : > { %6681 = vmatprep.subr.bf16.mxu0 %v9625_v7  ;;  %7369 = vmatprep.subr.bf16.mxu1 %v9628_v8  ;;  %v9715_v7 = vld [vmem:[%s14373_s1 + $0x5e4] ss:$16 sps:$4 sm:$0xff]   ;;  %v9718_v8 = vld [vmem:[%s14373_s1 + $0x5ec] ss:$16 sps:$4 sm:$0xff]  }
  0x9e   : > { %6671 = vmatmul.mubr.bf16.vlgmr.msra.gmra.mrb[0].mxu0 %v8216_v9  ;;  %7359 = vmatmul.mubr.bf16.vlgmr.msra.gmra.mrb[0].mxu1 %v8216_v9  ;;  %v9713_v9 = vld [vmem:[%s14373_s1 + $0x5e0] ss:$16 sps:$4 sm:$0xff]  }
  0x9f   : > { %6682 = vmatpush1.bf16.msra.mxu0 %v9623_v10  ;;  %7370 = vmatpush1.bf16.msra.mxu1 %v9626_v11  ;;  %v9716_v10 = vld [vmem:[%s14373_s1 + $0x5e8] ss:$16 sps:$4 sm:$0xff]   ;;  %v9721_v11 = vld [vmem:[%s14373_s1 + $0x604] ss:$16 sps:$4 sm:$0xff]  }
  0xa0   : > { %6683 = vmatprep.subr.bf16.mxu0 %v9631_v12  ;;  %7371 = vmatprep.subr.bf16.mxu1 %v9634_v13  ;;  %v9724_v12 = vld [vmem:[%s14373_s1 + $0x60c] ss:$16 sps:$4 sm:$0xff]   ;;  %v9719_v13 = vld [vmem:[%s14373_s1 + $0x600] ss:$16 sps:$4 sm:$0xff]  }
  0xa1   : > { %6713 = vmatprep.mubr.bf16.mxu0 %v8219_v16  ;;  %7401 = vmatprep.mubr.bf16.mxu1 %v8219_v16  ;;  %v9722_v16 = vld [vmem:[%s14373_s1 + $0x608] ss:$16 sps:$4 sm:$0xff]  }
  0xa3   : > { %6684 = vmatpush1.bf16.msra.mxu0 %v9629_v17  ;;  %7372 = vmatpush1.bf16.msra.mxu1 %v9632_v18  ;;  %v8218_v17 = vcombine.low %v11485_v14, %v11488_v15  ;;  %v11681_v18 = vld [vmem:[%s11200_s25 + $0x18] sm:$0xff]  ;;  %v9725_v14 = vld [vmem:[%s14373_s1 + $0x620] ss:$16 sps:$4 sm:$0xff]  }
  0xa4   : > { %6685 = vmatprep.subr.bf16.mxu0 %v9637_v19  ;;  %7373 = vmatprep.subr.bf16.mxu1 %v9640_v20  ;;  %v11684_v19 = vld [vmem:[%s11200_s25 + $0x98] sm:$0xff]  ;;  %v9727_v20 = vld [vmem:[%s14373_s1 + $0x624] ss:$16 sps:$4 sm:$0xff]  }
  0xa5   : > { %v9728_v15 = vld [vmem:[%s14373_s1 + $0x628] ss:$16 sps:$4 sm:$0xff]  }
  0xa7   : > { %6686 = vmatpush1.bf16.msra.mxu0 %v9635_v21  ;;  %7374 = vmatpush1.bf16.msra.mxu1 %v9638_v22  ;;  %v9730_v21 = vld [vmem:[%s14373_s1 + $0x62c] ss:$16 sps:$4 sm:$0xff]   ;;  %v8221_v22 = vcombine.high %v11681_v18, %v11684_v19 }
  0xa8   : > { %6687 = vmatprep.subr.bf16.mxu0 %v9643_v23  ;;  %7375 = vmatprep.subr.bf16.mxu1 %v9646_v24  ;;  %v9733_v23 = vld [vmem:[%s14373_s1 + $0x644] ss:$16 sps:$4 sm:$0xff]   ;;  %v9736_v24 = vld [vmem:[%s14373_s1 + $0x64c] ss:$16 sps:$4 sm:$0xff]  }
  0xab   : > { %6688 = vmatpush1.bf16.msra.mxu0 %v9641_v25  ;;  %7376 = vmatpush1.bf16.msra.mxu1 %v9644_v26  ;;  %v9731_v25 = vld [vmem:[%s14373_s1 + $0x640] ss:$16 sps:$4 sm:$0xff]   ;;  %v9734_v26 = vld [vmem:[%s14373_s1 + $0x648] ss:$16 sps:$4 sm:$0xff]  }
  0xac   : > { %6689 = vmatprep.subr.bf16.mxu0 %v9649_v27  ;;  %7377 = vmatprep.subr.bf16.mxu1 %v9652_v28  ;;  %v9739_v27 = vld [vmem:[%s14373_s1 + $0x664] ss:$16 sps:$4 sm:$0xff]   ;;  %v9742_v28 = vld [vmem:[%s14373_s1 + $0x66c] ss:$16 sps:$4 sm:$0xff]  }
  0xaf   : > { %6690 = vmatpush1.bf16.msra.mxu0 %v9647_v29  ;;  %7378 = vmatpush1.bf16.msra.mxu1 %v9650_v30  ;;  %v9737_v29 = vld [vmem:[%s14373_s1 + $0x660] ss:$16 sps:$4 sm:$0xff]   ;;  %v9740_v30 = vld [vmem:[%s14373_s1 + $0x668] ss:$16 sps:$4 sm:$0xff]  }
  0xb0   : > { %6691 = vmatprep.subr.bf16.mxu0 %v9655_v31  ;;  %7379 = vmatprep.subr.bf16.mxu1 %v9658_v32  ;;  %v9745_v31 = vld [vmem:[%s14373_s1 + $0x684] ss:$16 sps:$4 sm:$0xff]   ;;  %v9748_v32 = vld [vmem:[%s14373_s1 + $0x68c] ss:$16 sps:$4 sm:$0xff]  }
  0xb3   : > { %6692 = vmatpush1.bf16.msra.mxu0 %v9653_v33  ;;  %7380 = vmatpush1.bf16.msra.mxu1 %v9656_v34  ;;  %v9743_v33 = vld [vmem:[%s14373_s1 + $0x680] ss:$16 sps:$4 sm:$0xff]   ;;  %v9746_v34 = vld [vmem:[%s14373_s1 + $0x688] ss:$16 sps:$4 sm:$0xff]  }
  0xb4   : > { %6693 = vmatprep.subr.bf16.mxu0 %v9661_v35  ;;  %7381 = vmatprep.subr.bf16.mxu1 %v9664_v36  ;;  %v9751_v35 = vld [vmem:[%s14373_s1 + $0x6a4] ss:$16 sps:$4 sm:$0xff]   ;;  %v9754_v36 = vld [vmem:[%s14373_s1 + $0x6ac] ss:$16 sps:$4 sm:$0xff]  }
  0xb7   : > { %6694 = vmatpush1.bf16.msra.mxu0 %v9659_v37  ;;  %7382 = vmatpush1.bf16.msra.mxu1 %v9662_v38  ;;  %v9749_v37 = vld [vmem:[%s14373_s1 + $0x6a0] ss:$16 sps:$4 sm:$0xff]   ;;  %v9752_v38 = vld [vmem:[%s14373_s1 + $0x6a8] ss:$16 sps:$4 sm:$0xff]  }
  0xb8   : > { %6695 = vmatprep.subr.bf16.mxu0 %v9667_v39  ;;  %7383 = vmatprep.subr.bf16.mxu1 %v9670_v40  ;;  %v9757_v39 = vld [vmem:[%s14373_s1 + $0x6c4] ss:$16 sps:$4 sm:$0xff]   ;;  %v9760_v40 = vld [vmem:[%s14373_s1 + $0x6cc] ss:$16 sps:$4 sm:$0xff]  }
  0xbb   : > { %6696 = vmatpush1.bf16.msra.mxu0 %v9665_v41  ;;  %7384 = vmatpush1.bf16.msra.mxu1 %v9668_v42  ;;  %v9755_v41 = vld [vmem:[%s14373_s1 + $0x6c0] ss:$16 sps:$4 sm:$0xff]   ;;  %v9758_v42 = vld [vmem:[%s14373_s1 + $0x6c8] ss:$16 sps:$4 sm:$0xff]  }
  0xbc   : > { %6697 = vmatprep.subr.bf16.mxu0 %v9673_v43  ;;  %7385 = vmatprep.subr.bf16.mxu1 %v9676_v44  ;;  %v9763_v43 = vld [vmem:[%s14373_s1 + $0x6e4] ss:$16 sps:$4 sm:$0xff]   ;;  %v9766_v44 = vld [vmem:[%s14373_s1 + $0x6ec] ss:$16 sps:$4 sm:$0xff]  }
  0xbf   : > { %6698 = vmatpush1.bf16.msra.mxu0 %v9671_v45  ;;  %7386 = vmatpush1.bf16.msra.mxu1 %v9674_v46  ;;  %v9761_v45 = vld [vmem:[%s14373_s1 + $0x6e0] ss:$16 sps:$4 sm:$0xff]   ;;  %v9764_v46 = vld [vmem:[%s14373_s1 + $0x6e8] ss:$16 sps:$4 sm:$0xff]  }
  0xc0   : > { %6699 = vmatprep.subr.bf16.mxu0 %v9679_v47  ;;  %7387 = vmatprep.subr.bf16.mxu1 %v9682_v48  ;;  %v9769_v47 = vld [vmem:[%s14373_s1 + $0x704] ss:$16 sps:$4 sm:$0xff]   ;;  %v9772_v48 = vld [vmem:[%s14373_s1 + $0x70c] ss:$16 sps:$4 sm:$0xff]  }
  0xc3   : > { %6700 = vmatpush1.bf16.msra.mxu0 %v9677_v49  ;;  %7388 = vmatpush1.bf16.msra.mxu1 %v9680_v50  ;;  %v9767_v49 = vld [vmem:[%s14373_s1 + $0x700] ss:$16 sps:$4 sm:$0xff]   ;;  %v9770_v50 = vld [vmem:[%s14373_s1 + $0x708] ss:$16 sps:$4 sm:$0xff]  }
  0xc4   : > { %6701 = vmatprep.subr.bf16.mxu0 %v9685_v51  ;;  %7389 = vmatprep.subr.bf16.mxu1 %v9688_v52  ;;  %v9775_v51 = vld [vmem:[%s14373_s1 + $0x724] ss:$16 sps:$4 sm:$0xff]   ;;  %v9778_v52 = vld [vmem:[%s14373_s1 + $0x72c] ss:$16 sps:$4 sm:$0xff]  }
  0xc7   : > { %6702 = vmatpush1.bf16.msra.mxu0 %v9683_v53  ;;  %7390 = vmatpush1.bf16.msra.mxu1 %v9686_v54  ;;  %v9773_v53 = vld [vmem:[%s14373_s1 + $0x720] ss:$16 sps:$4 sm:$0xff]   ;;  %v9776_v54 = vld [vmem:[%s14373_s1 + $0x728] ss:$16 sps:$4 sm:$0xff]  }
  0xc8   : > { %6703 = vmatprep.subr.bf16.mxu0 %v9691_v55  ;;  %7391 = vmatprep.subr.bf16.mxu1 %v9694_v56  ;;  %v9781_v55 = vld [vmem:[%s14373_s1 + $0x744] ss:$16 sps:$4 sm:$0xff]   ;;  %v9784_v56 = vld [vmem:[%s14373_s1 + $0x74c] ss:$16 sps:$4 sm:$0xff]  }
  0xcb   : > { %6704 = vmatpush1.bf16.msra.mxu0 %v9689_v57  ;;  %7392 = vmatpush1.bf16.msra.mxu1 %v9692_v58  ;;  %v9779_v57 = vld [vmem:[%s14373_s1 + $0x740] ss:$16 sps:$4 sm:$0xff]   ;;  %v9782_v58 = vld [vmem:[%s14373_s1 + $0x748] ss:$16 sps:$4 sm:$0xff]  }
  0xcc   : > { %6705 = vmatprep.subr.bf16.mxu0 %v9697_v59  ;;  %7393 = vmatprep.subr.bf16.mxu1 %v9700_v60  ;;  %v9787_v59 = vld [vmem:[%s14373_s1 + $0x764] ss:$16 sps:$4 sm:$0xff]   ;;  %v9790_v60 = vld [vmem:[%s14373_s1 + $0x76c] ss:$16 sps:$4 sm:$0xff]  }
  0xcf   : > { %6706 = vmatpush1.bf16.msra.mxu0 %v9695_v61  ;;  %7394 = vmatpush1.bf16.msra.mxu1 %v9698_v62  ;;  %v9785_v61 = vld [vmem:[%s14373_s1 + $0x760] ss:$16 sps:$4 sm:$0xff]   ;;  %v9788_v62 = vld [vmem:[%s14373_s1 + $0x768] ss:$16 sps:$4 sm:$0xff]  }
  0xd0   : > { %6707 = vmatprep.subr.bf16.mxu0 %v9703_v63  ;;  %7395 = vmatprep.subr.bf16.mxu1 %v9706_v0  ;;  %v9793_v63 = vld [vmem:[%s14373_s1 + $0x784] ss:$16 sps:$4 sm:$0xff]   ;;  %v9796_v0 = vld [vmem:[%s14373_s1 + $0x78c] ss:$16 sps:$4 sm:$0xff]  }
  0xd3   : > { %6708 = vmatpush1.bf16.msra.mxu0 %v9701_v1  ;;  %7396 = vmatpush1.bf16.msra.mxu1 %v9704_v2  ;;  %v9791_v1 = vld [vmem:[%s14373_s1 + $0x780] ss:$16 sps:$4 sm:$0xff]   ;;  %v9794_v2 = vld [vmem:[%s14373_s1 + $0x788] ss:$16 sps:$4 sm:$0xff]  }
  0xd4   : > { %6709 = vmatprep.subr.bf16.mxu0 %v9709_v3  ;;  %7397 = vmatprep.subr.bf16.mxu1 %v9712_v4  ;;  %v9799_v3 = vld [vmem:[%s14373_s1 + $0x7a4] ss:$16 sps:$4 sm:$0xff]   ;;  %v9802_v4 = vld [vmem:[%s14373_s1 + $0x7ac] ss:$16 sps:$4 sm:$0xff]  }
  0xd7   : > { %6710 = vmatpush1.bf16.msra.mxu0 %v9707_v5  ;;  %7398 = vmatpush1.bf16.msra.mxu1 %v9710_v6  ;;  %v9797_v5 = vld [vmem:[%s14373_s1 + $0x7a0] ss:$16 sps:$4 sm:$0xff]   ;;  %v9800_v6 = vld [vmem:[%s14373_s1 + $0x7a8] ss:$16 sps:$4 sm:$0xff]  }
  0xd8   : > { %6711 = vmatprep.subr.bf16.mxu0 %v9715_v7  ;;  %7399 = vmatprep.subr.bf16.mxu1 %v9718_v8  ;;  %v9805_v7 = vld [vmem:[%s14373_s1 + $0x7c4] ss:$16 sps:$4 sm:$0xff]   ;;  %v9808_v8 = vld [vmem:[%s14373_s1 + $0x7cc] ss:$16 sps:$4 sm:$0xff]  }
  0xdb   : > { %6712 = vmatpush1.bf16.msra.mxu0 %v9713_v9  ;;  %7400 = vmatpush1.bf16.msra.mxu1 %v9716_v10  ;;  %v9803_v9 = vld [vmem:[%s14373_s1 + $0x7c0] ss:$16 sps:$4 sm:$0xff]   ;;  %v9806_v10 = vld [vmem:[%s14373_s1 + $0x7c8] ss:$16 sps:$4 sm:$0xff]  }
  0xdc   : > { %6724 = vmatprep.subr.bf16.mxu0 %v9721_v11  ;;  %7412 = vmatprep.subr.bf16.mxu1 %v9724_v12  ;;  %v9811_v11 = vld [vmem:[%s14373_s1 + $0x7e4] ss:$16 sps:$4 sm:$0xff]   ;;  %v9814_v12 = vld [vmem:[%s14373_s1 + $0x7ec] ss:$16 sps:$4 sm:$0xff]  }
  0xde   : > { %6714 = vmatmul.mubr.bf16.vlgmr.msra.gmra.mrb[0].mxu0 %v8218_v17  ;;  %7402 = vmatmul.mubr.bf16.vlgmr.msra.gmra.mrb[0].mxu1 %v8218_v17  ;;  %v9817_v17 = vld [vmem:[%s14373_s1 + $0x804] ss:$16 sps:$4 sm:$0xff]  }
  0xdf   : > { %6725 = vmatpush1.bf16.msra.mxu0 %v9719_v13  ;;  %7413 = vmatpush1.bf16.msra.mxu1 %v9722_v16  ;;  %v9809_v13 = vld [vmem:[%s14373_s1 + $0x7e0] ss:$16 sps:$4 sm:$0xff]   ;;  %v9812_v16 = vld [vmem:[%s14373_s1 + $0x7e8] ss:$16 sps:$4 sm:$0xff]  }
  0xe0   : > { %6726 = vmatprep.subr.bf16.mxu0 %v9727_v20  ;;  %7414 = vmatprep.subr.bf16.mxu1 %v9730_v21  ;;  %v9820_v20 = vld [vmem:[%s14373_s1 + $0x80c] ss:$16 sps:$4 sm:$0xff]   ;;  %v11875_v21 = vld [vmem:[%s11200_s25 + $0x20] sm:$0xff] }
  0xe1   : > { %6756 = vmatprep.mubr.bf16.mxu0 %v8221_v22  ;;  %7444 = vmatprep.mubr.bf16.mxu1 %v8221_v22  ;;  %v8220_v22 = vcombine.low %v11681_v18, %v11684_v19  ;;  %v9826_v18 = vld [vmem:[%s14373_s1 + $0x82c] ss:$16 sps:$4 sm:$0xff]  }
  0xe3   : > { %6727 = vmatpush1.bf16.msra.mxu0 %v9725_v14  ;;  %7415 = vmatpush1.bf16.msra.mxu1 %v9728_v15  ;;  %v11880_v14 = vld [vmem:[%s11200_s25 + $0xa0] sm:$0xff] }
  0xe4   : > { %6728 = vmatprep.subr.bf16.mxu0 %v9733_v23  ;;  %7416 = vmatprep.subr.bf16.mxu1 %v9736_v24  ;;  %v9815_v15 = vld [vmem:[%s14373_s1 + $0x800] ss:$16 sps:$4 sm:$0xff]   ;;  %v9818_v23 = vld [vmem:[%s14373_s1 + $0x808] ss:$16 sps:$4 sm:$0xff]   ;;  %v9823_v24 = vld [vmem:[%s14373_s1 + $0x824] ss:$16 sps:$4 sm:$0xff]   ;;  %v8223_v19 = vcombine.high %v11875_v21, %v11880_v14 }
  0xe7   : > { %6729 = vmatpush1.bf16.msra.mxu0 %v9731_v25  ;;  %7417 = vmatpush1.bf16.msra.mxu1 %v9734_v26  ;;  %v9821_v25 = vld [vmem:[%s14373_s1 + $0x820] ss:$16 sps:$4 sm:$0xff]   ;;  %v9824_v26 = vld [vmem:[%s14373_s1 + $0x828] ss:$16 sps:$4 sm:$0xff]  }
  0xe8   : > { %6730 = vmatprep.subr.bf16.mxu0 %v9739_v27  ;;  %7418 = vmatprep.subr.bf16.mxu1 %v9742_v28  ;;  %v9829_v27 = vld [vmem:[%s14373_s1 + $0x844] ss:$16 sps:$4 sm:$0xff]   ;;  %v9832_v28 = vld [vmem:[%s14373_s1 + $0x84c] ss:$16 sps:$4 sm:$0xff]  }
  0xeb   : > { %6731 = vmatpush1.bf16.msra.mxu0 %v9737_v29  ;;  %7419 = vmatpush1.bf16.msra.mxu1 %v9740_v30  ;;  %v9827_v29 = vld [vmem:[%s14373_s1 + $0x840] ss:$16 sps:$4 sm:$0xff]   ;;  %v9830_v30 = vld [vmem:[%s14373_s1 + $0x848] ss:$16 sps:$4 sm:$0xff]  }
  0xec   : > { %6732 = vmatprep.subr.bf16.mxu0 %v9745_v31  ;;  %7420 = vmatprep.subr.bf16.mxu1 %v9748_v32  ;;  %v9835_v31 = vld [vmem:[%s14373_s1 + $0x864] ss:$16 sps:$4 sm:$0xff]   ;;  %v9838_v32 = vld [vmem:[%s14373_s1 + $0x86c] ss:$16 sps:$4 sm:$0xff]  }
  0xef   : > { %6733 = vmatpush1.bf16.msra.mxu0 %v9743_v33  ;;  %7421 = vmatpush1.bf16.msra.mxu1 %v9746_v34  ;;  %v9833_v33 = vld [vmem:[%s14373_s1 + $0x860] ss:$16 sps:$4 sm:$0xff]   ;;  %v9836_v34 = vld [vmem:[%s14373_s1 + $0x868] ss:$16 sps:$4 sm:$0xff]  }
  0xf0   : > { %6734 = vmatprep.subr.bf16.mxu0 %v9751_v35  ;;  %7422 = vmatprep.subr.bf16.mxu1 %v9754_v36  ;;  %v9841_v35 = vld [vmem:[%s14373_s1 + $0x884] ss:$16 sps:$4 sm:$0xff]   ;;  %v9844_v36 = vld [vmem:[%s14373_s1 + $0x88c] ss:$16 sps:$4 sm:$0xff]  }
  0xf3   : > { %6735 = vmatpush1.bf16.msra.mxu0 %v9749_v37  ;;  %7423 = vmatpush1.bf16.msra.mxu1 %v9752_v38  ;;  %v9839_v37 = vld [vmem:[%s14373_s1 + $0x880] ss:$16 sps:$4 sm:$0xff]   ;;  %v9842_v38 = vld [vmem:[%s14373_s1 + $0x888] ss:$16 sps:$4 sm:$0xff]  }
  0xf4   : > { %6736 = vmatprep.subr.bf16.mxu0 %v9757_v39  ;;  %7424 = vmatprep.subr.bf16.mxu1 %v9760_v40  ;;  %v9847_v39 = vld [vmem:[%s14373_s1 + $0x8a4] ss:$16 sps:$4 sm:$0xff]   ;;  %v9850_v40 = vld [vmem:[%s14373_s1 + $0x8ac] ss:$16 sps:$4 sm:$0xff]  }
  0xf7   : > { %6737 = vmatpush1.bf16.msra.mxu0 %v9755_v41  ;;  %7425 = vmatpush1.bf16.msra.mxu1 %v9758_v42  ;;  %v9845_v41 = vld [vmem:[%s14373_s1 + $0x8a0] ss:$16 sps:$4 sm:$0xff]   ;;  %v9848_v42 = vld [vmem:[%s14373_s1 + $0x8a8] ss:$16 sps:$4 sm:$0xff]  }
  0xf8   : > { %6738 = vmatprep.subr.bf16.mxu0 %v9763_v43  ;;  %7426 = vmatprep.subr.bf16.mxu1 %v9766_v44  ;;  %v9853_v43 = vld [vmem:[%s14373_s1 + $0x8c4] ss:$16 sps:$4 sm:$0xff]   ;;  %v9856_v44 = vld [vmem:[%s14373_s1 + $0x8cc] ss:$16 sps:$4 sm:$0xff]  }
  0xfb   : > { %6739 = vmatpush1.bf16.msra.mxu0 %v9761_v45  ;;  %7427 = vmatpush1.bf16.msra.mxu1 %v9764_v46  ;;  %v9851_v45 = vld [vmem:[%s14373_s1 + $0x8c0] ss:$16 sps:$4 sm:$0xff]   ;;  %v9854_v46 = vld [vmem:[%s14373_s1 + $0x8c8] ss:$16 sps:$4 sm:$0xff]  }
  0xfc   : > { %6740 = vmatprep.subr.bf16.mxu0 %v9769_v47  ;;  %7428 = vmatprep.subr.bf16.mxu1 %v9772_v48  ;;  %v9859_v47 = vld [vmem:[%s14373_s1 + $0x8e4] ss:$16 sps:$4 sm:$0xff]   ;;  %v9862_v48 = vld [vmem:[%s14373_s1 + $0x8ec] ss:$16 sps:$4 sm:$0xff]  }
  0xff   : > { %6741 = vmatpush1.bf16.msra.mxu0 %v9767_v49  ;;  %7429 = vmatpush1.bf16.msra.mxu1 %v9770_v50  ;;  %v9857_v49 = vld [vmem:[%s14373_s1 + $0x8e0] ss:$16 sps:$4 sm:$0xff]   ;;  %v9860_v50 = vld [vmem:[%s14373_s1 + $0x8e8] ss:$16 sps:$4 sm:$0xff]  }
 0x100   : > { %6742 = vmatprep.subr.bf16.mxu0 %v9775_v51  ;;  %7430 = vmatprep.subr.bf16.mxu1 %v9778_v52  ;;  %v9865_v51 = vld [vmem:[%s14373_s1 + $0x904] ss:$16 sps:$4 sm:$0xff]   ;;  %v9868_v52 = vld [vmem:[%s14373_s1 + $0x90c] ss:$16 sps:$4 sm:$0xff]  }
 0x103   : > { %6743 = vmatpush1.bf16.msra.mxu0 %v9773_v53  ;;  %7431 = vmatpush1.bf16.msra.mxu1 %v9776_v54  ;;  %v9863_v53 = vld [vmem:[%s14373_s1 + $0x900] ss:$16 sps:$4 sm:$0xff]   ;;  %v9866_v54 = vld [vmem:[%s14373_s1 + $0x908] ss:$16 sps:$4 sm:$0xff]  }
 0x104   : > { %6744 = vmatprep.subr.bf16.mxu0 %v9781_v55  ;;  %7432 = vmatprep.subr.bf16.mxu1 %v9784_v56  ;;  %v9871_v55 = vld [vmem:[%s14373_s1 + $0x924] ss:$16 sps:$4 sm:$0xff]   ;;  %v9874_v56 = vld [vmem:[%s14373_s1 + $0x92c] ss:$16 sps:$4 sm:$0xff]  }
 0x107   : > { %6745 = vmatpush1.bf16.msra.mxu0 %v9779_v57  ;;  %7433 = vmatpush1.bf16.msra.mxu1 %v9782_v58  ;;  %v9869_v57 = vld [vmem:[%s14373_s1 + $0x920] ss:$16 sps:$4 sm:$0xff]   ;;  %v9872_v58 = vld [vmem:[%s14373_s1 + $0x928] ss:$16 sps:$4 sm:$0xff]  }
 0x108   : > { %6746 = vmatprep.subr.bf16.mxu0 %v9787_v59  ;;  %7434 = vmatprep.subr.bf16.mxu1 %v9790_v60  ;;  %v9877_v59 = vld [vmem:[%s14373_s1 + $0x944] ss:$16 sps:$4 sm:$0xff]   ;;  %v9880_v60 = vld [vmem:[%s14373_s1 + $0x94c] ss:$16 sps:$4 sm:$0xff]  }
 0x10b   : > { %6747 = vmatpush1.bf16.msra.mxu0 %v9785_v61  ;;  %7435 = vmatpush1.bf16.msra.mxu1 %v9788_v62  ;;  %v9875_v61 = vld [vmem:[%s14373_s1 + $0x940] ss:$16 sps:$4 sm:$0xff]   ;;  %v9878_v62 = vld [vmem:[%s14373_s1 + $0x948] ss:$16 sps:$4 sm:$0xff]  }
 0x10c   : > { %6748 = vmatprep.subr.bf16.mxu0 %v9793_v63  ;;  %7436 = vmatprep.subr.bf16.mxu1 %v9796_v0  ;;  %v9883_v63 = vld [vmem:[%s14373_s1 + $0x964] ss:$16 sps:$4 sm:$0xff]   ;;  %v9886_v0 = vld [vmem:[%s14373_s1 + $0x96c] ss:$16 sps:$4 sm:$0xff]  }
 0x10f   : > { %6749 = vmatpush1.bf16.msra.mxu0 %v9791_v1  ;;  %7437 = vmatpush1.bf16.msra.mxu1 %v9794_v2  ;;  %v9881_v1 = vld [vmem:[%s14373_s1 + $0x960] ss:$16 sps:$4 sm:$0xff]   ;;  %v9884_v2 = vld [vmem:[%s14373_s1 + $0x968] ss:$16 sps:$4 sm:$0xff]  }
 0x110   : > { %6750 = vmatprep.subr.bf16.mxu0 %v9799_v3  ;;  %7438 = vmatprep.subr.bf16.mxu1 %v9802_v4  ;;  %v9889_v3 = vld [vmem:[%s14373_s1 + $0x984] ss:$16 sps:$4 sm:$0xff]   ;;  %v9892_v4 = vld [vmem:[%s14373_s1 + $0x98c] ss:$16 sps:$4 sm:$0xff]  }
 0x113   : > { %6751 = vmatpush1.bf16.msra.mxu0 %v9797_v5  ;;  %7439 = vmatpush1.bf16.msra.mxu1 %v9800_v6  ;;  %v9887_v5 = vld [vmem:[%s14373_s1 + $0x980] ss:$16 sps:$4 sm:$0xff]   ;;  %v9890_v6 = vld [vmem:[%s14373_s1 + $0x988] ss:$16 sps:$4 sm:$0xff]  }
 0x114   : > { %6752 = vmatprep.subr.bf16.mxu0 %v9805_v7  ;;  %7440 = vmatprep.subr.bf16.mxu1 %v9808_v8  ;;  %v9895_v7 = vld [vmem:[%s14373_s1 + $0x9a4] ss:$16 sps:$4 sm:$0xff]   ;;  %v9898_v8 = vld [vmem:[%s14373_s1 + $0x9ac] ss:$16 sps:$4 sm:$0xff]  }
 0x117   : > { %6753 = vmatpush1.bf16.msra.mxu0 %v9803_v9  ;;  %7441 = vmatpush1.bf16.msra.mxu1 %v9806_v10  ;;  %v9893_v9 = vld [vmem:[%s14373_s1 + $0x9a0] ss:$16 sps:$4 sm:$0xff]   ;;  %v9896_v10 = vld [vmem:[%s14373_s1 + $0x9a8] ss:$16 sps:$4 sm:$0xff]  }
 0x118   : > { %6754 = vmatprep.subr.bf16.mxu0 %v9811_v11  ;;  %7442 = vmatprep.subr.bf16.mxu1 %v9814_v12  ;;  %v9901_v11 = vld [vmem:[%s14373_s1 + $0x9c4] ss:$16 sps:$4 sm:$0xff]   ;;  %v9904_v12 = vld [vmem:[%s14373_s1 + $0x9cc] ss:$16 sps:$4 sm:$0xff]  }
 0x11b   : > { %6755 = vmatpush1.bf16.msra.mxu0 %v9809_v13  ;;  %7443 = vmatpush1.bf16.msra.mxu1 %v9812_v16  ;;  %v9899_v13 = vld [vmem:[%s14373_s1 + $0x9c0] ss:$16 sps:$4 sm:$0xff]   ;;  %v9902_v16 = vld [vmem:[%s14373_s1 + $0x9c8] ss:$16 sps:$4 sm:$0xff]  }
 0x11c   : > { %6767 = vmatprep.subr.bf16.mxu0 %v9817_v17  ;;  %7455 = vmatprep.subr.bf16.mxu1 %v9820_v20  ;;  %v9907_v17 = vld [vmem:[%s14373_s1 + $0x9e4] ss:$16 sps:$4 sm:$0xff]   ;;  %v9910_v20 = vld [vmem:[%s14373_s1 + $0x9ec] ss:$16 sps:$4 sm:$0xff]  }
 0x11e   : > { %6757 = vmatmul.mubr.bf16.vlgmr.msra.gmra.mrb[0].mxu0 %v8220_v22  ;;  %7445 = vmatmul.mubr.bf16.vlgmr.msra.gmra.mrb[0].mxu1 %v8220_v22  ;;  %v9905_v22 = vld [vmem:[%s14373_s1 + $0x9e0] ss:$16 sps:$4 sm:$0xff]  }
 0x11f   : > { %6768 = vmatpush1.bf16.msra.mxu0 %v9815_v15  ;;  %7456 = vmatpush1.bf16.msra.mxu1 %v9818_v23  ;;  %v9908_v15 = vld [vmem:[%s14373_s1 + $0x9e8] ss:$16 sps:$4 sm:$0xff]   ;;  %v9913_v23 = vld [vmem:[%s14373_s1 + $0xa04] ss:$16 sps:$4 sm:$0xff]  }
 0x120   : > { %6769 = vmatprep.subr.bf16.mxu0 %v9823_v24  ;;  %7457 = vmatprep.subr.bf16.mxu1 %v9826_v18  ;;  %v9916_v24 = vld [vmem:[%s14373_s1 + $0xa0c] ss:$16 sps:$4 sm:$0xff]  }
 0x121   : > { %6799 = vmatprep.mubr.bf16.mxu0 %v8223_v19  ;;  %7487 = vmatprep.mubr.bf16.mxu1 %v8223_v19  ;;  %v12077_v18 = vld [vmem:[%s11200_s25 + $0x28] sm:$0xff] }
 0x122   : > { %v12080_v19 = vld [vmem:[%s11200_s25 + $0xa8] sm:$0xff] }
 0x123   : > { %6770 = vmatpush1.bf16.msra.mxu0 %v9821_v25  ;;  %7458 = vmatpush1.bf16.msra.mxu1 %v9824_v26  ;;  %v8222_v25 = vcombine.low %v11875_v21, %v11880_v14  ;;  %v9911_v26 = vld [vmem:[%s14373_s1 + $0xa00] ss:$16 sps:$4 sm:$0xff]   ;;  %v9922_v21 = vld [vmem:[%s14373_s1 + $0xa2c] ss:$16 sps:$4 sm:$0xff]   ;;  %v8225_v14 = vcombine.high %v12077_v18, %v12080_v19 }
 0x124   : > { %6771 = vmatprep.subr.bf16.mxu0 %v9829_v27  ;;  %7459 = vmatprep.subr.bf16.mxu1 %v9832_v28  ;;  %v9914_v27 = vld [vmem:[%s14373_s1 + $0xa08] ss:$16 sps:$4 sm:$0xff]   ;;  %v9919_v28 = vld [vmem:[%s14373_s1 + $0xa24] ss:$16 sps:$4 sm:$0xff]  }
 0x127   : > { %6772 = vmatpush1.bf16.msra.mxu0 %v9827_v29  ;;  %7460 = vmatpush1.bf16.msra.mxu1 %v9830_v30  ;;  %v9917_v29 = vld [vmem:[%s14373_s1 + $0xa20] ss:$16 sps:$4 sm:$0xff]   ;;  %v9920_v30 = vld [vmem:[%s14373_s1 + $0xa28] ss:$16 sps:$4 sm:$0xff]  }
 0x128   : > { %6773 = vmatprep.subr.bf16.mxu0 %v9835_v31  ;;  %7461 = vmatprep.subr.bf16.mxu1 %v9838_v32  ;;  %v9925_v31 = vld [vmem:[%s14373_s1 + $0xa44] ss:$16 sps:$4 sm:$0xff]   ;;  %v9928_v32 = vld [vmem:[%s14373_s1 + $0xa4c] ss:$16 sps:$4 sm:$0xff]  }
 0x12b   : > { %6774 = vmatpush1.bf16.msra.mxu0 %v9833_v33  ;;  %7462 = vmatpush1.bf16.msra.mxu1 %v9836_v34  ;;  %v9923_v33 = vld [vmem:[%s14373_s1 + $0xa40] ss:$16 sps:$4 sm:$0xff]   ;;  %v9926_v34 = vld [vmem:[%s14373_s1 + $0xa48] ss:$16 sps:$4 sm:$0xff]  }
 0x12c   : > { %6775 = vmatprep.subr.bf16.mxu0 %v9841_v35  ;;  %7463 = vmatprep.subr.bf16.mxu1 %v9844_v36  ;;  %v9931_v35 = vld [vmem:[%s14373_s1 + $0xa64] ss:$16 sps:$4 sm:$0xff]   ;;  %v9934_v36 = vld [vmem:[%s14373_s1 + $0xa6c] ss:$16 sps:$4 sm:$0xff]  }
 0x12f   : > { %6776 = vmatpush1.bf16.msra.mxu0 %v9839_v37  ;;  %7464 = vmatpush1.bf16.msra.mxu1 %v9842_v38  ;;  %v9929_v37 = vld [vmem:[%s14373_s1 + $0xa60] ss:$16 sps:$4 sm:$0xff]   ;;  %v9932_v38 = vld [vmem:[%s14373_s1 + $0xa68] ss:$16 sps:$4 sm:$0xff]  }
 0x130   : > { %6777 = vmatprep.subr.bf16.mxu0 %v9847_v39  ;;  %7465 = vmatprep.subr.bf16.mxu1 %v9850_v40  ;;  %v9937_v39 = vld [vmem:[%s14373_s1 + $0xa84] ss:$16 sps:$4 sm:$0xff]   ;;  %v9940_v40 = vld [vmem:[%s14373_s1 + $0xa8c] ss:$16 sps:$4 sm:$0xff]  }
 0x133   : > { %6778 = vmatpush1.bf16.msra.mxu0 %v9845_v41  ;;  %7466 = vmatpush1.bf16.msra.mxu1 %v9848_v42  ;;  %v9935_v41 = vld [vmem:[%s14373_s1 + $0xa80] ss:$16 sps:$4 sm:$0xff]   ;;  %v9938_v42 = vld [vmem:[%s14373_s1 + $0xa88] ss:$16 sps:$4 sm:$0xff]  }
 0x134   : > { %6779 = vmatprep.subr.bf16.mxu0 %v9853_v43  ;;  %7467 = vmatprep.subr.bf16.mxu1 %v9856_v44  ;;  %v9943_v43 = vld [vmem:[%s14373_s1 + $0xaa4] ss:$16 sps:$4 sm:$0xff]   ;;  %v9946_v44 = vld [vmem:[%s14373_s1 + $0xaac] ss:$16 sps:$4 sm:$0xff]  }
 0x137   : > { %6780 = vmatpush1.bf16.msra.mxu0 %v9851_v45  ;;  %7468 = vmatpush1.bf16.msra.mxu1 %v9854_v46  ;;  %v9941_v45 = vld [vmem:[%s14373_s1 + $0xaa0] ss:$16 sps:$4 sm:$0xff]   ;;  %v9944_v46 = vld [vmem:[%s14373_s1 + $0xaa8] ss:$16 sps:$4 sm:$0xff]  }
 0x138   : > { %6781 = vmatprep.subr.bf16.mxu0 %v9859_v47  ;;  %7469 = vmatprep.subr.bf16.mxu1 %v9862_v48  ;;  %v9949_v47 = vld [vmem:[%s14373_s1 + $0xac4] ss:$16 sps:$4 sm:$0xff]   ;;  %v9952_v48 = vld [vmem:[%s14373_s1 + $0xacc] ss:$16 sps:$4 sm:$0xff]  }
 0x13b   : > { %6782 = vmatpush1.bf16.msra.mxu0 %v9857_v49  ;;  %7470 = vmatpush1.bf16.msra.mxu1 %v9860_v50  ;;  %v9947_v49 = vld [vmem:[%s14373_s1 + $0xac0] ss:$16 sps:$4 sm:$0xff]   ;;  %v9950_v50 = vld [vmem:[%s14373_s1 + $0xac8] ss:$16 sps:$4 sm:$0xff]  }
 0x13c   : > { %6783 = vmatprep.subr.bf16.mxu0 %v9865_v51  ;;  %7471 = vmatprep.subr.bf16.mxu1 %v9868_v52  ;;  %v9955_v51 = vld [vmem:[%s14373_s1 + $0xae4] ss:$16 sps:$4 sm:$0xff]   ;;  %v9958_v52 = vld [vmem:[%s14373_s1 + $0xaec] ss:$16 sps:$4 sm:$0xff]  }
 0x13f   : > { %6784 = vmatpush1.bf16.msra.mxu0 %v9863_v53  ;;  %7472 = vmatpush1.bf16.msra.mxu1 %v9866_v54  ;;  %v9953_v53 = vld [vmem:[%s14373_s1 + $0xae0] ss:$16 sps:$4 sm:$0xff]   ;;  %v9956_v54 = vld [vmem:[%s14373_s1 + $0xae8] ss:$16 sps:$4 sm:$0xff]  }
 0x140   : > { %6785 = vmatprep.subr.bf16.mxu0 %v9871_v55  ;;  %7473 = vmatprep.subr.bf16.mxu1 %v9874_v56  ;;  %v9961_v55 = vld [vmem:[%s14373_s1 + $0xb04] ss:$16 sps:$4 sm:$0xff]   ;;  %v9964_v56 = vld [vmem:[%s14373_s1 + $0xb0c] ss:$16 sps:$4 sm:$0xff]  }
 0x143   : > { %6786 = vmatpush1.bf16.msra.mxu0 %v9869_v57  ;;  %7474 = vmatpush1.bf16.msra.mxu1 %v9872_v58  ;;  %v9959_v57 = vld [vmem:[%s14373_s1 + $0xb00] ss:$16 sps:$4 sm:$0xff]   ;;  %v9962_v58 = vld [vmem:[%s14373_s1 + $0xb08] ss:$16 sps:$4 sm:$0xff]  }
 0x144   : > { %6787 = vmatprep.subr.bf16.mxu0 %v9877_v59  ;;  %7475 = vmatprep.subr.bf16.mxu1 %v9880_v60  ;;  %v9967_v59 = vld [vmem:[%s14373_s1 + $0xb24] ss:$16 sps:$4 sm:$0xff]   ;;  %v9970_v60 = vld [vmem:[%s14373_s1 + $0xb2c] ss:$16 sps:$4 sm:$0xff]  }
 0x147   : > { %6788 = vmatpush1.bf16.msra.mxu0 %v9875_v61  ;;  %7476 = vmatpush1.bf16.msra.mxu1 %v9878_v62  ;;  %v9965_v61 = vld [vmem:[%s14373_s1 + $0xb20] ss:$16 sps:$4 sm:$0xff]   ;;  %v9968_v62 = vld [vmem:[%s14373_s1 + $0xb28] ss:$16 sps:$4 sm:$0xff]  }
 0x148   : > { %6789 = vmatprep.subr.bf16.mxu0 %v9883_v63  ;;  %7477 = vmatprep.subr.bf16.mxu1 %v9886_v0  ;;  %v9973_v63 = vld [vmem:[%s14373_s1 + $0xb44] ss:$16 sps:$4 sm:$0xff]   ;;  %v9976_v0 = vld [vmem:[%s14373_s1 + $0xb4c] ss:$16 sps:$4 sm:$0xff]  }
 0x14b   : > { %6790 = vmatpush1.bf16.msra.mxu0 %v9881_v1  ;;  %7478 = vmatpush1.bf16.msra.mxu1 %v9884_v2  ;;  %v9971_v1 = vld [vmem:[%s14373_s1 + $0xb40] ss:$16 sps:$4 sm:$0xff]   ;;  %v9974_v2 = vld [vmem:[%s14373_s1 + $0xb48] ss:$16 sps:$4 sm:$0xff]  }
 0x14c   : > { %6791 = vmatprep.subr.bf16.mxu0 %v9889_v3  ;;  %7479 = vmatprep.subr.bf16.mxu1 %v9892_v4  ;;  %v9979_v3 = vld [vmem:[%s14373_s1 + $0xb64] ss:$16 sps:$4 sm:$0xff]   ;;  %v9982_v4 = vld [vmem:[%s14373_s1 + $0xb6c] ss:$16 sps:$4 sm:$0xff]  }
 0x14f   : > { %6792 = vmatpush1.bf16.msra.mxu0 %v9887_v5  ;;  %7480 = vmatpush1.bf16.msra.mxu1 %v9890_v6  ;;  %v9977_v5 = vld [vmem:[%s14373_s1 + $0xb60] ss:$16 sps:$4 sm:$0xff]   ;;  %v9980_v6 = vld [vmem:[%s14373_s1 + $0xb68] ss:$16 sps:$4 sm:$0xff]  }
 0x150   : > { %6793 = vmatprep.subr.bf16.mxu0 %v9895_v7  ;;  %7481 = vmatprep.subr.bf16.mxu1 %v9898_v8  ;;  %v9985_v7 = vld [vmem:[%s14373_s1 + $0xb84] ss:$16 sps:$4 sm:$0xff]   ;;  %v9988_v8 = vld [vmem:[%s14373_s1 + $0xb8c] ss:$16 sps:$4 sm:$0xff]  }
 0x153   : > { %6794 = vmatpush1.bf16.msra.mxu0 %v9893_v9  ;;  %7482 = vmatpush1.bf16.msra.mxu1 %v9896_v10  ;;  %v9983_v9 = vld [vmem:[%s14373_s1 + $0xb80] ss:$16 sps:$4 sm:$0xff]   ;;  %v9986_v10 = vld [vmem:[%s14373_s1 + $0xb88] ss:$16 sps:$4 sm:$0xff]  }
 0x154   : > { %6795 = vmatprep.subr.bf16.mxu0 %v9901_v11  ;;  %7483 = vmatprep.subr.bf16.mxu1 %v9904_v12  ;;  %v9991_v11 = vld [vmem:[%s14373_s1 + $0xba4] ss:$16 sps:$4 sm:$0xff]   ;;  %v9994_v12 = vld [vmem:[%s14373_s1 + $0xbac] ss:$16 sps:$4 sm:$0xff]  }
 0x157   : > { %6796 = vmatpush1.bf16.msra.mxu0 %v9899_v13  ;;  %7484 = vmatpush1.bf16.msra.mxu1 %v9902_v16  ;;  %v9989_v13 = vld [vmem:[%s14373_s1 + $0xba0] ss:$16 sps:$4 sm:$0xff]   ;;  %v9992_v16 = vld [vmem:[%s14373_s1 + $0xba8] ss:$16 sps:$4 sm:$0xff]  }
 0x158   : > { %6797 = vmatprep.subr.bf16.mxu0 %v9907_v17  ;;  %7485 = vmatprep.subr.bf16.mxu1 %v9910_v20  ;;  %v9997_v17 = vld [vmem:[%s14373_s1 + $0xbc4] ss:$16 sps:$4 sm:$0xff]   ;;  %v10000_v20 = vld [vmem:[%s14373_s1 + $0xbcc] ss:$16 sps:$4 sm:$0xff]  }
 0x15b   : > { %6798 = vmatpush1.bf16.msra.mxu0 %v9905_v22  ;;  %7486 = vmatpush1.bf16.msra.mxu1 %v9908_v15  ;;  %v9995_v22 = vld [vmem:[%s14373_s1 + $0xbc0] ss:$16 sps:$4 sm:$0xff]   ;;  %v9998_v15 = vld [vmem:[%s14373_s1 + $0xbc8] ss:$16 sps:$4 sm:$0xff]  }
 0x15c   : > { %6810 = vmatprep.subr.bf16.mxu0 %v9913_v23  ;;  %7498 = vmatprep.subr.bf16.mxu1 %v9916_v24  ;;  %v10003_v23 = vld [vmem:[%s14373_s1 + $0xbe4] ss:$16 sps:$4 sm:$0xff]   ;;  %v10006_v24 = vld [vmem:[%s14373_s1 + $0xbec] ss:$16 sps:$4 sm:$0xff]  }
 0x15e   : > { %6800 = vmatmul.mubr.bf16.vlgmr.msra.gmra.mrb[0].mxu0 %v8222_v25  ;;  %7488 = vmatmul.mubr.bf16.vlgmr.msra.gmra.mrb[0].mxu1 %v8222_v25  ;;  %v10001_v25 = vld [vmem:[%s14373_s1 + $0xbe0] ss:$16 sps:$4 sm:$0xff]  }
 0x15f   : > { %6811 = vmatpush1.bf16.msra.mxu0 %v9911_v26  ;;  %7499 = vmatpush1.bf16.msra.mxu1 %v9914_v27  ;;  %v10004_v26 = vld [vmem:[%s14373_s1 + $0xbe8] ss:$16 sps:$4 sm:$0xff]   ;;  %v10009_v27 = vld [vmem:[%s14373_s1 + $0xc04] ss:$16 sps:$4 sm:$0xff]  }
 0x160   : > { %6812 = vmatprep.subr.bf16.mxu0 %v9919_v28  ;;  %7500 = vmatprep.subr.bf16.mxu1 %v9922_v21  ;;  %v10012_v28 = vld [vmem:[%s14373_s1 + $0xc0c] ss:$16 sps:$4 sm:$0xff]   ;;  %v12279_v21 = vld [vmem:[%s11200_s25 + $0x30] sm:$0xff] }
 0x161   : > { %6842 = vmatprep.mubr.bf16.mxu0 %v8225_v14  ;;  %7530 = vmatprep.mubr.bf16.mxu1 %v8225_v14  ;;  %v12282_v14 = vld [vmem:[%s11200_s25 + $0xb0] sm:$0xff] }
 0x163   : > { %6813 = vmatpush1.bf16.msra.mxu0 %v9917_v29  ;;  %7501 = vmatpush1.bf16.msra.mxu1 %v9920_v30  ;;  %v8224_v29 = vcombine.low %v12077_v18, %v12080_v19  ;;  %v10007_v30 = vld [vmem:[%s14373_s1 + $0xc00] ss:$16 sps:$4 sm:$0xff]   ;;  %v10018_v18 = vld [vmem:[%s14373_s1 + $0xc2c] ss:$16 sps:$4 sm:$0xff]   ;;  %v8227_v19 = vcombine.high %v12279_v21, %v12282_v14 }
 0x164   : > { %6814 = vmatprep.subr.bf16.mxu0 %v9925_v31  ;;  %7502 = vmatprep.subr.bf16.mxu1 %v9928_v32  ;;  %v10010_v31 = vld [vmem:[%s14373_s1 + $0xc08] ss:$16 sps:$4 sm:$0xff]   ;;  %v10015_v32 = vld [vmem:[%s14373_s1 + $0xc24] ss:$16 sps:$4 sm:$0xff]  }
 0x167   : > { %6815 = vmatpush1.bf16.msra.mxu0 %v9923_v33  ;;  %7503 = vmatpush1.bf16.msra.mxu1 %v9926_v34  ;;  %v10013_v33 = vld [vmem:[%s14373_s1 + $0xc20] ss:$16 sps:$4 sm:$0xff]   ;;  %v10016_v34 = vld [vmem:[%s14373_s1 + $0xc28] ss:$16 sps:$4 sm:$0xff]  }
 0x168   : > { %6816 = vmatprep.subr.bf16.mxu0 %v9931_v35  ;;  %7504 = vmatprep.subr.bf16.mxu1 %v9934_v36  ;;  %v10021_v35 = vld [vmem:[%s14373_s1 + $0xc44] ss:$16 sps:$4 sm:$0xff]   ;;  %v10024_v36 = vld [vmem:[%s14373_s1 + $0xc4c] ss:$16 sps:$4 sm:$0xff]  }
 0x16b   : > { %6817 = vmatpush1.bf16.msra.mxu0 %v9929_v37  ;;  %7505 = vmatpush1.bf16.msra.mxu1 %v9932_v38  ;;  %v10019_v37 = vld [vmem:[%s14373_s1 + $0xc40] ss:$16 sps:$4 sm:$0xff]   ;;  %v10022_v38 = vld [vmem:[%s14373_s1 + $0xc48] ss:$16 sps:$4 sm:$0xff]  }
 0x16c   : > { %6818 = vmatprep.subr.bf16.mxu0 %v9937_v39  ;;  %7506 = vmatprep.subr.bf16.mxu1 %v9940_v40  ;;  %v10027_v39 = vld [vmem:[%s14373_s1 + $0xc64] ss:$16 sps:$4 sm:$0xff]   ;;  %v10030_v40 = vld [vmem:[%s14373_s1 + $0xc6c] ss:$16 sps:$4 sm:$0xff]  }
 0x16f   : > { %6819 = vmatpush1.bf16.msra.mxu0 %v9935_v41  ;;  %7507 = vmatpush1.bf16.msra.mxu1 %v9938_v42  ;;  %v10025_v41 = vld [vmem:[%s14373_s1 + $0xc60] ss:$16 sps:$4 sm:$0xff]   ;;  %v10028_v42 = vld [vmem:[%s14373_s1 + $0xc68] ss:$16 sps:$4 sm:$0xff]  }
 0x170   : > { %6820 = vmatprep.subr.bf16.mxu0 %v9943_v43  ;;  %7508 = vmatprep.subr.bf16.mxu1 %v9946_v44  ;;  %v10033_v43 = vld [vmem:[%s14373_s1 + $0xc84] ss:$16 sps:$4 sm:$0xff]   ;;  %v10036_v44 = vld [vmem:[%s14373_s1 + $0xc8c] ss:$16 sps:$4 sm:$0xff]  }
 0x173   : > { %6821 = vmatpush1.bf16.msra.mxu0 %v9941_v45  ;;  %7509 = vmatpush1.bf16.msra.mxu1 %v9944_v46  ;;  %v10031_v45 = vld [vmem:[%s14373_s1 + $0xc80] ss:$16 sps:$4 sm:$0xff]   ;;  %v10034_v46 = vld [vmem:[%s14373_s1 + $0xc88] ss:$16 sps:$4 sm:$0xff]  }
 0x174   : > { %6822 = vmatprep.subr.bf16.mxu0 %v9949_v47  ;;  %7510 = vmatprep.subr.bf16.mxu1 %v9952_v48  ;;  %v10039_v47 = vld [vmem:[%s14373_s1 + $0xca4] ss:$16 sps:$4 sm:$0xff]   ;;  %v10042_v48 = vld [vmem:[%s14373_s1 + $0xcac] ss:$16 sps:$4 sm:$0xff]  }
 0x177   : > { %6823 = vmatpush1.bf16.msra.mxu0 %v9947_v49  ;;  %7511 = vmatpush1.bf16.msra.mxu1 %v9950_v50  ;;  %v10037_v49 = vld [vmem:[%s14373_s1 + $0xca0] ss:$16 sps:$4 sm:$0xff]   ;;  %v10040_v50 = vld [vmem:[%s14373_s1 + $0xca8] ss:$16 sps:$4 sm:$0xff]  }
 0x178   : > { %6824 = vmatprep.subr.bf16.mxu0 %v9955_v51  ;;  %7512 = vmatprep.subr.bf16.mxu1 %v9958_v52  ;;  %v10045_v51 = vld [vmem:[%s14373_s1 + $0xcc4] ss:$16 sps:$4 sm:$0xff]   ;;  %v10048_v52 = vld [vmem:[%s14373_s1 + $0xccc] ss:$16 sps:$4 sm:$0xff]  }
 0x17b   : > { %6825 = vmatpush1.bf16.msra.mxu0 %v9953_v53  ;;  %7513 = vmatpush1.bf16.msra.mxu1 %v9956_v54  ;;  %v10043_v53 = vld [vmem:[%s14373_s1 + $0xcc0] ss:$16 sps:$4 sm:$0xff]   ;;  %v10046_v54 = vld [vmem:[%s14373_s1 + $0xcc8] ss:$16 sps:$4 sm:$0xff]  }
 0x17c   : > { %6826 = vmatprep.subr.bf16.mxu0 %v9961_v55  ;;  %7514 = vmatprep.subr.bf16.mxu1 %v9964_v56  ;;  %v10051_v55 = vld [vmem:[%s14373_s1 + $0xce4] ss:$16 sps:$4 sm:$0xff]   ;;  %v10054_v56 = vld [vmem:[%s14373_s1 + $0xcec] ss:$16 sps:$4 sm:$0xff]  }
 0x17f   : > { %6827 = vmatpush1.bf16.msra.mxu0 %v9959_v57  ;;  %7515 = vmatpush1.bf16.msra.mxu1 %v9962_v58  ;;  %v10049_v57 = vld [vmem:[%s14373_s1 + $0xce0] ss:$16 sps:$4 sm:$0xff]   ;;  %v10052_v58 = vld [vmem:[%s14373_s1 + $0xce8] ss:$16 sps:$4 sm:$0xff]  }
 0x180   : > { %6828 = vmatprep.subr.bf16.mxu0 %v9967_v59  ;;  %7516 = vmatprep.subr.bf16.mxu1 %v9970_v60  ;;  %v10057_v59 = vld [vmem:[%s14373_s1 + $0xd04] ss:$16 sps:$4 sm:$0xff]   ;;  %v10060_v60 = vld [vmem:[%s14373_s1 + $0xd0c] ss:$16 sps:$4 sm:$0xff]  }
 0x183   : > { %6829 = vmatpush1.bf16.msra.mxu0 %v9965_v61  ;;  %7517 = vmatpush1.bf16.msra.mxu1 %v9968_v62  ;;  %v10055_v61 = vld [vmem:[%s14373_s1 + $0xd00] ss:$16 sps:$4 sm:$0xff]   ;;  %v10058_v62 = vld [vmem:[%s14373_s1 + $0xd08] ss:$16 sps:$4 sm:$0xff]  }
 0x184   : > { %6830 = vmatprep.subr.bf16.mxu0 %v9973_v63  ;;  %7518 = vmatprep.subr.bf16.mxu1 %v9976_v0  ;;  %v10063_v63 = vld [vmem:[%s14373_s1 + $0xd24] ss:$16 sps:$4 sm:$0xff]   ;;  %v10066_v0 = vld [vmem:[%s14373_s1 + $0xd2c] ss:$16 sps:$4 sm:$0xff]  }
 0x187   : > { %6831 = vmatpush1.bf16.msra.mxu0 %v9971_v1  ;;  %7519 = vmatpush1.bf16.msra.mxu1 %v9974_v2  ;;  %v10061_v1 = vld [vmem:[%s14373_s1 + $0xd20] ss:$16 sps:$4 sm:$0xff]   ;;  %v10064_v2 = vld [vmem:[%s14373_s1 + $0xd28] ss:$16 sps:$4 sm:$0xff]  }
 0x188   : > { %6832 = vmatprep.subr.bf16.mxu0 %v9979_v3  ;;  %7520 = vmatprep.subr.bf16.mxu1 %v9982_v4  ;;  %v10069_v3 = vld [vmem:[%s14373_s1 + $0xd44] ss:$16 sps:$4 sm:$0xff]   ;;  %v10072_v4 = vld [vmem:[%s14373_s1 + $0xd4c] ss:$16 sps:$4 sm:$0xff]  }
 0x18b   : > { %6833 = vmatpush1.bf16.msra.mxu0 %v9977_v5  ;;  %7521 = vmatpush1.bf16.msra.mxu1 %v9980_v6  ;;  %v10067_v5 = vld [vmem:[%s14373_s1 + $0xd40] ss:$16 sps:$4 sm:$0xff]   ;;  %v10070_v6 = vld [vmem:[%s14373_s1 + $0xd48] ss:$16 sps:$4 sm:$0xff]  }
 0x18c   : > { %6834 = vmatprep.subr.bf16.mxu0 %v9985_v7  ;;  %7522 = vmatprep.subr.bf16.mxu1 %v9988_v8  ;;  %v10075_v7 = vld [vmem:[%s14373_s1 + $0xd64] ss:$16 sps:$4 sm:$0xff]   ;;  %v10078_v8 = vld [vmem:[%s14373_s1 + $0xd6c] ss:$16 sps:$4 sm:$0xff]  }
 0x18f   : > { %6835 = vmatpush1.bf16.msra.mxu0 %v9983_v9  ;;  %7523 = vmatpush1.bf16.msra.mxu1 %v9986_v10  ;;  %v10073_v9 = vld [vmem:[%s14373_s1 + $0xd60] ss:$16 sps:$4 sm:$0xff]   ;;  %v10076_v10 = vld [vmem:[%s14373_s1 + $0xd68] ss:$16 sps:$4 sm:$0xff]  }
 0x190   : > { %6836 = vmatprep.subr.bf16.mxu0 %v9991_v11  ;;  %7524 = vmatprep.subr.bf16.mxu1 %v9994_v12  ;;  %v10081_v11 = vld [vmem:[%s14373_s1 + $0xd84] ss:$16 sps:$4 sm:$0xff]   ;;  %v10084_v12 = vld [vmem:[%s14373_s1 + $0xd8c] ss:$16 sps:$4 sm:$0xff]  }
 0x193   : > { %6837 = vmatpush1.bf16.msra.mxu0 %v9989_v13  ;;  %7525 = vmatpush1.bf16.msra.mxu1 %v9992_v16  ;;  %v10079_v13 = vld [vmem:[%s14373_s1 + $0xd80] ss:$16 sps:$4 sm:$0xff]   ;;  %v10082_v16 = vld [vmem:[%s14373_s1 + $0xd88] ss:$16 sps:$4 sm:$0xff]  }
 0x194   : > { %6838 = vmatprep.subr.bf16.mxu0 %v9997_v17  ;;  %7526 = vmatprep.subr.bf16.mxu1 %v10000_v20  ;;  %v10087_v17 = vld [vmem:[%s14373_s1 + $0xda4] ss:$16 sps:$4 sm:$0xff]   ;;  %v10090_v20 = vld [vmem:[%s14373_s1 + $0xdac] ss:$16 sps:$4 sm:$0xff]  }
 0x197   : > { %6839 = vmatpush1.bf16.msra.mxu0 %v9995_v22  ;;  %7527 = vmatpush1.bf16.msra.mxu1 %v9998_v15  ;;  %v10085_v22 = vld [vmem:[%s14373_s1 + $0xda0] ss:$16 sps:$4 sm:$0xff]   ;;  %v10088_v15 = vld [vmem:[%s14373_s1 + $0xda8] ss:$16 sps:$4 sm:$0xff]  }
 0x198   : > { %6840 = vmatprep.subr.bf16.mxu0 %v10003_v23  ;;  %7528 = vmatprep.subr.bf16.mxu1 %v10006_v24  ;;  %v10093_v23 = vld [vmem:[%s14373_s1 + $0xdc4] ss:$16 sps:$4 sm:$0xff]   ;;  %v10096_v24 = vld [vmem:[%s14373_s1 + $0xdcc] ss:$16 sps:$4 sm:$0xff]  }
 0x19b   : > { %6841 = vmatpush1.bf16.msra.mxu0 %v10001_v25  ;;  %7529 = vmatpush1.bf16.msra.mxu1 %v10004_v26  ;;  %v10091_v25 = vld [vmem:[%s14373_s1 + $0xdc0] ss:$16 sps:$4 sm:$0xff]   ;;  %v10094_v26 = vld [vmem:[%s14373_s1 + $0xdc8] ss:$16 sps:$4 sm:$0xff]  }
 0x19c   : > { %6853 = vmatprep.subr.bf16.mxu0 %v10009_v27  ;;  %7541 = vmatprep.subr.bf16.mxu1 %v10012_v28  ;;  %v10099_v27 = vld [vmem:[%s14373_s1 + $0xde4] ss:$16 sps:$4 sm:$0xff]   ;;  %v10102_v28 = vld [vmem:[%s14373_s1 + $0xdec] ss:$16 sps:$4 sm:$0xff]  }
 0x19e   : > { %6843 = vmatmul.mubr.bf16.vlgmr.msra.gmra.mrb[0].mxu0 %v8224_v29  ;;  %7531 = vmatmul.mubr.bf16.vlgmr.msra.gmra.mrb[0].mxu1 %v8224_v29  ;;  %v10097_v29 = vld [vmem:[%s14373_s1 + $0xde0] ss:$16 sps:$4 sm:$0xff]  }
 0x19f   : > { %6854 = vmatpush1.bf16.msra.mxu0 %v10007_v30  ;;  %7542 = vmatpush1.bf16.msra.mxu1 %v10010_v31  ;;  %v10100_v30 = vld [vmem:[%s14373_s1 + $0xde8] ss:$16 sps:$4 sm:$0xff]   ;;  %v10105_v31 = vld [vmem:[%s14373_s1 + $0xe04] ss:$16 sps:$4 sm:$0xff]  }
 0x1a0   : > { %6855 = vmatprep.subr.bf16.mxu0 %v10015_v32  ;;  %7543 = vmatprep.subr.bf16.mxu1 %v10018_v18  ;;  %v10108_v32 = vld [vmem:[%s14373_s1 + $0xe0c] ss:$16 sps:$4 sm:$0xff]  }
 0x1a1   : > { %6885 = vmatprep.mubr.bf16.mxu0 %v8227_v19  ;;  %7573 = vmatprep.mubr.bf16.mxu1 %v8227_v19  ;;  %v12481_v18 = vld [vmem:[%s11200_s25 + $0x38] sm:$0xff] }
 0x1a2   : > { %v12484_v19 = vld [vmem:[%s11200_s25 + $0xb8] sm:$0xff] }
 0x1a3   : > { %6856 = vmatpush1.bf16.msra.mxu0 %v10013_v33  ;;  %7544 = vmatpush1.bf16.msra.mxu1 %v10016_v34  ;;  %v8226_v33 = vcombine.low %v12279_v21, %v12282_v14  ;;  %v10103_v34 = vld [vmem:[%s14373_s1 + $0xe00] ss:$16 sps:$4 sm:$0xff]   ;;  %v10114_v21 = vld [vmem:[%s14373_s1 + $0xe2c] ss:$16 sps:$4 sm:$0xff]   ;;  %v8229_v14 = vcombine.high %v12481_v18, %v12484_v19 }
 0x1a4   : > { %6857 = vmatprep.subr.bf16.mxu0 %v10021_v35  ;;  %7545 = vmatprep.subr.bf16.mxu1 %v10024_v36  ;;  %v10106_v35 = vld [vmem:[%s14373_s1 + $0xe08] ss:$16 sps:$4 sm:$0xff]   ;;  %v10111_v36 = vld [vmem:[%s14373_s1 + $0xe24] ss:$16 sps:$4 sm:$0xff]  }
 0x1a7   : > { %6858 = vmatpush1.bf16.msra.mxu0 %v10019_v37  ;;  %7546 = vmatpush1.bf16.msra.mxu1 %v10022_v38  ;;  %v10109_v37 = vld [vmem:[%s14373_s1 + $0xe20] ss:$16 sps:$4 sm:$0xff]   ;;  %v10112_v38 = vld [vmem:[%s14373_s1 + $0xe28] ss:$16 sps:$4 sm:$0xff]  }
 0x1a8   : > { %6859 = vmatprep.subr.bf16.mxu0 %v10027_v39  ;;  %7547 = vmatprep.subr.bf16.mxu1 %v10030_v40  ;;  %v10117_v39 = vld [vmem:[%s14373_s1 + $0xe44] ss:$16 sps:$4 sm:$0xff]   ;;  %v10120_v40 = vld [vmem:[%s14373_s1 + $0xe4c] ss:$16 sps:$4 sm:$0xff]  }
 0x1ab   : > { %6860 = vmatpush1.bf16.msra.mxu0 %v10025_v41  ;;  %7548 = vmatpush1.bf16.msra.mxu1 %v10028_v42  ;;  %v10115_v41 = vld [vmem:[%s14373_s1 + $0xe40] ss:$16 sps:$4 sm:$0xff]   ;;  %v10118_v42 = vld [vmem:[%s14373_s1 + $0xe48] ss:$16 sps:$4 sm:$0xff]  }
 0x1ac   : > { %6861 = vmatprep.subr.bf16.mxu0 %v10033_v43  ;;  %7549 = vmatprep.subr.bf16.mxu1 %v10036_v44  ;;  %v10123_v43 = vld [vmem:[%s14373_s1 + $0xe64] ss:$16 sps:$4 sm:$0xff]   ;;  %v10126_v44 = vld [vmem:[%s14373_s1 + $0xe6c] ss:$16 sps:$4 sm:$0xff]  }
 0x1af   : > { %6862 = vmatpush1.bf16.msra.mxu0 %v10031_v45  ;;  %7550 = vmatpush1.bf16.msra.mxu1 %v10034_v46  ;;  %v10121_v45 = vld [vmem:[%s14373_s1 + $0xe60] ss:$16 sps:$4 sm:$0xff]   ;;  %v10124_v46 = vld [vmem:[%s14373_s1 + $0xe68] ss:$16 sps:$4 sm:$0xff]  }
 0x1b0   : > { %6863 = vmatprep.subr.bf16.mxu0 %v10039_v47  ;;  %7551 = vmatprep.subr.bf16.mxu1 %v10042_v48  ;;  %v10129_v47 = vld [vmem:[%s14373_s1 + $0xe84] ss:$16 sps:$4 sm:$0xff]   ;;  %v10132_v48 = vld [vmem:[%s14373_s1 + $0xe8c] ss:$16 sps:$4 sm:$0xff]  }
 0x1b3   : > { %6864 = vmatpush1.bf16.msra.mxu0 %v10037_v49  ;;  %7552 = vmatpush1.bf16.msra.mxu1 %v10040_v50  ;;  %v10127_v49 = vld [vmem:[%s14373_s1 + $0xe80] ss:$16 sps:$4 sm:$0xff]   ;;  %v10130_v50 = vld [vmem:[%s14373_s1 + $0xe88] ss:$16 sps:$4 sm:$0xff]  }
 0x1b4   : > { %6865 = vmatprep.subr.bf16.mxu0 %v10045_v51  ;;  %7553 = vmatprep.subr.bf16.mxu1 %v10048_v52  ;;  %v10135_v51 = vld [vmem:[%s14373_s1 + $0xea4] ss:$16 sps:$4 sm:$0xff]   ;;  %v10138_v52 = vld [vmem:[%s14373_s1 + $0xeac] ss:$16 sps:$4 sm:$0xff]  }
 0x1b7   : > { %6866 = vmatpush1.bf16.msra.mxu0 %v10043_v53  ;;  %7554 = vmatpush1.bf16.msra.mxu1 %v10046_v54  ;;  %v10133_v53 = vld [vmem:[%s14373_s1 + $0xea0] ss:$16 sps:$4 sm:$0xff]   ;;  %v10136_v54 = vld [vmem:[%s14373_s1 + $0xea8] ss:$16 sps:$4 sm:$0xff]  }
 0x1b8   : > { %6867 = vmatprep.subr.bf16.mxu0 %v10051_v55  ;;  %7555 = vmatprep.subr.bf16.mxu1 %v10054_v56  ;;  %v10141_v55 = vld [vmem:[%s14373_s1 + $0xec4] ss:$16 sps:$4 sm:$0xff]   ;;  %v10144_v56 = vld [vmem:[%s14373_s1 + $0xecc] ss:$16 sps:$4 sm:$0xff]  }
 0x1bb   : > { %6868 = vmatpush1.bf16.msra.mxu0 %v10049_v57  ;;  %7556 = vmatpush1.bf16.msra.mxu1 %v10052_v58  ;;  %v10139_v57 = vld [vmem:[%s14373_s1 + $0xec0] ss:$16 sps:$4 sm:$0xff]   ;;  %v10142_v58 = vld [vmem:[%s14373_s1 + $0xec8] ss:$16 sps:$4 sm:$0xff]  }
 0x1bc   : > { %6869 = vmatprep.subr.bf16.mxu0 %v10057_v59  ;;  %7557 = vmatprep.subr.bf16.mxu1 %v10060_v60  ;;  %v10147_v59 = vld [vmem:[%s14373_s1 + $0xee4] ss:$16 sps:$4 sm:$0xff]   ;;  %v10150_v60 = vld [vmem:[%s14373_s1 + $0xeec] ss:$16 sps:$4 sm:$0xff]  }
 0x1bf   : > { %6870 = vmatpush1.bf16.msra.mxu0 %v10055_v61  ;;  %7558 = vmatpush1.bf16.msra.mxu1 %v10058_v62  ;;  %v10145_v61 = vld [vmem:[%s14373_s1 + $0xee0] ss:$16 sps:$4 sm:$0xff]   ;;  %v10148_v62 = vld [vmem:[%s14373_s1 + $0xee8] ss:$16 sps:$4 sm:$0xff]  }
 0x1c0   : > { %6871 = vmatprep.subr.bf16.mxu0 %v10063_v63  ;;  %7559 = vmatprep.subr.bf16.mxu1 %v10066_v0  ;;  %v10153_v63 = vld [vmem:[%s14373_s1 + $0xf04] ss:$16 sps:$4 sm:$0xff]   ;;  %v10156_v0 = vld [vmem:[%s14373_s1 + $0xf0c] ss:$16 sps:$4 sm:$0xff]  }
 0x1c3   : > { %6872 = vmatpush1.bf16.msra.mxu0 %v10061_v1  ;;  %7560 = vmatpush1.bf16.msra.mxu1 %v10064_v2  ;;  %v10151_v1 = vld [vmem:[%s14373_s1 + $0xf00] ss:$16 sps:$4 sm:$0xff]   ;;  %v10154_v2 = vld [vmem:[%s14373_s1 + $0xf08] ss:$16 sps:$4 sm:$0xff]  }
 0x1c4   : > { %6873 = vmatprep.subr.bf16.mxu0 %v10069_v3  ;;  %7561 = vmatprep.subr.bf16.mxu1 %v10072_v4  ;;  %v10159_v3 = vld [vmem:[%s14373_s1 + $0xf24] ss:$16 sps:$4 sm:$0xff]   ;;  %v10162_v4 = vld [vmem:[%s14373_s1 + $0xf2c] ss:$16 sps:$4 sm:$0xff]  }
 0x1c7   : > { %6874 = vmatpush1.bf16.msra.mxu0 %v10067_v5  ;;  %7562 = vmatpush1.bf16.msra.mxu1 %v10070_v6  ;;  %v10157_v5 = vld [vmem:[%s14373_s1 + $0xf20] ss:$16 sps:$4 sm:$0xff]   ;;  %v10160_v6 = vld [vmem:[%s14373_s1 + $0xf28] ss:$16 sps:$4 sm:$0xff]  }
 0x1c8   : > { %6875 = vmatprep.subr.bf16.mxu0 %v10075_v7  ;;  %7563 = vmatprep.subr.bf16.mxu1 %v10078_v8  ;;  %v10165_v7 = vld [vmem:[%s14373_s1 + $0xf44] ss:$16 sps:$4 sm:$0xff]   ;;  %v10168_v8 = vld [vmem:[%s14373_s1 + $0xf4c] ss:$16 sps:$4 sm:$0xff]  }
 0x1cb   : > { %6876 = vmatpush1.bf16.msra.mxu0 %v10073_v9  ;;  %7564 = vmatpush1.bf16.msra.mxu1 %v10076_v10  ;;  %v10163_v9 = vld [vmem:[%s14373_s1 + $0xf40] ss:$16 sps:$4 sm:$0xff]   ;;  %v10166_v10 = vld [vmem:[%s14373_s1 + $0xf48] ss:$16 sps:$4 sm:$0xff]  }
 0x1cc   : > { %6877 = vmatprep.subr.bf16.mxu0 %v10081_v11  ;;  %7565 = vmatprep.subr.bf16.mxu1 %v10084_v12  ;;  %v10171_v11 = vld [vmem:[%s14373_s1 + $0xf64] ss:$16 sps:$4 sm:$0xff]   ;;  %v10174_v12 = vld [vmem:[%s14373_s1 + $0xf6c] ss:$16 sps:$4 sm:$0xff]  }
 0x1cf   : > { %6878 = vmatpush1.bf16.msra.mxu0 %v10079_v13  ;;  %7566 = vmatpush1.bf16.msra.mxu1 %v10082_v16  ;;  %v10169_v13 = vld [vmem:[%s14373_s1 + $0xf60] ss:$16 sps:$4 sm:$0xff]   ;;  %v10172_v16 = vld [vmem:[%s14373_s1 + $0xf68] ss:$16 sps:$4 sm:$0xff]  }
 0x1d0   : > { %6879 = vmatprep.subr.bf16.mxu0 %v10087_v17  ;;  %7567 = vmatprep.subr.bf16.mxu1 %v10090_v20  ;;  %v10177_v17 = vld [vmem:[%s14373_s1 + $0xf84] ss:$16 sps:$4 sm:$0xff]   ;;  %v10180_v20 = vld [vmem:[%s14373_s1 + $0xf8c] ss:$16 sps:$4 sm:$0xff]  }
 0x1d3   : > { %6880 = vmatpush1.bf16.msra.mxu0 %v10085_v22  ;;  %7568 = vmatpush1.bf16.msra.mxu1 %v10088_v15  ;;  %v10175_v22 = vld [vmem:[%s14373_s1 + $0xf80] ss:$16 sps:$4 sm:$0xff]   ;;  %v10178_v15 = vld [vmem:[%s14373_s1 + $0xf88] ss:$16 sps:$4 sm:$0xff]  }
 0x1d4   : > { %6881 = vmatprep.subr.bf16.mxu0 %v10093_v23  ;;  %7569 = vmatprep.subr.bf16.mxu1 %v10096_v24  ;;  %v10183_v23 = vld [vmem:[%s14373_s1 + $0xfa4] ss:$16 sps:$4 sm:$0xff]   ;;  %v10186_v24 = vld [vmem:[%s14373_s1 + $0xfac] ss:$16 sps:$4 sm:$0xff]  }
 0x1d7   : > { %6882 = vmatpush1.bf16.msra.mxu0 %v10091_v25  ;;  %7570 = vmatpush1.bf16.msra.mxu1 %v10094_v26  ;;  %v10181_v25 = vld [vmem:[%s14373_s1 + $0xfa0] ss:$16 sps:$4 sm:$0xff]   ;;  %v10184_v26 = vld [vmem:[%s14373_s1 + $0xfa8] ss:$16 sps:$4 sm:$0xff]  }
 0x1d8   : > { %6883 = vmatprep.subr.bf16.mxu0 %v10099_v27  ;;  %7571 = vmatprep.subr.bf16.mxu1 %v10102_v28  ;;  %v10189_v27 = vld [vmem:[%s14373_s1 + $0xfc4] ss:$16 sps:$4 sm:$0xff]   ;;  %v10192_v28 = vld [vmem:[%s14373_s1 + $0xfcc] ss:$16 sps:$4 sm:$0xff]  }
 0x1db   : > { %6884 = vmatpush1.bf16.msra.mxu0 %v10097_v29  ;;  %7572 = vmatpush1.bf16.msra.mxu1 %v10100_v30  ;;  %v10187_v29 = vld [vmem:[%s14373_s1 + $0xfc0] ss:$16 sps:$4 sm:$0xff]   ;;  %v10190_v30 = vld [vmem:[%s14373_s1 + $0xfc8] ss:$16 sps:$4 sm:$0xff]  }
 0x1dc   : > { %6896 = vmatprep.subr.bf16.mxu0 %v10105_v31  ;;  %7584 = vmatprep.subr.bf16.mxu1 %v10108_v32  ;;  %v10195_v31 = vld [vmem:[%s14373_s1 + $0xfe4] ss:$16 sps:$4 sm:$0xff]   ;;  %v10198_v32 = vld [vmem:[%s14373_s1 + $0xfec] ss:$16 sps:$4 sm:$0xff]  }
 0x1de   : > { %6886 = vmatmul.mubr.bf16.vlgmr.msra.gmra.mrb[0].mxu0 %v8226_v33  ;;  %7574 = vmatmul.mubr.bf16.vlgmr.msra.gmra.mrb[0].mxu1 %v8226_v33  ;;  %v10193_v33 = vld [vmem:[%s14373_s1 + $0xfe0] ss:$16 sps:$4 sm:$0xff]  }
 0x1df   : > { %6897 = vmatpush1.bf16.msra.mxu0 %v10103_v34  ;;  %7585 = vmatpush1.bf16.msra.mxu1 %v10106_v35  ;;  %v10196_v34 = vld [vmem:[%s14373_s1 + $0xfe8] ss:$16 sps:$4 sm:$0xff]   ;;  %v10201_v35 = vld [vmem:[%s14373_s1 + $0x1004] ss:$16 sps:$4 sm:$0xff]  }
 0x1e0   : > { %6898 = vmatprep.subr.bf16.mxu0 %v10111_v36  ;;  %7586 = vmatprep.subr.bf16.mxu1 %v10114_v21  ;;  %v10204_v36 = vld [vmem:[%s14373_s1 + $0x100c] ss:$16 sps:$4 sm:$0xff]   ;;  %v12683_v21 = vld [vmem:[%s11200_s25 + $0x40] sm:$0xff] }
 0x1e1   : > { %6928 = vmatprep.mubr.bf16.mxu0 %v8229_v14  ;;  %7616 = vmatprep.mubr.bf16.mxu1 %v8229_v14  ;;  %v12686_v14 = vld [vmem:[%s11200_s25 + $0xc0] sm:$0xff] }
 0x1e3   : > { %6899 = vmatpush1.bf16.msra.mxu0 %v10109_v37  ;;  %7587 = vmatpush1.bf16.msra.mxu1 %v10112_v38  ;;  %v8228_v37 = vcombine.low %v12481_v18, %v12484_v19  ;;  %v10199_v38 = vld [vmem:[%s14373_s1 + $0x1000] ss:$16 sps:$4 sm:$0xff]   ;;  %v10210_v18 = vld [vmem:[%s14373_s1 + $0x102c] ss:$16 sps:$4 sm:$0xff]   ;;  %v8231_v19 = vcombine.high %v12683_v21, %v12686_v14 }
 0x1e4   : > { %6900 = vmatprep.subr.bf16.mxu0 %v10117_v39  ;;  %7588 = vmatprep.subr.bf16.mxu1 %v10120_v40  ;;  %v10202_v39 = vld [vmem:[%s14373_s1 + $0x1008] ss:$16 sps:$4 sm:$0xff]   ;;  %v10207_v40 = vld [vmem:[%s14373_s1 + $0x1024] ss:$16 sps:$4 sm:$0xff]  }
 0x1e7   : > { %6901 = vmatpush1.bf16.msra.mxu0 %v10115_v41  ;;  %7589 = vmatpush1.bf16.msra.mxu1 %v10118_v42  ;;  %v10205_v41 = vld [vmem:[%s14373_s1 + $0x1020] ss:$16 sps:$4 sm:$0xff]   ;;  %v10208_v42 = vld [vmem:[%s14373_s1 + $0x1028] ss:$16 sps:$4 sm:$0xff]  }
 0x1e8   : > { %6902 = vmatprep.subr.bf16.mxu0 %v10123_v43  ;;  %7590 = vmatprep.subr.bf16.mxu1 %v10126_v44  ;;  %v10213_v43 = vld [vmem:[%s14373_s1 + $0x1044] ss:$16 sps:$4 sm:$0xff]   ;;  %v10216_v44 = vld [vmem:[%s14373_s1 + $0x104c] ss:$16 sps:$4 sm:$0xff]  }
 0x1eb   : > { %6903 = vmatpush1.bf16.msra.mxu0 %v10121_v45  ;;  %7591 = vmatpush1.bf16.msra.mxu1 %v10124_v46  ;;  %v10211_v45 = vld [vmem:[%s14373_s1 + $0x1040] ss:$16 sps:$4 sm:$0xff]   ;;  %v10214_v46 = vld [vmem:[%s14373_s1 + $0x1048] ss:$16 sps:$4 sm:$0xff]  }
 0x1ec   : > { %6904 = vmatprep.subr.bf16.mxu0 %v10129_v47  ;;  %7592 = vmatprep.subr.bf16.mxu1 %v10132_v48  ;;  %v10219_v47 = vld [vmem:[%s14373_s1 + $0x1064] ss:$16 sps:$4 sm:$0xff]   ;;  %v10222_v48 = vld [vmem:[%s14373_s1 + $0x106c] ss:$16 sps:$4 sm:$0xff]  }
 0x1ef   : > { %6905 = vmatpush1.bf16.msra.mxu0 %v10127_v49  ;;  %7593 = vmatpush1.bf16.msra.mxu1 %v10130_v50  ;;  %v10217_v49 = vld [vmem:[%s14373_s1 + $0x1060] ss:$16 sps:$4 sm:$0xff]   ;;  %v10220_v50 = vld [vmem:[%s14373_s1 + $0x1068] ss:$16 sps:$4 sm:$0xff]  }
 0x1f0   : > { %6906 = vmatprep.subr.bf16.mxu0 %v10135_v51  ;;  %7594 = vmatprep.subr.bf16.mxu1 %v10138_v52  ;;  %v10225_v51 = vld [vmem:[%s14373_s1 + $0x1084] ss:$16 sps:$4 sm:$0xff]   ;;  %v10228_v52 = vld [vmem:[%s14373_s1 + $0x108c] ss:$16 sps:$4 sm:$0xff]  }
 0x1f3   : > { %6907 = vmatpush1.bf16.msra.mxu0 %v10133_v53  ;;  %7595 = vmatpush1.bf16.msra.mxu1 %v10136_v54  ;;  %v10223_v53 = vld [vmem:[%s14373_s1 + $0x1080] ss:$16 sps:$4 sm:$0xff]   ;;  %v10226_v54 = vld [vmem:[%s14373_s1 + $0x1088] ss:$16 sps:$4 sm:$0xff]  }
 0x1f4   : > { %6908 = vmatprep.subr.bf16.mxu0 %v10141_v55  ;;  %7596 = vmatprep.subr.bf16.mxu1 %v10144_v56  ;;  %v10231_v55 = vld [vmem:[%s14373_s1 + $0x10a4] ss:$16 sps:$4 sm:$0xff]   ;;  %v10234_v56 = vld [vmem:[%s14373_s1 + $0x10ac] ss:$16 sps:$4 sm:$0xff]  }
 0x1f7   : > { %6909 = vmatpush1.bf16.msra.mxu0 %v10139_v57  ;;  %7597 = vmatpush1.bf16.msra.mxu1 %v10142_v58  ;;  %v10229_v57 = vld [vmem:[%s14373_s1 + $0x10a0] ss:$16 sps:$4 sm:$0xff]   ;;  %v10232_v58 = vld [vmem:[%s14373_s1 + $0x10a8] ss:$16 sps:$4 sm:$0xff]  }
 0x1f8   : > { %6910 = vmatprep.subr.bf16.mxu0 %v10147_v59  ;;  %7598 = vmatprep.subr.bf16.mxu1 %v10150_v60  ;;  %v10237_v59 = vld [vmem:[%s14373_s1 + $0x10c4] ss:$16 sps:$4 sm:$0xff]   ;;  %v10240_v60 = vld [vmem:[%s14373_s1 + $0x10cc] ss:$16 sps:$4 sm:$0xff]  }
 0x1fb   : > { %6911 = vmatpush1.bf16.msra.mxu0 %v10145_v61  ;;  %7599 = vmatpush1.bf16.msra.mxu1 %v10148_v62  ;;  %v10235_v61 = vld [vmem:[%s14373_s1 + $0x10c0] ss:$16 sps:$4 sm:$0xff]   ;;  %v10238_v62 = vld [vmem:[%s14373_s1 + $0x10c8] ss:$16 sps:$4 sm:$0xff]  }
 0x1fc   : > { %6912 = vmatprep.subr.bf16.mxu0 %v10153_v63  ;;  %7600 = vmatprep.subr.bf16.mxu1 %v10156_v0  ;;  %v10243_v63 = vld [vmem:[%s14373_s1 + $0x10e4] ss:$16 sps:$4 sm:$0xff]   ;;  %v10246_v0 = vld [vmem:[%s14373_s1 + $0x10ec] ss:$16 sps:$4 sm:$0xff]  }
 0x1ff   : > { %6913 = vmatpush1.bf16.msra.mxu0 %v10151_v1  ;;  %7601 = vmatpush1.bf16.msra.mxu1 %v10154_v2  ;;  %v10241_v1 = vld [vmem:[%s14373_s1 + $0x10e0] ss:$16 sps:$4 sm:$0xff]   ;;  %v10244_v2 = vld [vmem:[%s14373_s1 + $0x10e8] ss:$16 sps:$4 sm:$0xff]  }
 0x200   : > { %6914 = vmatprep.subr.bf16.mxu0 %v10159_v3  ;;  %7602 = vmatprep.subr.bf16.mxu1 %v10162_v4  ;;  %v10249_v3 = vld [vmem:[%s14373_s1 + $0x1104] ss:$16 sps:$4 sm:$0xff]   ;;  %v10252_v4 = vld [vmem:[%s14373_s1 + $0x110c] ss:$16 sps:$4 sm:$0xff]  }
 0x203   : > { %6915 = vmatpush1.bf16.msra.mxu0 %v10157_v5  ;;  %7603 = vmatpush1.bf16.msra.mxu1 %v10160_v6  ;;  %v10247_v5 = vld [vmem:[%s14373_s1 + $0x1100] ss:$16 sps:$4 sm:$0xff]   ;;  %v10250_v6 = vld [vmem:[%s14373_s1 + $0x1108] ss:$16 sps:$4 sm:$0xff]  }
 0x204   : > { %6916 = vmatprep.subr.bf16.mxu0 %v10165_v7  ;;  %7604 = vmatprep.subr.bf16.mxu1 %v10168_v8  ;;  %v10255_v7 = vld [vmem:[%s14373_s1 + $0x1124] ss:$16 sps:$4 sm:$0xff]   ;;  %v10258_v8 = vld [vmem:[%s14373_s1 + $0x112c] ss:$16 sps:$4 sm:$0xff]  }
 0x207   : > { %6917 = vmatpush1.bf16.msra.mxu0 %v10163_v9  ;;  %7605 = vmatpush1.bf16.msra.mxu1 %v10166_v10  ;;  %v10253_v9 = vld [vmem:[%s14373_s1 + $0x1120] ss:$16 sps:$4 sm:$0xff]   ;;  %v10256_v10 = vld [vmem:[%s14373_s1 + $0x1128] ss:$16 sps:$4 sm:$0xff]  }
 0x208   : > { %6918 = vmatprep.subr.bf16.mxu0 %v10171_v11  ;;  %7606 = vmatprep.subr.bf16.mxu1 %v10174_v12  ;;  %v10261_v11 = vld [vmem:[%s14373_s1 + $0x1144] ss:$16 sps:$4 sm:$0xff]   ;;  %v10264_v12 = vld [vmem:[%s14373_s1 + $0x114c] ss:$16 sps:$4 sm:$0xff]  }
 0x20b   : > { %6919 = vmatpush1.bf16.msra.mxu0 %v10169_v13  ;;  %7607 = vmatpush1.bf16.msra.mxu1 %v10172_v16  ;;  %v10259_v13 = vld [vmem:[%s14373_s1 + $0x1140] ss:$16 sps:$4 sm:$0xff]   ;;  %v10262_v16 = vld [vmem:[%s14373_s1 + $0x1148] ss:$16 sps:$4 sm:$0xff]  }
 0x20c   : > { %6920 = vmatprep.subr.bf16.mxu0 %v10177_v17  ;;  %7608 = vmatprep.subr.bf16.mxu1 %v10180_v20  ;;  %v10267_v17 = vld [vmem:[%s14373_s1 + $0x1164] ss:$16 sps:$4 sm:$0xff]   ;;  %v10270_v20 = vld [vmem:[%s14373_s1 + $0x116c] ss:$16 sps:$4 sm:$0xff]  }
 0x20f   : > { %6921 = vmatpush1.bf16.msra.mxu0 %v10175_v22  ;;  %7609 = vmatpush1.bf16.msra.mxu1 %v10178_v15  ;;  %v10265_v22 = vld [vmem:[%s14373_s1 + $0x1160] ss:$16 sps:$4 sm:$0xff]   ;;  %v10268_v15 = vld [vmem:[%s14373_s1 + $0x1168] ss:$16 sps:$4 sm:$0xff]  }
 0x210   : > { %6922 = vmatprep.subr.bf16.mxu0 %v10183_v23  ;;  %7610 = vmatprep.subr.bf16.mxu1 %v10186_v24  ;;  %v10273_v23 = vld [vmem:[%s14373_s1 + $0x1184] ss:$16 sps:$4 sm:$0xff]   ;;  %v10276_v24 = vld [vmem:[%s14373_s1 + $0x118c] ss:$16 sps:$4 sm:$0xff]  }
 0x213   : > { %6923 = vmatpush1.bf16.msra.mxu0 %v10181_v25  ;;  %7611 = vmatpush1.bf16.msra.mxu1 %v10184_v26  ;;  %v10271_v25 = vld [vmem:[%s14373_s1 + $0x1180] ss:$16 sps:$4 sm:$0xff]   ;;  %v10274_v26 = vld [vmem:[%s14373_s1 + $0x1188] ss:$16 sps:$4 sm:$0xff]  }
 0x214   : > { %6924 = vmatprep.subr.bf16.mxu0 %v10189_v27  ;;  %7612 = vmatprep.subr.bf16.mxu1 %v10192_v28  ;;  %v10279_v27 = vld [vmem:[%s14373_s1 + $0x11a4] ss:$16 sps:$4 sm:$0xff]   ;;  %v10282_v28 = vld [vmem:[%s14373_s1 + $0x11ac] ss:$16 sps:$4 sm:$0xff]  }
 0x217   : > { %6925 = vmatpush1.bf16.msra.mxu0 %v10187_v29  ;;  %7613 = vmatpush1.bf16.msra.mxu1 %v10190_v30  ;;  %v10277_v29 = vld [vmem:[%s14373_s1 + $0x11a0] ss:$16 sps:$4 sm:$0xff]   ;;  %v10280_v30 = vld [vmem:[%s14373_s1 + $0x11a8] ss:$16 sps:$4 sm:$0xff]  }
 0x218   : > { %6926 = vmatprep.subr.bf16.mxu0 %v10195_v31  ;;  %7614 = vmatprep.subr.bf16.mxu1 %v10198_v32  ;;  %v10285_v31 = vld [vmem:[%s14373_s1 + $0x11c4] ss:$16 sps:$4 sm:$0xff]   ;;  %v10288_v32 = vld [vmem:[%s14373_s1 + $0x11cc] ss:$16 sps:$4 sm:$0xff]  }
 0x21b   : > { %6927 = vmatpush1.bf16.msra.mxu0 %v10193_v33  ;;  %7615 = vmatpush1.bf16.msra.mxu1 %v10196_v34  ;;  %v10283_v33 = vld [vmem:[%s14373_s1 + $0x11c0] ss:$16 sps:$4 sm:$0xff]   ;;  %v10286_v34 = vld [vmem:[%s14373_s1 + $0x11c8] ss:$16 sps:$4 sm:$0xff]  }
 0x21c   : > { %6939 = vmatprep.subr.bf16.mxu0 %v10201_v35  ;;  %7627 = vmatprep.subr.bf16.mxu1 %v10204_v36  ;;  %v10291_v35 = vld [vmem:[%s14373_s1 + $0x11e4] ss:$16 sps:$4 sm:$0xff]   ;;  %v10294_v36 = vld [vmem:[%s14373_s1 + $0x11ec] ss:$16 sps:$4 sm:$0xff]  }
 0x21e   : > { %6929 = vmatmul.mubr.bf16.vlgmr.msra.gmra.mrb[0].mxu0 %v8228_v37  ;;  %7617 = vmatmul.mubr.bf16.vlgmr.msra.gmra.mrb[0].mxu1 %v8228_v37  ;;  %v10289_v37 = vld [vmem:[%s14373_s1 + $0x11e0] ss:$16 sps:$4 sm:$0xff]  }
 0x21f   : > { %6940 = vmatpush1.bf16.msra.mxu0 %v10199_v38  ;;  %7628 = vmatpush1.bf16.msra.mxu1 %v10202_v39  ;;  %v10292_v38 = vld [vmem:[%s14373_s1 + $0x11e8] ss:$16 sps:$4 sm:$0xff]   ;;  %v10297_v39 = vld [vmem:[%s14373_s1 + $0x1204] ss:$16 sps:$4 sm:$0xff]  }
 0x220   : > { %6941 = vmatprep.subr.bf16.mxu0 %v10207_v40  ;;  %7629 = vmatprep.subr.bf16.mxu1 %v10210_v18  ;;  %v10300_v40 = vld [vmem:[%s14373_s1 + $0x120c] ss:$16 sps:$4 sm:$0xff]  }
 0x221   : > { %6971 = vmatprep.mubr.bf16.mxu0 %v8231_v19  ;;  %7659 = vmatprep.mubr.bf16.mxu1 %v8231_v19  ;;  %v12885_v18 = vld [vmem:[%s11200_s25 + $0x48] sm:$0xff] }
 0x222   : > { %v12888_v19 = vld [vmem:[%s11200_s25 + $0xc8] sm:$0xff] }
 0x223   : > { %6942 = vmatpush1.bf16.msra.mxu0 %v10205_v41  ;;  %7630 = vmatpush1.bf16.msra.mxu1 %v10208_v42  ;;  %v8230_v41 = vcombine.low %v12683_v21, %v12686_v14  ;;  %v10295_v42 = vld [vmem:[%s14373_s1 + $0x1200] ss:$16 sps:$4 sm:$0xff]   ;;  %v10306_v21 = vld [vmem:[%s14373_s1 + $0x122c] ss:$16 sps:$4 sm:$0xff]   ;;  %v8233_v14 = vcombine.high %v12885_v18, %v12888_v19 }
 0x224   : > { %6943 = vmatprep.subr.bf16.mxu0 %v10213_v43  ;;  %7631 = vmatprep.subr.bf16.mxu1 %v10216_v44  ;;  %v10298_v43 = vld [vmem:[%s14373_s1 + $0x1208] ss:$16 sps:$4 sm:$0xff]   ;;  %v10303_v44 = vld [vmem:[%s14373_s1 + $0x1224] ss:$16 sps:$4 sm:$0xff]  }
 0x227   : > { %6944 = vmatpush1.bf16.msra.mxu0 %v10211_v45  ;;  %7632 = vmatpush1.bf16.msra.mxu1 %v10214_v46  ;;  %v10301_v45 = vld [vmem:[%s14373_s1 + $0x1220] ss:$16 sps:$4 sm:$0xff]   ;;  %v10304_v46 = vld [vmem:[%s14373_s1 + $0x1228] ss:$16 sps:$4 sm:$0xff]  }
 0x228   : > { %6945 = vmatprep.subr.bf16.mxu0 %v10219_v47  ;;  %7633 = vmatprep.subr.bf16.mxu1 %v10222_v48  ;;  %v10309_v47 = vld [vmem:[%s14373_s1 + $0x1244] ss:$16 sps:$4 sm:$0xff]   ;;  %v10312_v48 = vld [vmem:[%s14373_s1 + $0x124c] ss:$16 sps:$4 sm:$0xff]  }
 0x22b   : > { %6946 = vmatpush1.bf16.msra.mxu0 %v10217_v49  ;;  %7634 = vmatpush1.bf16.msra.mxu1 %v10220_v50  ;;  %v10307_v49 = vld [vmem:[%s14373_s1 + $0x1240] ss:$16 sps:$4 sm:$0xff]   ;;  %v10310_v50 = vld [vmem:[%s14373_s1 + $0x1248] ss:$16 sps:$4 sm:$0xff]  }
 0x22c   : > { %6947 = vmatprep.subr.bf16.mxu0 %v10225_v51  ;;  %7635 = vmatprep.subr.bf16.mxu1 %v10228_v52  ;;  %v10315_v51 = vld [vmem:[%s14373_s1 + $0x1264] ss:$16 sps:$4 sm:$0xff]   ;;  %v10318_v52 = vld [vmem:[%s14373_s1 + $0x126c] ss:$16 sps:$4 sm:$0xff]  }
 0x22f   : > { %6948 = vmatpush1.bf16.msra.mxu0 %v10223_v53  ;;  %7636 = vmatpush1.bf16.msra.mxu1 %v10226_v54  ;;  %v10313_v53 = vld [vmem:[%s14373_s1 + $0x1260] ss:$16 sps:$4 sm:$0xff]   ;;  %v10316_v54 = vld [vmem:[%s14373_s1 + $0x1268] ss:$16 sps:$4 sm:$0xff]  }
 0x230   : > { %6949 = vmatprep.subr.bf16.mxu0 %v10231_v55  ;;  %7637 = vmatprep.subr.bf16.mxu1 %v10234_v56  ;;  %v10321_v55 = vld [vmem:[%s14373_s1 + $0x1284] ss:$16 sps:$4 sm:$0xff]   ;;  %v10324_v56 = vld [vmem:[%s14373_s1 + $0x128c] ss:$16 sps:$4 sm:$0xff]  }
 0x233   : > { %6950 = vmatpush1.bf16.msra.mxu0 %v10229_v57  ;;  %7638 = vmatpush1.bf16.msra.mxu1 %v10232_v58  ;;  %v10319_v57 = vld [vmem:[%s14373_s1 + $0x1280] ss:$16 sps:$4 sm:$0xff]   ;;  %v10322_v58 = vld [vmem:[%s14373_s1 + $0x1288] ss:$16 sps:$4 sm:$0xff]  }
 0x234   : > { %6951 = vmatprep.subr.bf16.mxu0 %v10237_v59  ;;  %7639 = vmatprep.subr.bf16.mxu1 %v10240_v60  ;;  %v10327_v59 = vld [vmem:[%s14373_s1 + $0x12a4] ss:$16 sps:$4 sm:$0xff]   ;;  %v10330_v60 = vld [vmem:[%s14373_s1 + $0x12ac] ss:$16 sps:$4 sm:$0xff]  }
 0x237   : > { %6952 = vmatpush1.bf16.msra.mxu0 %v10235_v61  ;;  %7640 = vmatpush1.bf16.msra.mxu1 %v10238_v62  ;;  %v10325_v61 = vld [vmem:[%s14373_s1 + $0x12a0] ss:$16 sps:$4 sm:$0xff]   ;;  %v10328_v62 = vld [vmem:[%s14373_s1 + $0x12a8] ss:$16 sps:$4 sm:$0xff]  }
 0x238   : > { %6953 = vmatprep.subr.bf16.mxu0 %v10243_v63  ;;  %7641 = vmatprep.subr.bf16.mxu1 %v10246_v0  ;;  %v10333_v63 = vld [vmem:[%s14373_s1 + $0x12c4] ss:$16 sps:$4 sm:$0xff]   ;;  %v10336_v0 = vld [vmem:[%s14373_s1 + $0x12cc] ss:$16 sps:$4 sm:$0xff]  }
 0x23b   : > { %6954 = vmatpush1.bf16.msra.mxu0 %v10241_v1  ;;  %7642 = vmatpush1.bf16.msra.mxu1 %v10244_v2  ;;  %v10331_v1 = vld [vmem:[%s14373_s1 + $0x12c0] ss:$16 sps:$4 sm:$0xff]   ;;  %v10334_v2 = vld [vmem:[%s14373_s1 + $0x12c8] ss:$16 sps:$4 sm:$0xff]  }
 0x23c   : > { %6955 = vmatprep.subr.bf16.mxu0 %v10249_v3  ;;  %7643 = vmatprep.subr.bf16.mxu1 %v10252_v4  ;;  %v10339_v3 = vld [vmem:[%s14373_s1 + $0x12e4] ss:$16 sps:$4 sm:$0xff]   ;;  %v10342_v4 = vld [vmem:[%s14373_s1 + $0x12ec] ss:$16 sps:$4 sm:$0xff]  }
 0x23f   : > { %6956 = vmatpush1.bf16.msra.mxu0 %v10247_v5  ;;  %7644 = vmatpush1.bf16.msra.mxu1 %v10250_v6  ;;  %v10337_v5 = vld [vmem:[%s14373_s1 + $0x12e0] ss:$16 sps:$4 sm:$0xff]   ;;  %v10340_v6 = vld [vmem:[%s14373_s1 + $0x12e8] ss:$16 sps:$4 sm:$0xff]  }
 0x240   : > { %6957 = vmatprep.subr.bf16.mxu0 %v10255_v7  ;;  %7645 = vmatprep.subr.bf16.mxu1 %v10258_v8  ;;  %v10345_v7 = vld [vmem:[%s14373_s1 + $0x1304] ss:$16 sps:$4 sm:$0xff]   ;;  %v10348_v8 = vld [vmem:[%s14373_s1 + $0x130c] ss:$16 sps:$4 sm:$0xff]  }
 0x243   : > { %6958 = vmatpush1.bf16.msra.mxu0 %v10253_v9  ;;  %7646 = vmatpush1.bf16.msra.mxu1 %v10256_v10  ;;  %v10343_v9 = vld [vmem:[%s14373_s1 + $0x1300] ss:$16 sps:$4 sm:$0xff]   ;;  %v10346_v10 = vld [vmem:[%s14373_s1 + $0x1308] ss:$16 sps:$4 sm:$0xff]  }
 0x244   : > { %6959 = vmatprep.subr.bf16.mxu0 %v10261_v11  ;;  %7647 = vmatprep.subr.bf16.mxu1 %v10264_v12  ;;  %v10351_v11 = vld [vmem:[%s14373_s1 + $0x1324] ss:$16 sps:$4 sm:$0xff]   ;;  %v10354_v12 = vld [vmem:[%s14373_s1 + $0x132c] ss:$16 sps:$4 sm:$0xff]  }
 0x247   : > { %6960 = vmatpush1.bf16.msra.mxu0 %v10259_v13  ;;  %7648 = vmatpush1.bf16.msra.mxu1 %v10262_v16  ;;  %v10349_v13 = vld [vmem:[%s14373_s1 + $0x1320] ss:$16 sps:$4 sm:$0xff]   ;;  %v10352_v16 = vld [vmem:[%s14373_s1 + $0x1328] ss:$16 sps:$4 sm:$0xff]  }
 0x248   : > { %6961 = vmatprep.subr.bf16.mxu0 %v10267_v17  ;;  %7649 = vmatprep.subr.bf16.mxu1 %v10270_v20  ;;  %v10357_v17 = vld [vmem:[%s14373_s1 + $0x1344] ss:$16 sps:$4 sm:$0xff]   ;;  %v10360_v20 = vld [vmem:[%s14373_s1 + $0x134c] ss:$16 sps:$4 sm:$0xff]  }
 0x24b   : > { %6962 = vmatpush1.bf16.msra.mxu0 %v10265_v22  ;;  %7650 = vmatpush1.bf16.msra.mxu1 %v10268_v15  ;;  %v10355_v22 = vld [vmem:[%s14373_s1 + $0x1340] ss:$16 sps:$4 sm:$0xff]   ;;  %v10358_v15 = vld [vmem:[%s14373_s1 + $0x1348] ss:$16 sps:$4 sm:$0xff]  }
 0x24c   : > { %6963 = vmatprep.subr.bf16.mxu0 %v10273_v23  ;;  %7651 = vmatprep.subr.bf16.mxu1 %v10276_v24  ;;  %v10363_v23 = vld [vmem:[%s14373_s1 + $0x1364] ss:$16 sps:$4 sm:$0xff]   ;;  %v10366_v24 = vld [vmem:[%s14373_s1 + $0x136c] ss:$16 sps:$4 sm:$0xff]  }
 0x24f   : > { %6964 = vmatpush1.bf16.msra.mxu0 %v10271_v25  ;;  %7652 = vmatpush1.bf16.msra.mxu1 %v10274_v26  ;;  %v10361_v25 = vld [vmem:[%s14373_s1 + $0x1360] ss:$16 sps:$4 sm:$0xff]   ;;  %v10364_v26 = vld [vmem:[%s14373_s1 + $0x1368] ss:$16 sps:$4 sm:$0xff]  }
 0x250   : > { %6965 = vmatprep.subr.bf16.mxu0 %v10279_v27  ;;  %7653 = vmatprep.subr.bf16.mxu1 %v10282_v28  ;;  %v10369_v27 = vld [vmem:[%s14373_s1 + $0x1384] ss:$16 sps:$4 sm:$0xff]   ;;  %v10372_v28 = vld [vmem:[%s14373_s1 + $0x138c] ss:$16 sps:$4 sm:$0xff]  }
 0x253   : > { %6966 = vmatpush1.bf16.msra.mxu0 %v10277_v29  ;;  %7654 = vmatpush1.bf16.msra.mxu1 %v10280_v30  ;;  %v10367_v29 = vld [vmem:[%s14373_s1 + $0x1380] ss:$16 sps:$4 sm:$0xff]   ;;  %v10370_v30 = vld [vmem:[%s14373_s1 + $0x1388] ss:$16 sps:$4 sm:$0xff]  }
 0x254   : > { %6967 = vmatprep.subr.bf16.mxu0 %v10285_v31  ;;  %7655 = vmatprep.subr.bf16.mxu1 %v10288_v32  ;;  %v10375_v31 = vld [vmem:[%s14373_s1 + $0x13a4] ss:$16 sps:$4 sm:$0xff]   ;;  %v10378_v32 = vld [vmem:[%s14373_s1 + $0x13ac] ss:$16 sps:$4 sm:$0xff]  }
 0x257   : > { %6968 = vmatpush1.bf16.msra.mxu0 %v10283_v33  ;;  %7656 = vmatpush1.bf16.msra.mxu1 %v10286_v34  ;;  %v10373_v33 = vld [vmem:[%s14373_s1 + $0x13a0] ss:$16 sps:$4 sm:$0xff]   ;;  %v10376_v34 = vld [vmem:[%s14373_s1 + $0x13a8] ss:$16 sps:$4 sm:$0xff]  }
 0x258   : > { %6969 = vmatprep.subr.bf16.mxu0 %v10291_v35  ;;  %7657 = vmatprep.subr.bf16.mxu1 %v10294_v36  ;;  %v10381_v35 = vld [vmem:[%s14373_s1 + $0x13c4] ss:$16 sps:$4 sm:$0xff]   ;;  %v10384_v36 = vld [vmem:[%s14373_s1 + $0x13cc] ss:$16 sps:$4 sm:$0xff]  }
 0x25b   : > { %6970 = vmatpush1.bf16.msra.mxu0 %v10289_v37  ;;  %7658 = vmatpush1.bf16.msra.mxu1 %v10292_v38  ;;  %v10379_v37 = vld [vmem:[%s14373_s1 + $0x13c0] ss:$16 sps:$4 sm:$0xff]   ;;  %v10382_v38 = vld [vmem:[%s14373_s1 + $0x13c8] ss:$16 sps:$4 sm:$0xff]  }
 0x25c   : > { %6982 = vmatprep.subr.bf16.mxu0 %v10297_v39  ;;  %7670 = vmatprep.subr.bf16.mxu1 %v10300_v40  ;;  %v10387_v39 = vld [vmem:[%s14373_s1 + $0x13e4] ss:$16 sps:$4 sm:$0xff]   ;;  %v10390_v40 = vld [vmem:[%s14373_s1 + $0x13ec] ss:$16 sps:$4 sm:$0xff]  }
 0x25e   : > { %6972 = vmatmul.mubr.bf16.vlgmr.msra.gmra.mrb[0].mxu0 %v8230_v41  ;;  %7660 = vmatmul.mubr.bf16.vlgmr.msra.gmra.mrb[0].mxu1 %v8230_v41  ;;  %v10385_v41 = vld [vmem:[%s14373_s1 + $0x13e0] ss:$16 sps:$4 sm:$0xff]  }
 0x25f   : > { %6983 = vmatpush1.bf16.msra.mxu0 %v10295_v42  ;;  %7671 = vmatpush1.bf16.msra.mxu1 %v10298_v43  ;;  %v10388_v42 = vld [vmem:[%s14373_s1 + $0x13e8] ss:$16 sps:$4 sm:$0xff]   ;;  %v10393_v43 = vld [vmem:[%s14373_s1 + $0x1404] ss:$16 sps:$4 sm:$0xff]  }
 0x260   : > { %6984 = vmatprep.subr.bf16.mxu0 %v10303_v44  ;;  %7672 = vmatprep.subr.bf16.mxu1 %v10306_v21  ;;  %v10396_v44 = vld [vmem:[%s14373_s1 + $0x140c] ss:$16 sps:$4 sm:$0xff]   ;;  %v8232_v21 = vcombine.low %v12885_v18, %v12888_v19  ;;  %v10399_v18 = vld [vmem:[%s14373_s1 + $0x1424] ss:$16 sps:$4 sm:$0xff]  }
 0x261   : > { %7014 = vmatprep.mubr.bf16.mxu0 %v8233_v14  ;;  %7702 = vmatprep.mubr.bf16.mxu1 %v8233_v14  ;;  %v13089_v14 = vld [vmem:[%s11200_s25 + $0x50] sm:$0xff]  ;;  %v10402_v19 = vld [vmem:[%s14373_s1 + $0x142c] ss:$16 sps:$4 sm:$0xff]  }
 0x263   : > { %6985 = vmatpush1.bf16.msra.mxu0 %v10301_v45  ;;  %7673 = vmatpush1.bf16.msra.mxu1 %v10304_v46  ;;  %v13092_v45 = vld [vmem:[%s11200_s25 + $0xd0] sm:$0xff] }
 0x264   : > { %6986 = vmatprep.subr.bf16.mxu0 %v10309_v47  ;;  %7674 = vmatprep.subr.bf16.mxu1 %v10312_v48  ;;  %v10391_v46 = vld [vmem:[%s14373_s1 + $0x1400] ss:$16 sps:$4 sm:$0xff]   ;;  %v10394_v47 = vld [vmem:[%s14373_s1 + $0x1408] ss:$16 sps:$4 sm:$0xff]   ;;  %v8235_v48 = vcombine.high %v13089_v14, %v13092_v45 }
 0x267   : > { %6987 = vmatpush1.bf16.msra.mxu0 %v10307_v49  ;;  %7675 = vmatpush1.bf16.msra.mxu1 %v10310_v50  ;;  %v10397_v49 = vld [vmem:[%s14373_s1 + $0x1420] ss:$16 sps:$4 sm:$0xff]   ;;  %v10400_v50 = vld [vmem:[%s14373_s1 + $0x1428] ss:$16 sps:$4 sm:$0xff]  }
 0x268   : > { %6988 = vmatprep.subr.bf16.mxu0 %v10315_v51  ;;  %7676 = vmatprep.subr.bf16.mxu1 %v10318_v52  ;;  %v10405_v51 = vld [vmem:[%s14373_s1 + $0x1444] ss:$16 sps:$4 sm:$0xff]   ;;  %v10408_v52 = vld [vmem:[%s14373_s1 + $0x144c] ss:$16 sps:$4 sm:$0xff]  }
 0x26b   : > { %6989 = vmatpush1.bf16.msra.mxu0 %v10313_v53  ;;  %7677 = vmatpush1.bf16.msra.mxu1 %v10316_v54  ;;  %v10403_v53 = vld [vmem:[%s14373_s1 + $0x1440] ss:$16 sps:$4 sm:$0xff]   ;;  %v10406_v54 = vld [vmem:[%s14373_s1 + $0x1448] ss:$16 sps:$4 sm:$0xff]  }
 0x26c   : > { %6990 = vmatprep.subr.bf16.mxu0 %v10321_v55  ;;  %7678 = vmatprep.subr.bf16.mxu1 %v10324_v56  ;;  %v10411_v55 = vld [vmem:[%s14373_s1 + $0x1464] ss:$16 sps:$4 sm:$0xff]   ;;  %v10414_v56 = vld [vmem:[%s14373_s1 + $0x146c] ss:$16 sps:$4 sm:$0xff]  }
 0x26f   : > { %6991 = vmatpush1.bf16.msra.mxu0 %v10319_v57  ;;  %7679 = vmatpush1.bf16.msra.mxu1 %v10322_v58  ;;  %v10409_v57 = vld [vmem:[%s14373_s1 + $0x1460] ss:$16 sps:$4 sm:$0xff]   ;;  %v10412_v58 = vld [vmem:[%s14373_s1 + $0x1468] ss:$16 sps:$4 sm:$0xff]  }
 0x270   : > { %6992 = vmatprep.subr.bf16.mxu0 %v10327_v59  ;;  %7680 = vmatprep.subr.bf16.mxu1 %v10330_v60  ;;  %v10417_v59 = vld [vmem:[%s14373_s1 + $0x1484] ss:$16 sps:$4 sm:$0xff]   ;;  %v10420_v60 = vld [vmem:[%s14373_s1 + $0x148c] ss:$16 sps:$4 sm:$0xff]  }
 0x273   : > { %6993 = vmatpush1.bf16.msra.mxu0 %v10325_v61  ;;  %7681 = vmatpush1.bf16.msra.mxu1 %v10328_v62  ;;  %v10415_v61 = vld [vmem:[%s14373_s1 + $0x1480] ss:$16 sps:$4 sm:$0xff]   ;;  %v10418_v62 = vld [vmem:[%s14373_s1 + $0x1488] ss:$16 sps:$4 sm:$0xff]  }
 0x274   : > { %6994 = vmatprep.subr.bf16.mxu0 %v10333_v63  ;;  %7682 = vmatprep.subr.bf16.mxu1 %v10336_v0  ;;  %v10423_v63 = vld [vmem:[%s14373_s1 + $0x14a4] ss:$16 sps:$4 sm:$0xff]   ;;  %v10426_v0 = vld [vmem:[%s14373_s1 + $0x14ac] ss:$16 sps:$4 sm:$0xff]  }
 0x277   : > { %6995 = vmatpush1.bf16.msra.mxu0 %v10331_v1  ;;  %7683 = vmatpush1.bf16.msra.mxu1 %v10334_v2  ;;  %v10421_v1 = vld [vmem:[%s14373_s1 + $0x14a0] ss:$16 sps:$4 sm:$0xff]   ;;  %v10424_v2 = vld [vmem:[%s14373_s1 + $0x14a8] ss:$16 sps:$4 sm:$0xff]  }
 0x278   : > { %6996 = vmatprep.subr.bf16.mxu0 %v10339_v3  ;;  %7684 = vmatprep.subr.bf16.mxu1 %v10342_v4  ;;  %v10429_v3 = vld [vmem:[%s14373_s1 + $0x14c4] ss:$16 sps:$4 sm:$0xff]   ;;  %v10432_v4 = vld [vmem:[%s14373_s1 + $0x14cc] ss:$16 sps:$4 sm:$0xff]  }
 0x27b   : > { %6997 = vmatpush1.bf16.msra.mxu0 %v10337_v5  ;;  %7685 = vmatpush1.bf16.msra.mxu1 %v10340_v6  ;;  %v10427_v5 = vld [vmem:[%s14373_s1 + $0x14c0] ss:$16 sps:$4 sm:$0xff]   ;;  %v10430_v6 = vld [vmem:[%s14373_s1 + $0x14c8] ss:$16 sps:$4 sm:$0xff]  }
 0x27c   : > { %6998 = vmatprep.subr.bf16.mxu0 %v10345_v7  ;;  %7686 = vmatprep.subr.bf16.mxu1 %v10348_v8  ;;  %v10435_v7 = vld [vmem:[%s14373_s1 + $0x14e4] ss:$16 sps:$4 sm:$0xff]   ;;  %v10438_v8 = vld [vmem:[%s14373_s1 + $0x14ec] ss:$16 sps:$4 sm:$0xff]  }
 0x27f   : > { %6999 = vmatpush1.bf16.msra.mxu0 %v10343_v9  ;;  %7687 = vmatpush1.bf16.msra.mxu1 %v10346_v10  ;;  %v10433_v9 = vld [vmem:[%s14373_s1 + $0x14e0] ss:$16 sps:$4 sm:$0xff]   ;;  %v10436_v10 = vld [vmem:[%s14373_s1 + $0x14e8] ss:$16 sps:$4 sm:$0xff]  }
 0x280   : > { %7000 = vmatprep.subr.bf16.mxu0 %v10351_v11  ;;  %7688 = vmatprep.subr.bf16.mxu1 %v10354_v12  ;;  %v10441_v11 = vld [vmem:[%s14373_s1 + $0x1504] ss:$16 sps:$4 sm:$0xff]   ;;  %v10444_v12 = vld [vmem:[%s14373_s1 + $0x150c] ss:$16 sps:$4 sm:$0xff]  }
 0x283   : > { %7001 = vmatpush1.bf16.msra.mxu0 %v10349_v13  ;;  %7689 = vmatpush1.bf16.msra.mxu1 %v10352_v16  ;;  %v10439_v13 = vld [vmem:[%s14373_s1 + $0x1500] ss:$16 sps:$4 sm:$0xff]   ;;  %v10442_v16 = vld [vmem:[%s14373_s1 + $0x1508] ss:$16 sps:$4 sm:$0xff]  }
 0x284   : > { %7002 = vmatprep.subr.bf16.mxu0 %v10357_v17  ;;  %7690 = vmatprep.subr.bf16.mxu1 %v10360_v20  ;;  %v10447_v17 = vld [vmem:[%s14373_s1 + $0x1524] ss:$16 sps:$4 sm:$0xff]   ;;  %v10450_v20 = vld [vmem:[%s14373_s1 + $0x152c] ss:$16 sps:$4 sm:$0xff]  }
 0x287   : > { %7003 = vmatpush1.bf16.msra.mxu0 %v10355_v22  ;;  %7691 = vmatpush1.bf16.msra.mxu1 %v10358_v15  ;;  %v10445_v22 = vld [vmem:[%s14373_s1 + $0x1520] ss:$16 sps:$4 sm:$0xff]   ;;  %v10448_v15 = vld [vmem:[%s14373_s1 + $0x1528] ss:$16 sps:$4 sm:$0xff]  }
 0x288   : > { %7004 = vmatprep.subr.bf16.mxu0 %v10363_v23  ;;  %7692 = vmatprep.subr.bf16.mxu1 %v10366_v24  ;;  %v10453_v23 = vld [vmem:[%s14373_s1 + $0x1544] ss:$16 sps:$4 sm:$0xff]   ;;  %v10456_v24 = vld [vmem:[%s14373_s1 + $0x154c] ss:$16 sps:$4 sm:$0xff]  }
 0x28b   : > { %7005 = vmatpush1.bf16.msra.mxu0 %v10361_v25  ;;  %7693 = vmatpush1.bf16.msra.mxu1 %v10364_v26  ;;  %v10451_v25 = vld [vmem:[%s14373_s1 + $0x1540] ss:$16 sps:$4 sm:$0xff]   ;;  %v10454_v26 = vld [vmem:[%s14373_s1 + $0x1548] ss:$16 sps:$4 sm:$0xff]  }
 0x28c   : > { %7006 = vmatprep.subr.bf16.mxu0 %v10369_v27  ;;  %7694 = vmatprep.subr.bf16.mxu1 %v10372_v28  ;;  %v10459_v27 = vld [vmem:[%s14373_s1 + $0x1564] ss:$16 sps:$4 sm:$0xff]   ;;  %v10462_v28 = vld [vmem:[%s14373_s1 + $0x156c] ss:$16 sps:$4 sm:$0xff]  }
 0x28f   : > { %7007 = vmatpush1.bf16.msra.mxu0 %v10367_v29  ;;  %7695 = vmatpush1.bf16.msra.mxu1 %v10370_v30  ;;  %v10457_v29 = vld [vmem:[%s14373_s1 + $0x1560] ss:$16 sps:$4 sm:$0xff]   ;;  %v10460_v30 = vld [vmem:[%s14373_s1 + $0x1568] ss:$16 sps:$4 sm:$0xff]  }
 0x290   : > { %7008 = vmatprep.subr.bf16.mxu0 %v10375_v31  ;;  %7696 = vmatprep.subr.bf16.mxu1 %v10378_v32  ;;  %v10465_v31 = vld [vmem:[%s14373_s1 + $0x1584] ss:$16 sps:$4 sm:$0xff]   ;;  %v10468_v32 = vld [vmem:[%s14373_s1 + $0x158c] ss:$16 sps:$4 sm:$0xff]  }
 0x293   : > { %7009 = vmatpush1.bf16.msra.mxu0 %v10373_v33  ;;  %7697 = vmatpush1.bf16.msra.mxu1 %v10376_v34  ;;  %v10463_v33 = vld [vmem:[%s14373_s1 + $0x1580] ss:$16 sps:$4 sm:$0xff]   ;;  %v10466_v34 = vld [vmem:[%s14373_s1 + $0x1588] ss:$16 sps:$4 sm:$0xff]  }
 0x294   : > { %7010 = vmatprep.subr.bf16.mxu0 %v10381_v35  ;;  %7698 = vmatprep.subr.bf16.mxu1 %v10384_v36  ;;  %v10471_v35 = vld [vmem:[%s14373_s1 + $0x15a4] ss:$16 sps:$4 sm:$0xff]   ;;  %v10474_v36 = vld [vmem:[%s14373_s1 + $0x15ac] ss:$16 sps:$4 sm:$0xff]  }
 0x297   : > { %7011 = vmatpush1.bf16.msra.mxu0 %v10379_v37  ;;  %7699 = vmatpush1.bf16.msra.mxu1 %v10382_v38  ;;  %v10469_v37 = vld [vmem:[%s14373_s1 + $0x15a0] ss:$16 sps:$4 sm:$0xff]   ;;  %v10472_v38 = vld [vmem:[%s14373_s1 + $0x15a8] ss:$16 sps:$4 sm:$0xff]  }
 0x298   : > { %7012 = vmatprep.subr.bf16.mxu0 %v10387_v39  ;;  %7700 = vmatprep.subr.bf16.mxu1 %v10390_v40  ;;  %v10477_v39 = vld [vmem:[%s14373_s1 + $0x15c4] ss:$16 sps:$4 sm:$0xff]   ;;  %v10480_v40 = vld [vmem:[%s14373_s1 + $0x15cc] ss:$16 sps:$4 sm:$0xff]  }
 0x29b   : > { %7013 = vmatpush1.bf16.msra.mxu0 %v10385_v41  ;;  %7701 = vmatpush1.bf16.msra.mxu1 %v10388_v42  ;;  %v10475_v41 = vld [vmem:[%s14373_s1 + $0x15c0] ss:$16 sps:$4 sm:$0xff]   ;;  %v10478_v42 = vld [vmem:[%s14373_s1 + $0x15c8] ss:$16 sps:$4 sm:$0xff]  }
 0x29c   : > { %7025 = vmatprep.subr.bf16.mxu0 %v10393_v43  ;;  %7713 = vmatprep.subr.bf16.mxu1 %v10396_v44  ;;  %v10483_v43 = vld [vmem:[%s14373_s1 + $0x15e4] ss:$16 sps:$4 sm:$0xff]   ;;  %v10486_v44 = vld [vmem:[%s14373_s1 + $0x15ec] ss:$16 sps:$4 sm:$0xff]  }
 0x29e   : > { %7015 = vmatmul.mubr.bf16.vlgmr.msra.gmra.mrb[0].mxu0 %v8232_v21  ;;  %7703 = vmatmul.mubr.bf16.vlgmr.msra.gmra.mrb[0].mxu1 %v8232_v21  ;;  %v10481_v21 = vld [vmem:[%s14373_s1 + $0x15e0] ss:$16 sps:$4 sm:$0xff]  }
 0x29f   : > { %7026 = vmatpush1.bf16.msra.mxu0 %v10391_v46  ;;  %7714 = vmatpush1.bf16.msra.mxu1 %v10394_v47  ;;  %v10484_v46 = vld [vmem:[%s14373_s1 + $0x15e8] ss:$16 sps:$4 sm:$0xff]   ;;  %v10489_v47 = vld [vmem:[%s14373_s1 + $0x1604] ss:$16 sps:$4 sm:$0xff]  }
 0x2a0   : > { %7027 = vmatprep.subr.bf16.mxu0 %v10399_v18  ;;  %7715 = vmatprep.subr.bf16.mxu1 %v10402_v19  ;;  %v10492_v18 = vld [vmem:[%s14373_s1 + $0x160c] ss:$16 sps:$4 sm:$0xff]   ;;  %v8234_v19 = vcombine.low %v13089_v14, %v13092_v45  ;;  %v10495_v14 = vld [vmem:[%s14373_s1 + $0x1624] ss:$16 sps:$4 sm:$0xff]  }
 0x2a1   : > { %7057 = vmatprep.mubr.bf16.mxu0 %v8235_v48  ;;  %7745 = vmatprep.mubr.bf16.mxu1 %v8235_v48  ;;  %v13291_v48 = vld [vmem:[%s11200_s25 + $0x58] sm:$0xff] }
 0x2a2   : > { %v10498_v45 = vld [vmem:[%s14373_s1 + $0x162c] ss:$16 sps:$4 sm:$0xff]  }
 0x2a3   : > { %7028 = vmatpush1.bf16.msra.mxu0 %v10397_v49  ;;  %7716 = vmatpush1.bf16.msra.mxu1 %v10400_v50  ;;  %v13294_v49 = vld [vmem:[%s11200_s25 + $0xd8] sm:$0xff]  ;;  %v10487_v50 = vld [vmem:[%s14373_s1 + $0x1600] ss:$16 sps:$4 sm:$0xff]  }
 0x2a4   : > { %7029 = vmatprep.subr.bf16.mxu0 %v10405_v51  ;;  %7717 = vmatprep.subr.bf16.mxu1 %v10408_v52  ;;  %v10490_v51 = vld [vmem:[%s14373_s1 + $0x1608] ss:$16 sps:$4 sm:$0xff]   ;;  %v8237_v52 = vcombine.high %v13291_v48, %v13294_v49 }
 0x2a7   : > { %7030 = vmatpush1.bf16.msra.mxu0 %v10403_v53  ;;  %7718 = vmatpush1.bf16.msra.mxu1 %v10406_v54  ;;  %v10493_v53 = vld [vmem:[%s14373_s1 + $0x1620] ss:$16 sps:$4 sm:$0xff]   ;;  %v10496_v54 = vld [vmem:[%s14373_s1 + $0x1628] ss:$16 sps:$4 sm:$0xff]  }
 0x2a8   : > { %7031 = vmatprep.subr.bf16.mxu0 %v10411_v55  ;;  %7719 = vmatprep.subr.bf16.mxu1 %v10414_v56  ;;  %v10501_v55 = vld [vmem:[%s14373_s1 + $0x1644] ss:$16 sps:$4 sm:$0xff]   ;;  %v10504_v56 = vld [vmem:[%s14373_s1 + $0x164c] ss:$16 sps:$4 sm:$0xff]  }
 0x2ab   : > { %7032 = vmatpush1.bf16.msra.mxu0 %v10409_v57  ;;  %7720 = vmatpush1.bf16.msra.mxu1 %v10412_v58  ;;  %v10499_v57 = vld [vmem:[%s14373_s1 + $0x1640] ss:$16 sps:$4 sm:$0xff]   ;;  %v10502_v58 = vld [vmem:[%s14373_s1 + $0x1648] ss:$16 sps:$4 sm:$0xff]  }
 0x2ac   : > { %7033 = vmatprep.subr.bf16.mxu0 %v10417_v59  ;;  %7721 = vmatprep.subr.bf16.mxu1 %v10420_v60  ;;  %v10507_v59 = vld [vmem:[%s14373_s1 + $0x1664] ss:$16 sps:$4 sm:$0xff]   ;;  %v10510_v60 = vld [vmem:[%s14373_s1 + $0x166c] ss:$16 sps:$4 sm:$0xff]  }
 0x2af   : > { %7034 = vmatpush1.bf16.msra.mxu0 %v10415_v61  ;;  %7722 = vmatpush1.bf16.msra.mxu1 %v10418_v62  ;;  %v10505_v61 = vld [vmem:[%s14373_s1 + $0x1660] ss:$16 sps:$4 sm:$0xff]   ;;  %v10508_v62 = vld [vmem:[%s14373_s1 + $0x1668] ss:$16 sps:$4 sm:$0xff]  }
 0x2b0   : > { %7035 = vmatprep.subr.bf16.mxu0 %v10423_v63  ;;  %7723 = vmatprep.subr.bf16.mxu1 %v10426_v0  ;;  %v10513_v63 = vld [vmem:[%s14373_s1 + $0x1684] ss:$16 sps:$4 sm:$0xff]   ;;  %v10516_v0 = vld [vmem:[%s14373_s1 + $0x168c] ss:$16 sps:$4 sm:$0xff]  }
 0x2b3   : > { %7036 = vmatpush1.bf16.msra.mxu0 %v10421_v1  ;;  %7724 = vmatpush1.bf16.msra.mxu1 %v10424_v2  ;;  %v10511_v1 = vld [vmem:[%s14373_s1 + $0x1680] ss:$16 sps:$4 sm:$0xff]   ;;  %v10514_v2 = vld [vmem:[%s14373_s1 + $0x1688] ss:$16 sps:$4 sm:$0xff]  }
 0x2b4   : > { %7037 = vmatprep.subr.bf16.mxu0 %v10429_v3  ;;  %7725 = vmatprep.subr.bf16.mxu1 %v10432_v4  ;;  %v10519_v3 = vld [vmem:[%s14373_s1 + $0x16a4] ss:$16 sps:$4 sm:$0xff]   ;;  %v10522_v4 = vld [vmem:[%s14373_s1 + $0x16ac] ss:$16 sps:$4 sm:$0xff]  }
 0x2b7   : > { %7038 = vmatpush1.bf16.msra.mxu0 %v10427_v5  ;;  %7726 = vmatpush1.bf16.msra.mxu1 %v10430_v6  ;;  %v10517_v5 = vld [vmem:[%s14373_s1 + $0x16a0] ss:$16 sps:$4 sm:$0xff]   ;;  %v10520_v6 = vld [vmem:[%s14373_s1 + $0x16a8] ss:$16 sps:$4 sm:$0xff]  }
 0x2b8   : > { %7039 = vmatprep.subr.bf16.mxu0 %v10435_v7  ;;  %7727 = vmatprep.subr.bf16.mxu1 %v10438_v8  ;;  %v10525_v7 = vld [vmem:[%s14373_s1 + $0x16c4] ss:$16 sps:$4 sm:$0xff]   ;;  %v10528_v8 = vld [vmem:[%s14373_s1 + $0x16cc] ss:$16 sps:$4 sm:$0xff]  }
 0x2bb   : > { %7040 = vmatpush1.bf16.msra.mxu0 %v10433_v9  ;;  %7728 = vmatpush1.bf16.msra.mxu1 %v10436_v10  ;;  %v10523_v9 = vld [vmem:[%s14373_s1 + $0x16c0] ss:$16 sps:$4 sm:$0xff]   ;;  %v10526_v10 = vld [vmem:[%s14373_s1 + $0x16c8] ss:$16 sps:$4 sm:$0xff]  }
 0x2bc   : > { %7041 = vmatprep.subr.bf16.mxu0 %v10441_v11  ;;  %7729 = vmatprep.subr.bf16.mxu1 %v10444_v12  ;;  %v10531_v11 = vld [vmem:[%s14373_s1 + $0x16e4] ss:$16 sps:$4 sm:$0xff]   ;;  %v10534_v12 = vld [vmem:[%s14373_s1 + $0x16ec] ss:$16 sps:$4 sm:$0xff]  }
 0x2bf   : > { %7042 = vmatpush1.bf16.msra.mxu0 %v10439_v13  ;;  %7730 = vmatpush1.bf16.msra.mxu1 %v10442_v16  ;;  %v10529_v13 = vld [vmem:[%s14373_s1 + $0x16e0] ss:$16 sps:$4 sm:$0xff]   ;;  %v10532_v16 = vld [vmem:[%s14373_s1 + $0x16e8] ss:$16 sps:$4 sm:$0xff]  }
 0x2c0   : > { %7043 = vmatprep.subr.bf16.mxu0 %v10447_v17  ;;  %7731 = vmatprep.subr.bf16.mxu1 %v10450_v20  ;;  %v10537_v17 = vld [vmem:[%s14373_s1 + $0x1704] ss:$16 sps:$4 sm:$0xff]   ;;  %v10540_v20 = vld [vmem:[%s14373_s1 + $0x170c] ss:$16 sps:$4 sm:$0xff]  }
 0x2c3   : > { %7044 = vmatpush1.bf16.msra.mxu0 %v10445_v22  ;;  %7732 = vmatpush1.bf16.msra.mxu1 %v10448_v15  ;;  %v10535_v22 = vld [vmem:[%s14373_s1 + $0x1700] ss:$16 sps:$4 sm:$0xff]   ;;  %v10538_v15 = vld [vmem:[%s14373_s1 + $0x1708] ss:$16 sps:$4 sm:$0xff]  }
 0x2c4   : > { %7045 = vmatprep.subr.bf16.mxu0 %v10453_v23  ;;  %7733 = vmatprep.subr.bf16.mxu1 %v10456_v24  ;;  %v10543_v23 = vld [vmem:[%s14373_s1 + $0x1724] ss:$16 sps:$4 sm:$0xff]   ;;  %v10546_v24 = vld [vmem:[%s14373_s1 + $0x172c] ss:$16 sps:$4 sm:$0xff]  }
 0x2c7   : > { %7046 = vmatpush1.bf16.msra.mxu0 %v10451_v25  ;;  %7734 = vmatpush1.bf16.msra.mxu1 %v10454_v26  ;;  %v10541_v25 = vld [vmem:[%s14373_s1 + $0x1720] ss:$16 sps:$4 sm:$0xff]   ;;  %v10544_v26 = vld [vmem:[%s14373_s1 + $0x1728] ss:$16 sps:$4 sm:$0xff]  }
 0x2c8   : > { %7047 = vmatprep.subr.bf16.mxu0 %v10459_v27  ;;  %7735 = vmatprep.subr.bf16.mxu1 %v10462_v28  ;;  %v10549_v27 = vld [vmem:[%s14373_s1 + $0x1744] ss:$16 sps:$4 sm:$0xff]   ;;  %v10552_v28 = vld [vmem:[%s14373_s1 + $0x174c] ss:$16 sps:$4 sm:$0xff]  }
 0x2cb   : > { %7048 = vmatpush1.bf16.msra.mxu0 %v10457_v29  ;;  %7736 = vmatpush1.bf16.msra.mxu1 %v10460_v30  ;;  %v10547_v29 = vld [vmem:[%s14373_s1 + $0x1740] ss:$16 sps:$4 sm:$0xff]   ;;  %v10550_v30 = vld [vmem:[%s14373_s1 + $0x1748] ss:$16 sps:$4 sm:$0xff]  }
 0x2cc   : > { %7049 = vmatprep.subr.bf16.mxu0 %v10465_v31  ;;  %7737 = vmatprep.subr.bf16.mxu1 %v10468_v32  ;;  %v10555_v31 = vld [vmem:[%s14373_s1 + $0x1764] ss:$16 sps:$4 sm:$0xff]   ;;  %v10558_v32 = vld [vmem:[%s14373_s1 + $0x176c] ss:$16 sps:$4 sm:$0xff]  }
 0x2cf   : > { %7050 = vmatpush1.bf16.msra.mxu0 %v10463_v33  ;;  %7738 = vmatpush1.bf16.msra.mxu1 %v10466_v34  ;;  %v10553_v33 = vld [vmem:[%s14373_s1 + $0x1760] ss:$16 sps:$4 sm:$0xff]   ;;  %v10556_v34 = vld [vmem:[%s14373_s1 + $0x1768] ss:$16 sps:$4 sm:$0xff]  }
 0x2d0   : > { %7051 = vmatprep.subr.bf16.mxu0 %v10471_v35  ;;  %7739 = vmatprep.subr.bf16.mxu1 %v10474_v36  ;;  %v10561_v35 = vld [vmem:[%s14373_s1 + $0x1784] ss:$16 sps:$4 sm:$0xff]   ;;  %v10564_v36 = vld [vmem:[%s14373_s1 + $0x178c] ss:$16 sps:$4 sm:$0xff]  }
 0x2d3   : > { %7052 = vmatpush1.bf16.msra.mxu0 %v10469_v37  ;;  %7740 = vmatpush1.bf16.msra.mxu1 %v10472_v38  ;;  %v10559_v37 = vld [vmem:[%s14373_s1 + $0x1780] ss:$16 sps:$4 sm:$0xff]   ;;  %v10562_v38 = vld [vmem:[%s14373_s1 + $0x1788] ss:$16 sps:$4 sm:$0xff]  }
 0x2d4   : > { %7053 = vmatprep.subr.bf16.mxu0 %v10477_v39  ;;  %7741 = vmatprep.subr.bf16.mxu1 %v10480_v40  ;;  %v10567_v39 = vld [vmem:[%s14373_s1 + $0x17a4] ss:$16 sps:$4 sm:$0xff]   ;;  %v10570_v40 = vld [vmem:[%s14373_s1 + $0x17ac] ss:$16 sps:$4 sm:$0xff]  }
 0x2d7   : > { %7054 = vmatpush1.bf16.msra.mxu0 %v10475_v41  ;;  %7742 = vmatpush1.bf16.msra.mxu1 %v10478_v42  ;;  %v10565_v41 = vld [vmem:[%s14373_s1 + $0x17a0] ss:$16 sps:$4 sm:$0xff]   ;;  %v10568_v42 = vld [vmem:[%s14373_s1 + $0x17a8] ss:$16 sps:$4 sm:$0xff]  }
 0x2d8   : > { %7055 = vmatprep.subr.bf16.mxu0 %v10483_v43  ;;  %7743 = vmatprep.subr.bf16.mxu1 %v10486_v44  ;;  %v10573_v43 = vld [vmem:[%s14373_s1 + $0x17c4] ss:$16 sps:$4 sm:$0xff]   ;;  %v10576_v44 = vld [vmem:[%s14373_s1 + $0x17cc] ss:$16 sps:$4 sm:$0xff]  }
 0x2db   : > { %7056 = vmatpush1.bf16.msra.mxu0 %v10481_v21  ;;  %7744 = vmatpush1.bf16.msra.mxu1 %v10484_v46  ;;  %v10571_v21 = vld [vmem:[%s14373_s1 + $0x17c0] ss:$16 sps:$4 sm:$0xff]   ;;  %v10574_v46 = vld [vmem:[%s14373_s1 + $0x17c8] ss:$16 sps:$4 sm:$0xff]  }
 0x2dc   : > { %7068 = vmatprep.subr.bf16.mxu0 %v10489_v47  ;;  %7756 = vmatprep.subr.bf16.mxu1 %v10492_v18  ;;  %v10579_v47 = vld [vmem:[%s14373_s1 + $0x17e4] ss:$16 sps:$4 sm:$0xff]   ;;  %v10582_v18 = vld [vmem:[%s14373_s1 + $0x17ec] ss:$16 sps:$4 sm:$0xff]  }
 0x2de   : > { %7058 = vmatmul.mubr.bf16.vlgmr.msra.gmra.mrb[0].mxu0 %v8234_v19  ;;  %7746 = vmatmul.mubr.bf16.vlgmr.msra.gmra.mrb[0].mxu1 %v8234_v19  ;;  %v10577_v19 = vld [vmem:[%s14373_s1 + $0x17e0] ss:$16 sps:$4 sm:$0xff]  }
 0x2df   : > { %7069 = vmatpush1.bf16.msra.mxu0 %v10487_v50  ;;  %7757 = vmatpush1.bf16.msra.mxu1 %v10490_v51  ;;  %v10580_v50 = vld [vmem:[%s14373_s1 + $0x17e8] ss:$16 sps:$4 sm:$0xff]   ;;  %v10585_v51 = vld [vmem:[%s14373_s1 + $0x1804] ss:$16 sps:$4 sm:$0xff]  }
 0x2e0   : > { %7070 = vmatprep.subr.bf16.mxu0 %v10495_v14  ;;  %7758 = vmatprep.subr.bf16.mxu1 %v10498_v45  ;;  %v10588_v14 = vld [vmem:[%s14373_s1 + $0x180c] ss:$16 sps:$4 sm:$0xff]   ;;  %v8236_v45 = vcombine.low %v13291_v48, %v13294_v49  ;;  %v10591_v48 = vld [vmem:[%s14373_s1 + $0x1824] ss:$16 sps:$4 sm:$0xff]  }
 0x2e1   : > { %7100 = vmatprep.mubr.bf16.mxu0 %v8237_v52  ;;  %7788 = vmatprep.mubr.bf16.mxu1 %v8237_v52  ;;  %v13493_v52 = vld [vmem:[%s11200_s25 + $0x60] sm:$0xff]  ;;  %v10594_v49 = vld [vmem:[%s14373_s1 + $0x182c] ss:$16 sps:$4 sm:$0xff]  }
 0x2e3   : > { %7071 = vmatpush1.bf16.msra.mxu0 %v10493_v53  ;;  %7759 = vmatpush1.bf16.msra.mxu1 %v10496_v54  ;;  %v13496_v53 = vld [vmem:[%s11200_s25 + $0xe0] sm:$0xff] }
 0x2e4   : > { %7072 = vmatprep.subr.bf16.mxu0 %v10501_v55  ;;  %7760 = vmatprep.subr.bf16.mxu1 %v10504_v56  ;;  %v10583_v54 = vld [vmem:[%s14373_s1 + $0x1800] ss:$16 sps:$4 sm:$0xff]   ;;  %v10586_v55 = vld [vmem:[%s14373_s1 + $0x1808] ss:$16 sps:$4 sm:$0xff]   ;;  %v8239_v56 = vcombine.high %v13493_v52, %v13496_v53 }
 0x2e7   : > { %7073 = vmatpush1.bf16.msra.mxu0 %v10499_v57  ;;  %7761 = vmatpush1.bf16.msra.mxu1 %v10502_v58  ;;  %v10589_v57 = vld [vmem:[%s14373_s1 + $0x1820] ss:$16 sps:$4 sm:$0xff]   ;;  %v10592_v58 = vld [vmem:[%s14373_s1 + $0x1828] ss:$16 sps:$4 sm:$0xff]  }
 0x2e8   : > { %7074 = vmatprep.subr.bf16.mxu0 %v10507_v59  ;;  %7762 = vmatprep.subr.bf16.mxu1 %v10510_v60  ;;  %v10597_v59 = vld [vmem:[%s14373_s1 + $0x1844] ss:$16 sps:$4 sm:$0xff]   ;;  %v10600_v60 = vld [vmem:[%s14373_s1 + $0x184c] ss:$16 sps:$4 sm:$0xff]  }
 0x2eb   : > { %7075 = vmatpush1.bf16.msra.mxu0 %v10505_v61  ;;  %7763 = vmatpush1.bf16.msra.mxu1 %v10508_v62  ;;  %v10595_v61 = vld [vmem:[%s14373_s1 + $0x1840] ss:$16 sps:$4 sm:$0xff]   ;;  %v10598_v62 = vld [vmem:[%s14373_s1 + $0x1848] ss:$16 sps:$4 sm:$0xff]  }
 0x2ec   : > { %7076 = vmatprep.subr.bf16.mxu0 %v10513_v63  ;;  %7764 = vmatprep.subr.bf16.mxu1 %v10516_v0  ;;  %v10603_v63 = vld [vmem:[%s14373_s1 + $0x1864] ss:$16 sps:$4 sm:$0xff]   ;;  %v10606_v0 = vld [vmem:[%s14373_s1 + $0x186c] ss:$16 sps:$4 sm:$0xff]  }
 0x2ef   : > { %7077 = vmatpush1.bf16.msra.mxu0 %v10511_v1  ;;  %7765 = vmatpush1.bf16.msra.mxu1 %v10514_v2  ;;  %v10601_v1 = vld [vmem:[%s14373_s1 + $0x1860] ss:$16 sps:$4 sm:$0xff]   ;;  %v10604_v2 = vld [vmem:[%s14373_s1 + $0x1868] ss:$16 sps:$4 sm:$0xff]  }
 0x2f0   : > { %7078 = vmatprep.subr.bf16.mxu0 %v10519_v3  ;;  %7766 = vmatprep.subr.bf16.mxu1 %v10522_v4  ;;  %v10609_v3 = vld [vmem:[%s14373_s1 + $0x1884] ss:$16 sps:$4 sm:$0xff]   ;;  %v10612_v4 = vld [vmem:[%s14373_s1 + $0x188c] ss:$16 sps:$4 sm:$0xff]  }
 0x2f3   : > { %7079 = vmatpush1.bf16.msra.mxu0 %v10517_v5  ;;  %7767 = vmatpush1.bf16.msra.mxu1 %v10520_v6  ;;  %v10607_v5 = vld [vmem:[%s14373_s1 + $0x1880] ss:$16 sps:$4 sm:$0xff]   ;;  %v10610_v6 = vld [vmem:[%s14373_s1 + $0x1888] ss:$16 sps:$4 sm:$0xff]  }
 0x2f4   : > { %7080 = vmatprep.subr.bf16.mxu0 %v10525_v7  ;;  %7768 = vmatprep.subr.bf16.mxu1 %v10528_v8  ;;  %v10615_v7 = vld [vmem:[%s14373_s1 + $0x18a4] ss:$16 sps:$4 sm:$0xff]   ;;  %v10618_v8 = vld [vmem:[%s14373_s1 + $0x18ac] ss:$16 sps:$4 sm:$0xff]  }
 0x2f7   : > { %7081 = vmatpush1.bf16.msra.mxu0 %v10523_v9  ;;  %7769 = vmatpush1.bf16.msra.mxu1 %v10526_v10  ;;  %v10613_v9 = vld [vmem:[%s14373_s1 + $0x18a0] ss:$16 sps:$4 sm:$0xff]   ;;  %v10616_v10 = vld [vmem:[%s14373_s1 + $0x18a8] ss:$16 sps:$4 sm:$0xff]  }
 0x2f8   : > { %7082 = vmatprep.subr.bf16.mxu0 %v10531_v11  ;;  %7770 = vmatprep.subr.bf16.mxu1 %v10534_v12  ;;  %v10621_v11 = vld [vmem:[%s14373_s1 + $0x18c4] ss:$16 sps:$4 sm:$0xff]   ;;  %v10624_v12 = vld [vmem:[%s14373_s1 + $0x18cc] ss:$16 sps:$4 sm:$0xff]  }
 0x2fb   : > { %7083 = vmatpush1.bf16.msra.mxu0 %v10529_v13  ;;  %7771 = vmatpush1.bf16.msra.mxu1 %v10532_v16  ;;  %v10619_v13 = vld [vmem:[%s14373_s1 + $0x18c0] ss:$16 sps:$4 sm:$0xff]   ;;  %v10622_v16 = vld [vmem:[%s14373_s1 + $0x18c8] ss:$16 sps:$4 sm:$0xff]  }
 0x2fc   : > { %7084 = vmatprep.subr.bf16.mxu0 %v10537_v17  ;;  %7772 = vmatprep.subr.bf16.mxu1 %v10540_v20  ;;  %v10627_v17 = vld [vmem:[%s14373_s1 + $0x18e4] ss:$16 sps:$4 sm:$0xff]   ;;  %v10630_v20 = vld [vmem:[%s14373_s1 + $0x18ec] ss:$16 sps:$4 sm:$0xff]  }
 0x2ff   : > { %7085 = vmatpush1.bf16.msra.mxu0 %v10535_v22  ;;  %7773 = vmatpush1.bf16.msra.mxu1 %v10538_v15  ;;  %v10625_v22 = vld [vmem:[%s14373_s1 + $0x18e0] ss:$16 sps:$4 sm:$0xff]   ;;  %v10628_v15 = vld [vmem:[%s14373_s1 + $0x18e8] ss:$16 sps:$4 sm:$0xff]  }
 0x300   : > { %7086 = vmatprep.subr.bf16.mxu0 %v10543_v23  ;;  %7774 = vmatprep.subr.bf16.mxu1 %v10546_v24  ;;  %v10633_v23 = vld [vmem:[%s14373_s1 + $0x1904] ss:$16 sps:$4 sm:$0xff]   ;;  %v10636_v24 = vld [vmem:[%s14373_s1 + $0x190c] ss:$16 sps:$4 sm:$0xff]  }
 0x303   : > { %7087 = vmatpush1.bf16.msra.mxu0 %v10541_v25  ;;  %7775 = vmatpush1.bf16.msra.mxu1 %v10544_v26  ;;  %v10631_v25 = vld [vmem:[%s14373_s1 + $0x1900] ss:$16 sps:$4 sm:$0xff]   ;;  %v10634_v26 = vld [vmem:[%s14373_s1 + $0x1908] ss:$16 sps:$4 sm:$0xff]  }
 0x304   : > { %7088 = vmatprep.subr.bf16.mxu0 %v10549_v27  ;;  %7776 = vmatprep.subr.bf16.mxu1 %v10552_v28  ;;  %v10639_v27 = vld [vmem:[%s14373_s1 + $0x1924] ss:$16 sps:$4 sm:$0xff]   ;;  %v10642_v28 = vld [vmem:[%s14373_s1 + $0x192c] ss:$16 sps:$4 sm:$0xff]  }
 0x307   : > { %7089 = vmatpush1.bf16.msra.mxu0 %v10547_v29  ;;  %7777 = vmatpush1.bf16.msra.mxu1 %v10550_v30  ;;  %v10637_v29 = vld [vmem:[%s14373_s1 + $0x1920] ss:$16 sps:$4 sm:$0xff]   ;;  %v10640_v30 = vld [vmem:[%s14373_s1 + $0x1928] ss:$16 sps:$4 sm:$0xff]  }
 0x308   : > { %7090 = vmatprep.subr.bf16.mxu0 %v10555_v31  ;;  %7778 = vmatprep.subr.bf16.mxu1 %v10558_v32  ;;  %v10645_v31 = vld [vmem:[%s14373_s1 + $0x1944] ss:$16 sps:$4 sm:$0xff]   ;;  %v10648_v32 = vld [vmem:[%s14373_s1 + $0x194c] ss:$16 sps:$4 sm:$0xff]  }
 0x30b   : > { %7091 = vmatpush1.bf16.msra.mxu0 %v10553_v33  ;;  %7779 = vmatpush1.bf16.msra.mxu1 %v10556_v34  ;;  %v10643_v33 = vld [vmem:[%s14373_s1 + $0x1940] ss:$16 sps:$4 sm:$0xff]   ;;  %v10646_v34 = vld [vmem:[%s14373_s1 + $0x1948] ss:$16 sps:$4 sm:$0xff]  }
 0x30c   : > { %7092 = vmatprep.subr.bf16.mxu0 %v10561_v35  ;;  %7780 = vmatprep.subr.bf16.mxu1 %v10564_v36  ;;  %v10651_v35 = vld [vmem:[%s14373_s1 + $0x1964] ss:$16 sps:$4 sm:$0xff]   ;;  %v10654_v36 = vld [vmem:[%s14373_s1 + $0x196c] ss:$16 sps:$4 sm:$0xff]  }
 0x30f   : > { %7093 = vmatpush1.bf16.msra.mxu0 %v10559_v37  ;;  %7781 = vmatpush1.bf16.msra.mxu1 %v10562_v38  ;;  %v10649_v37 = vld [vmem:[%s14373_s1 + $0x1960] ss:$16 sps:$4 sm:$0xff]   ;;  %v10652_v38 = vld [vmem:[%s14373_s1 + $0x1968] ss:$16 sps:$4 sm:$0xff]  }
 0x310   : > { %7094 = vmatprep.subr.bf16.mxu0 %v10567_v39  ;;  %7782 = vmatprep.subr.bf16.mxu1 %v10570_v40  ;;  %v10657_v39 = vld [vmem:[%s14373_s1 + $0x1984] ss:$16 sps:$4 sm:$0xff]   ;;  %v10660_v40 = vld [vmem:[%s14373_s1 + $0x198c] ss:$16 sps:$4 sm:$0xff]  }
 0x313   : > { %7095 = vmatpush1.bf16.msra.mxu0 %v10565_v41  ;;  %7783 = vmatpush1.bf16.msra.mxu1 %v10568_v42  ;;  %v10655_v41 = vld [vmem:[%s14373_s1 + $0x1980] ss:$16 sps:$4 sm:$0xff]   ;;  %v10658_v42 = vld [vmem:[%s14373_s1 + $0x1988] ss:$16 sps:$4 sm:$0xff]  }
 0x314   : > { %7096 = vmatprep.subr.bf16.mxu0 %v10573_v43  ;;  %7784 = vmatprep.subr.bf16.mxu1 %v10576_v44  ;;  %v10663_v43 = vld [vmem:[%s14373_s1 + $0x19a4] ss:$16 sps:$4 sm:$0xff]   ;;  %v10666_v44 = vld [vmem:[%s14373_s1 + $0x19ac] ss:$16 sps:$4 sm:$0xff]  }
 0x317   : > { %7097 = vmatpush1.bf16.msra.mxu0 %v10571_v21  ;;  %7785 = vmatpush1.bf16.msra.mxu1 %v10574_v46  ;;  %v10661_v21 = vld [vmem:[%s14373_s1 + $0x19a0] ss:$16 sps:$4 sm:$0xff]   ;;  %v10664_v46 = vld [vmem:[%s14373_s1 + $0x19a8] ss:$16 sps:$4 sm:$0xff]  }
 0x318   : > { %7098 = vmatprep.subr.bf16.mxu0 %v10579_v47  ;;  %7786 = vmatprep.subr.bf16.mxu1 %v10582_v18  ;;  %v10669_v47 = vld [vmem:[%s14373_s1 + $0x19c4] ss:$16 sps:$4 sm:$0xff]   ;;  %v10672_v18 = vld [vmem:[%s14373_s1 + $0x19cc] ss:$16 sps:$4 sm:$0xff]  }
 0x31b   : > { %7099 = vmatpush1.bf16.msra.mxu0 %v10577_v19  ;;  %7787 = vmatpush1.bf16.msra.mxu1 %v10580_v50  ;;  %v10667_v19 = vld [vmem:[%s14373_s1 + $0x19c0] ss:$16 sps:$4 sm:$0xff]   ;;  %v10670_v50 = vld [vmem:[%s14373_s1 + $0x19c8] ss:$16 sps:$4 sm:$0xff]  }
 0x31c   : > { %7111 = vmatprep.subr.bf16.mxu0 %v10585_v51  ;;  %7799 = vmatprep.subr.bf16.mxu1 %v10588_v14  ;;  %v10675_v51 = vld [vmem:[%s14373_s1 + $0x19e4] ss:$16 sps:$4 sm:$0xff]   ;;  %v10678_v14 = vld [vmem:[%s14373_s1 + $0x19ec] ss:$16 sps:$4 sm:$0xff]  }
 0x31e   : > { %7101 = vmatmul.mubr.bf16.vlgmr.msra.gmra.mrb[0].mxu0 %v8236_v45  ;;  %7789 = vmatmul.mubr.bf16.vlgmr.msra.gmra.mrb[0].mxu1 %v8236_v45  ;;  %v10673_v45 = vld [vmem:[%s14373_s1 + $0x19e0] ss:$16 sps:$4 sm:$0xff]  }
 0x31f   : > { %7112 = vmatpush1.bf16.msra.mxu0 %v10583_v54  ;;  %7800 = vmatpush1.bf16.msra.mxu1 %v10586_v55  ;;  %v10676_v54 = vld [vmem:[%s14373_s1 + $0x19e8] ss:$16 sps:$4 sm:$0xff]   ;;  %v10681_v55 = vld [vmem:[%s14373_s1 + $0x1a04] ss:$16 sps:$4 sm:$0xff]  }
 0x320   : > { %7113 = vmatprep.subr.bf16.mxu0 %v10591_v48  ;;  %7801 = vmatprep.subr.bf16.mxu1 %v10594_v49  ;;  %v10684_v48 = vld [vmem:[%s14373_s1 + $0x1a0c] ss:$16 sps:$4 sm:$0xff]   ;;  %v8238_v49 = vcombine.low %v13493_v52, %v13496_v53  ;;  %v10687_v52 = vld [vmem:[%s14373_s1 + $0x1a24] ss:$16 sps:$4 sm:$0xff]  }
 0x321   : > { %7143 = vmatprep.mubr.bf16.mxu0 %v8239_v56  ;;  %7831 = vmatprep.mubr.bf16.mxu1 %v8239_v56  ;;  %v13695_v56 = vld [vmem:[%s11200_s25 + $0x68] sm:$0xff] }
 0x322   : > { %v10690_v53 = vld [vmem:[%s14373_s1 + $0x1a2c] ss:$16 sps:$4 sm:$0xff]  }
 0x323   : > { %7114 = vmatpush1.bf16.msra.mxu0 %v10589_v57  ;;  %7802 = vmatpush1.bf16.msra.mxu1 %v10592_v58  ;;  %v13698_v57 = vld [vmem:[%s11200_s25 + $0xe8] sm:$0xff]  ;;  %v10679_v58 = vld [vmem:[%s14373_s1 + $0x1a00] ss:$16 sps:$4 sm:$0xff]  }
 0x324   : > { %7115 = vmatprep.subr.bf16.mxu0 %v10597_v59  ;;  %7803 = vmatprep.subr.bf16.mxu1 %v10600_v60  ;;  %v10682_v59 = vld [vmem:[%s14373_s1 + $0x1a08] ss:$16 sps:$4 sm:$0xff]   ;;  %v8241_v60 = vcombine.high %v13695_v56, %v13698_v57 }
 0x327   : > { %7116 = vmatpush1.bf16.msra.mxu0 %v10595_v61  ;;  %7804 = vmatpush1.bf16.msra.mxu1 %v10598_v62  ;;  %v10685_v61 = vld [vmem:[%s14373_s1 + $0x1a20] ss:$16 sps:$4 sm:$0xff]   ;;  %v10688_v62 = vld [vmem:[%s14373_s1 + $0x1a28] ss:$16 sps:$4 sm:$0xff]  }
 0x328   : > { %7117 = vmatprep.subr.bf16.mxu0 %v10603_v63  ;;  %7805 = vmatprep.subr.bf16.mxu1 %v10606_v0  ;;  %v10693_v63 = vld [vmem:[%s14373_s1 + $0x1a44] ss:$16 sps:$4 sm:$0xff]   ;;  %v10696_v0 = vld [vmem:[%s14373_s1 + $0x1a4c] ss:$16 sps:$4 sm:$0xff]  }
 0x32b   : > { %7118 = vmatpush1.bf16.msra.mxu0 %v10601_v1  ;;  %7806 = vmatpush1.bf16.msra.mxu1 %v10604_v2  ;;  %v10691_v1 = vld [vmem:[%s14373_s1 + $0x1a40] ss:$16 sps:$4 sm:$0xff]   ;;  %v10694_v2 = vld [vmem:[%s14373_s1 + $0x1a48] ss:$16 sps:$4 sm:$0xff]  }
 0x32c   : > { %7119 = vmatprep.subr.bf16.mxu0 %v10609_v3  ;;  %7807 = vmatprep.subr.bf16.mxu1 %v10612_v4  ;;  %v10699_v3 = vld [vmem:[%s14373_s1 + $0x1a64] ss:$16 sps:$4 sm:$0xff]   ;;  %v10702_v4 = vld [vmem:[%s14373_s1 + $0x1a6c] ss:$16 sps:$4 sm:$0xff]  }
 0x32f   : > { %7120 = vmatpush1.bf16.msra.mxu0 %v10607_v5  ;;  %7808 = vmatpush1.bf16.msra.mxu1 %v10610_v6  ;;  %v10697_v5 = vld [vmem:[%s14373_s1 + $0x1a60] ss:$16 sps:$4 sm:$0xff]   ;;  %v10700_v6 = vld [vmem:[%s14373_s1 + $0x1a68] ss:$16 sps:$4 sm:$0xff]  }
 0x330   : > { %7121 = vmatprep.subr.bf16.mxu0 %v10615_v7  ;;  %7809 = vmatprep.subr.bf16.mxu1 %v10618_v8  ;;  %v10705_v7 = vld [vmem:[%s14373_s1 + $0x1a84] ss:$16 sps:$4 sm:$0xff]   ;;  %v10708_v8 = vld [vmem:[%s14373_s1 + $0x1a8c] ss:$16 sps:$4 sm:$0xff]  }
 0x333   : > { %7122 = vmatpush1.bf16.msra.mxu0 %v10613_v9  ;;  %7810 = vmatpush1.bf16.msra.mxu1 %v10616_v10  ;;  %v10703_v9 = vld [vmem:[%s14373_s1 + $0x1a80] ss:$16 sps:$4 sm:$0xff]   ;;  %v10706_v10 = vld [vmem:[%s14373_s1 + $0x1a88] ss:$16 sps:$4 sm:$0xff]  }
 0x334   : > { %7123 = vmatprep.subr.bf16.mxu0 %v10621_v11  ;;  %7811 = vmatprep.subr.bf16.mxu1 %v10624_v12  ;;  %v10711_v11 = vld [vmem:[%s14373_s1 + $0x1aa4] ss:$16 sps:$4 sm:$0xff]   ;;  %v10714_v12 = vld [vmem:[%s14373_s1 + $0x1aac] ss:$16 sps:$4 sm:$0xff]  }
 0x337   : > { %7124 = vmatpush1.bf16.msra.mxu0 %v10619_v13  ;;  %7812 = vmatpush1.bf16.msra.mxu1 %v10622_v16  ;;  %v10709_v13 = vld [vmem:[%s14373_s1 + $0x1aa0] ss:$16 sps:$4 sm:$0xff]   ;;  %v10712_v16 = vld [vmem:[%s14373_s1 + $0x1aa8] ss:$16 sps:$4 sm:$0xff]  }
 0x338   : > { %7125 = vmatprep.subr.bf16.mxu0 %v10627_v17  ;;  %7813 = vmatprep.subr.bf16.mxu1 %v10630_v20  ;;  %v10717_v17 = vld [vmem:[%s14373_s1 + $0x1ac4] ss:$16 sps:$4 sm:$0xff]   ;;  %v10720_v20 = vld [vmem:[%s14373_s1 + $0x1acc] ss:$16 sps:$4 sm:$0xff]  }
 0x33b   : > { %7126 = vmatpush1.bf16.msra.mxu0 %v10625_v22  ;;  %7814 = vmatpush1.bf16.msra.mxu1 %v10628_v15  ;;  %v10715_v22 = vld [vmem:[%s14373_s1 + $0x1ac0] ss:$16 sps:$4 sm:$0xff]   ;;  %v10718_v15 = vld [vmem:[%s14373_s1 + $0x1ac8] ss:$16 sps:$4 sm:$0xff]  }
 0x33c   : > { %7127 = vmatprep.subr.bf16.mxu0 %v10633_v23  ;;  %7815 = vmatprep.subr.bf16.mxu1 %v10636_v24  ;;  %v10723_v23 = vld [vmem:[%s14373_s1 + $0x1ae4] ss:$16 sps:$4 sm:$0xff]   ;;  %v10726_v24 = vld [vmem:[%s14373_s1 + $0x1aec] ss:$16 sps:$4 sm:$0xff]  }
 0x33f   : > { %7128 = vmatpush1.bf16.msra.mxu0 %v10631_v25  ;;  %7816 = vmatpush1.bf16.msra.mxu1 %v10634_v26  ;;  %v10721_v25 = vld [vmem:[%s14373_s1 + $0x1ae0] ss:$16 sps:$4 sm:$0xff]   ;;  %v10724_v26 = vld [vmem:[%s14373_s1 + $0x1ae8] ss:$16 sps:$4 sm:$0xff]  }
 0x340   : > { %7129 = vmatprep.subr.bf16.mxu0 %v10639_v27  ;;  %7817 = vmatprep.subr.bf16.mxu1 %v10642_v28  ;;  %v10729_v27 = vld [vmem:[%s14373_s1 + $0x1b04] ss:$16 sps:$4 sm:$0xff]   ;;  %v10732_v28 = vld [vmem:[%s14373_s1 + $0x1b0c] ss:$16 sps:$4 sm:$0xff]  }
 0x343   : > { %7130 = vmatpush1.bf16.msra.mxu0 %v10637_v29  ;;  %7818 = vmatpush1.bf16.msra.mxu1 %v10640_v30  ;;  %v10727_v29 = vld [vmem:[%s14373_s1 + $0x1b00] ss:$16 sps:$4 sm:$0xff]   ;;  %v10730_v30 = vld [vmem:[%s14373_s1 + $0x1b08] ss:$16 sps:$4 sm:$0xff]  }
 0x344   : > { %7131 = vmatprep.subr.bf16.mxu0 %v10645_v31  ;;  %7819 = vmatprep.subr.bf16.mxu1 %v10648_v32  ;;  %v10735_v31 = vld [vmem:[%s14373_s1 + $0x1b24] ss:$16 sps:$4 sm:$0xff]   ;;  %v10738_v32 = vld [vmem:[%s14373_s1 + $0x1b2c] ss:$16 sps:$4 sm:$0xff]  }
 0x347   : > { %7132 = vmatpush1.bf16.msra.mxu0 %v10643_v33  ;;  %7820 = vmatpush1.bf16.msra.mxu1 %v10646_v34  ;;  %v10733_v33 = vld [vmem:[%s14373_s1 + $0x1b20] ss:$16 sps:$4 sm:$0xff]   ;;  %v10736_v34 = vld [vmem:[%s14373_s1 + $0x1b28] ss:$16 sps:$4 sm:$0xff]  }
 0x348   : > { %7133 = vmatprep.subr.bf16.mxu0 %v10651_v35  ;;  %7821 = vmatprep.subr.bf16.mxu1 %v10654_v36  ;;  %v10741_v35 = vld [vmem:[%s14373_s1 + $0x1b44] ss:$16 sps:$4 sm:$0xff]   ;;  %v10744_v36 = vld [vmem:[%s14373_s1 + $0x1b4c] ss:$16 sps:$4 sm:$0xff]  }
 0x34b   : > { %7134 = vmatpush1.bf16.msra.mxu0 %v10649_v37  ;;  %7822 = vmatpush1.bf16.msra.mxu1 %v10652_v38  ;;  %v10739_v37 = vld [vmem:[%s14373_s1 + $0x1b40] ss:$16 sps:$4 sm:$0xff]   ;;  %v10742_v38 = vld [vmem:[%s14373_s1 + $0x1b48] ss:$16 sps:$4 sm:$0xff]  }
 0x34c   : > { %7135 = vmatprep.subr.bf16.mxu0 %v10657_v39  ;;  %7823 = vmatprep.subr.bf16.mxu1 %v10660_v40  ;;  %v10747_v39 = vld [vmem:[%s14373_s1 + $0x1b64] ss:$16 sps:$4 sm:$0xff]   ;;  %v10750_v40 = vld [vmem:[%s14373_s1 + $0x1b6c] ss:$16 sps:$4 sm:$0xff]  }
 0x34f   : > { %7136 = vmatpush1.bf16.msra.mxu0 %v10655_v41  ;;  %7824 = vmatpush1.bf16.msra.mxu1 %v10658_v42  ;;  %v10745_v41 = vld [vmem:[%s14373_s1 + $0x1b60] ss:$16 sps:$4 sm:$0xff]   ;;  %v10748_v42 = vld [vmem:[%s14373_s1 + $0x1b68] ss:$16 sps:$4 sm:$0xff]  }
 0x350   : > { %7137 = vmatprep.subr.bf16.mxu0 %v10663_v43  ;;  %7825 = vmatprep.subr.bf16.mxu1 %v10666_v44  ;;  %v10753_v43 = vld [vmem:[%s14373_s1 + $0x1b84] ss:$16 sps:$4 sm:$0xff]   ;;  %v10756_v44 = vld [vmem:[%s14373_s1 + $0x1b8c] ss:$16 sps:$4 sm:$0xff]  }
 0x353   : > { %7138 = vmatpush1.bf16.msra.mxu0 %v10661_v21  ;;  %7826 = vmatpush1.bf16.msra.mxu1 %v10664_v46  ;;  %v10751_v21 = vld [vmem:[%s14373_s1 + $0x1b80] ss:$16 sps:$4 sm:$0xff]   ;;  %v10754_v46 = vld [vmem:[%s14373_s1 + $0x1b88] ss:$16 sps:$4 sm:$0xff]  }
 0x354   : > { %7139 = vmatprep.subr.bf16.mxu0 %v10669_v47  ;;  %7827 = vmatprep.subr.bf16.mxu1 %v10672_v18  ;;  %v10759_v47 = vld [vmem:[%s14373_s1 + $0x1ba4] ss:$16 sps:$4 sm:$0xff]   ;;  %v10762_v18 = vld [vmem:[%s14373_s1 + $0x1bac] ss:$16 sps:$4 sm:$0xff]  }
 0x357   : > { %7140 = vmatpush1.bf16.msra.mxu0 %v10667_v19  ;;  %7828 = vmatpush1.bf16.msra.mxu1 %v10670_v50  ;;  %v10757_v19 = vld [vmem:[%s14373_s1 + $0x1ba0] ss:$16 sps:$4 sm:$0xff]   ;;  %v10760_v50 = vld [vmem:[%s14373_s1 + $0x1ba8] ss:$16 sps:$4 sm:$0xff]  }
 0x358   : > { %7141 = vmatprep.subr.bf16.mxu0 %v10675_v51  ;;  %7829 = vmatprep.subr.bf16.mxu1 %v10678_v14  ;;  %v10765_v51 = vld [vmem:[%s14373_s1 + $0x1bc4] ss:$16 sps:$4 sm:$0xff]   ;;  %v10768_v14 = vld [vmem:[%s14373_s1 + $0x1bcc] ss:$16 sps:$4 sm:$0xff]  }
 0x35b   : > { %7142 = vmatpush1.bf16.msra.mxu0 %v10673_v45  ;;  %7830 = vmatpush1.bf16.msra.mxu1 %v10676_v54  ;;  %v10763_v45 = vld [vmem:[%s14373_s1 + $0x1bc0] ss:$16 sps:$4 sm:$0xff]   ;;  %v10766_v54 = vld [vmem:[%s14373_s1 + $0x1bc8] ss:$16 sps:$4 sm:$0xff]  }
 0x35c   : > { %7154 = vmatprep.subr.bf16.mxu0 %v10681_v55  ;;  %7842 = vmatprep.subr.bf16.mxu1 %v10684_v48  ;;  %v10771_v55 = vld [vmem:[%s14373_s1 + $0x1be4] ss:$16 sps:$4 sm:$0xff]   ;;  %v10774_v48 = vld [vmem:[%s14373_s1 + $0x1bec] ss:$16 sps:$4 sm:$0xff]  }
 0x35e   : > { %7144 = vmatmul.mubr.bf16.vlgmr.msra.gmra.mrb[0].mxu0 %v8238_v49  ;;  %7832 = vmatmul.mubr.bf16.vlgmr.msra.gmra.mrb[0].mxu1 %v8238_v49  ;;  %v10769_v49 = vld [vmem:[%s14373_s1 + $0x1be0] ss:$16 sps:$4 sm:$0xff]  }
 0x35f   : > { %7155 = vmatpush1.bf16.msra.mxu0 %v10679_v58  ;;  %7843 = vmatpush1.bf16.msra.mxu1 %v10682_v59  ;;  %v10772_v58 = vld [vmem:[%s14373_s1 + $0x1be8] ss:$16 sps:$4 sm:$0xff]   ;;  %v10777_v59 = vld [vmem:[%s14373_s1 + $0x1c04] ss:$16 sps:$4 sm:$0xff]  }
 0x360   : > { %7156 = vmatprep.subr.bf16.mxu0 %v10687_v52  ;;  %7844 = vmatprep.subr.bf16.mxu1 %v10690_v53  ;;  %v10780_v52 = vld [vmem:[%s14373_s1 + $0x1c0c] ss:$16 sps:$4 sm:$0xff]   ;;  %v8240_v53 = vcombine.low %v13695_v56, %v13698_v57  ;;  %v10783_v56 = vld [vmem:[%s14373_s1 + $0x1c24] ss:$16 sps:$4 sm:$0xff]  }
 0x361   : > { %7186 = vmatprep.mubr.bf16.mxu0 %v8241_v60  ;;  %7874 = vmatprep.mubr.bf16.mxu1 %v8241_v60  ;;  %v13897_v60 = vld [vmem:[%s11200_s25 + $0x70] sm:$0xff]  ;;  %v10786_v57 = vld [vmem:[%s14373_s1 + $0x1c2c] ss:$16 sps:$4 sm:$0xff]  }
 0x363   : > { %7157 = vmatpush1.bf16.msra.mxu0 %v10685_v61  ;;  %7845 = vmatpush1.bf16.msra.mxu1 %v10688_v62  ;;  %v13900_v61 = vld [vmem:[%s11200_s25 + $0xf0] sm:$0xff] }
 0x364   : > { %7158 = vmatprep.subr.bf16.mxu0 %v10693_v63  ;;  %7846 = vmatprep.subr.bf16.mxu1 %v10696_v0  ;;  %v10775_v62 = vld [vmem:[%s14373_s1 + $0x1c00] ss:$16 sps:$4 sm:$0xff]   ;;  %v10778_v63 = vld [vmem:[%s14373_s1 + $0x1c08] ss:$16 sps:$4 sm:$0xff]   ;;  %v8243_v0 = vcombine.high %v13897_v60, %v13900_v61 }
 0x367   : > { %7159 = vmatpush1.bf16.msra.mxu0 %v10691_v1  ;;  %7847 = vmatpush1.bf16.msra.mxu1 %v10694_v2  ;;  %v10781_v1 = vld [vmem:[%s14373_s1 + $0x1c20] ss:$16 sps:$4 sm:$0xff]   ;;  %v10784_v2 = vld [vmem:[%s14373_s1 + $0x1c28] ss:$16 sps:$4 sm:$0xff]  }
 0x368   : > { %7160 = vmatprep.subr.bf16.mxu0 %v10699_v3  ;;  %7848 = vmatprep.subr.bf16.mxu1 %v10702_v4  ;;  %v10789_v3 = vld [vmem:[%s14373_s1 + $0x1c44] ss:$16 sps:$4 sm:$0xff]   ;;  %v10792_v4 = vld [vmem:[%s14373_s1 + $0x1c4c] ss:$16 sps:$4 sm:$0xff]  }
 0x36b   : > { %7161 = vmatpush1.bf16.msra.mxu0 %v10697_v5  ;;  %7849 = vmatpush1.bf16.msra.mxu1 %v10700_v6  ;;  %v10787_v5 = vld [vmem:[%s14373_s1 + $0x1c40] ss:$16 sps:$4 sm:$0xff]   ;;  %v10790_v6 = vld [vmem:[%s14373_s1 + $0x1c48] ss:$16 sps:$4 sm:$0xff]  }
 0x36c   : > { %7162 = vmatprep.subr.bf16.mxu0 %v10705_v7  ;;  %7850 = vmatprep.subr.bf16.mxu1 %v10708_v8  ;;  %v10795_v7 = vld [vmem:[%s14373_s1 + $0x1c64] ss:$16 sps:$4 sm:$0xff]   ;;  %v10798_v8 = vld [vmem:[%s14373_s1 + $0x1c6c] ss:$16 sps:$4 sm:$0xff]  }
 0x36f   : > { %7163 = vmatpush1.bf16.msra.mxu0 %v10703_v9  ;;  %7851 = vmatpush1.bf16.msra.mxu1 %v10706_v10  ;;  %v10793_v9 = vld [vmem:[%s14373_s1 + $0x1c60] ss:$16 sps:$4 sm:$0xff]   ;;  %v10796_v10 = vld [vmem:[%s14373_s1 + $0x1c68] ss:$16 sps:$4 sm:$0xff]  }
 0x370   : > { %7164 = vmatprep.subr.bf16.mxu0 %v10711_v11  ;;  %7852 = vmatprep.subr.bf16.mxu1 %v10714_v12  ;;  %v10801_v11 = vld [vmem:[%s14373_s1 + $0x1c84] ss:$16 sps:$4 sm:$0xff]   ;;  %v10804_v12 = vld [vmem:[%s14373_s1 + $0x1c8c] ss:$16 sps:$4 sm:$0xff]  }
 0x373   : > { %7165 = vmatpush1.bf16.msra.mxu0 %v10709_v13  ;;  %7853 = vmatpush1.bf16.msra.mxu1 %v10712_v16  ;;  %v10799_v13 = vld [vmem:[%s14373_s1 + $0x1c80] ss:$16 sps:$4 sm:$0xff]   ;;  %v10802_v16 = vld [vmem:[%s14373_s1 + $0x1c88] ss:$16 sps:$4 sm:$0xff]  }
 0x374   : > { %7166 = vmatprep.subr.bf16.mxu0 %v10717_v17  ;;  %7854 = vmatprep.subr.bf16.mxu1 %v10720_v20  ;;  %v10807_v17 = vld [vmem:[%s14373_s1 + $0x1ca4] ss:$16 sps:$4 sm:$0xff]   ;;  %v10810_v20 = vld [vmem:[%s14373_s1 + $0x1cac] ss:$16 sps:$4 sm:$0xff]  }
 0x377   : > { %7167 = vmatpush1.bf16.msra.mxu0 %v10715_v22  ;;  %7855 = vmatpush1.bf16.msra.mxu1 %v10718_v15  ;;  %v10805_v22 = vld [vmem:[%s14373_s1 + $0x1ca0] ss:$16 sps:$4 sm:$0xff]   ;;  %v10808_v15 = vld [vmem:[%s14373_s1 + $0x1ca8] ss:$16 sps:$4 sm:$0xff]  }
 0x378   : > { %7168 = vmatprep.subr.bf16.mxu0 %v10723_v23  ;;  %7856 = vmatprep.subr.bf16.mxu1 %v10726_v24  ;;  %v10813_v23 = vld [vmem:[%s14373_s1 + $0x1cc4] ss:$16 sps:$4 sm:$0xff]   ;;  %v10816_v24 = vld [vmem:[%s14373_s1 + $0x1ccc] ss:$16 sps:$4 sm:$0xff]  }
 0x37b   : > { %7169 = vmatpush1.bf16.msra.mxu0 %v10721_v25  ;;  %7857 = vmatpush1.bf16.msra.mxu1 %v10724_v26  ;;  %v10811_v25 = vld [vmem:[%s14373_s1 + $0x1cc0] ss:$16 sps:$4 sm:$0xff]   ;;  %v10814_v26 = vld [vmem:[%s14373_s1 + $0x1cc8] ss:$16 sps:$4 sm:$0xff]  }
 0x37c   : > { %7170 = vmatprep.subr.bf16.mxu0 %v10729_v27  ;;  %7858 = vmatprep.subr.bf16.mxu1 %v10732_v28  ;;  %v10819_v27 = vld [vmem:[%s14373_s1 + $0x1ce4] ss:$16 sps:$4 sm:$0xff]   ;;  %v10822_v28 = vld [vmem:[%s14373_s1 + $0x1cec] ss:$16 sps:$4 sm:$0xff]  }
 0x37f   : > { %7171 = vmatpush1.bf16.msra.mxu0 %v10727_v29  ;;  %7859 = vmatpush1.bf16.msra.mxu1 %v10730_v30  ;;  %v10817_v29 = vld [vmem:[%s14373_s1 + $0x1ce0] ss:$16 sps:$4 sm:$0xff]   ;;  %v10820_v30 = vld [vmem:[%s14373_s1 + $0x1ce8] ss:$16 sps:$4 sm:$0xff]  }
 0x380   : > { %7172 = vmatprep.subr.bf16.mxu0 %v10735_v31  ;;  %7860 = vmatprep.subr.bf16.mxu1 %v10738_v32  ;;  %v10825_v31 = vld [vmem:[%s14373_s1 + $0x1d04] ss:$16 sps:$4 sm:$0xff]   ;;  %v10828_v32 = vld [vmem:[%s14373_s1 + $0x1d0c] ss:$16 sps:$4 sm:$0xff]  }
 0x383   : > { %7173 = vmatpush1.bf16.msra.mxu0 %v10733_v33  ;;  %7861 = vmatpush1.bf16.msra.mxu1 %v10736_v34  ;;  %v10823_v33 = vld [vmem:[%s14373_s1 + $0x1d00] ss:$16 sps:$4 sm:$0xff]   ;;  %v10826_v34 = vld [vmem:[%s14373_s1 + $0x1d08] ss:$16 sps:$4 sm:$0xff]  }
 0x384   : > { %7174 = vmatprep.subr.bf16.mxu0 %v10741_v35  ;;  %7862 = vmatprep.subr.bf16.mxu1 %v10744_v36  ;;  %v10831_v35 = vld [vmem:[%s14373_s1 + $0x1d24] ss:$16 sps:$4 sm:$0xff]   ;;  %v10834_v36 = vld [vmem:[%s14373_s1 + $0x1d2c] ss:$16 sps:$4 sm:$0xff]  }
 0x387   : > { %7175 = vmatpush1.bf16.msra.mxu0 %v10739_v37  ;;  %7863 = vmatpush1.bf16.msra.mxu1 %v10742_v38  ;;  %v10829_v37 = vld [vmem:[%s14373_s1 + $0x1d20] ss:$16 sps:$4 sm:$0xff]   ;;  %v10832_v38 = vld [vmem:[%s14373_s1 + $0x1d28] ss:$16 sps:$4 sm:$0xff]  }
 0x388   : > { %7176 = vmatprep.subr.bf16.mxu0 %v10747_v39  ;;  %7864 = vmatprep.subr.bf16.mxu1 %v10750_v40  ;;  %v10837_v39 = vld [vmem:[%s14373_s1 + $0x1d44] ss:$16 sps:$4 sm:$0xff]   ;;  %v10840_v40 = vld [vmem:[%s14373_s1 + $0x1d4c] ss:$16 sps:$4 sm:$0xff]  }
 0x38b   : > { %7177 = vmatpush1.bf16.msra.mxu0 %v10745_v41  ;;  %7865 = vmatpush1.bf16.msra.mxu1 %v10748_v42  ;;  %v10835_v41 = vld [vmem:[%s14373_s1 + $0x1d40] ss:$16 sps:$4 sm:$0xff]   ;;  %v10838_v42 = vld [vmem:[%s14373_s1 + $0x1d48] ss:$16 sps:$4 sm:$0xff]  }
 0x38c   : > { %7178 = vmatprep.subr.bf16.mxu0 %v10753_v43  ;;  %7866 = vmatprep.subr.bf16.mxu1 %v10756_v44  ;;  %v10843_v43 = vld [vmem:[%s14373_s1 + $0x1d64] ss:$16 sps:$4 sm:$0xff]   ;;  %v10846_v44 = vld [vmem:[%s14373_s1 + $0x1d6c] ss:$16 sps:$4 sm:$0xff]  }
 0x38f   : > { %7179 = vmatpush1.bf16.msra.mxu0 %v10751_v21  ;;  %7867 = vmatpush1.bf16.msra.mxu1 %v10754_v46  ;;  %v10841_v21 = vld [vmem:[%s14373_s1 + $0x1d60] ss:$16 sps:$4 sm:$0xff]   ;;  %v10844_v46 = vld [vmem:[%s14373_s1 + $0x1d68] ss:$16 sps:$4 sm:$0xff]  }
 0x390   : > { %7180 = vmatprep.subr.bf16.mxu0 %v10759_v47  ;;  %7868 = vmatprep.subr.bf16.mxu1 %v10762_v18  ;;  %v10849_v47 = vld [vmem:[%s14373_s1 + $0x1d84] ss:$16 sps:$4 sm:$0xff]   ;;  %v10852_v18 = vld [vmem:[%s14373_s1 + $0x1d8c] ss:$16 sps:$4 sm:$0xff]  }
 0x393   : > { %7181 = vmatpush1.bf16.msra.mxu0 %v10757_v19  ;;  %7869 = vmatpush1.bf16.msra.mxu1 %v10760_v50  ;;  %v10847_v19 = vld [vmem:[%s14373_s1 + $0x1d80] ss:$16 sps:$4 sm:$0xff]   ;;  %v10850_v50 = vld [vmem:[%s14373_s1 + $0x1d88] ss:$16 sps:$4 sm:$0xff]  }
 0x394   : > { %7182 = vmatprep.subr.bf16.mxu0 %v10765_v51  ;;  %7870 = vmatprep.subr.bf16.mxu1 %v10768_v14  ;;  %v10855_v51 = vld [vmem:[%s14373_s1 + $0x1da4] ss:$16 sps:$4 sm:$0xff]   ;;  %v10858_v14 = vld [vmem:[%s14373_s1 + $0x1dac] ss:$16 sps:$4 sm:$0xff]  }
 0x397   : > { %7183 = vmatpush1.bf16.msra.mxu0 %v10763_v45  ;;  %7871 = vmatpush1.bf16.msra.mxu1 %v10766_v54  ;;  %v10853_v45 = vld [vmem:[%s14373_s1 + $0x1da0] ss:$16 sps:$4 sm:$0xff]   ;;  %v10856_v54 = vld [vmem:[%s14373_s1 + $0x1da8] ss:$16 sps:$4 sm:$0xff]  }
 0x398   : > { %7184 = vmatprep.subr.bf16.mxu0 %v10771_v55  ;;  %7872 = vmatprep.subr.bf16.mxu1 %v10774_v48  ;;  %v10861_v55 = vld [vmem:[%s14373_s1 + $0x1dc4] ss:$16 sps:$4 sm:$0xff]   ;;  %v10864_v48 = vld [vmem:[%s14373_s1 + $0x1dcc] ss:$16 sps:$4 sm:$0xff]  }
 0x39b   : > { %7185 = vmatpush1.bf16.msra.mxu0 %v10769_v49  ;;  %7873 = vmatpush1.bf16.msra.mxu1 %v10772_v58  ;;  %v10859_v49 = vld [vmem:[%s14373_s1 + $0x1dc0] ss:$16 sps:$4 sm:$0xff]   ;;  %v10862_v58 = vld [vmem:[%s14373_s1 + $0x1dc8] ss:$16 sps:$4 sm:$0xff]  }
 0x39c   : > { %7197 = vmatprep.subr.bf16.mxu0 %v10777_v59  ;;  %7885 = vmatprep.subr.bf16.mxu1 %v10780_v52  ;;  %v10867_v59 = vld [vmem:[%s14373_s1 + $0x1de4] ss:$16 sps:$4 sm:$0xff]   ;;  %v10870_v52 = vld [vmem:[%s14373_s1 + $0x1dec] ss:$16 sps:$4 sm:$0xff]  }
 0x39e   : > { %7187 = vmatmul.mubr.bf16.vlgmr.msra.gmra.mrb[0].mxu0 %v8240_v53  ;;  %7875 = vmatmul.mubr.bf16.vlgmr.msra.gmra.mrb[0].mxu1 %v8240_v53  ;;  %v10865_v53 = vld [vmem:[%s14373_s1 + $0x1de0] ss:$16 sps:$4 sm:$0xff]  }
 0x39f   : > { %7198 = vmatpush1.bf16.msra.mxu0 %v10775_v62  ;;  %7886 = vmatpush1.bf16.msra.mxu1 %v10778_v63  ;;  %v10868_v62 = vld [vmem:[%s14373_s1 + $0x1de8] ss:$16 sps:$4 sm:$0xff]   ;;  %v10873_v63 = vld [vmem:[%s14373_s1 + $0x1e04] ss:$16 sps:$4 sm:$0xff]  }
 0x3a0   : > { %7199 = vmatprep.subr.bf16.mxu0 %v10783_v56  ;;  %7887 = vmatprep.subr.bf16.mxu1 %v10786_v57  ;;  %v10876_v56 = vld [vmem:[%s14373_s1 + $0x1e0c] ss:$16 sps:$4 sm:$0xff]   ;;  %v8242_v57 = vcombine.low %v13897_v60, %v13900_v61  ;;  %v10879_v60 = vld [vmem:[%s14373_s1 + $0x1e24] ss:$16 sps:$4 sm:$0xff]  }
 0x3a1   : > { %7229 = vmatprep.mubr.bf16.mxu0 %v8243_v0  ;;  %7917 = vmatprep.mubr.bf16.mxu1 %v8243_v0  ;;  %v14099_v0 = vld [vmem:[%s11200_s25 + $0x78] sm:$0xff] }
 0x3a2   : > { %v10882_v61 = vld [vmem:[%s14373_s1 + $0x1e2c] ss:$16 sps:$4 sm:$0xff]  }
 0x3a3   : > { %7200 = vmatpush1.bf16.msra.mxu0 %v10781_v1  ;;  %7888 = vmatpush1.bf16.msra.mxu1 %v10784_v2  ;;  %v14102_v1 = vld [vmem:[%s11200_s25 + $0xf8] sm:$0xff]  ;;  %v10871_v2 = vld [vmem:[%s14373_s1 + $0x1e00] ss:$16 sps:$4 sm:$0xff]  }
 0x3a4   : > { %7201 = vmatprep.subr.bf16.mxu0 %v10789_v3  ;;  %7889 = vmatprep.subr.bf16.mxu1 %v10792_v4  ;;  %v10874_v3 = vld [vmem:[%s14373_s1 + $0x1e08] ss:$16 sps:$4 sm:$0xff]   ;;  %v8245_v4 = vcombine.high %v14099_v0, %v14102_v1 }
 0x3a7   : > { %7202 = vmatpush1.bf16.msra.mxu0 %v10787_v5  ;;  %7890 = vmatpush1.bf16.msra.mxu1 %v10790_v6  ;;  %v10877_v5 = vld [vmem:[%s14373_s1 + $0x1e20] ss:$16 sps:$4 sm:$0xff]   ;;  %v10880_v6 = vld [vmem:[%s14373_s1 + $0x1e28] ss:$16 sps:$4 sm:$0xff]  }
 0x3a8   : > { %7203 = vmatprep.subr.bf16.mxu0 %v10795_v7  ;;  %7891 = vmatprep.subr.bf16.mxu1 %v10798_v8  ;;  %v10885_v7 = vld [vmem:[%s14373_s1 + $0x1e44] ss:$16 sps:$4 sm:$0xff]   ;;  %v10888_v8 = vld [vmem:[%s14373_s1 + $0x1e4c] ss:$16 sps:$4 sm:$0xff]  }
 0x3ab   : > { %7204 = vmatpush1.bf16.msra.mxu0 %v10793_v9  ;;  %7892 = vmatpush1.bf16.msra.mxu1 %v10796_v10  ;;  %v10883_v9 = vld [vmem:[%s14373_s1 + $0x1e40] ss:$16 sps:$4 sm:$0xff]   ;;  %v10886_v10 = vld [vmem:[%s14373_s1 + $0x1e48] ss:$16 sps:$4 sm:$0xff]  }
 0x3ac   : > { %7205 = vmatprep.subr.bf16.mxu0 %v10801_v11  ;;  %7893 = vmatprep.subr.bf16.mxu1 %v10804_v12  ;;  %v10891_v11 = vld [vmem:[%s14373_s1 + $0x1e64] ss:$16 sps:$4 sm:$0xff]   ;;  %v10894_v12 = vld [vmem:[%s14373_s1 + $0x1e6c] ss:$16 sps:$4 sm:$0xff]  }
 0x3af   : > { %7206 = vmatpush1.bf16.msra.mxu0 %v10799_v13  ;;  %7894 = vmatpush1.bf16.msra.mxu1 %v10802_v16  ;;  %v10889_v13 = vld [vmem:[%s14373_s1 + $0x1e60] ss:$16 sps:$4 sm:$0xff]   ;;  %v10892_v16 = vld [vmem:[%s14373_s1 + $0x1e68] ss:$16 sps:$4 sm:$0xff]  }
 0x3b0   : > { %7207 = vmatprep.subr.bf16.mxu0 %v10807_v17  ;;  %7895 = vmatprep.subr.bf16.mxu1 %v10810_v20  ;;  %v10897_v17 = vld [vmem:[%s14373_s1 + $0x1e84] ss:$16 sps:$4 sm:$0xff]   ;;  %v10900_v20 = vld [vmem:[%s14373_s1 + $0x1e8c] ss:$16 sps:$4 sm:$0xff]  }
 0x3b3   : > { %7208 = vmatpush1.bf16.msra.mxu0 %v10805_v22  ;;  %7896 = vmatpush1.bf16.msra.mxu1 %v10808_v15  ;;  %v10895_v22 = vld [vmem:[%s14373_s1 + $0x1e80] ss:$16 sps:$4 sm:$0xff]   ;;  %v10898_v15 = vld [vmem:[%s14373_s1 + $0x1e88] ss:$16 sps:$4 sm:$0xff]  }
 0x3b4   : > { %7209 = vmatprep.subr.bf16.mxu0 %v10813_v23  ;;  %7897 = vmatprep.subr.bf16.mxu1 %v10816_v24  ;;  %v10903_v23 = vld [vmem:[%s14373_s1 + $0x1ea4] ss:$16 sps:$4 sm:$0xff]   ;;  %v10906_v24 = vld [vmem:[%s14373_s1 + $0x1eac] ss:$16 sps:$4 sm:$0xff]  }
 0x3b7   : > { %7210 = vmatpush1.bf16.msra.mxu0 %v10811_v25  ;;  %7898 = vmatpush1.bf16.msra.mxu1 %v10814_v26  ;;  %v10901_v25 = vld [vmem:[%s14373_s1 + $0x1ea0] ss:$16 sps:$4 sm:$0xff]   ;;  %v10904_v26 = vld [vmem:[%s14373_s1 + $0x1ea8] ss:$16 sps:$4 sm:$0xff]  }
 0x3b8   : > { %7211 = vmatprep.subr.bf16.mxu0 %v10819_v27  ;;  %7899 = vmatprep.subr.bf16.mxu1 %v10822_v28  ;;  %v10909_v27 = vld [vmem:[%s14373_s1 + $0x1ec4] ss:$16 sps:$4 sm:$0xff]   ;;  %v10912_v28 = vld [vmem:[%s14373_s1 + $0x1ecc] ss:$16 sps:$4 sm:$0xff]  }
 0x3bb   : > { %7212 = vmatpush1.bf16.msra.mxu0 %v10817_v29  ;;  %7900 = vmatpush1.bf16.msra.mxu1 %v10820_v30  ;;  %v10907_v29 = vld [vmem:[%s14373_s1 + $0x1ec0] ss:$16 sps:$4 sm:$0xff]   ;;  %v10910_v30 = vld [vmem:[%s14373_s1 + $0x1ec8] ss:$16 sps:$4 sm:$0xff]  }
 0x3bc   : > { %7213 = vmatprep.subr.bf16.mxu0 %v10825_v31  ;;  %7901 = vmatprep.subr.bf16.mxu1 %v10828_v32  ;;  %v10915_v31 = vld [vmem:[%s14373_s1 + $0x1ee4] ss:$16 sps:$4 sm:$0xff]   ;;  %v10918_v32 = vld [vmem:[%s14373_s1 + $0x1eec] ss:$16 sps:$4 sm:$0xff]  }
 0x3bf   : > { %7214 = vmatpush1.bf16.msra.mxu0 %v10823_v33  ;;  %7902 = vmatpush1.bf16.msra.mxu1 %v10826_v34  ;;  %v10913_v33 = vld [vmem:[%s14373_s1 + $0x1ee0] ss:$16 sps:$4 sm:$0xff]   ;;  %v10916_v34 = vld [vmem:[%s14373_s1 + $0x1ee8] ss:$16 sps:$4 sm:$0xff]  }
 0x3c0   : > { %7215 = vmatprep.subr.bf16.mxu0 %v10831_v35  ;;  %7903 = vmatprep.subr.bf16.mxu1 %v10834_v36  ;;  %v10921_v35 = vld [vmem:[%s14373_s1 + $0x1f04] ss:$16 sps:$4 sm:$0xff]   ;;  %v10924_v36 = vld [vmem:[%s14373_s1 + $0x1f0c] ss:$16 sps:$4 sm:$0xff]  }
 0x3c3   : > { %7216 = vmatpush1.bf16.msra.mxu0 %v10829_v37  ;;  %7904 = vmatpush1.bf16.msra.mxu1 %v10832_v38  ;;  %v10919_v37 = vld [vmem:[%s14373_s1 + $0x1f00] ss:$16 sps:$4 sm:$0xff]   ;;  %v10922_v38 = vld [vmem:[%s14373_s1 + $0x1f08] ss:$16 sps:$4 sm:$0xff]  }
 0x3c4   : > { %7217 = vmatprep.subr.bf16.mxu0 %v10837_v39  ;;  %7905 = vmatprep.subr.bf16.mxu1 %v10840_v40  ;;  %v10927_v39 = vld [vmem:[%s14373_s1 + $0x1f24] ss:$16 sps:$4 sm:$0xff]   ;;  %v10930_v40 = vld [vmem:[%s14373_s1 + $0x1f2c] ss:$16 sps:$4 sm:$0xff]  }
 0x3c7   : > { %7218 = vmatpush1.bf16.msra.mxu0 %v10835_v41  ;;  %7906 = vmatpush1.bf16.msra.mxu1 %v10838_v42  ;;  %v10925_v41 = vld [vmem:[%s14373_s1 + $0x1f20] ss:$16 sps:$4 sm:$0xff]   ;;  %v10928_v42 = vld [vmem:[%s14373_s1 + $0x1f28] ss:$16 sps:$4 sm:$0xff]  }
 0x3c8   : > { %7219 = vmatprep.subr.bf16.mxu0 %v10843_v43  ;;  %7907 = vmatprep.subr.bf16.mxu1 %v10846_v44  ;;  %v10933_v43 = vld [vmem:[%s14373_s1 + $0x1f44] ss:$16 sps:$4 sm:$0xff]   ;;  %v10936_v44 = vld [vmem:[%s14373_s1 + $0x1f4c] ss:$16 sps:$4 sm:$0xff]  }
 0x3cb   : > { %7220 = vmatpush1.bf16.msra.mxu0 %v10841_v21  ;;  %7908 = vmatpush1.bf16.msra.mxu1 %v10844_v46  ;;  %v10931_v21 = vld [vmem:[%s14373_s1 + $0x1f40] ss:$16 sps:$4 sm:$0xff]   ;;  %v10934_v46 = vld [vmem:[%s14373_s1 + $0x1f48] ss:$16 sps:$4 sm:$0xff]  }
 0x3cc   : > { %7221 = vmatprep.subr.bf16.mxu0 %v10849_v47  ;;  %7909 = vmatprep.subr.bf16.mxu1 %v10852_v18  ;;  %v10939_v47 = vld [vmem:[%s14373_s1 + $0x1f64] ss:$16 sps:$4 sm:$0xff]   ;;  %v10942_v18 = vld [vmem:[%s14373_s1 + $0x1f6c] ss:$16 sps:$4 sm:$0xff]  }
 0x3cf   : > { %7222 = vmatpush1.bf16.msra.mxu0 %v10847_v19  ;;  %7910 = vmatpush1.bf16.msra.mxu1 %v10850_v50  ;;  %v10937_v19 = vld [vmem:[%s14373_s1 + $0x1f60] ss:$16 sps:$4 sm:$0xff]   ;;  %v10940_v50 = vld [vmem:[%s14373_s1 + $0x1f68] ss:$16 sps:$4 sm:$0xff]  }
 0x3d0   : > { %7223 = vmatprep.subr.bf16.mxu0 %v10855_v51  ;;  %7911 = vmatprep.subr.bf16.mxu1 %v10858_v14  ;;  %v10945_v51 = vld [vmem:[%s14373_s1 + $0x1f84] ss:$16 sps:$4 sm:$0xff]   ;;  %v10948_v14 = vld [vmem:[%s14373_s1 + $0x1f8c] ss:$16 sps:$4 sm:$0xff]  }
 0x3d3   : > { %7224 = vmatpush1.bf16.msra.mxu0 %v10853_v45  ;;  %7912 = vmatpush1.bf16.msra.mxu1 %v10856_v54  ;;  %v10943_v45 = vld [vmem:[%s14373_s1 + $0x1f80] ss:$16 sps:$4 sm:$0xff]   ;;  %v10946_v54 = vld [vmem:[%s14373_s1 + $0x1f88] ss:$16 sps:$4 sm:$0xff]  }
 0x3d4   : > { %7225 = vmatprep.subr.bf16.mxu0 %v10861_v55  ;;  %7913 = vmatprep.subr.bf16.mxu1 %v10864_v48  ;;  %v10951_v55 = vld [vmem:[%s14373_s1 + $0x1fa4] ss:$16 sps:$4 sm:$0xff]   ;;  %v10954_v48 = vld [vmem:[%s14373_s1 + $0x1fac] ss:$16 sps:$4 sm:$0xff]  }
 0x3d7   : > { %7226 = vmatpush1.bf16.msra.mxu0 %v10859_v49  ;;  %7914 = vmatpush1.bf16.msra.mxu1 %v10862_v58  ;;  %v10949_v49 = vld [vmem:[%s14373_s1 + $0x1fa0] ss:$16 sps:$4 sm:$0xff]   ;;  %v10952_v58 = vld [vmem:[%s14373_s1 + $0x1fa8] ss:$16 sps:$4 sm:$0xff]  }
 0x3d8   : > { %7227 = vmatprep.subr.bf16.mxu0 %v10867_v59  ;;  %7915 = vmatprep.subr.bf16.mxu1 %v10870_v52  ;;  %v10957_v59 = vld [vmem:[%s14373_s1 + $0x1fc4] ss:$16 sps:$4 sm:$0xff]   ;;  %v10960_v52 = vld [vmem:[%s14373_s1 + $0x1fcc] ss:$16 sps:$4 sm:$0xff]  }
 0x3db   : > { %7228 = vmatpush1.bf16.msra.mxu0 %v10865_v53  ;;  %7916 = vmatpush1.bf16.msra.mxu1 %v10868_v62  ;;  %v10955_v53 = vld [vmem:[%s14373_s1 + $0x1fc0] ss:$16 sps:$4 sm:$0xff]   ;;  %v10958_v62 = vld [vmem:[%s14373_s1 + $0x1fc8] ss:$16 sps:$4 sm:$0xff]  }
 0x3dc   : > { %7240 = vmatprep.subr.bf16.mxu0 %v10873_v63  ;;  %7928 = vmatprep.subr.bf16.mxu1 %v10876_v56  ;;  %v10963_v63 = vld [vmem:[%s14373_s1 + $0x1fe4] ss:$16 sps:$4 sm:$0xff]   ;;  %v10966_v56 = vld [vmem:[%s14373_s1 + $0x1fec] ss:$16 sps:$4 sm:$0xff]  }
 0x3de   : > { %7230 = vmatmul.mubr.bf16.vlgmr.msra.gmra.mrb[0].mxu0 %v8242_v57  ;;  %7918 = vmatmul.mubr.bf16.vlgmr.msra.gmra.mrb[0].mxu1 %v8242_v57  ;;  %v10961_v57 = vld [vmem:[%s14373_s1 + $0x1fe0] ss:$16 sps:$4 sm:$0xff]  }
 0x3df   : > { %7241 = vmatpush1.bf16.msra.mxu0 %v10871_v2  ;;  %7929 = vmatpush1.bf16.msra.mxu1 %v10874_v3  ;;  %v10964_v2 = vld [vmem:[%s14373_s1 + $0x1fe8] ss:$16 sps:$4 sm:$0xff]   ;;  %v8244_v3 = vcombine.low %v14099_v0, %v14102_v1 }
 0x3e0   : > { %7242 = vmatprep.subr.bf16.mxu0 %v10879_v60  ;;  %7930 = vmatprep.subr.bf16.mxu1 %v10882_v61  ;;  %v1295_v60 = vlaneseq }
 0x3e1   : > { %7272 = vmatprep.mubr.bf16.mxu0 %v8245_v4  ;;  %7960 = vmatprep.mubr.bf16.mxu1 %v8245_v4 }
 0x3e2   : > { %v1296_v61 = vshrl.u32 %v1295_v60, 7 }
 0x3e3   : > { %7243 = vmatpush1.bf16.msra.mxu0 %v10877_v5  ;;  %7931 = vmatpush1.bf16.msra.mxu1 %v10880_v6  ;;  %v1293_v5 = vld [vmem:[%s14374_s2] sm:$0xf] }
 0x3e4   : > { %7244 = vmatprep.subr.bf16.mxu0 %v10885_v7  ;;  %7932 = vmatprep.subr.bf16.mxu1 %v10888_v8  ;;  %v1297_v4 = vsub.s32 0, %v1296_v61  ;;  %v1305_v6 = vsub.s32 2, %v1296_v61  ;;  %v1301_v7 = vsub.s32 1, %v1296_v61  ;;  %v1309_v8 = vsub.s32 3, %v1296_v61 }
 0x3e5   : > { %v7973_v1 = vadd.s32 8, %v1296_v61 }
 0x3e6   : > { %v1310_v0 = vrot.slane %v1293_v5, %v1309_v8 }
 0x3e7   : > { %7245 = vmatpush1.bf16.msra.mxu0 %v10883_v9  ;;  %7933 = vmatpush1.bf16.msra.mxu1 %v10886_v10  ;;  %v1298_v9 = vrot.slane %v1293_v5, %v1297_v4  ;;  %v1306_v10 = vrot.slane %v1293_v5, %v1305_v6  ;;  %vm7975_vm0 = vcmp.lt.s32.totalorder %v7973_v1, 9 }
 0x3e8   : > { %7246 = vmatprep.subr.bf16.mxu0 %v10891_v11  ;;  %7934 = vmatprep.subr.bf16.mxu1 %v10894_v12  ;;  %v1302_v11 = vrot.slane %v1293_v5, %v1301_v7 }
 0x3eb   : > { %7247 = vmatpush1.bf16.msra.mxu0 %v10889_v13  ;;  %7935 = vmatpush1.bf16.msra.mxu1 %v10892_v16 }
 0x3ec   : > { %7248 = vmatprep.subr.bf16.mxu0 %v10897_v17  ;;  %7936 = vmatprep.subr.bf16.mxu1 %v10900_v20 }
 0x3ef   : > { %7249 = vmatpush1.bf16.msra.mxu0 %v10895_v22  ;;  %7937 = vmatpush1.bf16.msra.mxu1 %v10898_v15 }
 0x3f0   : > { %7250 = vmatprep.subr.bf16.mxu0 %v10903_v23  ;;  %7938 = vmatprep.subr.bf16.mxu1 %v10906_v24 }
 0x3f3   : > { %7251 = vmatpush1.bf16.msra.mxu0 %v10901_v25  ;;  %7939 = vmatpush1.bf16.msra.mxu1 %v10904_v26 }
 0x3f4   : > { %7252 = vmatprep.subr.bf16.mxu0 %v10909_v27  ;;  %7940 = vmatprep.subr.bf16.mxu1 %v10912_v28 }
 0x3f7   : > { %7253 = vmatpush1.bf16.msra.mxu0 %v10907_v29  ;;  %7941 = vmatpush1.bf16.msra.mxu1 %v10910_v30 }
 0x3f8   : > { %7254 = vmatprep.subr.bf16.mxu0 %v10915_v31  ;;  %7942 = vmatprep.subr.bf16.mxu1 %v10918_v32 }
 0x3fb   : > { %7255 = vmatpush1.bf16.msra.mxu0 %v10913_v33  ;;  %7943 = vmatpush1.bf16.msra.mxu1 %v10916_v34 }
 0x3fc   : > { %7256 = vmatprep.subr.bf16.mxu0 %v10921_v35  ;;  %7944 = vmatprep.subr.bf16.mxu1 %v10924_v36 }
 0x3ff   : > { %7257 = vmatpush1.bf16.msra.mxu0 %v10919_v37  ;;  %7945 = vmatpush1.bf16.msra.mxu1 %v10922_v38 }
 0x400   : > { %7258 = vmatprep.subr.bf16.mxu0 %v10927_v39  ;;  %7946 = vmatprep.subr.bf16.mxu1 %v10930_v40 }
 0x403   : > { %7259 = vmatpush1.bf16.msra.mxu0 %v10925_v41  ;;  %7947 = vmatpush1.bf16.msra.mxu1 %v10928_v42 }
 0x404   : > { %7260 = vmatprep.subr.bf16.mxu0 %v10933_v43  ;;  %7948 = vmatprep.subr.bf16.mxu1 %v10936_v44 }
 0x407   : > { %7261 = vmatpush1.bf16.msra.mxu0 %v10931_v21  ;;  %7949 = vmatpush1.bf16.msra.mxu1 %v10934_v46 }
 0x408   : > { %7262 = vmatprep.subr.bf16.mxu0 %v10939_v47  ;;  %7950 = vmatprep.subr.bf16.mxu1 %v10942_v18 }
 0x40b   : > { %7263 = vmatpush1.bf16.msra.mxu0 %v10937_v19  ;;  %7951 = vmatpush1.bf16.msra.mxu1 %v10940_v50 }
 0x40c   : > { %7264 = vmatprep.subr.bf16.mxu0 %v10945_v51  ;;  %7952 = vmatprep.subr.bf16.mxu1 %v10948_v14 }
 0x40f   : > { %7265 = vmatpush1.bf16.msra.mxu0 %v10943_v45  ;;  %7953 = vmatpush1.bf16.msra.mxu1 %v10946_v54 }
 0x410   : > { %7266 = vmatprep.subr.bf16.mxu0 %v10951_v55  ;;  %7954 = vmatprep.subr.bf16.mxu1 %v10954_v48 }
 0x413   : > { %7267 = vmatpush1.bf16.msra.mxu0 %v10949_v49  ;;  %7955 = vmatpush1.bf16.msra.mxu1 %v10952_v58 }
 0x414   : > { %7268 = vmatprep.subr.bf16.mxu0 %v10957_v59  ;;  %7956 = vmatprep.subr.bf16.mxu1 %v10960_v52 }
 0x417   : > { %7269 = vmatpush1.bf16.msra.mxu0 %v10955_v53  ;;  %7957 = vmatpush1.bf16.msra.mxu1 %v10958_v62 }
 0x418   : > { %7270 = vmatprep.subr.bf16.mxu0 %v10963_v63  ;;  %7958 = vmatprep.subr.bf16.mxu1 %v10966_v56 }
 0x41b   : > { %7271 = vmatpush1.bf16.msra.mxu0 %v10961_v57  ;;  %7959 = vmatpush1.bf16.msra.mxu1 %v10964_v2 }
 0x41e   : > { %7273 = vmatmul.mubr.bf16.vlgmr.msra.gmra.mrb[0].mxu0 %v8244_v3  ;;  %7961 = vmatmul.mubr.bf16.vlgmr.msra.gmra.mrb[0].mxu1 %v8244_v3 }
 0x4f1   : > { %v7274_v12 = vpop.f32.mrb[0].mxu0  ;;  %v7962_v13 = vpop.f32.mrb[0].mxu1 }
 0x4f2   : > { %v14297_v16 = vadd.f32 %v7274_v12, %v1298_v9  ;;  %v7276_v17 = vpop.f32.mrb[1].mxu0  ;;  %v7964_v20 = vpop.f32.mrb[1].mxu1  ;;  %v14299_v22 = vadd.f32 %v7962_v13, %v1306_v10 }
 0x4f3   : > { %v14301_v15 = vadd.f32 %v7276_v17, %v1302_v11  ;;  %v7278_v23 = vpop.f32.mrb[2].mxu0  ;;  %v7966_v24 = vpop.f32.mrb[2].mxu1  ;;  %v14311_v31 = vadd.f32 %v7964_v20, %v1310_v0 }
 0x4f4   : > { %v8003_v25 = vmul.f32 %v14297_v16, %v14297_v16  ;;  %v14305_v26 = vadd.f32 %v7278_v23, %v1298_v9  ;;  %v7280_v27 = vpop.f32.mrb[3].mxu0  ;;  %v7968_v28 = vpop.f32.mrb[3].mxu1  ;;  %v8005_v33 = vmul.f32 %v14299_v22, %v14299_v22  ;;  %v14320_v37 = vadd.f32 %v7966_v24, %v1306_v10 }
 0x4f5   : > { %v7984_v29 = vadd.f32 %v14301_v15, %v14297_v16  ;;  %v8004_v30 = vmul.f32 %v14301_v15, %v14301_v15  ;;  %v14313_v32 = vadd.f32 %v7280_v27, %v1302_v11  ;;  %v8006_v39 = vmul.f32 %v14311_v31, %v14311_v31 }
 0x4f6   : > { %v7980_v36 = vsel %vm7975_vm0, %v14305_v26, 0.0  ;;  %v7982_v21 = vsel %vm7975_vm0, %v14320_v37, 0.0  ;;  %v14329_v46 = vadd.f32 %v7968_v28, %v1310_v0  ;;  %v8056_v9 = vstv %s8055_s8 }
 0x4f7   : > { %v8011_v34 = vadd.f32 %v8004_v30, %v8003_v25  ;;  %v7985_v35 = vadd.f32 %v14299_v22, %v7984_v29  ;;  %v7981_v41 = vsel %vm7975_vm0, %v14313_v32, 0.0  ;;  %v8007_v44 = vmul.f32 %v7980_v36, %v7980_v36 }
 0x4f8   : > { %v8008_v19 = vmul.f32 %v7981_v41, %v7981_v41  ;;  %v8009_v50 = vmul.f32 %v7982_v21, %v7982_v21  ;;  %v7983_v45 = vsel %vm7975_vm0, %v14329_v46, 0.0  ;;  %v8066_v30 = vstv %s9270_s9 }
 0x4f9   : > { %v7986_v38 = vadd.f32 %v14311_v31, %v7985_v35  ;;  %v8012_v40 = vadd.f32 %v8011_v34, %v8005_v33  ;;  %v8010_v48 = vmul.f32 %v7983_v45, %v7983_v45 }
 0x4fb   : > { %v8013_v42 = vadd.f32 %v8012_v40, %v8006_v39  ;;  %v7987_v43 = vadd.f32 %v7986_v38, %v7980_v36 }
 0x4fd   : > { %v8014_v47 = vadd.f32 %v8013_v42, %v8007_v44  ;;  %v7988_v18 = vadd.f32 %v7987_v43, %v7981_v41 }
 0x4ff   : > { %v7989_v51 = vadd.f32 %v7988_v18, %v7982_v21  ;;  %v8015_v14 = vadd.f32 %v8014_v47, %v8008_v19  ;;  %v8100_v19 = vld [vmem:[%s14376_s4 + $0x8] sm:$0xff] }
 0x501   : > { %v7990_v54 = vadd.f32 %v7989_v51, %v7983_v45  ;;  %v8016_v55 = vadd.f32 %v8015_v14, %v8009_v50 }
 0x503   : > { %7991 = vadd.xlane.f32.xlu0 %v7990_v54  ;;  %v8017_v49 = vadd.f32 %v8016_v55, %v8010_v48  ;;  %v8101_v55 = vld [vmem:[%s14376_s4 + $0x10] sm:$0xff] }
 0x507   : > { %8018 = vadd.xlane.f32.xlu0 %v8017_v49 }
 0x590   : > { %v7992_v58 = vpop.xlane.xlu0 %7991 }
 0x591   : > { %v7993_v59 = vrot.slane %v7992_v58, 4 }
 0x593   : > { %v7994_v52 = vadd.f32 %v7993_v59, %v7992_v58 }
 0x594   : > { %v8019_v53 = vpop.xlane.xlu0 %8018 }
 0x595   : > { %v7995_v62 = vrot.slane %v7994_v52, 2  ;;  %v8020_v63 = vrot.slane %v8019_v53, 4 }
 0x597   : > { %v8021_v56 = vadd.f32 %v8020_v63, %v8019_v53  ;;  %v7996_v57 = vadd.f32 %v7995_v62, %v7994_v52  ;;  %v8102_v53 = vld [vmem:[%s14376_s4 + $0x18] sm:$0xff] }
 0x599   : > { %v8022_v2 = vrot.slane %v8021_v56, 2  ;;  %v7997_v3 = vrot.slane %v7996_v57, 1 }
 0x59b   : > { %v8023_v60 = vadd.f32 %v8022_v2, %v8021_v56  ;;  %v7998_v61 = vadd.f32 %v7997_v3, %v7996_v57  ;;  %v8103_v2 = vld [vmem:[%s14376_s4 + $0x20] sm:$0xff] }
 0x59d   : > { %9403 = vpush %v7998_v61  ;;  %v8024_v4 = vrot.slane %v8023_v60, 1 }
 0x59f   : > { %v8025_v5 = vadd.f32 %v8024_v4, %v8023_v60 }
 0x5a1   : > { %9405 = vpush %v8025_v5  ;;  %v8104_v5 = vld [vmem:[%s14376_s4 + $0x28] sm:$0xff] }
 0x5ce   : > { %s9404_s23 = spop %9403 }
 0x5cf   : > { %s8002_s24 = smul.f32 0.00021701389, %s9404_s23 }
 0x5d1   : > { %s8030_s26 = smul.f32 %s8002_s24, %s8002_s24  ;;  %v8037_v8 = vstv %s8002_s24 }
 0x5d2   : > { %s9406_s27 = spop %9405  ;;  %v8038_v10 = vsub.f32 %v14297_v16, %v8037_v8  ;;  %v8039_v11 = vsub.f32 %v14301_v15, %v8037_v8  ;;  %v8040_v12 = vsub.f32 %v14299_v22, %v8037_v8  ;;  %v8041_v13 = vsub.f32 %v14311_v31, %v8037_v8 }
 0x5d3   : > { %s8029_s28 = smul.f32 0.00021701389, %s9406_s27  ;;  %v8042_v0 = vsub.f32 %v14305_v26, %v8037_v8  ;;  %v8043_v17 = vsub.f32 %v14313_v32, %v8037_v8  ;;  %v8044_v20 = vsub.f32 %v14320_v37, %v8037_v8  ;;  %v8045_v31 = vsub.f32 %v14329_v46, %v8037_v8  ;;  %v8099_v46 = vld [vmem:[%s14376_s4] sm:$0xff] }
 0x5d5   : > { %s8031_s29 = ssub.f32 %s8029_s28, %s8030_s26 }
 0x5d7   : > { %s8032_s6 = smax.f32 %s11001_s30, %s8031_s29  ;;  %s8213_s30 = sshll.u32 %s14380_s19, 3 }
 0x5d8   : > { %s8033_s7 = sadd.f32 0.001, %s8032_s6  ;;  %s236_s8 = scalar_lea.vmem %s14377_s5, %s8213_s30 }
 0x5da   : > { %v8034_v6 = vstv %s8033_s7 }
 0x5db   : > { %10967 = vrsqrt.f32 %v8034_v6 }
 0x5e5   : > { %v10968_v7 = vpop.eup %10967 }
 0x5e6   : > { %9407 = vpush %v10968_v7 }
 0x617   : > { %s9408_s10 = spop %9407 }
 0x618   : > { %v8046_v1 = vstv %s9408_s10 }
 0x619   : > { %v8047_v23 = vmul.f32 %v8046_v1, %v8038_v10  ;;  %v8048_v24 = vmul.f32 %v8046_v1, %v8039_v11  ;;  %v8049_v25 = vmul.f32 %v8046_v1, %v8040_v12  ;;  %v8050_v27 = vmul.f32 %v8046_v1, %v8041_v13  ;;  %v8106_v13 = vld [vmem:[%s14376_s4 + $0x38] sm:$0xff] }
 0x61a   : > { %v8051_v28 = vmul.f32 %v8046_v1, %v8042_v0  ;;  %v8052_v29 = vmul.f32 %v8046_v1, %v8043_v17  ;;  %v8053_v16 = vmul.f32 %v8046_v1, %v8044_v20  ;;  %v8054_v38 = vmul.f32 %v8046_v1, %v8045_v31 }
 0x61b   : > { %v8057_v15 = vmul.f32 %v8056_v9, %v8047_v23  ;;  %v8058_v33 = vmul.f32 %v8056_v9, %v8048_v24  ;;  %v8059_v22 = vmul.f32 %v8056_v9, %v8049_v25  ;;  %v8060_v34 = vmul.f32 %v8056_v9, %v8050_v27 }
 0x61c   : > { %v8061_v26 = vmul.f32 %v8056_v9, %v8051_v28  ;;  %v8062_v37 = vmul.f32 %v8056_v9, %v8052_v29  ;;  %v8063_v40 = vmul.f32 %v8056_v9, %v8053_v16  ;;  %v8064_v21 = vmul.f32 %v8056_v9, %v8054_v38  ;;  %v8105_v9 = vld [vmem:[%s14376_s4 + $0x30] sm:$0xff] }
 0x61d   : > { %v8067_v35 = vadd.f32 %v8066_v30, %v8057_v15  ;;  %v8068_v36 = vadd.f32 %v8066_v30, %v8058_v33  ;;  %v8069_v32 = vadd.f32 %v8066_v30, %v8059_v22  ;;  %v8070_v39 = vadd.f32 %v8066_v30, %v8060_v34 }
 0x61e   : > { %v8071_v41 = vadd.f32 %v8066_v30, %v8061_v26  ;;  %v8072_v47 = vadd.f32 %v8066_v30, %v8062_v37  ;;  %v8073_v14 = vadd.f32 %v8066_v30, %v8063_v40  ;;  %v8074_v58 = vadd.f32 %v8066_v30, %v8064_v21 }
 0x61f   : > { %vm8075_vm1 = vcmp.gt.f32.partialorder %v8067_v35, 0.0  ;;  %vm8076_vm2 = vcmp.gt.f32.partialorder %v8068_v36, 0.0  ;;  %vm8077_vm3 = vcmp.gt.f32.partialorder %v8069_v32, 0.0  ;;  %v8083_v42 = vmul.f32 0.2, %v8067_v35 }
 0x620   : > { %v8084_v43 = vmul.f32 0.2, %v8068_v36  ;;  %v8085_v44 = vmul.f32 0.2, %v8069_v32  ;;  %v8086_v18 = vmul.f32 0.2, %v8070_v39 }
 0x621   : > { %vm8078_vm4 = vcmp.gt.f32.partialorder %v8070_v39, 0.0  ;;  %v8091_v50 = vsel %vm8075_vm1, %v8067_v35, %v8083_v42  ;;  %v8087_v45 = vmul.f32 0.2, %v8071_v41  ;;  %vm8079_vm5 = vcmp.gt.f32.partialorder %v8071_v41, 0.0 }
 0x622   : > { %v8092_v51 = vsel %vm8076_vm2, %v8068_v36, %v8084_v43  ;;  %v8093_v54 = vsel %vm8077_vm3, %v8069_v32, %v8085_v44  ;;  %v8107_v48 = vmul.f32 %v8099_v46, %v8091_v50  ;;  %v8088_v59 = vmul.f32 0.2, %v8072_v47 }
 0x623   : > { %v8108_v49 = vmul.f32 %v8100_v19, %v8092_v51  ;;  %v8094_v52 = vsel %vm8078_vm4, %v8070_v39, %v8086_v18  ;;  %vm8080_vm6 = vcmp.gt.f32.partialorder %v8072_v47, 0.0  ;;  %v8109_v62 = vmul.f32 %v8101_v55, %v8093_v54 }
 0x624   : > { %v8089_v56 = vmul.f32 0.2, %v8073_v14  ;;  %v8095_v57 = vsel %vm8079_vm5, %v8071_v41, %v8087_v45  ;;  %vm8081_vm7 = vcmp.gt.f32.partialorder %v8073_v14, 0.0  ;;  %v8110_v3 = vmul.f32 %v8102_v53, %v8094_v52 }
 0x625   : > { %v8115_v63 = vadd.f32 %v8108_v49, %v8107_v48  ;;  %v8090_v61 = vmul.f32 0.2, %v8074_v58  ;;  %v8096_v4 = vsel %vm8080_vm6, %v8072_v47, %v8088_v59  ;;  %vm8082_vm8 = vcmp.gt.f32.partialorder %v8074_v58, 0.0 }
 0x626   : > { %v8111_v6 = vmul.f32 %v8103_v2, %v8095_v57  ;;  %v8097_v8 = vsel %vm8081_vm7, %v8073_v14, %v8089_v56  ;;  %v8112_v10 = vmul.f32 %v8104_v5, %v8096_v4 }
 0x627   : > { %v8116_v60 = vadd.f32 %v8115_v63, %v8109_v62  ;;  %v8098_v12 = vsel %vm8082_vm8, %v8074_v58, %v8090_v61  ;;  %v8113_v0 = vmul.f32 %v8105_v9, %v8097_v8 }
 0x628   : > { %v8114_v17 = vmul.f32 %v8106_v13, %v8098_v12 }
 0x629   : > { %v8117_v7 = vadd.f32 %v8116_v60, %v8110_v3 }
 0x62b   : > { %v8118_v11 = vadd.f32 %v8117_v7, %v8111_v6 }
 0x62d   : > { %v8119_v1 = vadd.f32 %v8118_v11, %v8112_v10 }
 0x62f   : > { %v8120_v20 = vadd.f32 %v8119_v1, %v8113_v0 }
 0x631   : > { %v8121_v23 = vadd.f32 %v8120_v20, %v8114_v17 }
 0x633   : > { %8122 = vadd.xlane.f32.xlu1 %v8121_v23 }
 0x6c0   : > { %v8123_v24 = vpop.xlane.xlu1 %8122 }
 0x6c1   : > { %v8124_v25 = vrot.slane %v8123_v24, 4 }
 0x6c3   : > { %v8125_v27 = vadd.f32 %v8124_v25, %v8123_v24 }
 0x6c5   : > { %v8126_v28 = vrot.slane %v8125_v27, 2 }
 0x6c7   : > { %v8127_v29 = vadd.f32 %v8126_v28, %v8125_v27 }
 0x6c9   : > { %v8128_v16 = vrot.slane %v8127_v29, 1 }
 0x6cb   : > { %v8129_v30 = vadd.f32 %v8128_v16, %v8127_v29 }
 0x6cd   : > { %9409 = vpush %v8129_v30 }
 0x6fe   : > { %s9410_s29 = spop %9409 }
 0x6ff   : > { %v8131_v15 = vstv %s9410_s29 }
 0x700   : > { %v9271_v33 = vmul.f32 -1.442695, %v8131_v15 }
 0x702   : > { %10969 = vpow2.f32 %v9271_v33 }
 0x70c   : > { %v10970_v22 = vpop.eup %10969 }
 0x70d   : > { %v8135_v34 = vadd.f32 1.0, %v10970_v22 }
 0x70f   : > { %10971 = vrcp.f32 %v8135_v34 }
 0x719   : > { %v10972_v31 = vpop.eup %10971 }
 0x71a   : > { %8138 = vst [vmem:[%s236_s8] sm:$0xff] %v10972_v31 }
 0x71b PF: > { %s16_s18 = sadd.s32 1, %s10998_s18  }
 0x71c   : > { %p13_p1 = scmp.ge.s32.totalorder %s16_s18, 4  }
 0x71e   :  { %15 = sbr.rel (!%p13_p1) target bundleno = 1 (0x1), region = 75 }
 0x725   :  { %8158 = vsyncpa [#allocation3], 1 }
 0x726   :  { %8160 = vsyncpa [#allocation3 + $0x1], 1 }

</bundles_post_ra>
